<compile_context>
chip_gen: v7x
topology: tpu7x:2x2x1
jax: 0.10.0
libtpu: 0.0.40
codegen_flags: <defaults>
</compile_context>

<pallas_src>
import math
from functools import partial

import numpy as np
import jax
import jax.numpy as jnp
from jax import lax
from jax.experimental import pallas as pl
from jax.experimental.pallas import tpu as pltpu


_VMEM = pl.BlockSpec(memory_space=pltpu.MemorySpace.VMEM)


# ----------------------------------------------------------------------------
# In-kernel building blocks
# ----------------------------------------------------------------------------
def _bn_lrelu(y, g, b):
    """Training-mode BatchNorm (biased batch stats, eps=1e-5) + LeakyReLU(0.2)."""
    inv_n = 1.0 / y.shape[0]
    s1 = jnp.sum(y, axis=0, keepdims=True)
    s2 = jnp.sum(y * y, axis=0, keepdims=True)
    mean = s1 * inv_n
    var = jnp.maximum(s2 * inv_n - mean * mean, 0.0)   # guard f32 cancellation
    z = (y - mean) * lax.rsqrt(var + 1e-5) * g + b
    return jnp.where(z >= 0.0, z, 0.2 * z)


def _gather_patches(sel, act, batch, n_in, n_out):
    """im2col (4x4 / stride-2 / pad-1) via a hoisted per-image 0/1 selector.

    sel : (16*n_out, n_in) constant selection matrix (kernel input).
    act : (batch*n_in, C) activation, rows ordered (b, spatial).
    Returns (batch*n_out, 16*C) patches, K ordered (kh, kw, c_in).

    One MXU matmul per image; all row slices start at multiples of n_out
    (8-aligned), so there are no relayouts in the slice+concat.
    """
    parts = []
    for b in range(batch):                     # trace-time unroll (B is static)
        g = jnp.dot(sel, act[b * n_in:(b + 1) * n_in, :],
                    preferred_element_type=jnp.float32)     # (16*n_out, C)
        parts.append(jnp.concatenate(
            [g[k * n_out:(k + 1) * n_out, :] for k in range(16)], axis=1))
    return jnp.concatenate(parts, axis=0)      # (batch*n_out, 16*C)


def _vae_fused_kernel(batch,
                      p1_ref, w1_ref, g1_ref, b1_ref,
                      s2_ref, w2_ref, g2_ref, b2_ref,
                      s3_ref, w3_ref,
                      fcw_ref, msk_ref, fold_ref, rsum_ref, bias_ref,
                      out_ref):
    f32 = jnp.float32

    # layer 1: conv1 (pre-im2col'd network input) + BN1 + LeakyReLU(0.2)
    h1 = jnp.dot(p1_ref[...], w1_ref[...], preferred_element_type=f32)
    h1 = _bn_lrelu(h1, g1_ref[...], b1_ref[...])                 # (B*256, 32)

    # layer 2: hoisted-selector im2col + conv2 + BN2 + LeakyReLU(0.2)
    p2 = _gather_patches(s2_ref[...], h1, batch, 256, 64)        # (B*64, 512)
    h2 = jnp.dot(p2, w2_ref[...], preferred_element_type=f32)
    h2 = _bn_lrelu(h2, g2_ref[...], b2_ref[...])                 # (B*64, 64)

    # layer 3: hoisted-selector im2col + conv3 (no BN / activation)
    p3 = _gather_patches(s3_ref[...], h2, batch, 64, 16)         # (B*16, 1024)
    h3 = jnp.dot(p3, w3_ref[...], preferred_element_type=f32)    # (B*16, 128), rows (b, s)

    # flatten(.view(-1,2048)) + fc1 + bias, folded into constant matmuls:
    #   out = R @ ((h3 @ Fwide) * M) @ K + bias
    # Fwide[c, s*10+o] = fc1[c*16+s, o];  M keeps the s'==s terms;
    # K folds the 16 s-groups of lanes to 10; R sums the 16 rows of each image.
    y = jnp.dot(h3, fcw_ref[...], preferred_element_type=f32)    # (B*16, 160)
    d = y * msk_ref[...]
    z = jnp.dot(d, fold_ref[...], preferred_element_type=f32)    # (B*16, 10)
    out_ref[...] = (jnp.dot(rsum_ref[...], z, preferred_element_type=f32)
                    + bias_ref[...])                             # (B, 10)


# ----------------------------------------------------------------------------
# XLA-side glue (input-layer im2col) + one-time parameter / constant prep
# ----------------------------------------------------------------------------
def im2col_input(x_nhwc):
    """im2col for the network INPUT only (4x4 / stride-2 / pad-1)."""
    x = jnp.pad(x_nhwc, ((0, 0), (1, 1), (1, 1), (0, 0)))
    b, h, w, c = x.shape
    oh = (h - 4) // 2 + 1
    ow = (w - 4) // 2 + 1
    cols = [x[:, i:i + 2 * oh:2, j:j + 2 * ow:2, :]
            for i in range(4) for j in range(4)]
    # rows ordered (b, oh, ow); K ordered (kh, kw, c_in)
    return jnp.stack(cols, axis=3).reshape(b * oh * ow, 16 * c)


def _reshape_weight(w_oihw):
    # (C_out, C_in, KH, KW) -> (KH*KW*C_in, C_out), matching the patch K order.
    co, ci, kh, kw = w_oihw.shape
    return jnp.transpose(w_oihw, (2, 3, 1, 0)).reshape(kh * kw * ci, co)


def _build_selector(ih, iw):
    """Per-image 0/1 selector for a 4x4 / stride-2 / pad-1 im2col.

    Shape (16 * (ih//2)*(iw//2), ih*iw); row (k, oh, ow) selects source pixel
    (2*oh + ki - 1, 2*ow + kj - 1) or is all-zero (zero padding)."""
    qh, qw = ih // 2, iw // 2
    s = np.zeros((16 * qh * qw, ih * iw), np.float32)
    for ki in range(4):
        for kj in range(4):
            k = ki * 4 + kj
            for oh in range(qh):
                sh = 2 * oh + ki - 1
                if sh < 0 or sh >= ih:
                    continue
                for ow in range(qw):
                    sw = 2 * ow + kj - 1
                    if sw < 0 or sw >= iw:
                        continue
                    s[k * qh * qw + oh * qw + ow, sh * iw + sw] = 1.0
    return jnp.asarray(s)


def prepare_params(params, batch):
    """One-time parameter re-layout + constant selector build (off hot path)."""
    # fc1 rows are indexed c*16+s (PyTorch NCHW flatten); Fwide[c, s*10+o].
    fcw = params["fc1"].reshape(128, 160)
    msk = jnp.asarray(np.tile(
        np.repeat(np.eye(16, dtype=np.float32), 10, axis=1), (batch, 1)))
    fold = jnp.asarray(np.tile(np.eye(10, dtype=np.float32), (16, 1)))
    rsum = jnp.asarray(np.kron(np.eye(batch, dtype=np.float32),
                               np.ones((1, 16), np.float32)))
    return {
        "w1m": _reshape_weight(params["w1"]),
        "w2m": _reshape_weight(params["w2"]),
        "w3m": _reshape_weight(params["w3"]),
        "g1": params["g1"], "b1": params["b1"],
        "g2": params["g2"], "b2": params["b2"],
        "s2": _build_selector(16, 16),     # (1024, 256)  ~1 MiB
        "s3": _build_selector(8, 8),       # (256, 64)    ~64 KiB
        "fcw": fcw,                        # (128, 160)
        "msk": msk,                        # (B*16, 160)
        "fold": fold,                      # (160, 10)
        "rsum": rsum,                      # (B, B*16)
        "bias": params["bias"],            # (1, 10)
    }


@jax.jit
def vae_forward(x_nchw, prep):
    batch = x_nchw.shape[0]
    x = jnp.transpose(x_nchw, (0, 2, 3, 1))       # NCHW -> NHWC
    p1 = im2col_input(x)                          # (B*256, 48)
    # Gridless single invocation (~2 MiB VMEM).  For large batch, add a
    # leading batch-tile grid marked "parallel" (v7x megacore) with two-stage
    # BN statistics accumulated in scratch.
    return pl.pallas_call(
        partial(_vae_fused_kernel, batch),
        out_shape=jax.ShapeDtypeStruct((batch, 10), jnp.float32),
        in_specs=[_VMEM] * 15,
        out_specs=_VMEM,
    )(p1, prep["w1m"], prep["g1"], prep["b1"],
      prep["s2"], prep["w2m"], prep["g2"], prep["b2"],
      prep["s3"], prep["w3m"],
      prep["fcw"], prep["msk"], prep["fold"], prep["rsum"], prep["bias"])


# ----------------------------------------------------------------------------
# Pure-JAX reference (for self-check)
# ----------------------------------------------------------------------------
def vae_reference(x, params):
    def conv(inp, w):
        return jax.lax.conv_general_dilated(
            inp, w, window_strides=(2, 2), padding=[(1, 1), (1, 1)],
            dimension_numbers=("NCHW", "OIHW", "NCHW"))

    def bn_lrelu(h, g, bvec):
        mean = h.mean(axis=(0, 2, 3), keepdims=True)
        var = jnp.square(h - mean).mean(axis=(0, 2, 3), keepdims=True)
        z = (h - mean) / jnp.sqrt(var + 1e-5)
        z = z * g.reshape(1, -1, 1, 1) + bvec.reshape(1, -1, 1, 1)
        return jnp.where(z >= 0, z, 0.2 * z)

    h1 = bn_lrelu(conv(x, params["w1"]), params["g1"][0], params["b1"][0])
    h2 = bn_lrelu(conv(h1, params["w2"]), params["g2"][0], params["b2"][0])
    h3 = conv(h2, params["w3"]).reshape(x.shape[0], -1)
    return h3 @ params["fc1"] + params["bias"]


# ----------------------------------------------------------------------------
# Deterministic parameter init (shapes & uniform(-stdv, stdv) of the module)
# ----------------------------------------------------------------------------
def init_params(key):
    stdv = 1.0 / math.sqrt(3 * 4 * 4)
    keys = jax.random.split(key, 9)

    def u(k, shape):
        return jax.random.uniform(k, shape, jnp.float32, -stdv, stdv)

    return {
        "w1": u(keys[0], (32, 3, 4, 4)),      # weight1
        "w2": u(keys[1], (64, 32, 4, 4)),     # weight2
        "w3": u(keys[2], (128, 64, 4, 4)),    # weight3
        "g1": u(keys[3], (1, 32)),            # bn1 weight
        "b1": u(keys[4], (1, 32)),            # bn1 bias
        "g2": u(keys[5], (1, 64)),            # bn2 weight
        "b2": u(keys[6], (1, 64)),            # bn2 bias
        "fc1": u(keys[7], (2048, 10)),        # fc1
        "bias": u(keys[8], (1, 10)),          # bias
        # bn3 and lr exist in the module but are unused in forward().
    }


if __name__ == "__main__":
    key = jax.random.PRNGKey(0)
    kx, kp = jax.random.split(key)
    # Spatial 32x32 with 3 input channels is forced by the .view(-1, 2048) flatten.
    x = jax.random.normal(kx, (2, 3, 32, 32), jnp.float32)
    params = init_params(kp)
    prep = prepare_params(params, batch=x.shape[0])

    out = jax.block_until_ready(vae_forward(x, prep))
    ref = jax.block_until_ready(vae_reference(x, params))

    assert out.shape == (2, 10), out.shape
    assert jnp.allclose(out, ref, atol=1e-3, rtol=1e-3), (
        float(jnp.max(jnp.abs(out - ref))))
    print("KERNEL_OK")
</pallas_src>

<mosaic_0001>
module attributes {stable_mosaic.version = 11 : i64} {
  func.func @_vae_fused_kernel(%arg0: memref<512x48xf32, #tpu.memory_space<vmem>>, %arg1: memref<48x32xf32, #tpu.memory_space<vmem>>, %arg2: memref<1x32xf32, #tpu.memory_space<vmem>>, %arg3: memref<1x32xf32, #tpu.memory_space<vmem>>, %arg4: memref<1024x256xf32, #tpu.memory_space<vmem>>, %arg5: memref<512x64xf32, #tpu.memory_space<vmem>>, %arg6: memref<1x64xf32, #tpu.memory_space<vmem>>, %arg7: memref<1x64xf32, #tpu.memory_space<vmem>>, %arg8: memref<256x64xf32, #tpu.memory_space<vmem>>, %arg9: memref<1024x128xf32, #tpu.memory_space<vmem>>, %arg10: memref<128x160xf32, #tpu.memory_space<vmem>>, %arg11: memref<32x160xf32, #tpu.memory_space<vmem>>, %arg12: memref<160x10xf32, #tpu.memory_space<vmem>>, %arg13: memref<2x32xf32, #tpu.memory_space<vmem>>, %arg14: memref<1x10xf32, #tpu.memory_space<vmem>>, %arg15: memref<2x10xf32, #tpu.memory_space<vmem>>) attributes {dimension_semantics = [], scalar_prefetch = 0 : i64, scratch_operands = 0 : i64, tpu.core_type = #tpu.core_type<tc>} {
    %c0 = arith.constant 0 : index
    %c0_0 = arith.constant 0 : index
    %0 = vector.load %arg0[%c0, %c0_0] : memref<512x48xf32, #tpu.memory_space<vmem>>, vector<512x48xf32>
    %c0_1 = arith.constant 0 : index
    %c0_2 = arith.constant 0 : index
    %1 = vector.load %arg1[%c0_1, %c0_2] : memref<48x32xf32, #tpu.memory_space<vmem>>, vector<48x32xf32>
    %cst = arith.constant dense<0.000000e+00> : vector<512x32xf32>
    %2 = tpu.matmul %0, %1, %cst {dimension_numbers = #tpu.dot_dimension_numbers<[1], [0], [0], [1], [0, 0, 1, 1], [], []>} : vector<512x48xf32>, vector<48x32xf32>, vector<512x32xf32> -> vector<512x32xf32>
    %c0_3 = arith.constant 0 : index
    %c0_4 = arith.constant 0 : index
    %3 = vector.load %arg2[%c0_3, %c0_4] : memref<1x32xf32, #tpu.memory_space<vmem>>, vector<1x32xf32>
    %c0_5 = arith.constant 0 : index
    %c0_6 = arith.constant 0 : index
    %4 = vector.load %arg3[%c0_5, %c0_6] : memref<1x32xf32, #tpu.memory_space<vmem>>, vector<1x32xf32>
    %cst_7 = arith.constant dense<0.000000e+00> : vector<32xf32>
    %5 = vector.multi_reduction <add>, %2, %cst_7 [0] : vector<512x32xf32> to vector<32xf32>
    %6 = vector.shape_cast %5 : vector<32xf32> to vector<1x32xf32>
    %7 = arith.mulf %2, %2 : vector<512x32xf32>
    %cst_8 = arith.constant dense<0.000000e+00> : vector<32xf32>
    %8 = vector.multi_reduction <add>, %7, %cst_8 [0] : vector<512x32xf32> to vector<32xf32>
    %9 = vector.shape_cast %8 : vector<32xf32> to vector<1x32xf32>
    %cst_9 = arith.constant 0.001953125 : f32
    %10 = vector.broadcast %cst_9 : f32 to vector<1x32xf32>
    %11 = arith.mulf %6, %10 : vector<1x32xf32>
    %cst_10 = arith.constant 0.001953125 : f32
    %12 = vector.broadcast %cst_10 : f32 to vector<1x32xf32>
    %13 = arith.mulf %9, %12 : vector<1x32xf32>
    %14 = arith.mulf %11, %11 : vector<1x32xf32>
    %15 = arith.subf %13, %14 : vector<1x32xf32>
    %cst_11 = arith.constant 0.000000e+00 : f32
    %16 = vector.broadcast %cst_11 : f32 to vector<1x32xf32>
    %17 = arith.maximumf %15, %16 : vector<1x32xf32>
    %18 = vector.broadcast %11 : vector<1x32xf32> to vector<512x32xf32>
    %19 = arith.subf %2, %18 : vector<512x32xf32>
    %cst_12 = arith.constant 9.99999974E-6 : f32
    %20 = vector.broadcast %cst_12 : f32 to vector<1x32xf32>
    %21 = arith.addf %17, %20 : vector<1x32xf32>
    %22 = math.rsqrt %21 : vector<1x32xf32>
    %23 = vector.broadcast %22 : vector<1x32xf32> to vector<512x32xf32>
    %24 = arith.mulf %19, %23 : vector<512x32xf32>
    %25 = vector.broadcast %3 : vector<1x32xf32> to vector<512x32xf32>
    %26 = arith.mulf %24, %25 : vector<512x32xf32>
    %27 = vector.broadcast %4 : vector<1x32xf32> to vector<512x32xf32>
    %28 = arith.addf %26, %27 : vector<512x32xf32>
    %cst_13 = arith.constant 0.000000e+00 : f32
    %29 = vector.broadcast %cst_13 : f32 to vector<512x32xf32>
    %30 = arith.cmpf oge, %28, %29 : vector<512x32xf32>
    %cst_14 = arith.constant 2.000000e-01 : f32
    %31 = vector.broadcast %cst_14 : f32 to vector<512x32xf32>
    %32 = arith.mulf %31, %28 : vector<512x32xf32>
    %33 = arith.select %30, %28, %32 : vector<512x32xi1>, vector<512x32xf32>
    %c0_15 = arith.constant 0 : index
    %c0_16 = arith.constant 0 : index
    %34 = vector.load %arg4[%c0_15, %c0_16] : memref<1024x256xf32, #tpu.memory_space<vmem>>, vector<1024x256xf32>
    %35 = vector.extract_strided_slice %33 {offsets = [0, 0], sizes = [256, 32], strides = [1, 1]} : vector<512x32xf32> to vector<256x32xf32>
    %cst_17 = arith.constant dense<0.000000e+00> : vector<1024x32xf32>
    %36 = tpu.matmul %34, %35, %cst_17 {dimension_numbers = #tpu.dot_dimension_numbers<[1], [0], [0], [1], [0, 0, 1, 1], [], []>} : vector<1024x256xf32>, vector<256x32xf32>, vector<1024x32xf32> -> vector<1024x32xf32>
    %37 = vector.extract_strided_slice %36 {offsets = [0, 0], sizes = [64, 32], strides = [1, 1]} : vector<1024x32xf32> to vector<64x32xf32>
    %38 = vector.extract_strided_slice %36 {offsets = [64, 0], sizes = [64, 32], strides = [1, 1]} : vector<1024x32xf32> to vector<64x32xf32>
    %39 = vector.extract_strided_slice %36 {offsets = [128, 0], sizes = [64, 32], strides = [1, 1]} : vector<1024x32xf32> to vector<64x32xf32>
    %40 = vector.extract_strided_slice %36 {offsets = [192, 0], sizes = [64, 32], strides = [1, 1]} : vector<1024x32xf32> to vector<64x32xf32>
    %41 = vector.extract_strided_slice %36 {offsets = [256, 0], sizes = [64, 32], strides = [1, 1]} : vector<1024x32xf32> to vector<64x32xf32>
    %42 = vector.extract_strided_slice %36 {offsets = [320, 0], sizes = [64, 32], strides = [1, 1]} : vector<1024x32xf32> to vector<64x32xf32>
    %43 = vector.extract_strided_slice %36 {offsets = [384, 0], sizes = [64, 32], strides = [1, 1]} : vector<1024x32xf32> to vector<64x32xf32>
    %44 = vector.extract_strided_slice %36 {offsets = [448, 0], sizes = [64, 32], strides = [1, 1]} : vector<1024x32xf32> to vector<64x32xf32>
    %45 = vector.extract_strided_slice %36 {offsets = [512, 0], sizes = [64, 32], strides = [1, 1]} : vector<1024x32xf32> to vector<64x32xf32>
    %46 = vector.extract_strided_slice %36 {offsets = [576, 0], sizes = [64, 32], strides = [1, 1]} : vector<1024x32xf32> to vector<64x32xf32>
    %47 = vector.extract_strided_slice %36 {offsets = [640, 0], sizes = [64, 32], strides = [1, 1]} : vector<1024x32xf32> to vector<64x32xf32>
    %48 = vector.extract_strided_slice %36 {offsets = [704, 0], sizes = [64, 32], strides = [1, 1]} : vector<1024x32xf32> to vector<64x32xf32>
    %49 = vector.extract_strided_slice %36 {offsets = [768, 0], sizes = [64, 32], strides = [1, 1]} : vector<1024x32xf32> to vector<64x32xf32>
    %50 = vector.extract_strided_slice %36 {offsets = [832, 0], sizes = [64, 32], strides = [1, 1]} : vector<1024x32xf32> to vector<64x32xf32>
    %51 = vector.extract_strided_slice %36 {offsets = [896, 0], sizes = [64, 32], strides = [1, 1]} : vector<1024x32xf32> to vector<64x32xf32>
    %52 = vector.extract_strided_slice %36 {offsets = [960, 0], sizes = [64, 32], strides = [1, 1]} : vector<1024x32xf32> to vector<64x32xf32>
    %53 = tpu.concatenate %37, %38, %39, %40, %41, %42, %43, %44, %45, %46, %47, %48, %49, %50, %51, %52 in 1 : vector<64x32xf32>, vector<64x32xf32>, vector<64x32xf32>, vector<64x32xf32>, vector<64x32xf32>, vector<64x32xf32>, vector<64x32xf32>, vector<64x32xf32>, vector<64x32xf32>, vector<64x32xf32>, vector<64x32xf32>, vector<64x32xf32>, vector<64x32xf32>, vector<64x32xf32>, vector<64x32xf32>, vector<64x32xf32> -> vector<64x512xf32>
    %54 = vector.extract_strided_slice %33 {offsets = [256, 0], sizes = [256, 32], strides = [1, 1]} : vector<512x32xf32> to vector<256x32xf32>
    %cst_18 = arith.constant dense<0.000000e+00> : vector<1024x32xf32>
    %55 = tpu.matmul %34, %54, %cst_18 {dimension_numbers = #tpu.dot_dimension_numbers<[1], [0], [0], [1], [0, 0, 1, 1], [], []>} : vector<1024x256xf32>, vector<256x32xf32>, vector<1024x32xf32> -> vector<1024x32xf32>
    %56 = vector.extract_strided_slice %55 {offsets = [0, 0], sizes = [64, 32], strides = [1, 1]} : vector<1024x32xf32> to vector<64x32xf32>
    %57 = vector.extract_strided_slice %55 {offsets = [64, 0], sizes = [64, 32], strides = [1, 1]} : vector<1024x32xf32> to vector<64x32xf32>
    %58 = vector.extract_strided_slice %55 {offsets = [128, 0], sizes = [64, 32], strides = [1, 1]} : vector<1024x32xf32> to vector<64x32xf32>
    %59 = vector.extract_strided_slice %55 {offsets = [192, 0], sizes = [64, 32], strides = [1, 1]} : vector<1024x32xf32> to vector<64x32xf32>
    %60 = vector.extract_strided_slice %55 {offsets = [256, 0], sizes = [64, 32], strides = [1, 1]} : vector<1024x32xf32> to vector<64x32xf32>
    %61 = vector.extract_strided_slice %55 {offsets = [320, 0], sizes = [64, 32], strides = [1, 1]} : vector<1024x32xf32> to vector<64x32xf32>
    %62 = vector.extract_strided_slice %55 {offsets = [384, 0], sizes = [64, 32], strides = [1, 1]} : vector<1024x32xf32> to vector<64x32xf32>
    %63 = vector.extract_strided_slice %55 {offsets = [448, 0], sizes = [64, 32], strides = [1, 1]} : vector<1024x32xf32> to vector<64x32xf32>
    %64 = vector.extract_strided_slice %55 {offsets = [512, 0], sizes = [64, 32], strides = [1, 1]} : vector<1024x32xf32> to vector<64x32xf32>
    %65 = vector.extract_strided_slice %55 {offsets = [576, 0], sizes = [64, 32], strides = [1, 1]} : vector<1024x32xf32> to vector<64x32xf32>
    %66 = vector.extract_strided_slice %55 {offsets = [640, 0], sizes = [64, 32], strides = [1, 1]} : vector<1024x32xf32> to vector<64x32xf32>
    %67 = vector.extract_strided_slice %55 {offsets = [704, 0], sizes = [64, 32], strides = [1, 1]} : vector<1024x32xf32> to vector<64x32xf32>
    %68 = vector.extract_strided_slice %55 {offsets = [768, 0], sizes = [64, 32], strides = [1, 1]} : vector<1024x32xf32> to vector<64x32xf32>
    %69 = vector.extract_strided_slice %55 {offsets = [832, 0], sizes = [64, 32], strides = [1, 1]} : vector<1024x32xf32> to vector<64x32xf32>
    %70 = vector.extract_strided_slice %55 {offsets = [896, 0], sizes = [64, 32], strides = [1, 1]} : vector<1024x32xf32> to vector<64x32xf32>
    %71 = vector.extract_strided_slice %55 {offsets = [960, 0], sizes = [64, 32], strides = [1, 1]} : vector<1024x32xf32> to vector<64x32xf32>
    %72 = tpu.concatenate %56, %57, %58, %59, %60, %61, %62, %63, %64, %65, %66, %67, %68, %69, %70, %71 in 1 : vector<64x32xf32>, vector<64x32xf32>, vector<64x32xf32>, vector<64x32xf32>, vector<64x32xf32>, vector<64x32xf32>, vector<64x32xf32>, vector<64x32xf32>, vector<64x32xf32>, vector<64x32xf32>, vector<64x32xf32>, vector<64x32xf32>, vector<64x32xf32>, vector<64x32xf32>, vector<64x32xf32>, vector<64x32xf32> -> vector<64x512xf32>
    %73 = tpu.concatenate %53, %72 in 0 : vector<64x512xf32>, vector<64x512xf32> -> vector<128x512xf32>
    %c0_19 = arith.constant 0 : index
    %c0_20 = arith.constant 0 : index
    %74 = vector.load %arg5[%c0_19, %c0_20] : memref<512x64xf32, #tpu.memory_space<vmem>>, vector<512x64xf32>
    %cst_21 = arith.constant dense<0.000000e+00> : vector<128x64xf32>
    %75 = tpu.matmul %73, %74, %cst_21 {dimension_numbers = #tpu.dot_dimension_numbers<[1], [0], [0], [1], [0, 0, 1, 1], [], []>} : vector<128x512xf32>, vector<512x64xf32>, vector<128x64xf32> -> vector<128x64xf32>
    %c0_22 = arith.constant 0 : index
    %c0_23 = arith.constant 0 : index
    %76 = vector.load %arg6[%c0_22, %c0_23] : memref<1x64xf32, #tpu.memory_space<vmem>>, vector<1x64xf32>
    %c0_24 = arith.constant 0 : index
    %c0_25 = arith.constant 0 : index
    %77 = vector.load %arg7[%c0_24, %c0_25] : memref<1x64xf32, #tpu.memory_space<vmem>>, vector<1x64xf32>
    %cst_26 = arith.constant dense<0.000000e+00> : vector<64xf32>
    %78 = vector.multi_reduction <add>, %75, %cst_26 [0] : vector<128x64xf32> to vector<64xf32>
    %79 = vector.shape_cast %78 : vector<64xf32> to vector<1x64xf32>
    %80 = arith.mulf %75, %75 : vector<128x64xf32>
    %cst_27 = arith.constant dense<0.000000e+00> : vector<64xf32>
    %81 = vector.multi_reduction <add>, %80, %cst_27 [0] : vector<128x64xf32> to vector<64xf32>
    %82 = vector.shape_cast %81 : vector<64xf32> to vector<1x64xf32>
    %cst_28 = arith.constant 7.812500e-03 : f32
    %83 = vector.broadcast %cst_28 : f32 to vector<1x64xf32>
    %84 = arith.mulf %79, %83 : vector<1x64xf32>
    %cst_29 = arith.constant 7.812500e-03 : f32
    %85 = vector.broadcast %cst_29 : f32 to vector<1x64xf32>
    %86 = arith.mulf %82, %85 : vector<1x64xf32>
    %87 = arith.mulf %84, %84 : vector<1x64xf32>
    %88 = arith.subf %86, %87 : vector<1x64xf32>
    %cst_30 = arith.constant 0.000000e+00 : f32
    %89 = vector.broadcast %cst_30 : f32 to vector<1x64xf32>
    %90 = arith.maximumf %88, %89 : vector<1x64xf32>
    %91 = vector.broadcast %84 : vector<1x64xf32> to vector<128x64xf32>
    %92 = arith.subf %75, %91 : vector<128x64xf32>
    %cst_31 = arith.constant 9.99999974E-6 : f32
    %93 = vector.broadcast %cst_31 : f32 to vector<1x64xf32>
    %94 = arith.addf %90, %93 : vector<1x64xf32>
    %95 = math.rsqrt %94 : vector<1x64xf32>
    %96 = vector.broadcast %95 : vector<1x64xf32> to vector<128x64xf32>
    %97 = arith.mulf %92, %96 : vector<128x64xf32>
    %98 = vector.broadcast %76 : vector<1x64xf32> to vector<128x64xf32>
    %99 = arith.mulf %97, %98 : vector<128x64xf32>
    %100 = vector.broadcast %77 : vector<1x64xf32> to vector<128x64xf32>
    %101 = arith.addf %99, %100 : vector<128x64xf32>
    %cst_32 = arith.constant 0.000000e+00 : f32
    %102 = vector.broadcast %cst_32 : f32 to vector<128x64xf32>
    %103 = arith.cmpf oge, %101, %102 : vector<128x64xf32>
    %cst_33 = arith.constant 2.000000e-01 : f32
    %104 = vector.broadcast %cst_33 : f32 to vector<128x64xf32>
    %105 = arith.mulf %104, %101 : vector<128x64xf32>
    %106 = arith.select %103, %101, %105 : vector<128x64xi1>, vector<128x64xf32>
    %c0_34 = arith.constant 0 : index
    %c0_35 = arith.constant 0 : index
    %107 = vector.load %arg8[%c0_34, %c0_35] : memref<256x64xf32, #tpu.memory_space<vmem>>, vector<256x64xf32>
    %108 = vector.extract_strided_slice %106 {offsets = [0, 0], sizes = [64, 64], strides = [1, 1]} : vector<128x64xf32> to vector<64x64xf32>
    %cst_36 = arith.constant dense<0.000000e+00> : vector<256x64xf32>
    %109 = tpu.matmul %107, %108, %cst_36 {dimension_numbers = #tpu.dot_dimension_numbers<[1], [0], [0], [1], [0, 0, 1, 1], [], []>} : vector<256x64xf32>, vector<64x64xf32>, vector<256x64xf32> -> vector<256x64xf32>
    %110 = vector.extract_strided_slice %109 {offsets = [0, 0], sizes = [16, 64], strides = [1, 1]} : vector<256x64xf32> to vector<16x64xf32>
    %111 = vector.extract_strided_slice %109 {offsets = [16, 0], sizes = [16, 64], strides = [1, 1]} : vector<256x64xf32> to vector<16x64xf32>
    %112 = vector.extract_strided_slice %109 {offsets = [32, 0], sizes = [16, 64], strides = [1, 1]} : vector<256x64xf32> to vector<16x64xf32>
    %113 = vector.extract_strided_slice %109 {offsets = [48, 0], sizes = [16, 64], strides = [1, 1]} : vector<256x64xf32> to vector<16x64xf32>
    %114 = vector.extract_strided_slice %109 {offsets = [64, 0], sizes = [16, 64], strides = [1, 1]} : vector<256x64xf32> to vector<16x64xf32>
    %115 = vector.extract_strided_slice %109 {offsets = [80, 0], sizes = [16, 64], strides = [1, 1]} : vector<256x64xf32> to vector<16x64xf32>
    %116 = vector.extract_strided_slice %109 {offsets = [96, 0], sizes = [16, 64], strides = [1, 1]} : vector<256x64xf32> to vector<16x64xf32>
    %117 = vector.extract_strided_slice %109 {offsets = [112, 0], sizes = [16, 64], strides = [1, 1]} : vector<256x64xf32> to vector<16x64xf32>
    %118 = vector.extract_strided_slice %109 {offsets = [128, 0], sizes = [16, 64], strides = [1, 1]} : vector<256x64xf32> to vector<16x64xf32>
    %119 = vector.extract_strided_slice %109 {offsets = [144, 0], sizes = [16, 64], strides = [1, 1]} : vector<256x64xf32> to vector<16x64xf32>
    %120 = vector.extract_strided_slice %109 {offsets = [160, 0], sizes = [16, 64], strides = [1, 1]} : vector<256x64xf32> to vector<16x64xf32>
    %121 = vector.extract_strided_slice %109 {offsets = [176, 0], sizes = [16, 64], strides = [1, 1]} : vector<256x64xf32> to vector<16x64xf32>
    %122 = vector.extract_strided_slice %109 {offsets = [192, 0], sizes = [16, 64], strides = [1, 1]} : vector<256x64xf32> to vector<16x64xf32>
    %123 = vector.extract_strided_slice %109 {offsets = [208, 0], sizes = [16, 64], strides = [1, 1]} : vector<256x64xf32> to vector<16x64xf32>
    %124 = vector.extract_strided_slice %109 {offsets = [224, 0], sizes = [16, 64], strides = [1, 1]} : vector<256x64xf32> to vector<16x64xf32>
    %125 = vector.extract_strided_slice %109 {offsets = [240, 0], sizes = [16, 64], strides = [1, 1]} : vector<256x64xf32> to vector<16x64xf32>
    %126 = tpu.concatenate %110, %111, %112, %113, %114, %115, %116, %117, %118, %119, %120, %121, %122, %123, %124, %125 in 1 : vector<16x64xf32>, vector<16x64xf32>, vector<16x64xf32>, vector<16x64xf32>, vector<16x64xf32>, vector<16x64xf32>, vector<16x64xf32>, vector<16x64xf32>, vector<16x64xf32>, vector<16x64xf32>, vector<16x64xf32>, vector<16x64xf32>, vector<16x64xf32>, vector<16x64xf32>, vector<16x64xf32>, vector<16x64xf32> -> vector<16x1024xf32>
    %127 = vector.extract_strided_slice %106 {offsets = [64, 0], sizes = [64, 64], strides = [1, 1]} : vector<128x64xf32> to vector<64x64xf32>
    %cst_37 = arith.constant dense<0.000000e+00> : vector<256x64xf32>
    %128 = tpu.matmul %107, %127, %cst_37 {dimension_numbers = #tpu.dot_dimension_numbers<[1], [0], [0], [1], [0, 0, 1, 1], [], []>} : vector<256x64xf32>, vector<64x64xf32>, vector<256x64xf32> -> vector<256x64xf32>
    %129 = vector.extract_strided_slice %128 {offsets = [0, 0], sizes = [16, 64], strides = [1, 1]} : vector<256x64xf32> to vector<16x64xf32>
    %130 = vector.extract_strided_slice %128 {offsets = [16, 0], sizes = [16, 64], strides = [1, 1]} : vector<256x64xf32> to vector<16x64xf32>
    %131 = vector.extract_strided_slice %128 {offsets = [32, 0], sizes = [16, 64], strides = [1, 1]} : vector<256x64xf32> to vector<16x64xf32>
    %132 = vector.extract_strided_slice %128 {offsets = [48, 0], sizes = [16, 64], strides = [1, 1]} : vector<256x64xf32> to vector<16x64xf32>
    %133 = vector.extract_strided_slice %128 {offsets = [64, 0], sizes = [16, 64], strides = [1, 1]} : vector<256x64xf32> to vector<16x64xf32>
    %134 = vector.extract_strided_slice %128 {offsets = [80, 0], sizes = [16, 64], strides = [1, 1]} : vector<256x64xf32> to vector<16x64xf32>
    %135 = vector.extract_strided_slice %128 {offsets = [96, 0], sizes = [16, 64], strides = [1, 1]} : vector<256x64xf32> to vector<16x64xf32>
    %136 = vector.extract_strided_slice %128 {offsets = [112, 0], sizes = [16, 64], strides = [1, 1]} : vector<256x64xf32> to vector<16x64xf32>
    %137 = vector.extract_strided_slice %128 {offsets = [128, 0], sizes = [16, 64], strides = [1, 1]} : vector<256x64xf32> to vector<16x64xf32>
    %138 = vector.extract_strided_slice %128 {offsets = [144, 0], sizes = [16, 64], strides = [1, 1]} : vector<256x64xf32> to vector<16x64xf32>
    %139 = vector.extract_strided_slice %128 {offsets = [160, 0], sizes = [16, 64], strides = [1, 1]} : vector<256x64xf32> to vector<16x64xf32>
    %140 = vector.extract_strided_slice %128 {offsets = [176, 0], sizes = [16, 64], strides = [1, 1]} : vector<256x64xf32> to vector<16x64xf32>
    %141 = vector.extract_strided_slice %128 {offsets = [192, 0], sizes = [16, 64], strides = [1, 1]} : vector<256x64xf32> to vector<16x64xf32>
    %142 = vector.extract_strided_slice %128 {offsets = [208, 0], sizes = [16, 64], strides = [1, 1]} : vector<256x64xf32> to vector<16x64xf32>
    %143 = vector.extract_strided_slice %128 {offsets = [224, 0], sizes = [16, 64], strides = [1, 1]} : vector<256x64xf32> to vector<16x64xf32>
    %144 = vector.extract_strided_slice %128 {offsets = [240, 0], sizes = [16, 64], strides = [1, 1]} : vector<256x64xf32> to vector<16x64xf32>
    %145 = tpu.concatenate %129, %130, %131, %132, %133, %134, %135, %136, %137, %138, %139, %140, %141, %142, %143, %144 in 1 : vector<16x64xf32>, vector<16x64xf32>, vector<16x64xf32>, vector<16x64xf32>, vector<16x64xf32>, vector<16x64xf32>, vector<16x64xf32>, vector<16x64xf32>, vector<16x64xf32>, vector<16x64xf32>, vector<16x64xf32>, vector<16x64xf32>, vector<16x64xf32>, vector<16x64xf32>, vector<16x64xf32>, vector<16x64xf32> -> vector<16x1024xf32>
    %146 = tpu.concatenate %126, %145 in 0 : vector<16x1024xf32>, vector<16x1024xf32> -> vector<32x1024xf32>
    %c0_38 = arith.constant 0 : index
    %c0_39 = arith.constant 0 : index
    %147 = vector.load %arg9[%c0_38, %c0_39] : memref<1024x128xf32, #tpu.memory_space<vmem>>, vector<1024x128xf32>
    %cst_40 = arith.constant dense<0.000000e+00> : vector<32x128xf32>
    %148 = tpu.matmul %146, %147, %cst_40 {dimension_numbers = #tpu.dot_dimension_numbers<[1], [0], [0], [1], [0, 0, 1, 1], [], []>} : vector<32x1024xf32>, vector<1024x128xf32>, vector<32x128xf32> -> vector<32x128xf32>
    %c0_41 = arith.constant 0 : index
    %c0_42 = arith.constant 0 : index
    %149 = vector.load %arg10[%c0_41, %c0_42] : memref<128x160xf32, #tpu.memory_space<vmem>>, vector<128x160xf32>
    %cst_43 = arith.constant dense<0.000000e+00> : vector<32x160xf32>
    %150 = tpu.matmul %148, %149, %cst_43 {dimension_numbers = #tpu.dot_dimension_numbers<[1], [0], [0], [1], [0, 0, 1, 1], [], []>} : vector<32x128xf32>, vector<128x160xf32>, vector<32x160xf32> -> vector<32x160xf32>
    %c0_44 = arith.constant 0 : index
    %c0_45 = arith.constant 0 : index
    %151 = vector.load %arg11[%c0_44, %c0_45] : memref<32x160xf32, #tpu.memory_space<vmem>>, vector<32x160xf32>
    %152 = arith.mulf %150, %151 : vector<32x160xf32>
    %c0_46 = arith.constant 0 : index
    %c0_47 = arith.constant 0 : index
    %153 = vector.load %arg12[%c0_46, %c0_47] : memref<160x10xf32, #tpu.memory_space<vmem>>, vector<160x10xf32>
    %cst_48 = arith.constant dense<0.000000e+00> : vector<32x10xf32>
    %154 = tpu.matmul %152, %153, %cst_48 {dimension_numbers = #tpu.dot_dimension_numbers<[1], [0], [0], [1], [0, 0, 1, 1], [], []>} : vector<32x160xf32>, vector<160x10xf32>, vector<32x10xf32> -> vector<32x10xf32>
    %c0_49 = arith.constant 0 : index
    %c0_50 = arith.constant 0 : index
    %155 = vector.load %arg13[%c0_49, %c0_50] : memref<2x32xf32, #tpu.memory_space<vmem>>, vector<2x32xf32>
    %cst_51 = arith.constant dense<0.000000e+00> : vector<2x10xf32>
    %156 = tpu.matmul %155, %154, %cst_51 {dimension_numbers = #tpu.dot_dimension_numbers<[1], [0], [0], [1], [0, 0, 1, 1], [], []>} : vector<2x32xf32>, vector<32x10xf32>, vector<2x10xf32> -> vector<2x10xf32>
    %c0_52 = arith.constant 0 : index
    %c0_53 = arith.constant 0 : index
    %157 = vector.load %arg14[%c0_52, %c0_53] : memref<1x10xf32, #tpu.memory_space<vmem>>, vector<1x10xf32>
    %158 = vector.broadcast %157 : vector<1x10xf32> to vector<2x10xf32>
    %159 = arith.addf %156, %158 : vector<2x10xf32>
    %c0_54 = arith.constant 0 : index
    %c0_55 = arith.constant 0 : index
    %160 = vector.load %arg15[%c0_54, %c0_55] : memref<2x10xf32, #tpu.memory_space<vmem>>, vector<2x10xf32>
    tpu.vector_store %arg15[%c0_54, %c0_55], %159 {strides = array<i32>} : memref<2x10xf32, #tpu.memory_space<vmem>>, vector<2x10xf32>,
    return
  }
}

</mosaic_0001>

<bundles_post_ra>
// kernel: vae_forward.1
= control target key start
LH: loop header
LB: loop body
LE: loop exit
PB: predicated region body
PF: predicated region fallthrough
CT: control target
= control target key end

     0   :  { %vm121_vm0 = vcmask 392192   ;;  %s13181_s0 = inlined_call_operand.vmem [shape: f32[512,48], index: 0, kind: input, shape index: {}]   ;;  %s13182_s1 = inlined_call_operand.vmem [shape: f32[48,32], index: 1, kind: input, shape index: {}]   ;;  %s13183_s2 = inlined_call_operand.vmem [shape: f32[1,32], index: 2, kind: input, shape index: {}]   ;;  %s13184_s3 = inlined_call_operand.vmem [shape: f32[1,32], index: 3, kind: input, shape index: {}]   ;;  %s13185_s4 = inlined_call_operand.vmem [shape: f32[1024,256], index: 4, kind: input, shape index: {}]   ;;  %s13186_s5 = inlined_call_operand.vmem [shape: f32[512,64], index: 5, kind: input, shape index: {}]   ;;  %s13187_s6 = inlined_call_operand.vmem [shape: f32[1,64], index: 6, kind: input, shape index: {}]   ;;  %s13188_s7 = inlined_call_operand.vmem [shape: f32[1,64], index: 7, kind: input, shape index: {}]   ;;  %s13189_s8 = inlined_call_operand.vmem [shape: f32[256,64], index: 8, kind: input, shape index: {}]   ;;  %s13190_s9 = inlined_call_operand.vmem [shape: f32[1024,128], index: 9, kind: input, shape index: {}]   ;;  %s13191_s10 = inlined_call_operand.vmem [shape: f32[128,160], index: 10, kind: input, shape index: {}]   ;;  %s13192_s11 = inlined_call_operand.vmem [shape: f32[32,160], index: 11, kind: input, shape index: {}]   ;;  %s13193_s12 = inlined_call_operand.vmem [shape: f32[160,10], index: 12, kind: input, shape index: {}]   ;;  %s13194_s13 = inlined_call_operand.vmem [shape: f32[2,32], index: 13, kind: input, shape index: {}]   ;;  %s13195_s14 = inlined_call_operand.vmem [shape: f32[1,10], index: 14, kind: input, shape index: {}]   ;;  %s13196_s15 = inlined_call_operand.hbm [shape: f32[2,10], index: 15, kind: output, shape index: {}]  }
   0x1   :  { %v115_v0 = vld [vmem:[%s13182_s1] sm:$0xff]  ;;  %v116_v1 = vld [vmem:[%s13182_s1 + $0x8] sm:$0xff]  ;;  %v117_v2 = vld [vmem:[%s13182_s1 + $0x10] sm:$0xff] }
   0x2   :  { %v7137_v3 = vpack.c.bf16 %v116_v1, %v115_v0  ;;  %v118_v4 = vld [vmem:[%s13182_s1 + $0x18] sm:$0xff]  ;;  %v119_v6 = vld [vmem:[%s13182_s1 + $0x20] sm:$0xff]  ;;  %v120_v7 = vld [vmem:[%s13182_s1 + $0x28] sm:$0xff] }
   0x3   :  { %v7141_v5 = vpack.c.bf16 %v118_v4, %v117_v2  ;;  %v51_v8 = vld [vmem:[%s13181_s0] sm:$0xff]  ;;  %v7145_v9 = vpack.c.bf16 %v120_v7, %v119_v6  ;;  %v52_v10 = vld [vmem:[%s13181_s0 + $0x8] sm:$0xff]  ;;  %v53_v12 = vld [vmem:[%s13181_s0 + $0x10] sm:$0xff] }
   0x4   :  { %7138 = vmatprep.subr.bf16.mxu0 %v7137_v3  ;;  %6902 = vmatprep.mubr.msk.f32.mxu0 %vm121_vm0, %v51_v8  ;;  %v83_v11 = vld [vmem:[%s13181_s0 + $0x100] sm:$0xff]  ;;  %v84_v13 = vld [vmem:[%s13181_s0 + $0x108] sm:$0xff]  ;;  %v85_v14 = vld [vmem:[%s13181_s0 + $0x110] sm:$0xff] }
   0x5   :  { %7140 = vmatpush3.bf16.msra.mxu0 %v7137_v3  ;;  %7537 = vmatprep.subr.bf16.mxu1 %v7137_v3  ;;  %v54_v15 = vld [vmem:[%s13181_s0 + $0x18] sm:$0xff]  ;;  %v55_v16 = vld [vmem:[%s13181_s0 + $0x20] sm:$0xff]  ;;  %v56_v19 = vld [vmem:[%s13181_s0 + $0x28] sm:$0xff] }
   0x6   :  { %7142 = vmatprep.subr.bf16.mxu0 %v7141_v5  ;;  %7540 = vmatpush3.bf16.msra.mxu1 %v7137_v3  ;;  %v86_v17 = vld [vmem:[%s13181_s0 + $0x118] sm:$0xff]  ;;  %v87_v18 = vld [vmem:[%s13181_s0 + $0x120] sm:$0xff]  ;;  %v57_v20 = vld [vmem:[%s13181_s0 + $0x30] sm:$0xff] }
   0x7   :  { %7538 = vmatprep.subr.bf16.mxu1 %v7141_v5  ;;  %6950 = vmatprep.mubr.msk.f32.mxu1 %vm121_vm0, %v83_v11  ;;  %v88_v21 = vld [vmem:[%s13181_s0 + $0x128] sm:$0xff]  ;;  %v89_v22 = vld [vmem:[%s13181_s0 + $0x130] sm:$0xff] }
   0x9   :  { %7144 = vmatpush3.bf16.msra.mxu0 %v7141_v5 }
   0xa   :  { %7146 = vmatprep.subr.bf16.mxu0 %v7145_v9  ;;  %7541 = vmatpush3.bf16.msra.mxu1 %v7141_v5 }
   0xb   :  { %7539 = vmatprep.subr.bf16.mxu1 %v7145_v9 }
   0xd   :  { %7148 = vmatpush3.bf16.msra.mxu0 %v7145_v9 }
   0xe   :  { %7542 = vmatpush3.bf16.msra.mxu1 %v7145_v9 }
  0x10   :  { %6903 = vmatmul.mubr.msk.f32.vlgmr.msra.gmra.mrb[0].mxu0 %vm121_vm0, %v52_v10 }
  0x11   :  { %6905 = vmatprep.mubr.msk.f32.mxu0 %vm121_vm0, %v53_v12  ;;  %6951 = vmatmul.mubr.msk.f32.vlgmr.msra.gmra.mrb[0].mxu1 %vm121_vm0, %v84_v13 }
  0x12   :  { %6953 = vmatprep.mubr.msk.f32.mxu1 %vm121_vm0, %v85_v14 }
  0x14   :  { %6906 = vmatmul.mubr.msk.f32.gmra.mrb[2].mxu0 %vm121_vm0, %v54_v15 }
  0x15   :  { %6908 = vmatprep.mubr.msk.f32.mxu0 %vm121_vm0, %v55_v16  ;;  %6954 = vmatmul.mubr.msk.f32.gmra.mrb[2].mxu1 %vm121_vm0, %v86_v17 }
  0x16   :  { %6956 = vmatprep.mubr.msk.f32.mxu1 %vm121_vm0, %v87_v18 }
  0x18   :  { %6909 = vmatmul.mubr.msk.f32.gmra.mrb[4].mxu0 %vm121_vm0, %v56_v19 }
  0x19   :  { %20 = vsyncpa [#allocation3], 0  ;;  %6911 = vmatprep.mubr.msk.f32.mxu0 %vm121_vm0, %v57_v20  ;;  %v58_v23 = vld [vmem:[%s13181_s0 + $0x38] sm:$0xff]  ;;  %6957 = vmatmul.mubr.msk.f32.gmra.mrb[4].mxu1 %vm121_vm0, %v88_v21  ;;  %v59_v24 = vld [vmem:[%s13181_s0 + $0x40] sm:$0xff]  ;;  %vm701_vm1 = vcmask 261120   ;;  %s8155_s22 = smov 32  }
  0x1a   :  { %6959 = vmatprep.mubr.msk.f32.mxu1 %vm121_vm0, %v89_v22  ;;  %v90_v25 = vld [vmem:[%s13181_s0 + $0x138] sm:$0xff]  ;;  %v91_v26 = vld [vmem:[%s13181_s0 + $0x140] sm:$0xff]  ;;  %v60_v27 = vld [vmem:[%s13181_s0 + $0x48] sm:$0xff]  ;;  %s8156_s27 = smov 64   ;;  %s8157_s23 = smov 96  }
  0x1b   :  { %v61_v28 = vld [vmem:[%s13181_s0 + $0x50] sm:$0xff]  ;;  %v92_v29 = vld [vmem:[%s13181_s0 + $0x148] sm:$0xff]  ;;  %v62_v31 = vld [vmem:[%s13181_s0 + $0x58] sm:$0xff] }
  0x1c   :  { %6912 = vmatmul.mubr.msk.f32.gmra.mrb[6].mxu0 %vm121_vm0, %v58_v23  ;;  %v93_v30 = vld [vmem:[%s13181_s0 + $0x150] sm:$0xff]  ;;  %v63_v32 = vld [vmem:[%s13181_s0 + $0x60] sm:$0xff]  ;;  %v94_v33 = vld [vmem:[%s13181_s0 + $0x158] sm:$0xff] }
  0x1d   :  { %6914 = vmatprep.mubr.msk.f32.mxu0 %vm121_vm0, %v59_v24  ;;  %6960 = vmatmul.mubr.msk.f32.gmra.mrb[6].mxu1 %vm121_vm0, %v90_v25  ;;  %v95_v34 = vld [vmem:[%s13181_s0 + $0x160] sm:$0xff]  ;;  %v64_v35 = vld [vmem:[%s13181_s0 + $0x68] sm:$0xff]  ;;  %v65_v36 = vld [vmem:[%s13181_s0 + $0x70] sm:$0xff] }
  0x1e   :  { %6962 = vmatprep.mubr.msk.f32.mxu1 %vm121_vm0, %v91_v26  ;;  %v96_v37 = vld [vmem:[%s13181_s0 + $0x168] sm:$0xff]  ;;  %v97_v38 = vld [vmem:[%s13181_s0 + $0x170] sm:$0xff]  ;;  %v66_v39 = vld [vmem:[%s13181_s0 + $0x78] sm:$0xff] }
  0x1f   :  { %v67_v40 = vld [vmem:[%s13181_s0 + $0x80] sm:$0xff]  ;;  %v98_v41 = vld [vmem:[%s13181_s0 + $0x178] sm:$0xff]  ;;  %v68_v43 = vld [vmem:[%s13181_s0 + $0x88] sm:$0xff] }
  0x20   :  { %6915 = vmatmul.mubr.msk.f32.gmra.mrb[8].mxu0 %vm121_vm0, %v60_v27  ;;  %v99_v42 = vld [vmem:[%s13181_s0 + $0x180] sm:$0xff]  ;;  %v69_v44 = vld [vmem:[%s13181_s0 + $0x90] sm:$0xff]  ;;  %v100_v45 = vld [vmem:[%s13181_s0 + $0x188] sm:$0xff] }
  0x21   :  { %6917 = vmatprep.mubr.msk.f32.mxu0 %vm121_vm0, %v61_v28  ;;  %6963 = vmatmul.mubr.msk.f32.gmra.mrb[8].mxu1 %vm121_vm0, %v92_v29  ;;  %v101_v46 = vld [vmem:[%s13181_s0 + $0x190] sm:$0xff]  ;;  %v70_v47 = vld [vmem:[%s13181_s0 + $0x98] sm:$0xff]  ;;  %v71_v48 = vld [vmem:[%s13181_s0 + $0xa0] sm:$0xff] }
  0x22   :  { %6965 = vmatprep.mubr.msk.f32.mxu1 %vm121_vm0, %v93_v30  ;;  %v102_v49 = vld [vmem:[%s13181_s0 + $0x198] sm:$0xff]  ;;  %v103_v50 = vld [vmem:[%s13181_s0 + $0x1a0] sm:$0xff]  ;;  %v72_v51 = vld [vmem:[%s13181_s0 + $0xa8] sm:$0xff] }
  0x23   :  { %v73_v52 = vld [vmem:[%s13181_s0 + $0xb0] sm:$0xff]  ;;  %v104_v53 = vld [vmem:[%s13181_s0 + $0x1a8] sm:$0xff]  ;;  %v74_v55 = vld [vmem:[%s13181_s0 + $0xb8] sm:$0xff] }
  0x24   :  { %6918 = vmatmul.mubr.msk.f32.gmra.mrb[10].mxu0 %vm121_vm0, %v62_v31  ;;  %v105_v54 = vld [vmem:[%s13181_s0 + $0x1b0] sm:$0xff]  ;;  %v75_v56 = vld [vmem:[%s13181_s0 + $0xc0] sm:$0xff]  ;;  %v106_v57 = vld [vmem:[%s13181_s0 + $0x1b8] sm:$0xff] }
  0x25   :  { %6920 = vmatprep.mubr.msk.f32.mxu0 %vm121_vm0, %v63_v32  ;;  %6966 = vmatmul.mubr.msk.f32.gmra.mrb[10].mxu1 %vm121_vm0, %v94_v33  ;;  %v107_v58 = vld [vmem:[%s13181_s0 + $0x1c0] sm:$0xff]  ;;  %v76_v59 = vld [vmem:[%s13181_s0 + $0xc8] sm:$0xff]  ;;  %v77_v60 = vld [vmem:[%s13181_s0 + $0xd0] sm:$0xff] }
  0x26   :  { %6968 = vmatprep.mubr.msk.f32.mxu1 %vm121_vm0, %v95_v34  ;;  %v108_v61 = vld [vmem:[%s13181_s0 + $0x1c8] sm:$0xff]  ;;  %v109_v62 = vld [vmem:[%s13181_s0 + $0x1d0] sm:$0xff]  ;;  %v78_v63 = vld [vmem:[%s13181_s0 + $0xd8] sm:$0xff] }
  0x27   :  { %v79_v0 = vld [vmem:[%s13181_s0 + $0xe0] sm:$0xff]  ;;  %v110_v1 = vld [vmem:[%s13181_s0 + $0x1d8] sm:$0xff]  ;;  %v80_v3 = vld [vmem:[%s13181_s0 + $0xe8] sm:$0xff] }
  0x28   :  { %6921 = vmatmul.mubr.msk.f32.gmra.mrb[12].mxu0 %vm121_vm0, %v64_v35  ;;  %v111_v2 = vld [vmem:[%s13181_s0 + $0x1e0] sm:$0xff]  ;;  %v81_v4 = vld [vmem:[%s13181_s0 + $0xf0] sm:$0xff]  ;;  %v112_v5 = vld [vmem:[%s13181_s0 + $0x1e8] sm:$0xff] }
  0x29   :  { %6923 = vmatprep.mubr.msk.f32.mxu0 %vm121_vm0, %v65_v36  ;;  %6969 = vmatmul.mubr.msk.f32.gmra.mrb[12].mxu1 %vm121_vm0, %v96_v37  ;;  %v113_v6 = vld [vmem:[%s13181_s0 + $0x1f0] sm:$0xff]  ;;  %v82_v7 = vld [vmem:[%s13181_s0 + $0xf8] sm:$0xff] }
  0x2a   :  { %6971 = vmatprep.mubr.msk.f32.mxu1 %vm121_vm0, %v97_v38  ;;  %v114_v8 = vld [vmem:[%s13181_s0 + $0x1f8] sm:$0xff] }
  0x2c   :  { %6924 = vmatmul.mubr.msk.f32.gmra.mrb[14].mxu0 %vm121_vm0, %v66_v39 }
  0x2d   :  { %6926 = vmatprep.mubr.msk.f32.mxu0 %vm121_vm0, %v67_v40  ;;  %6972 = vmatmul.mubr.msk.f32.gmra.mrb[14].mxu1 %vm121_vm0, %v98_v41 }
  0x2e   :  { %6974 = vmatprep.mubr.msk.f32.mxu1 %vm121_vm0, %v99_v42 }
  0x30   :  { %6927 = vmatmul.mubr.msk.f32.gmra.mrb[16].mxu0 %vm121_vm0, %v68_v43 }
  0x31   :  { %6929 = vmatprep.mubr.msk.f32.mxu0 %vm121_vm0, %v69_v44  ;;  %6975 = vmatmul.mubr.msk.f32.gmra.mrb[16].mxu1 %vm121_vm0, %v100_v45 }
  0x32   :  { %6977 = vmatprep.mubr.msk.f32.mxu1 %vm121_vm0, %v101_v46 }
  0x34   :  { %6930 = vmatmul.mubr.msk.f32.gmra.mrb[18].mxu0 %vm121_vm0, %v70_v47 }
  0x35   :  { %6932 = vmatprep.mubr.msk.f32.mxu0 %vm121_vm0, %v71_v48  ;;  %6978 = vmatmul.mubr.msk.f32.gmra.mrb[18].mxu1 %vm121_vm0, %v102_v49 }
  0x36   :  { %6980 = vmatprep.mubr.msk.f32.mxu1 %vm121_vm0, %v103_v50 }
  0x38   :  { %6933 = vmatmul.mubr.msk.f32.gmra.mrb[20].mxu0 %vm121_vm0, %v72_v51 }
  0x39   :  { %6935 = vmatprep.mubr.msk.f32.mxu0 %vm121_vm0, %v73_v52  ;;  %6981 = vmatmul.mubr.msk.f32.gmra.mrb[20].mxu1 %vm121_vm0, %v104_v53 }
  0x3a   :  { %6983 = vmatprep.mubr.msk.f32.mxu1 %vm121_vm0, %v105_v54 }
  0x3c   :  { %6936 = vmatmul.mubr.msk.f32.gmra.mrb[22].mxu0 %vm121_vm0, %v74_v55 }
  0x3d   :  { %6938 = vmatprep.mubr.msk.f32.mxu0 %vm121_vm0, %v75_v56  ;;  %6984 = vmatmul.mubr.msk.f32.gmra.mrb[22].mxu1 %vm121_vm0, %v106_v57 }
  0x3e   :  { %6986 = vmatprep.mubr.msk.f32.mxu1 %vm121_vm0, %v107_v58 }
  0x40   :  { %6939 = vmatmul.mubr.msk.f32.gmra.mrb[24].mxu0 %vm121_vm0, %v76_v59 }
  0x41   :  { %6941 = vmatprep.mubr.msk.f32.mxu0 %vm121_vm0, %v77_v60  ;;  %6987 = vmatmul.mubr.msk.f32.gmra.mrb[24].mxu1 %vm121_vm0, %v108_v61 }
  0x42   :  { %6989 = vmatprep.mubr.msk.f32.mxu1 %vm121_vm0, %v109_v62 }
  0x44   :  { %6942 = vmatmul.mubr.msk.f32.gmra.mrb[26].mxu0 %vm121_vm0, %v78_v63 }
  0x45   :  { %6944 = vmatprep.mubr.msk.f32.mxu0 %vm121_vm0, %v79_v0  ;;  %6990 = vmatmul.mubr.msk.f32.gmra.mrb[26].mxu1 %vm121_vm0, %v110_v1 }
  0x46   :  { %6992 = vmatprep.mubr.msk.f32.mxu1 %vm121_vm0, %v111_v2 }
  0x48   :  { %6945 = vmatmul.mubr.msk.f32.gmra.mrb[28].mxu0 %vm121_vm0, %v80_v3 }
  0x49   :  { %6947 = vmatprep.mubr.msk.f32.mxu0 %vm121_vm0, %v81_v4  ;;  %6993 = vmatmul.mubr.msk.f32.gmra.mrb[28].mxu1 %vm121_vm0, %v112_v5 }
  0x4a   :  { %6995 = vmatprep.mubr.msk.f32.mxu1 %vm121_vm0, %v113_v6 }
  0x4c   :  { %6948 = vmatmul.mubr.msk.f32.gmra.mrb[30].mxu0 %vm121_vm0, %v82_v7 }
  0x4d   :  { %6996 = vmatmul.mubr.msk.f32.gmra.mrb[30].mxu1 %vm121_vm0, %v114_v8 }
  0xe3   :  { %v8515_v9 = vpop.f32.mrb[0].mxu0 }
  0xe4   :  { %v703_v10 = vsel %vm701_vm1, %v8515_v9, 0.0  ;;  %v836_v11 = vmul.f32 %v8515_v9, %v8515_v9  ;;  %v8521_v12 = vpop.f32.mrb[1].mxu0  ;;  %v8523_v13 = vpop.f32.mrb[0].mxu1 }
  0xe5   :  { %v702_v14 = vsel %vm701_vm1, %v8521_v12, 0.0  ;;  %v835_v15 = vmul.f32 %v8521_v12, %v8521_v12  ;;  %v8529_v16 = vpop.f32.mrb[1].mxu1 }
  0xe6   :  { %v900_v17 = vsel %vm701_vm1, %v836_v11, 0.0  ;;  %v704_v18 = vadd.f32 %v703_v10, %v702_v14 }
  0xe7   :  { %v899_v19 = vsel %vm701_vm1, %v835_v15, 0.0  ;;  %v8533_v20 = vpop.f32.mrb[2].mxu0 }
  0xe8   :  { %v901_v21 = vadd.f32 %v900_v17, %v899_v19  ;;  %v8535_v22 = vpop.f32.mrb[3].mxu0  ;;  %v8537_v23 = vpop.f32.mrb[2].mxu1  ;;  %v838_v24 = vmul.f32 %v8533_v20, %v8533_v20  ;;  %v707_v29 = vsel %vm701_vm1, %v8533_v20, 0.0 }
  0xe9   :  { %v705_v25 = vsel %vm701_vm1, %v8535_v22, 0.0  ;;  %v837_v26 = vmul.f32 %v8535_v22, %v8535_v22  ;;  %v8545_v27 = vpop.f32.mrb[3].mxu1 }
  0xea   :  { %v706_v28 = vadd.f32 %v705_v25, %v704_v18  ;;  %v904_v36 = vsel %vm701_vm1, %v838_v24, 0.0 }
  0xeb   :  { %v902_v30 = vsel %vm701_vm1, %v837_v26, 0.0  ;;  %v8550_v31 = vpop.f32.mrb[4].mxu0 }
  0xec   :  { %v708_v32 = vadd.f32 %v707_v29, %v706_v28  ;;  %v903_v33 = vadd.f32 %v902_v30, %v901_v21  ;;  %v8552_v34 = vpop.f32.mrb[5].mxu0  ;;  %v8554_v35 = vpop.f32.mrb[4].mxu1  ;;  %v840_v37 = vmul.f32 %v8550_v31, %v8550_v31  ;;  %v711_v43 = vsel %vm701_vm1, %v8550_v31, 0.0 }
  0xed   :  { %v709_v38 = vsel %vm701_vm1, %v8552_v34, 0.0  ;;  %v839_v39 = vmul.f32 %v8552_v34, %v8552_v34  ;;  %v8563_v40 = vpop.f32.mrb[5].mxu1 }
  0xee   :  { %v905_v41 = vadd.f32 %v904_v36, %v903_v33  ;;  %v710_v42 = vadd.f32 %v709_v38, %v708_v32  ;;  %v908_v50 = vsel %vm701_vm1, %v840_v37, 0.0 }
  0xef   :  { %v906_v44 = vsel %vm701_vm1, %v839_v39, 0.0  ;;  %v8568_v45 = vpop.f32.mrb[6].mxu0 }
  0xf0   :  { %v907_v46 = vadd.f32 %v906_v44, %v905_v41  ;;  %v8570_v47 = vpop.f32.mrb[7].mxu0  ;;  %v712_v48 = vadd.f32 %v711_v43, %v710_v42  ;;  %v8572_v49 = vpop.f32.mrb[6].mxu1  ;;  %v842_v51 = vmul.f32 %v8568_v45, %v8568_v45  ;;  %v715_v57 = vsel %vm701_vm1, %v8568_v45, 0.0 }
  0xf1   :  { %v713_v52 = vsel %vm701_vm1, %v8570_v47, 0.0  ;;  %v841_v53 = vmul.f32 %v8570_v47, %v8570_v47  ;;  %v8581_v54 = vpop.f32.mrb[7].mxu1 }
  0xf2   :  { %v714_v55 = vadd.f32 %v713_v52, %v712_v48  ;;  %v909_v56 = vadd.f32 %v908_v50, %v907_v46  ;;  %v912_v0 = vsel %vm701_vm1, %v842_v51, 0.0 }
  0xf3   :  { %v910_v58 = vsel %vm701_vm1, %v841_v53, 0.0  ;;  %v8586_v59 = vpop.f32.mrb[8].mxu0 }
  0xf4   :  { %v911_v60 = vadd.f32 %v910_v58, %v909_v56  ;;  %v8588_v61 = vpop.f32.mrb[9].mxu0  ;;  %v716_v62 = vadd.f32 %v715_v57, %v714_v55  ;;  %v8590_v63 = vpop.f32.mrb[8].mxu1  ;;  %v844_v1 = vmul.f32 %v8586_v59, %v8586_v59  ;;  %v719_v7 = vsel %vm701_vm1, %v8586_v59, 0.0 }
  0xf5   :  { %v717_v2 = vsel %vm701_vm1, %v8588_v61, 0.0  ;;  %v843_v3 = vmul.f32 %v8588_v61, %v8588_v61  ;;  %v8599_v4 = vpop.f32.mrb[9].mxu1 }
  0xf6   :  { %v718_v5 = vadd.f32 %v717_v2, %v716_v62  ;;  %v913_v6 = vadd.f32 %v912_v0, %v911_v60  ;;  %v916_v18 = vsel %vm701_vm1, %v844_v1, 0.0 }
  0xf7   :  { %v914_v8 = vsel %vm701_vm1, %v843_v3, 0.0  ;;  %v8604_v10 = vpop.f32.mrb[10].mxu0 }
  0xf8   :  { %v915_v11 = vadd.f32 %v914_v8, %v913_v6  ;;  %v8606_v14 = vpop.f32.mrb[11].mxu0  ;;  %v720_v15 = vadd.f32 %v719_v7, %v718_v5  ;;  %v8608_v17 = vpop.f32.mrb[10].mxu1  ;;  %v846_v19 = vmul.f32 %v8604_v10, %v8604_v10  ;;  %v723_v29 = vsel %vm701_vm1, %v8604_v10, 0.0 }
  0xf9   :  { %v721_v21 = vsel %vm701_vm1, %v8606_v14, 0.0  ;;  %v845_v24 = vmul.f32 %v8606_v14, %v8606_v14  ;;  %v8617_v25 = vpop.f32.mrb[11].mxu1 }
  0xfa   :  { %v722_v26 = vadd.f32 %v721_v21, %v720_v15  ;;  %v917_v28 = vadd.f32 %v916_v18, %v915_v11  ;;  %v920_v39 = vsel %vm701_vm1, %v846_v19, 0.0 }
  0xfb   :  { %v918_v30 = vsel %vm701_vm1, %v845_v24, 0.0  ;;  %v8622_v32 = vpop.f32.mrb[12].mxu0 }
  0xfc   :  { %v919_v33 = vadd.f32 %v918_v30, %v917_v28  ;;  %v8624_v36 = vpop.f32.mrb[13].mxu0  ;;  %v724_v37 = vadd.f32 %v723_v29, %v722_v26  ;;  %v8626_v38 = vpop.f32.mrb[12].mxu1  ;;  %v848_v41 = vmul.f32 %v8622_v32, %v8622_v32  ;;  %v727_v50 = vsel %vm701_vm1, %v8622_v32, 0.0 }
  0xfd   :  { %v725_v42 = vsel %vm701_vm1, %v8624_v36, 0.0  ;;  %v847_v43 = vmul.f32 %v8624_v36, %v8624_v36  ;;  %v8635_v44 = vpop.f32.mrb[13].mxu1 }
  0xfe   :  { %v726_v46 = vadd.f32 %v725_v42, %v724_v37  ;;  %v921_v48 = vadd.f32 %v920_v39, %v919_v33  ;;  %v924_v58 = vsel %vm701_vm1, %v848_v41, 0.0 }
  0xff   :  { %v922_v51 = vsel %vm701_vm1, %v847_v43, 0.0  ;;  %v8640_v52 = vpop.f32.mrb[14].mxu0 }
 0x100   :  { %13267 = vst [vmem:[#allocation5_spill] sm:$0xff] %v8640_v52  ;;  %v923_v53 = vadd.f32 %v922_v51, %v921_v48  ;;  %v8642_v55 = vpop.f32.mrb[15].mxu0  ;;  %v728_v56 = vadd.f32 %v727_v50, %v726_v46  ;;  %v8644_v57 = vpop.f32.mrb[14].mxu1  ;;  %v850_v60 = vmul.f32 %v8640_v52, %v8640_v52  ;;  %v731_v5 = vsel %vm701_vm1, %v8640_v52, 0.0 }
 0x101   :  { %13268 = vst [vmem:[#allocation6_spill] sm:$0xff] %v8642_v55  ;;  %v729_v62 = vsel %vm701_vm1, %v8642_v55, 0.0  ;;  %v849_v0 = vmul.f32 %v8642_v55, %v8642_v55  ;;  %v8653_v1 = vpop.f32.mrb[15].mxu1  ;;  %v868_v55 = vmul.f32 %v8523_v13, %v8523_v13 }
 0x102   :  { %v730_v2 = vadd.f32 %v729_v62, %v728_v56  ;;  %v925_v3 = vadd.f32 %v924_v58, %v923_v53  ;;  %v928_v19 = vsel %vm701_vm1, %v850_v60, 0.0 }
 0x103   :  { %v926_v6 = vsel %vm701_vm1, %v849_v0, 0.0  ;;  %v8658_v7 = vpop.f32.mrb[16].mxu0 }
 0x104   :  { %13269 = vst [vmem:[#allocation7_spill] sm:$0xff] %v8658_v7  ;;  %v927_v8 = vadd.f32 %v926_v6, %v925_v3  ;;  %v8660_v11 = vpop.f32.mrb[17].mxu0  ;;  %v732_v15 = vadd.f32 %v731_v5, %v730_v2  ;;  %v8662_v18 = vpop.f32.mrb[16].mxu1  ;;  %v852_v21 = vmul.f32 %v8658_v7, %v8658_v7  ;;  %v735_v33 = vsel %vm701_vm1, %v8658_v7, 0.0 }
 0x105   :  { %13270 = vst [vmem:[#allocation8_spill] sm:$0xff] %v8660_v11  ;;  %v733_v24 = vsel %vm701_vm1, %v8660_v11, 0.0  ;;  %v851_v26 = vmul.f32 %v8660_v11, %v8660_v11  ;;  %v8671_v28 = vpop.f32.mrb[17].mxu1  ;;  %v867_v7 = vmul.f32 %v8529_v16, %v8529_v16 }
 0x106   :  { %v734_v29 = vadd.f32 %v733_v24, %v732_v15  ;;  %v929_v30 = vadd.f32 %v928_v19, %v927_v8  ;;  %v932_v48 = vsel %vm701_vm1, %v852_v21, 0.0 }
 0x107   :  { %v930_v37 = vsel %vm701_vm1, %v851_v26, 0.0  ;;  %v8676_v39 = vpop.f32.mrb[18].mxu0 }
 0x108   :  { %13271 = vst [vmem:[#allocation9_spill] sm:$0xff] %v8676_v39  ;;  %v931_v41 = vadd.f32 %v930_v37, %v929_v30  ;;  %v8678_v42 = vpop.f32.mrb[19].mxu0  ;;  %v736_v43 = vadd.f32 %v735_v33, %v734_v29  ;;  %v8680_v46 = vpop.f32.mrb[18].mxu1  ;;  %v854_v50 = vmul.f32 %v8676_v39, %v8676_v39  ;;  %v739_v62 = vsel %vm701_vm1, %v8676_v39, 0.0 }
 0x109   :  { %13272 = vst [vmem:[#allocation10_spill] sm:$0xff] %v8678_v42  ;;  %13273 = vst [vmem:[#allocation11_spill] sm:$0xff] %v8680_v46  ;;  %v737_v51 = vsel %vm701_vm1, %v8678_v42, 0.0  ;;  %v853_v53 = vmul.f32 %v8678_v42, %v8678_v42  ;;  %v8689_v56 = vpop.f32.mrb[19].mxu1 }
 0x10a   :  { %13274 = vst [vmem:[#allocation12_spill] sm:$0xff] %v8689_v56  ;;  %v738_v58 = vadd.f32 %v737_v51, %v736_v43  ;;  %v933_v60 = vadd.f32 %v932_v48, %v931_v41  ;;  %v936_v15 = vsel %vm701_vm1, %v854_v50, 0.0 }
 0x10b   :  { %v934_v0 = vsel %vm701_vm1, %v853_v53, 0.0  ;;  %v8694_v2 = vpop.f32.mrb[20].mxu0 }
 0x10c   :  { %13275 = vst [vmem:[#allocation13_spill] sm:$0xff] %v8694_v2  ;;  %v935_v3 = vadd.f32 %v934_v0, %v933_v60  ;;  %v8696_v5 = vpop.f32.mrb[21].mxu0  ;;  %v740_v6 = vadd.f32 %v739_v62, %v738_v58  ;;  %v8698_v8 = vpop.f32.mrb[20].mxu1  ;;  %v856_v19 = vmul.f32 %v8694_v2, %v8694_v2  ;;  %v743_v33 = vsel %vm701_vm1, %v8694_v2, 0.0 }
 0x10d   :  { %13276 = vst [vmem:[#allocation14_spill] sm:$0xff] %v8696_v5  ;;  %13277 = vst [vmem:[#allocation15_spill] sm:$0xff] %v8698_v8  ;;  %v741_v21 = vsel %vm701_vm1, %v8696_v5, 0.0  ;;  %v855_v24 = vmul.f32 %v8696_v5, %v8696_v5  ;;  %v8707_v26 = vpop.f32.mrb[21].mxu1 }
 0x10e   :  { %13278 = vst [vmem:[#allocation16_spill] sm:$0xff] %v8707_v26  ;;  %v742_v29 = vadd.f32 %v741_v21, %v740_v6  ;;  %v937_v30 = vadd.f32 %v936_v15, %v935_v3  ;;  %v940_v53 = vsel %vm701_vm1, %v856_v19, 0.0 }
 0x10f   :  { %v938_v37 = vsel %vm701_vm1, %v855_v24, 0.0  ;;  %v8712_v41 = vpop.f32.mrb[22].mxu0 }
 0x110   :  { %13279 = vst [vmem:[#allocation17_spill] sm:$0xff] %v8712_v41  ;;  %v939_v43 = vadd.f32 %v938_v37, %v937_v30  ;;  %v8714_v48 = vpop.f32.mrb[23].mxu0  ;;  %v744_v50 = vadd.f32 %v743_v33, %v742_v29  ;;  %v8716_v51 = vpop.f32.mrb[22].mxu1  ;;  %v858_v58 = vmul.f32 %v8712_v41, %v8712_v41  ;;  %v747_v15 = vsel %vm701_vm1, %v8712_v41, 0.0 }
 0x111   :  { %13280 = vst [vmem:[#allocation18_spill] sm:$0xff] %v8714_v48  ;;  %13281 = vst [vmem:[#allocation19_spill] sm:$0xff] %v8716_v51  ;;  %v745_v60 = vsel %vm701_vm1, %v8714_v48, 0.0  ;;  %v857_v62 = vmul.f32 %v8714_v48, %v8714_v48  ;;  %v8725_v0 = vpop.f32.mrb[23].mxu1 }
 0x112   :  { %13282 = vst [vmem:[#allocation20_spill] sm:$0xff] %v8725_v0  ;;  %v746_v3 = vadd.f32 %v745_v60, %v744_v50  ;;  %v941_v6 = vadd.f32 %v940_v53, %v939_v43  ;;  %v944_v37 = vsel %vm701_vm1, %v858_v58, 0.0 }
 0x113   :  { %v942_v21 = vsel %vm701_vm1, %v857_v62, 0.0  ;;  %v8730_v24 = vpop.f32.mrb[24].mxu0 }
 0x114   :  { %13283 = vst [vmem:[#allocation21_spill] sm:$0xff] %v8730_v24  ;;  %v943_v19 = vadd.f32 %v942_v21, %v941_v6  ;;  %v8732_v29 = vpop.f32.mrb[25].mxu0  ;;  %v748_v30 = vadd.f32 %v747_v15, %v746_v3  ;;  %v8734_v33 = vpop.f32.mrb[24].mxu1  ;;  %v860_v48 = vmul.f32 %v8730_v24, %v8730_v24  ;;  %v751_v3 = vsel %vm701_vm1, %v8730_v24, 0.0 }
 0x115   :  { %13284 = vst [vmem:[#allocation22_spill] sm:$0xff] %v8732_v29  ;;  %13285 = vst [vmem:[#allocation23_spill] sm:$0xff] %v8734_v33  ;;  %v749_v43 = vsel %vm701_vm1, %v8732_v29, 0.0  ;;  %v859_v50 = vmul.f32 %v8732_v29, %v8732_v29  ;;  %v8743_v53 = vpop.f32.mrb[25].mxu1 }
 0x116   :  { %13286 = vst [vmem:[#allocation24_spill] sm:$0xff] %v8743_v53  ;;  %v750_v60 = vadd.f32 %v749_v43, %v748_v30  ;;  %v945_v62 = vadd.f32 %v944_v37, %v943_v19  ;;  %v948_v5 = vsel %vm701_vm1, %v860_v48, 0.0 }
 0x117   :  { %v946_v6 = vsel %vm701_vm1, %v859_v50, 0.0  ;;  %v8748_v15 = vpop.f32.mrb[26].mxu0 }
 0x118   :  { %13287 = vst [vmem:[#allocation25_spill] sm:$0xff] %v8748_v15  ;;  %v947_v58 = vadd.f32 %v946_v6, %v945_v62  ;;  %v8750_v21 = vpop.f32.mrb[27].mxu0  ;;  %v752_v41 = vadd.f32 %v751_v3, %v750_v60  ;;  %v8752_v2 = vpop.f32.mrb[26].mxu1  ;;  %v862_v29 = vmul.f32 %v8748_v15, %v8748_v15  ;;  %v755_v60 = vsel %vm701_vm1, %v8748_v15, 0.0 }
 0x119   :  { %13288 = vst [vmem:[#allocation26_spill] sm:$0xff] %v8750_v21  ;;  %13289 = vst [vmem:[#allocation27_spill] sm:$0xff] %v8752_v2  ;;  %v753_v19 = vsel %vm701_vm1, %v8750_v21, 0.0  ;;  %v861_v30 = vmul.f32 %v8750_v21, %v8750_v21  ;;  %v8761_v37 = vpop.f32.mrb[27].mxu1 }
 0x11a   :  { %13290 = vst [vmem:[#allocation28_spill] sm:$0xff] %v8761_v37  ;;  %v754_v43 = vadd.f32 %v753_v19, %v752_v41  ;;  %v949_v50 = vadd.f32 %v948_v5, %v947_v58  ;;  %v952_v42 = vsel %vm701_vm1, %v862_v29, 0.0 }
 0x11b   :  { %v950_v62 = vsel %vm701_vm1, %v861_v30, 0.0  ;;  %v8766_v3 = vpop.f32.mrb[28].mxu0 }
 0x11c   :  { %13291 = vst [vmem:[#allocation29_spill] sm:$0xff] %v8766_v3  ;;  %v951_v48 = vadd.f32 %v950_v62, %v949_v50  ;;  %v8768_v6 = vpop.f32.mrb[29].mxu0  ;;  %v756_v24 = vadd.f32 %v755_v60, %v754_v43  ;;  %v8770_v39 = vpop.f32.mrb[28].mxu1  ;;  %v864_v21 = vmul.f32 %v8766_v3, %v8766_v3  ;;  %v759_v43 = vsel %vm701_vm1, %v8766_v3, 0.0 }
 0x11d   :  { %13292 = vst [vmem:[#allocation30_spill] sm:$0xff] %v8768_v6  ;;  %13293 = vst [vmem:[#allocation31_spill] sm:$0xff] %v8770_v39  ;;  %v757_v5 = vsel %vm701_vm1, %v8768_v6, 0.0  ;;  %v863_v41 = vmul.f32 %v8768_v6, %v8768_v6  ;;  %v8779_v58 = vpop.f32.mrb[29].mxu1 }
 0x11e   :  { %13294 = vst [vmem:[#allocation32_spill] sm:$0xff] %v8779_v58  ;;  %v758_v19 = vadd.f32 %v757_v5, %v756_v24  ;;  %v953_v30 = vadd.f32 %v952_v42, %v951_v48  ;;  %v956_v6 = vsel %vm701_vm1, %v864_v21, 0.0  ;;  %v765_v21 = vsel %vm701_vm1, %v8529_v16, 0.0 }
 0x11f   :  { %v954_v50 = vsel %vm701_vm1, %v863_v41, 0.0  ;;  %v8784_v60 = vpop.f32.mrb[30].mxu0 }
 0x120   :  { %v955_v29 = vadd.f32 %v954_v50, %v953_v30  ;;  %v8786_v62 = vpop.f32.mrb[31].mxu0  ;;  %v760_v15 = vadd.f32 %v759_v43, %v758_v19  ;;  %v8790_v11 = vpop.f32.mrb[30].mxu1  ;;  %v866_v42 = vmul.f32 %v8784_v60, %v8784_v60  ;;  %v763_v30 = vsel %vm701_vm1, %v8784_v60, 0.0 }
 0x121   :  { %13295 = vst [vmem:[#allocation33_spill] sm:$0xff] %v8786_v62  ;;  %13296 = vst [vmem:[#allocation34_spill] sm:$0xff] %v8790_v11  ;;  %v761_v24 = vsel %vm701_vm1, %v8786_v62, 0.0  ;;  %v865_v48 = vmul.f32 %v8786_v62, %v8786_v62  ;;  %v8799_v5 = vpop.f32.mrb[31].mxu1  ;;  %v962_v62 = vsel %vm701_vm1, %v867_v7, 0.0  ;;  %v964_v7 = vsel %vm701_vm1, %v868_v55, 0.0 }
 0x122   :  { %v762_v41 = vadd.f32 %v761_v24, %v760_v15  ;;  %v957_v19 = vadd.f32 %v956_v6, %v955_v29  ;;  %v960_v52 = vsel %vm701_vm1, %v866_v42, 0.0  ;;  %v869_v15 = vmul.f32 %v8545_v27, %v8545_v27 }
 0x123   :  { %v958_v43 = vsel %vm701_vm1, %v865_v48, 0.0  ;;  %v767_v24 = vsel %vm701_vm1, %v8523_v13, 0.0  ;;  %v769_v48 = vsel %vm701_vm1, %v8545_v27, 0.0 }
 0x124   :  { %v959_v50 = vadd.f32 %v958_v43, %v957_v19  ;;  %v764_v3 = vadd.f32 %v763_v30, %v762_v41  ;;  %v13231_v19 = vmov 0.0|0.0   ;;  %v870_v30 = vmul.f32 %v8537_v23, %v8537_v23 }
 0x125   :  { %7149 = vmatprep.subr.bf16.mxu1 %v13231_v19  ;;  %7197 = vmatprep.subr.bf16.mxu0 %v13231_v19  ;;  %v773_v19 = vsel %vm701_vm1, %v8563_v40, 0.0 }
 0x126   :  { %v766_v6 = vadd.f32 %v765_v21, %v764_v3  ;;  %v961_v29 = vadd.f32 %v960_v52, %v959_v50  ;;  %v966_v52 = vsel %vm701_vm1, %v869_v15, 0.0  ;;  %v871_v3 = vmul.f32 %v8563_v40, %v8563_v40 }
 0x127   :  { %v771_v50 = vsel %vm701_vm1, %v8537_v23, 0.0  ;;  %v968_v55 = vsel %vm701_vm1, %v870_v30, 0.0 }
 0x128   :  { %v963_v42 = vadd.f32 %v962_v62, %v961_v29  ;;  %v768_v41 = vadd.f32 %v767_v24, %v766_v6  ;;  %v872_v29 = vmul.f32 %v8554_v35, %v8554_v35  ;;  %v970_v15 = vsel %vm701_vm1, %v871_v3, 0.0 }
 0x129   :  { %v873_v24 = vmul.f32 %v8581_v54, %v8581_v54 }
 0x12a   :  { %v770_v43 = vadd.f32 %v769_v48, %v768_v41  ;;  %v965_v21 = vadd.f32 %v964_v7, %v963_v42  ;;  %v775_v41 = vsel %vm701_vm1, %v8554_v35, 0.0  ;;  %v777_v7 = vsel %vm701_vm1, %v8581_v54, 0.0 }
 0x12b   :  { %v972_v30 = vsel %vm701_vm1, %v872_v29, 0.0  ;;  %v974_v3 = vsel %vm701_vm1, %v873_v24, 0.0 }
 0x12c   :  { %v967_v62 = vadd.f32 %v966_v52, %v965_v21  ;;  %v772_v6 = vadd.f32 %v771_v50, %v770_v43  ;;  %v874_v21 = vmul.f32 %v8572_v49, %v8572_v49  ;;  %v875_v50 = vmul.f32 %v8599_v4, %v8599_v4 }
 0x12e   :  { %v774_v48 = vadd.f32 %v773_v19, %v772_v6  ;;  %v969_v42 = vadd.f32 %v968_v55, %v967_v62  ;;  %v779_v6 = vsel %vm701_vm1, %v8572_v49, 0.0  ;;  %v781_v55 = vsel %vm701_vm1, %v8599_v4, 0.0 }
 0x12f   :  { %v976_v29 = vsel %vm701_vm1, %v874_v21, 0.0  ;;  %v978_v24 = vsel %vm701_vm1, %v875_v50, 0.0 }
 0x130   :  { %v971_v52 = vadd.f32 %v970_v15, %v969_v42  ;;  %v776_v43 = vadd.f32 %v775_v41, %v774_v48  ;;  %v876_v42 = vmul.f32 %v8590_v63, %v8590_v63  ;;  %v877_v41 = vmul.f32 %v8617_v25, %v8617_v25 }
 0x132   :  { %v778_v19 = vadd.f32 %v777_v7, %v776_v43  ;;  %v973_v62 = vadd.f32 %v972_v30, %v971_v52  ;;  %v783_v43 = vsel %vm701_vm1, %v8590_v63, 0.0  ;;  %v785_v30 = vsel %vm701_vm1, %v8617_v25, 0.0 }
 0x133   :  { %v980_v21 = vsel %vm701_vm1, %v876_v42, 0.0  ;;  %v982_v50 = vsel %vm701_vm1, %v877_v41, 0.0 }
 0x134   :  { %v975_v15 = vadd.f32 %v974_v3, %v973_v62  ;;  %v780_v48 = vadd.f32 %v779_v6, %v778_v19  ;;  %v878_v62 = vmul.f32 %v8608_v17, %v8608_v17  ;;  %v879_v6 = vmul.f32 %v8635_v44, %v8635_v44 }
 0x136   :  { %v782_v7 = vadd.f32 %v781_v55, %v780_v48  ;;  %v977_v52 = vadd.f32 %v976_v29, %v975_v15  ;;  %v787_v48 = vsel %vm701_vm1, %v8608_v17, 0.0  ;;  %v789_v29 = vsel %vm701_vm1, %v8635_v44, 0.0 }
 0x137   :  { %v984_v42 = vsel %vm701_vm1, %v878_v62, 0.0  ;;  %v986_v41 = vsel %vm701_vm1, %v879_v6, 0.0 }
 0x138   :  { %v979_v3 = vadd.f32 %v978_v24, %v977_v52  ;;  %v784_v19 = vadd.f32 %v783_v43, %v782_v7  ;;  %v880_v52 = vmul.f32 %v8626_v38, %v8626_v38  ;;  %v881_v43 = vmul.f32 %v8653_v1, %v8653_v1 }
 0x13a   :  { %v786_v55 = vadd.f32 %v785_v30, %v784_v19  ;;  %v981_v15 = vadd.f32 %v980_v21, %v979_v3  ;;  %v791_v19 = vsel %vm701_vm1, %v8626_v38, 0.0  ;;  %v793_v21 = vsel %vm701_vm1, %v8653_v1, 0.0 }
 0x13b   :  { %v988_v62 = vsel %vm701_vm1, %v880_v52, 0.0  ;;  %v990_v6 = vsel %vm701_vm1, %v881_v43, 0.0 }
 0x13c   :  { %v983_v24 = vadd.f32 %v982_v50, %v981_v15  ;;  %v788_v7 = vadd.f32 %v787_v48, %v786_v55  ;;  %v882_v15 = vmul.f32 %v8644_v57, %v8644_v57  ;;  %v883_v48 = vmul.f32 %v8671_v28, %v8671_v28 }
 0x13e   :  { %v790_v30 = vadd.f32 %v789_v29, %v788_v7  ;;  %v985_v3 = vadd.f32 %v984_v42, %v983_v24  ;;  %v795_v7 = vsel %vm701_vm1, %v8644_v57, 0.0  ;;  %v797_v42 = vsel %vm701_vm1, %v8671_v28, 0.0 }
 0x13f   :  { %v992_v52 = vsel %vm701_vm1, %v882_v15, 0.0  ;;  %v994_v43 = vsel %vm701_vm1, %v883_v48, 0.0 }
 0x140   :  { %v987_v50 = vadd.f32 %v986_v41, %v985_v3  ;;  %v792_v55 = vadd.f32 %v791_v19, %v790_v30  ;;  %v884_v3 = vmul.f32 %v8662_v18, %v8662_v18  ;;  %v885_v19 = vmul.f32 %v8689_v56, %v8689_v56 }
 0x142   :  { %v794_v29 = vadd.f32 %v793_v21, %v792_v55  ;;  %v989_v24 = vadd.f32 %v988_v62, %v987_v50  ;;  %v799_v55 = vsel %vm701_vm1, %v8662_v18, 0.0  ;;  %v801_v62 = vsel %vm701_vm1, %v8689_v56, 0.0  ;;  %v9105_v56 = vld [vmem:[%s13183_s2] ss:$0 sm:$0xff] }
 0x143   :  { %v996_v15 = vsel %vm701_vm1, %v884_v3, 0.0  ;;  %v998_v48 = vsel %vm701_vm1, %v885_v19, 0.0 }
 0x144   :  { %v991_v41 = vadd.f32 %v990_v6, %v989_v24  ;;  %v796_v30 = vadd.f32 %v795_v7, %v794_v29  ;;  %v886_v24 = vmul.f32 %v8680_v46, %v8680_v46  ;;  %v887_v7 = vmul.f32 %v8707_v26, %v8707_v26 }
 0x146   :  { %v798_v21 = vadd.f32 %v797_v42, %v796_v30  ;;  %v993_v50 = vadd.f32 %v992_v52, %v991_v41  ;;  %v803_v30 = vsel %vm701_vm1, %v8680_v46, 0.0  ;;  %v805_v52 = vsel %vm701_vm1, %v8707_v26, 0.0 }
 0x147   :  { %v1000_v3 = vsel %vm701_vm1, %v886_v24, 0.0  ;;  %v1002_v19 = vsel %vm701_vm1, %v887_v7, 0.0 }
 0x148   :  { %v995_v6 = vadd.f32 %v994_v43, %v993_v50  ;;  %v800_v29 = vadd.f32 %v799_v55, %v798_v21  ;;  %v888_v50 = vmul.f32 %v8698_v8, %v8698_v8  ;;  %v889_v55 = vmul.f32 %v8725_v0, %v8725_v0 }
 0x14a   :  { %v802_v42 = vadd.f32 %v801_v62, %v800_v29  ;;  %v997_v41 = vadd.f32 %v996_v15, %v995_v6  ;;  %v807_v29 = vsel %vm701_vm1, %v8698_v8, 0.0  ;;  %v809_v15 = vsel %vm701_vm1, %v8725_v0, 0.0 }
 0x14b   :  { %v1004_v24 = vsel %vm701_vm1, %v888_v50, 0.0  ;;  %v1006_v7 = vsel %vm701_vm1, %v889_v55, 0.0 }
 0x14c   :  { %v999_v43 = vadd.f32 %v998_v48, %v997_v41  ;;  %v804_v21 = vadd.f32 %v803_v30, %v802_v42  ;;  %v890_v41 = vmul.f32 %v8716_v51, %v8716_v51  ;;  %v891_v30 = vmul.f32 %v8743_v53, %v8743_v53 }
 0x14e   :  { %v806_v62 = vadd.f32 %v805_v52, %v804_v21  ;;  %v1001_v6 = vadd.f32 %v1000_v3, %v999_v43  ;;  %v811_v21 = vsel %vm701_vm1, %v8716_v51, 0.0  ;;  %v813_v3 = vsel %vm701_vm1, %v8743_v53, 0.0 }
 0x14f   :  { %v1008_v50 = vsel %vm701_vm1, %v890_v41, 0.0  ;;  %v1010_v55 = vsel %vm701_vm1, %v891_v30, 0.0 }
 0x150   :  { %v1003_v48 = vadd.f32 %v1002_v19, %v1001_v6  ;;  %v808_v42 = vadd.f32 %v807_v29, %v806_v62  ;;  %v892_v6 = vmul.f32 %v8734_v33, %v8734_v33  ;;  %v893_v29 = vmul.f32 %v8761_v37, %v8761_v37 }
 0x152   :  { %v810_v52 = vadd.f32 %v809_v15, %v808_v42  ;;  %v1005_v43 = vadd.f32 %v1004_v24, %v1003_v48  ;;  %v815_v42 = vsel %vm701_vm1, %v8734_v33, 0.0  ;;  %v817_v24 = vsel %vm701_vm1, %v8761_v37, 0.0 }
 0x153   :  { %v1012_v41 = vsel %vm701_vm1, %v892_v6, 0.0  ;;  %v1014_v30 = vsel %vm701_vm1, %v893_v29, 0.0 }
 0x154   :  { %v1007_v19 = vadd.f32 %v1006_v7, %v1005_v43  ;;  %v812_v62 = vadd.f32 %v811_v21, %v810_v52  ;;  %v894_v43 = vmul.f32 %v8752_v2, %v8752_v2  ;;  %v895_v21 = vmul.f32 %v8779_v58, %v8779_v58 }
 0x156   :  { %v814_v15 = vadd.f32 %v813_v3, %v812_v62  ;;  %v1009_v48 = vadd.f32 %v1008_v50, %v1007_v19  ;;  %v819_v62 = vsel %vm701_vm1, %v8752_v2, 0.0  ;;  %v821_v50 = vsel %vm701_vm1, %v8779_v58, 0.0 }
 0x157   :  { %v1016_v6 = vsel %vm701_vm1, %v894_v43, 0.0  ;;  %v1018_v29 = vsel %vm701_vm1, %v895_v21, 0.0 }
 0x158   :  { %v1011_v7 = vadd.f32 %v1010_v55, %v1009_v48  ;;  %v816_v52 = vadd.f32 %v815_v42, %v814_v15  ;;  %v896_v48 = vmul.f32 %v8770_v39, %v8770_v39  ;;  %v897_v42 = vmul.f32 %v8799_v5, %v8799_v5 }
 0x15a   :  { %v818_v3 = vadd.f32 %v817_v24, %v816_v52  ;;  %v1013_v19 = vadd.f32 %v1012_v41, %v1011_v7  ;;  %v823_v52 = vsel %vm701_vm1, %v8770_v39, 0.0  ;;  %v825_v41 = vsel %vm701_vm1, %v8799_v5, 0.0 }
 0x15b   :  { %v1020_v43 = vsel %vm701_vm1, %v896_v48, 0.0  ;;  %v1022_v21 = vsel %vm701_vm1, %v897_v42, 0.0 }
 0x15c   :  { %v1015_v55 = vadd.f32 %v1014_v30, %v1013_v19  ;;  %v820_v15 = vadd.f32 %v819_v62, %v818_v3  ;;  %v898_v19 = vmul.f32 %v8790_v11, %v8790_v11 }
 0x15e   :  { %v822_v24 = vadd.f32 %v821_v50, %v820_v15  ;;  %v1017_v7 = vadd.f32 %v1016_v6, %v1015_v55  ;;  %v827_v50 = vsel %vm701_vm1, %v8790_v11, 0.0  ;;  %v1024_v6 = vsel %vm701_vm1, %v898_v19, 0.0 }
 0x160   :  { %v1019_v30 = vadd.f32 %v1018_v29, %v1017_v7  ;;  %v824_v3 = vadd.f32 %v823_v52, %v822_v24 }
 0x162   :  { %v826_v62 = vadd.f32 %v825_v41, %v824_v3  ;;  %v1021_v58 = vadd.f32 %v1020_v43, %v1019_v30 }
 0x164   :  { %v828_v55 = vadd.f32 %v827_v50, %v826_v62  ;;  %v1023_v15 = vadd.f32 %v1022_v21, %v1021_v58  ;;  %v13310_v50 = vld [vmem:[#allocation25_spill] sm:$0xff]  ;;  %v13311_v21 = vld [vmem:[#allocation30_spill] sm:$0xff] }
 0x166   :  { %v829_v39 = vrot.slane %v828_v55, 4  ;;  %v1025_v2 = vadd.f32 %v1024_v6, %v1023_v15  ;;  %v13307_v6 = vld [vmem:[#allocation22_spill] sm:$0xff] }
 0x168   :  { %v830_v29 = vadd.f32 %v829_v39, %v828_v55  ;;  %v1026_v24 = vrot.slane %v1025_v2, 4  ;;  %v13309_v55 = vld [vmem:[#allocation26_spill] sm:$0xff] }
 0x16a   :  { %v831_v7 = vrot.slane %v830_v29, 2  ;;  %v1027_v48 = vadd.f32 %v1026_v24, %v1025_v2  ;;  %v1500_v2 = vld [vmem:[%s13185_s4 + $0x8] sm:$0xff]  ;;  %v13300_v24 = vld [vmem:[#allocation7_spill] sm:$0xff] }
 0x16b   :  { %1819 = vmatprep.mubr.f32.mxu1 %v1500_v2  ;;  %3006 = vmatprep.mubr.f32.mxu0 %v1500_v2  ;;  %v13299_v2 = vld [vmem:[#allocation8_spill] sm:$0xff] }
 0x16c   :  { %v832_v52 = vadd.f32 %v831_v7, %v830_v29  ;;  %v1028_v37 = vrot.slane %v1027_v48, 2  ;;  %v13316_v29 = vld [vmem:[#allocation28_spill] sm:$0xff] }
 0x16e   :  { %v833_v33 = vrot.slane %v832_v52, 1  ;;  %v1029_v53 = vadd.f32 %v1028_v37, %v1027_v48  ;;  %v13312_v37 = vld [vmem:[#allocation29_spill] sm:$0xff] }
 0x170   :  { %v834_v42 = vadd.f32 %v833_v33, %v832_v52  ;;  %v1030_v41 = vrot.slane %v1029_v53, 1  ;;  %v13302_v52 = vld [vmem:[#allocation9_spill] sm:$0xff]  ;;  %v13317_v33 = vld [vmem:[#allocation27_spill] sm:$0xff] }
 0x172   :  { %v1031_v30 = vadd.f32 %v1030_v41, %v1029_v53  ;;  %v8965_v3 = vmul.f32 0.001953125, %v834_v42  ;;  %v13297_v41 = vld [vmem:[#allocation6_spill] sm:$0xff]  ;;  %v13313_v53 = vld [vmem:[#allocation33_spill] sm:$0xff] }
 0x173   :  { %v13303_v42 = vld [vmem:[#allocation14_spill] sm:$0xff] }
 0x174   :  { %v1033_v43 = vmul.f32 0.001953125, %v1031_v30  ;;  %v1034_v58 = vmul.f32 %v8965_v3, %v8965_v3  ;;  %v13314_v30 = vld [vmem:[#allocation24_spill] sm:$0xff]  ;;  %v13320_v46 = vsub.f32 %v8799_v5, %v8965_v3  ;;  %v13321_v8 = vsub.f32 %v8521_v12, %v8965_v3 }
 0x175   :  { %v13322_v19 = vsub.f32 %v8515_v9, %v8965_v3  ;;  %v13323_v11 = vsub.f32 %v8535_v22, %v8965_v3  ;;  %v13326_v5 = vsub.f32 %v8550_v31, %v8965_v3  ;;  %v13330_v31 = vsub.f32 %v8588_v61, %v8965_v3 }
 0x176   :  { %v1035_v62 = vsub.f32 %v1033_v43, %v1034_v58  ;;  %v13298_v43 = vld [vmem:[#allocation5_spill] sm:$0xff]  ;;  %v13315_v58 = vld [vmem:[#allocation23_spill] sm:$0xff] }
 0x178   :  { %v1036_v48 = vmax.f32 %v1035_v62, 0.0  ;;  %v13301_v62 = vld [vmem:[#allocation10_spill] sm:$0xff] }
 0x17a   :  { %v1101_v15 = vadd.f32 1e-05, %v1036_v48  ;;  %v13308_v48 = vld [vmem:[#allocation21_spill] sm:$0xff] }
 0x17c   :  { %8126 = vrsqrt.f32 %v1101_v15  ;;  %v13318_v15 = vld [vmem:[#allocation32_spill] sm:$0xff] }
 0x186   :  { %v9100_v51 = vpop.eup %8126 }
 0x187   :  { %v1165_v26 = vmul.f32 %v9100_v51, %v13320_v46  ;;  %v9115_v0 = vmul.f32 %v9100_v51, %v13321_v8  ;;  %v9121_v7 = vmul.f32 %v9100_v51, %v13322_v19  ;;  %v9127_v39 = vmul.f32 %v9100_v51, %v13323_v11 }
 0x188   :  { %v13324_v46 = vsub.f32 %v8533_v20, %v8965_v3  ;;  %v13325_v8 = vsub.f32 %v8552_v34, %v8965_v3  ;;  %v9145_v22 = vmul.f32 %v9100_v51, %v13326_v5  ;;  %v13327_v11 = vsub.f32 %v8570_v47, %v8965_v3 }
 0x189   :  { %v9154_v19 = vmul.f32 %v9105_v56, %v1165_v26  ;;  %v13329_v34 = vsub.f32 %v8568_v45, %v8965_v3  ;;  %v13331_v47 = vsub.f32 %v8586_v59, %v8965_v3  ;;  %v13332_v26 = vsub.f32 %v8606_v14, %v8965_v3 }
 0x18a   :  { %v9133_v12 = vmul.f32 %v9100_v51, %v13324_v46  ;;  %v9139_v9 = vmul.f32 %v9100_v51, %v13325_v8  ;;  %v9151_v20 = vmul.f32 %v9100_v51, %v13327_v11  ;;  %v9166_v8 = vmul.f32 %v9100_v51, %v13330_v31 }
 0x18b   :  { %13328 = vst [vmem:[#allocation6_spill] sm:$0xff] %v9154_v19  ;;  %v9160_v46 = vmul.f32 %v9100_v51, %v13329_v34  ;;  %v9172_v5 = vmul.f32 %v9100_v51, %v13331_v47  ;;  %v9178_v45 = vmul.f32 %v9100_v51, %v13332_v26  ;;  %v13333_v11 = vsub.f32 %v8604_v10, %v8965_v3 }
 0x18c   :  { %v13334_v34 = vsub.f32 %v8624_v36, %v8965_v3  ;;  %v13335_v31 = vsub.f32 %v8622_v32, %v8965_v3  ;;  %v13336_v47 = vsub.f32 %v13297_v41, %v8965_v3  ;;  %v13337_v26 = vsub.f32 %v13298_v43, %v8965_v3 }
 0x18d   :  { %v9184_v61 = vmul.f32 %v9100_v51, %v13333_v11  ;;  %v13338_v11 = vsub.f32 %v13299_v2, %v8965_v3 }
 0x18e   :  { %v9190_v59 = vmul.f32 %v9100_v51, %v13334_v34  ;;  %v9196_v14 = vmul.f32 %v9100_v51, %v13335_v31  ;;  %v9202_v10 = vmul.f32 %v9100_v51, %v13336_v47  ;;  %v9208_v36 = vmul.f32 %v9100_v51, %v13337_v26 }
 0x18f   :  { %v9214_v32 = vmul.f32 %v9100_v51, %v13338_v11  ;;  %v13339_v34 = vsub.f32 %v13300_v24, %v8965_v3  ;;  %v13340_v31 = vsub.f32 %v13301_v62, %v8965_v3  ;;  %v13341_v47 = vsub.f32 %v13302_v52, %v8965_v3  ;;  %v13344_v11 = vld [vmem:[#allocation13_spill] sm:$0xff] }
 0x190   :  { %v13343_v26 = vsub.f32 %v13303_v42, %v8965_v3 }
 0x191   :  { %v9220_v41 = vmul.f32 %v9100_v51, %v13339_v34  ;;  %v9226_v43 = vmul.f32 %v9100_v51, %v13340_v31  ;;  %v9232_v2 = vmul.f32 %v9100_v51, %v13341_v47  ;;  %v13345_v34 = vsub.f32 %v13344_v11, %v8965_v3  ;;  %v13346_v31 = vld [vmem:[#allocation18_spill] sm:$0xff]  ;;  %v13348_v47 = vld [vmem:[#allocation17_spill] sm:$0xff] }
 0x192   :  { %v9238_v24 = vmul.f32 %v9100_v51, %v13343_v26  ;;  %v13347_v19 = vsub.f32 %v13346_v31, %v8965_v3  ;;  %v13350_v26 = vsub.f32 %v13307_v6, %v8965_v3 }
 0x193   :  { %13342 = vst [vmem:[#allocation5_spill] sm:$0xff] %v9232_v2  ;;  %v9244_v62 = vmul.f32 %v9100_v51, %v13345_v34  ;;  %v13349_v2 = vsub.f32 %v13348_v47, %v8965_v3  ;;  %v13351_v34 = vsub.f32 %v13308_v48, %v8965_v3 }
 0x194   :  { %v9250_v52 = vmul.f32 %v9100_v51, %v13347_v19  ;;  %v9262_v11 = vmul.f32 %v9100_v51, %v13350_v26  ;;  %v13352_v19 = vsub.f32 %v13309_v55, %v8965_v3  ;;  %v13354_v26 = vsub.f32 %v13311_v21, %v8965_v3 }
 0x195   :  { %v9256_v42 = vmul.f32 %v9100_v51, %v13349_v2  ;;  %v9268_v31 = vmul.f32 %v9100_v51, %v13351_v34  ;;  %v13353_v2 = vsub.f32 %v13310_v50, %v8965_v3  ;;  %v13355_v34 = vsub.f32 %v13312_v37, %v8965_v3 }
 0x196   :  { %v9274_v47 = vmul.f32 %v9100_v51, %v13352_v19  ;;  %v9286_v48 = vmul.f32 %v9100_v51, %v13354_v26  ;;  %v13356_v19 = vsub.f32 %v13313_v53, %v8965_v3  ;;  %v13358_v26 = vsub.f32 %v8529_v16, %v8965_v3 }
 0x197   :  { %v9280_v6 = vmul.f32 %v9100_v51, %v13353_v2  ;;  %v9292_v55 = vmul.f32 %v9100_v51, %v13355_v34  ;;  %v13357_v2 = vsub.f32 %v8784_v60, %v8965_v3  ;;  %v13359_v34 = vsub.f32 %v8523_v13, %v8965_v3 }
 0x198   :  { %v9298_v50 = vmul.f32 %v9100_v51, %v13356_v19  ;;  %v9310_v37 = vmul.f32 %v9100_v51, %v13358_v26  ;;  %v13360_v19 = vsub.f32 %v8545_v27, %v8965_v3  ;;  %v13362_v26 = vsub.f32 %v8563_v40, %v8965_v3 }
 0x199   :  { %v9304_v21 = vmul.f32 %v9100_v51, %v13357_v2  ;;  %v9316_v53 = vmul.f32 %v9100_v51, %v13359_v34  ;;  %v13361_v2 = vsub.f32 %v8537_v23, %v8965_v3  ;;  %v13363_v34 = vsub.f32 %v8554_v35, %v8965_v3 }
 0x19a   :  { %v9322_v60 = vmul.f32 %v9100_v51, %v13360_v19  ;;  %v9334_v13 = vmul.f32 %v9100_v51, %v13362_v26  ;;  %v13364_v19 = vsub.f32 %v8581_v54, %v8965_v3  ;;  %v13366_v26 = vsub.f32 %v8599_v4, %v8965_v3 }
 0x19b   :  { %v9328_v16 = vmul.f32 %v9100_v51, %v13361_v2  ;;  %v9340_v27 = vmul.f32 %v9100_v51, %v13363_v34  ;;  %v13365_v2 = vsub.f32 %v8572_v49, %v8965_v3  ;;  %v13367_v34 = vsub.f32 %v8590_v63, %v8965_v3 }
 0x19c   :  { %v9346_v23 = vmul.f32 %v9100_v51, %v13364_v19  ;;  %v9358_v35 = vmul.f32 %v9100_v51, %v13366_v26  ;;  %v13368_v19 = vsub.f32 %v8617_v25, %v8965_v3  ;;  %v13370_v26 = vsub.f32 %v8635_v44, %v8965_v3 }
 0x19d   :  { %v9352_v40 = vmul.f32 %v9100_v51, %v13365_v2  ;;  %v9364_v54 = vmul.f32 %v9100_v51, %v13367_v34  ;;  %v13369_v2 = vsub.f32 %v8608_v17, %v8965_v3  ;;  %v13371_v34 = vsub.f32 %v8626_v38, %v8965_v3 }
 0x19e   :  { %v9370_v49 = vmul.f32 %v9100_v51, %v13368_v19  ;;  %v9382_v63 = vmul.f32 %v9100_v51, %v13370_v26  ;;  %v13372_v19 = vsub.f32 %v8653_v1, %v8965_v3  ;;  %v13376_v26 = vsub.f32 %v8671_v28, %v8965_v3 }
 0x19f   :  { %v9376_v4 = vmul.f32 %v9100_v51, %v13369_v2  ;;  %v9388_v25 = vmul.f32 %v9100_v51, %v13371_v34  ;;  %v13374_v2 = vsub.f32 %v8644_v57, %v8965_v3  ;;  %v13378_v34 = vsub.f32 %v8662_v18, %v8965_v3 }
 0x1a0   :  { %v9394_v17 = vmul.f32 %v9100_v51, %v13372_v19  ;;  %v9406_v38 = vmul.f32 %v9100_v51, %v13376_v26  ;;  %v13380_v19 = vld [vmem:[#allocation12_spill] sm:$0xff] }
 0x1a1   :  { %v9400_v44 = vmul.f32 %v9100_v51, %v13374_v2  ;;  %v9412_v1 = vmul.f32 %v9100_v51, %v13378_v34  ;;  %v13383_v2 = vld [vmem:[#allocation11_spill] sm:$0xff]  ;;  %v13386_v26 = vld [vmem:[#allocation16_spill] sm:$0xff] }
 0x1a2   :  { %13373 = vst [vmem:[#allocation8_spill] sm:$0xff] %v9394_v17  ;;  %13377 = vst [vmem:[#allocation10_spill] sm:$0xff] %v9406_v38  ;;  %v13381_v17 = vsub.f32 %v13380_v19, %v8965_v3  ;;  %v13387_v38 = vsub.f32 %v13386_v26, %v8965_v3  ;;  %v13388_v34 = vld [vmem:[#allocation15_spill] sm:$0xff] }
 0x1a3   :  { %13375 = vst [vmem:[#allocation7_spill] sm:$0xff] %v9400_v44  ;;  %13379 = vst [vmem:[#allocation9_spill] sm:$0xff] %v9412_v1  ;;  %v13384_v44 = vsub.f32 %v13383_v2, %v8965_v3  ;;  %v13389_v1 = vsub.f32 %v13388_v34, %v8965_v3 }
 0x1a4   :  { %v9418_v57 = vmul.f32 %v9100_v51, %v13381_v17  ;;  %v9430_v18 = vmul.f32 %v9100_v51, %v13387_v38  ;;  %v13390_v17 = vld [vmem:[#allocation20_spill] sm:$0xff]  ;;  %v13394_v38 = vsub.f32 %v13314_v30, %v8965_v3 }
 0x1a5   :  { %v9424_v28 = vmul.f32 %v9100_v51, %v13384_v44  ;;  %v9436_v19 = vmul.f32 %v9100_v51, %v13389_v1  ;;  %v13392_v44 = vld [vmem:[#allocation19_spill] sm:$0xff]  ;;  %v13395_v1 = vsub.f32 %v13315_v58, %v8965_v3 }
 0x1a6   :  { %13382 = vst [vmem:[#allocation14_spill] sm:$0xff] %v9418_v57  ;;  %v13391_v57 = vsub.f32 %v13390_v17, %v8965_v3  ;;  %v9454_v34 = vmul.f32 %v9100_v51, %v13394_v38  ;;  %v13400_v38 = vsub.f32 %v13318_v15, %v8965_v3  ;;  %v9498_v15 = vmul.f32 %v9105_v56, %v9121_v7 }
 0x1a7   :  { %13385 = vst [vmem:[#allocation22_spill] sm:$0xff] %v9424_v28  ;;  %v13393_v28 = vsub.f32 %v13392_v44, %v8965_v3  ;;  %v9460_v17 = vmul.f32 %v9100_v51, %v13395_v1  ;;  %v13401_v1 = vld [vmem:[#allocation31_spill] sm:$0xff]  ;;  %v9526_v7 = vmul.f32 %v9105_v56, %v9166_v8  ;;  %v9550_v8 = vmul.f32 %v9105_v56, %v9202_v10 }
 0x1a8   :  { %v9442_v2 = vmul.f32 %v9100_v51, %v13391_v57  ;;  %v13397_v57 = vsub.f32 %v13316_v29, %v8965_v3  ;;  %v9478_v58 = vmul.f32 %v9100_v51, %v13400_v38  ;;  %v9502_v38 = vmul.f32 %v9105_v56, %v9127_v39 }
 0x1a9   :  { %v9448_v26 = vmul.f32 %v9100_v51, %v13393_v28  ;;  %13396 = vst [vmem:[#allocation21_spill] sm:$0xff] %v9460_v17  ;;  %v13399_v28 = vsub.f32 %v13317_v33, %v8965_v3  ;;  %v13402_v17 = vsub.f32 %v13401_v1, %v8965_v3  ;;  %v9522_v39 = vmul.f32 %v9105_v56, %v9160_v46 }
 0x1aa   :  { %v9466_v44 = vmul.f32 %v9100_v51, %v13397_v57  ;;  %v13403_v57 = vld [vmem:[#allocation34_spill] sm:$0xff]  ;;  %v9546_v46 = vmul.f32 %v9105_v56, %v9196_v14  ;;  %v13405_v14 = vld [vmem:[#allocation5_spill] sm:$0xff]  ;;  %v1206_v1 = vmul.f32 %v9105_v56, %v9316_v53  ;;  %v9642_v53 = vmul.f32 %v9105_v56, %v9352_v40 }
 0x1ab   :  { %v9472_v30 = vmul.f32 %v9100_v51, %v13399_v28  ;;  %v9484_v29 = vmul.f32 %v9100_v51, %v13402_v17  ;;  %v9494_v28 = vmul.f32 %v9105_v56, %v9115_v0  ;;  %v9506_v17 = vmul.f32 %v9105_v56, %v9133_v12 }
 0x1ac   :  { %13398 = vst [vmem:[#allocation26_spill] sm:$0xff] %v9466_v44  ;;  %v13404_v44 = vsub.f32 %v13403_v57, %v8965_v3  ;;  %v9514_v0 = vmul.f32 %v9105_v56, %v9145_v22  ;;  %v9518_v3 = vmul.f32 %v9105_v56, %v9151_v20  ;;  %v9530_v12 = vmul.f32 %v9105_v56, %v9172_v5  ;;  %v13415_v57 = vld [vmem:[#allocation7_spill] sm:$0xff] }
 0x1ad   :  { %v9538_v22 = vmul.f32 %v9105_v56, %v9184_v61  ;;  %v9542_v20 = vmul.f32 %v9105_v56, %v9190_v59  ;;  %v9554_v5 = vmul.f32 %v9105_v56, %v9208_v36  ;;  %v9562_v61 = vmul.f32 %v9105_v56, %v9220_v41 }
 0x1ae   :  { %v9490_v33 = vmul.f32 %v9100_v51, %v13404_v44  ;;  %v9510_v51 = vmul.f32 %v9105_v56, %v9139_v9  ;;  %v9534_v9 = vmul.f32 %v9105_v56, %v9178_v45  ;;  %v9558_v45 = vmul.f32 %v9105_v56, %v9214_v32 }
 0x1af   :  { %v9566_v59 = vmul.f32 %v9105_v56, %v9226_v43  ;;  %v9570_v10 = vmul.f32 %v9105_v56, %v13405_v14  ;;  %v9574_v36 = vmul.f32 %v9105_v56, %v9238_v24  ;;  %v9578_v32 = vmul.f32 %v9105_v56, %v9244_v62  ;;  %v13416_v14 = vld [vmem:[#allocation10_spill] sm:$0xff] }
 0x1b0   :  { %v9582_v41 = vmul.f32 %v9105_v56, %v9250_v52  ;;  %v9586_v43 = vmul.f32 %v9105_v56, %v9256_v42  ;;  %v9590_v44 = vmul.f32 %v9105_v56, %v9262_v11  ;;  %v9594_v24 = vmul.f32 %v9105_v56, %v9268_v31 }
 0x1b1   :  { %v9598_v62 = vmul.f32 %v9105_v56, %v9274_v47  ;;  %v9602_v52 = vmul.f32 %v9105_v56, %v9280_v6  ;;  %v9606_v42 = vmul.f32 %v9105_v56, %v9286_v48  ;;  %v9610_v11 = vmul.f32 %v9105_v56, %v9292_v55 }
 0x1b2   :  { %13406 = vst [vmem:[#allocation25_spill] sm:$0xff] %v9590_v44  ;;  %13407 = vst [vmem:[#allocation30_spill] sm:$0xff] %v9594_v24  ;;  %v9614_v31 = vmul.f32 %v9105_v56, %v9298_v50  ;;  %v9618_v47 = vmul.f32 %v9105_v56, %v9304_v21  ;;  %v1205_v6 = vmul.f32 %v9105_v56, %v9310_v37 }
 0x1b3   :  { %13408 = vst [vmem:[#allocation29_spill] sm:$0xff] %v9598_v62  ;;  %13409 = vst [vmem:[#allocation33_spill] sm:$0xff] %v9602_v52  ;;  %v1207_v48 = vmul.f32 %v9105_v56, %v9322_v60  ;;  %v1208_v55 = vmul.f32 %v9105_v56, %v9328_v16  ;;  %v9630_v50 = vmul.f32 %v9105_v56, %v9334_v13  ;;  %v13424_v52 = vld [vmem:[#allocation26_spill] sm:$0xff] }
 0x1b4   :  { %13410 = vst [vmem:[#allocation24_spill] sm:$0xff] %v9606_v42  ;;  %13411 = vst [vmem:[#allocation23_spill] sm:$0xff] %v9610_v11  ;;  %v9634_v21 = vmul.f32 %v9105_v56, %v9340_v27  ;;  %v9638_v37 = vmul.f32 %v9105_v56, %v9346_v23  ;;  %v9646_v60 = vmul.f32 %v9105_v56, %v9358_v35  ;;  %v13414_v35 = vld [vmem:[#allocation8_spill] sm:$0xff]  ;;  %v13419_v11 = vld [vmem:[#allocation22_spill] sm:$0xff] }
 0x1b5   :  { %13412 = vst [vmem:[#allocation28_spill] sm:$0xff] %v9614_v31  ;;  %13413 = vst [vmem:[#allocation27_spill] sm:$0xff] %v9618_v47  ;;  %v9650_v16 = vmul.f32 %v9105_v56, %v9364_v54  ;;  %v9654_v13 = vmul.f32 %v9105_v56, %v9370_v49  ;;  %v9658_v27 = vmul.f32 %v9105_v56, %v9376_v4  ;;  %v13417_v47 = vld [vmem:[#allocation9_spill] sm:$0xff]  ;;  %v13418_v31 = vld [vmem:[#allocation14_spill] sm:$0xff] }
 0x1b6   :  { %v9662_v23 = vmul.f32 %v9105_v56, %v9382_v63  ;;  %v9666_v40 = vmul.f32 %v9105_v56, %v9388_v25  ;;  %v9670_v54 = vmul.f32 %v9105_v56, %v13414_v35  ;;  %v9674_v49 = vmul.f32 %v9105_v56, %v13415_v57  ;;  %v13422_v42 = vld [vmem:[#allocation21_spill] sm:$0xff] }
 0x1b7   :  { %v9678_v4 = vmul.f32 %v9105_v56, %v13416_v14  ;;  %v9682_v63 = vmul.f32 %v9105_v56, %v13417_v47  ;;  %v9686_v25 = vmul.f32 %v9105_v56, %v13418_v31  ;;  %v9690_v35 = vmul.f32 %v9105_v56, %v13419_v11  ;;  %v9707_v31 = vld [vmem:[%s13184_s3] ss:$0 sm:$0xff] }
 0x1b8   :  { %v9694_v57 = vmul.f32 %v9105_v56, %v9430_v18  ;;  %v9698_v14 = vmul.f32 %v9105_v56, %v9436_v19  ;;  %v9702_v47 = vmul.f32 %v9105_v56, %v9442_v2  ;;  %v9711_v11 = vmul.f32 %v9105_v56, %v9448_v26 }
 0x1b9   :  { %v9715_v18 = vmul.f32 %v9105_v56, %v9454_v34  ;;  %v9719_v19 = vmul.f32 %v9105_v56, %v13422_v42  ;;  %v9723_v2 = vmul.f32 %v9105_v56, %v13424_v52  ;;  %v9727_v62 = vmul.f32 %v9105_v56, %v9472_v30 }
 0x1ba   :  { %13420 = vst [vmem:[#allocation32_spill] sm:$0xff] %v9711_v11  ;;  %v9731_v26 = vmul.f32 %v9105_v56, %v9478_v58  ;;  %v9735_v34 = vmul.f32 %v9105_v56, %v9484_v29  ;;  %v9739_v42 = vmul.f32 %v9105_v56, %v9490_v33  ;;  %v1243_v52 = vadd.f32 %v9707_v31, %v9494_v28 }
 0x1bb   :  { %13421 = vst [vmem:[#allocation13_spill] sm:$0xff] %v9715_v18  ;;  %13423 = vst [vmem:[#allocation18_spill] sm:$0xff] %v9719_v19  ;;  %v1275_v30 = vadd.f32 %v9707_v31, %v1205_v6  ;;  %v1245_v58 = vadd.f32 %v9707_v31, %v9502_v38  ;;  %v1246_v29 = vadd.f32 %v9707_v31, %v9506_v17 }
 0x1bc   :  { %13425 = vst [vmem:[#allocation17_spill] sm:$0xff] %v9723_v2  ;;  %13426 = vst [vmem:[#allocation12_spill] sm:$0xff] %v9727_v62  ;;  %v1244_v2 = vadd.f32 %v9707_v31, %v9498_v15  ;;  %v1276_v62 = vadd.f32 %v9707_v31, %v1206_v1  ;;  %v1278_v56 = vadd.f32 %v9707_v31, %v1208_v55  ;;  %vm1307_vm2 = vcmp.ge.f32.partialorder %v1243_v52, 0.0 }
 0x1bd   :  { %13427 = vst [vmem:[#allocation11_spill] sm:$0xff] %v9731_v26  ;;  %13428 = vst [vmem:[#allocation16_spill] sm:$0xff] %v9735_v34  ;;  %v1277_v34 = vadd.f32 %v9707_v31, %v1207_v48  ;;  %v1371_v33 = vmul.f32 0.2, %v1243_v52  ;;  %vm1339_vm4 = vcmp.ge.f32.partialorder %v1275_v30, 0.0  ;;  %vm1309_vm6 = vcmp.ge.f32.partialorder %v1245_v58, 0.0 }
 0x1be   :  { %13429 = vst [vmem:[#allocation15_spill] sm:$0xff] %v9739_v42  ;;  %vm1308_vm3 = vcmp.ge.f32.partialorder %v1244_v2, 0.0  ;;  %v1372_v28 = vmul.f32 0.2, %v1244_v2  ;;  %vm1340_vm5 = vcmp.ge.f32.partialorder %v1276_v62, 0.0  ;;  %vm1310_vm7 = vcmp.ge.f32.partialorder %v1246_v29, 0.0 }
 0x1bf   :  { %v1403_v15 = vmul.f32 0.2, %v1275_v30  ;;  %v1404_v6 = vmul.f32 0.2, %v1276_v62  ;;  %v1435_v42 = vsel %vm1307_vm2, %v1243_v52, %v1371_v33  ;;  %v1373_v17 = vmul.f32 0.2, %v1245_v58 }
 0x1c0   :  { %v1436_v1 = vsel %vm1308_vm3, %v1244_v2, %v1372_v28  ;;  %v1374_v48 = vmul.f32 0.2, %v1246_v29  ;;  %vm1341_vm8 = vcmp.ge.f32.partialorder %v1277_v34, 0.0  ;;  %vm1342_vm9 = vcmp.ge.f32.partialorder %v1278_v56, 0.0 }
 0x1c1   :  { %v7150_v38 = vpack.c.bf16 %v1436_v1, %v1435_v42  ;;  %v1467_v26 = vsel %vm1339_vm4, %v1275_v30, %v1403_v15  ;;  %v1468_v19 = vsel %vm1340_vm5, %v1276_v62, %v1404_v6  ;;  %v1437_v55 = vsel %vm1309_vm6, %v1245_v58, %v1373_v17 }
 0x1c2   :  { %v7198_v18 = vpack.c.bf16 %v1468_v19, %v1467_v26  ;;  %v1405_v24 = vmul.f32 0.2, %v1277_v34  ;;  %v1406_v44 = vmul.f32 0.2, %v1278_v56  ;;  %v1247_v11 = vadd.f32 %v9707_v31, %v9510_v51 }
 0x1c3   :  { %7151 = vmatpush1.bf16.msra.mxu1 %v7150_v38  ;;  %v13430_v52 = vmov 0.0|0.0   ;;  %v1438_v2 = vsel %vm1310_vm7, %v1246_v29, %v1374_v48  ;;  %v1248_v62 = vadd.f32 %v9707_v31, %v9514_v0  ;;  %v1279_v19 = vadd.f32 %v9707_v31, %v9630_v50 }
 0x1c4   :  { %7199 = vmatpush1.bf16.msra.mxu0 %v7198_v18  ;;  %7152 = vmatprep.subr.bf16.mxu1 %v13430_v52  ;;  %v7153_v26 = vpack.c.bf16 %v1438_v2, %v1437_v55  ;;  %v1469_v42 = vsel %vm1341_vm8, %v1277_v34, %v1405_v24  ;;  %v1470_v30 = vsel %vm1342_vm9, %v1278_v56, %v1406_v44  ;;  %vm1311_vm10 = vcmp.ge.f32.partialorder %v1247_v11, 0.0 }
 0x1c5   :  { %7200 = vmatprep.subr.bf16.mxu0 %v13430_v52  ;;  %v7201_v58 = vpack.c.bf16 %v1470_v30, %v1469_v42  ;;  %vm1312_vm11 = vcmp.ge.f32.partialorder %v1248_v62, 0.0  ;;  %v1375_v51 = vmul.f32 0.2, %v1247_v11  ;;  %v1376_v18 = vmul.f32 0.2, %v1248_v62 }
 0x1c6   :  { %v1280_v29 = vadd.f32 %v9707_v31, %v9634_v21  ;;  %vm1343_vm12 = vcmp.ge.f32.partialorder %v1279_v19, 0.0  ;;  %v1407_v33 = vmul.f32 0.2, %v1279_v19  ;;  %v1249_v0 = vadd.f32 %v9707_v31, %v9518_v3 }
 0x1c7   :  { %7154 = vmatpush1.bf16.msra.mxu1 %v7153_v26  ;;  %v1439_v50 = vsel %vm1311_vm10, %v1247_v11, %v1375_v51  ;;  %v1440_v24 = vsel %vm1312_vm11, %v1248_v62, %v1376_v18  ;;  %v1250_v44 = vadd.f32 %v9707_v31, %v9522_v39  ;;  %v1281_v6 = vadd.f32 %v9707_v31, %v9638_v37 }
 0x1c8   :  { %7202 = vmatpush1.bf16.msra.mxu0 %v7201_v58  ;;  %7155 = vmatprep.subr.bf16.mxu1 %v13430_v52  ;;  %v7156_v34 = vpack.c.bf16 %v1440_v24, %v1439_v50  ;;  %vm1344_vm13 = vcmp.ge.f32.partialorder %v1280_v29, 0.0  ;;  %v1408_v56 = vmul.f32 0.2, %v1280_v29  ;;  %v1471_v28 = vsel %vm1343_vm12, %v1279_v19, %v1407_v33 }
 0x1c9   :  { %7203 = vmatprep.subr.bf16.mxu0 %v13430_v52  ;;  %vm1313_vm14 = vcmp.ge.f32.partialorder %v1249_v0, 0.0  ;;  %vm1314_vm15 = vcmp.ge.f32.partialorder %v1250_v44, 0.0  ;;  %v1377_v21 = vmul.f32 0.2, %v1249_v0  ;;  %v1378_v15 = vmul.f32 0.2, %v1250_v44 }
 0x1ca   :  { %v1472_v3 = vsel %vm1344_vm13, %v1280_v29, %v1408_v56  ;;  %v1282_v11 = vadd.f32 %v9707_v31, %v9642_v53  ;;  %v1251_v39 = vadd.f32 %v9707_v31, %v9526_v7  ;;  %v1252_v48 = vadd.f32 %v9707_v31, %v9530_v12 }
 0x1cb   :  { %7157 = vmatpush1.bf16.msra.mxu1 %v7156_v34  ;;  %v7204_v1 = vpack.c.bf16 %v1472_v3, %v1471_v28  ;;  %v1441_v38 = vsel %vm1313_vm14, %v1249_v0, %v1377_v21  ;;  %v1442_v17 = vsel %vm1314_vm15, %v1250_v44, %v1378_v15  ;;  %vm1345_vm0 = vcmp.ge.f32.partialorder %v1281_v6, 0.0 }
 0x1cc   :  { %7158 = vmatprep.subr.bf16.mxu1 %v13430_v52  ;;  %v7159_v55 = vpack.c.bf16 %v1442_v17, %v1441_v38  ;;  %vm1346_vm2 = vcmp.ge.f32.partialorder %v1282_v11, 0.0  ;;  %v1409_v2 = vmul.f32 0.2, %v1281_v6  ;;  %v1410_v37 = vmul.f32 0.2, %v1282_v11 }
 0x1cd   :  { %7205 = vmatpush1.bf16.msra.mxu0 %v7204_v1  ;;  %vm1315_vm3 = vcmp.ge.f32.partialorder %v1251_v39, 0.0  ;;  %vm1316_vm4 = vcmp.ge.f32.partialorder %v1252_v48, 0.0  ;;  %v1379_v53 = vmul.f32 0.2, %v1251_v39  ;;  %v1380_v62 = vmul.f32 0.2, %v1252_v48 }
 0x1ce   :  { %7206 = vmatprep.subr.bf16.mxu0 %v13430_v52  ;;  %v1473_v7 = vsel %vm1345_vm0, %v1281_v6, %v1409_v2  ;;  %v1283_v19 = vadd.f32 %v9707_v31, %v9646_v60  ;;  %v1284_v12 = vadd.f32 %v9707_v31, %v9650_v16  ;;  %v1474_v26 = vsel %vm1346_vm2, %v1282_v11, %v1410_v37 }
 0x1cf   :  { %7160 = vmatpush1.bf16.msra.mxu1 %v7159_v55  ;;  %v1443_v42 = vsel %vm1315_vm3, %v1251_v39, %v1379_v53  ;;  %v1253_v30 = vadd.f32 %v9707_v31, %v9534_v9  ;;  %v1254_v58 = vadd.f32 %v9707_v31, %v9538_v22  ;;  %v7207_v51 = vpack.c.bf16 %v1474_v26, %v1473_v7 }
 0x1d0   :  { %7161 = vmatprep.subr.bf16.mxu1 %v13430_v52  ;;  %v1444_v18 = vsel %vm1316_vm4, %v1252_v48, %v1380_v62  ;;  %vm1347_vm5 = vcmp.ge.f32.partialorder %v1283_v19, 0.0  ;;  %vm1348_vm6 = vcmp.ge.f32.partialorder %v1284_v12, 0.0  ;;  %v1411_v33 = vmul.f32 0.2, %v1283_v19 }
 0x1d1   :  { %v7162_v29 = vpack.c.bf16 %v1444_v18, %v1443_v42  ;;  %v1412_v60 = vmul.f32 0.2, %v1284_v12  ;;  %vm1317_vm7 = vcmp.ge.f32.partialorder %v1253_v30, 0.0  ;;  %7208 = vmatpush1.bf16.msra.mxu0 %v7207_v51  ;;  %vm1318_vm8 = vcmp.ge.f32.partialorder %v1254_v58, 0.0 }
 0x1d2   :  { %v1381_v16 = vmul.f32 0.2, %v1253_v30  ;;  %v1382_v0 = vmul.f32 0.2, %v1254_v58  ;;  %v1285_v50 = vadd.f32 %v9707_v31, %v9654_v13  ;;  %7209 = vmatprep.subr.bf16.mxu0 %v13430_v52  ;;  %v1475_v9 = vsel %vm1347_vm5, %v1283_v19, %v1411_v33 }
 0x1d3   :  { %7163 = vmatpush1.bf16.msra.mxu1 %v7162_v29  ;;  %v1476_v22 = vsel %vm1348_vm6, %v1284_v12, %v1412_v60  ;;  %v1286_v24 = vadd.f32 %v9707_v31, %v9658_v27  ;;  %v1255_v13 = vadd.f32 %v9707_v31, %v9542_v20  ;;  %v1256_v3 = vadd.f32 %v9707_v31, %v9546_v46 }
 0x1d4   :  { %v7210_v44 = vpack.c.bf16 %v1476_v22, %v1475_v9  ;;  %7164 = vmatprep.subr.bf16.mxu1 %v13430_v52  ;;  %v1445_v34 = vsel %vm1317_vm7, %v1253_v30, %v1381_v16  ;;  %v1446_v56 = vsel %vm1318_vm8, %v1254_v58, %v1382_v0  ;;  %vm1349_vm9 = vcmp.ge.f32.partialorder %v1285_v50, 0.0 }
 0x1d5   :  { %v7165_v28 = vpack.c.bf16 %v1446_v56, %v1445_v34  ;;  %vm1350_vm10 = vcmp.ge.f32.partialorder %v1286_v24, 0.0  ;;  %v1413_v21 = vmul.f32 0.2, %v1285_v50  ;;  %v1414_v15 = vmul.f32 0.2, %v1286_v24 }
 0x1d6   :  { %7211 = vmatpush1.bf16.msra.mxu0 %v7210_v44  ;;  %v1287_v27 = vadd.f32 %v9707_v31, %v9662_v23  ;;  %v1288_v6 = vadd.f32 %v9707_v31, %v9666_v40  ;;  %v1257_v1 = vadd.f32 %v9707_v31, %v9550_v8  ;;  %vm1319_vm11 = vcmp.ge.f32.partialorder %v1255_v13, 0.0 }
 0x1d7   :  { %7212 = vmatprep.subr.bf16.mxu0 %v13430_v52  ;;  %7166 = vmatpush1.bf16.msra.mxu1 %v7165_v28  ;;  %v1477_v11 = vsel %vm1349_vm9, %v1285_v50, %v1413_v21  ;;  %v1478_v39 = vsel %vm1350_vm10, %v1286_v24, %v1414_v15  ;;  %vm1320_vm12 = vcmp.ge.f32.partialorder %v1256_v3, 0.0  ;;  %v1383_v20 = vmul.f32 0.2, %v1255_v13 }
 0x1d8   :  { %v7213_v38 = vpack.c.bf16 %v1478_v39, %v1477_v11  ;;  %7167 = vmatprep.subr.bf16.mxu1 %v13430_v52  ;;  %v1384_v46 = vmul.f32 0.2, %v1256_v3  ;;  %vm1351_vm13 = vcmp.ge.f32.partialorder %v1287_v27, 0.0  ;;  %vm1352_vm14 = vcmp.ge.f32.partialorder %v1288_v6, 0.0 }
 0x1d9   :  { %v1415_v23 = vmul.f32 0.2, %v1287_v27  ;;  %v1447_v40 = vsel %vm1319_vm11, %v1255_v13, %v1383_v20  ;;  %v1416_v17 = vmul.f32 0.2, %v1288_v6  ;;  %v1258_v48 = vadd.f32 %v9707_v31, %v9554_v5 }
 0x1da   :  { %7214 = vmatpush1.bf16.msra.mxu0 %v7213_v38  ;;  %vm1321_vm15 = vcmp.ge.f32.partialorder %v1257_v1, 0.0  ;;  %v1448_v8 = vsel %vm1320_vm12, %v1256_v3, %v1384_v46  ;;  %v1385_v2 = vmul.f32 0.2, %v1257_v1  ;;  %v1289_v37 = vadd.f32 %v9707_v31, %v9670_v54 }
 0x1db   :  { %7215 = vmatprep.subr.bf16.mxu0 %v13430_v52  ;;  %v1479_v55 = vsel %vm1351_vm13, %v1287_v27, %v1415_v23  ;;  %v7168_v53 = vpack.c.bf16 %v1448_v8, %v1447_v40  ;;  %v1480_v7 = vsel %vm1352_vm14, %v1288_v6, %v1416_v17  ;;  %vm1322_vm0 = vcmp.ge.f32.partialorder %v1258_v48, 0.0 }
 0x1dc   :  { %v1386_v62 = vmul.f32 0.2, %v1258_v48  ;;  %v7216_v19 = vpack.c.bf16 %v1480_v7, %v1479_v55  ;;  %v1449_v12 = vsel %vm1321_vm15, %v1257_v1, %v1385_v2  ;;  %v1290_v26 = vadd.f32 %v9707_v31, %v9674_v49  ;;  %v13431_v2 = vld [vmem:[#allocation32_spill] sm:$0xff]  ;;  %v13432_v7 = vld [vmem:[#allocation25_spill] sm:$0xff] }
 0x1dd   :  { %vm1353_vm2 = vcmp.ge.f32.partialorder %v1289_v37, 0.0  ;;  %7169 = vmatpush1.bf16.msra.mxu1 %v7168_v53  ;;  %v1417_v42 = vmul.f32 0.2, %v1289_v37  ;;  %v1259_v30 = vadd.f32 %v9707_v31, %v9558_v45  ;;  %v1260_v58 = vadd.f32 %v9707_v31, %v9562_v61 }
 0x1de   :  { %v1450_v5 = vsel %vm1322_vm0, %v1258_v48, %v1386_v62  ;;  %7217 = vmatpush1.bf16.msra.mxu0 %v7216_v19  ;;  %7170 = vmatprep.subr.bf16.mxu1 %v13430_v52  ;;  %vm1354_vm3 = vcmp.ge.f32.partialorder %v1290_v26, 0.0  ;;  %v1418_v51 = vmul.f32 0.2, %v1290_v26  ;;  %v1291_v18 = vadd.f32 %v9707_v31, %v9678_v4  ;;  %v13433_v19 = vld [vmem:[#allocation30_spill] sm:$0xff] }
 0x1df   :  { %v7171_v54 = vpack.c.bf16 %v1450_v5, %v1449_v12  ;;  %7218 = vmatprep.subr.bf16.mxu0 %v13430_v52  ;;  %v1481_v49 = vsel %vm1353_vm2, %v1289_v37, %v1417_v42  ;;  %vm1323_vm4 = vcmp.ge.f32.partialorder %v1259_v30, 0.0  ;;  %vm1324_vm5 = vcmp.ge.f32.partialorder %v1260_v58, 0.0 }
 0x1e0   :  { %v1387_v29 = vmul.f32 0.2, %v1259_v30  ;;  %v1482_v33 = vsel %vm1354_vm3, %v1290_v26, %v1418_v51  ;;  %v1388_v45 = vmul.f32 0.2, %v1260_v58  ;;  %v1292_v61 = vadd.f32 %v9707_v31, %v9682_v63  ;;  %v13434_v51 = vld [vmem:[#allocation13_spill] sm:$0xff] }
 0x1e1   :  { %vm1355_vm6 = vcmp.ge.f32.partialorder %v1291_v18, 0.0  ;;  %7172 = vmatpush1.bf16.msra.mxu1 %v7171_v54  ;;  %v7219_v60 = vpack.c.bf16 %v1482_v33, %v1481_v49  ;;  %v1419_v0 = vmul.f32 0.2, %v1291_v18  ;;  %v1261_v50 = vadd.f32 %v9707_v31, %v9566_v59  ;;  %v13435_v33 = vld [vmem:[#allocation18_spill] sm:$0xff] }
 0x1e2   :  { %v1451_v16 = vsel %vm1323_vm4, %v1259_v30, %v1387_v29  ;;  %7173 = vmatprep.subr.bf16.mxu1 %v13430_v52  ;;  %v1452_v4 = vsel %vm1324_vm5, %v1260_v58, %v1388_v45  ;;  %vm1356_vm7 = vcmp.ge.f32.partialorder %v1292_v61, 0.0  ;;  %v1420_v9 = vmul.f32 0.2, %v1292_v61 }
 0x1e3   :  { %v1262_v22 = vadd.f32 %v9707_v31, %v9570_v10  ;;  %7220 = vmatpush1.bf16.msra.mxu0 %v7219_v60  ;;  %v7174_v24 = vpack.c.bf16 %v1452_v4, %v1451_v16  ;;  %v1483_v44 = vsel %vm1355_vm6, %v1291_v18, %v1419_v0  ;;  %vm1325_vm8 = vcmp.ge.f32.partialorder %v1261_v50, 0.0 }
 0x1e4   :  { %v1389_v63 = vmul.f32 0.2, %v1261_v50  ;;  %7221 = vmatprep.subr.bf16.mxu0 %v13430_v52  ;;  %v1484_v34 = vsel %vm1356_vm7, %v1292_v61, %v1420_v9  ;;  %v1293_v59 = vadd.f32 %v9707_v31, %v9686_v25  ;;  %v1294_v15 = vadd.f32 %v9707_v31, %v9690_v35  ;;  %v13436_v9 = vld [vmem:[#allocation29_spill] sm:$0xff] }
 0x1e5   :  { %vm1326_vm9 = vcmp.ge.f32.partialorder %v1262_v22, 0.0  ;;  %v1390_v56 = vmul.f32 0.2, %v1262_v22  ;;  %7175 = vmatpush1.bf16.msra.mxu1 %v7174_v24  ;;  %v7222_v28 = vpack.c.bf16 %v1484_v34, %v1483_v44  ;;  %v1263_v10 = vadd.f32 %v9707_v31, %v9574_v36  ;;  %v13437_v24 = vld [vmem:[#allocation33_spill] sm:$0xff] }
 0x1e6   :  { %v1453_v21 = vsel %vm1325_vm8, %v1261_v50, %v1389_v63  ;;  %7176 = vmatprep.subr.bf16.mxu1 %v13430_v52  ;;  %vm1357_vm10 = vcmp.ge.f32.partialorder %v1293_v59, 0.0  ;;  %v1421_v3 = vmul.f32 0.2, %v1293_v59  ;;  %v1264_v27 = vadd.f32 %v9707_v31, %v9578_v32  ;;  %v13438_v63 = vld [vmem:[#allocation17_spill] sm:$0xff] }
 0x1e7   :  { %v1454_v13 = vsel %vm1326_vm9, %v1262_v22, %v1390_v56  ;;  %7223 = vmatpush1.bf16.msra.mxu0 %v7222_v28  ;;  %vm1358_vm11 = vcmp.ge.f32.partialorder %v1294_v15, 0.0  ;;  %v1422_v25 = vmul.f32 0.2, %v1294_v15  ;;  %vm1327_vm12 = vcmp.ge.f32.partialorder %v1263_v10, 0.0  ;;  %v13439_v56 = vld [vmem:[#allocation12_spill] sm:$0xff] }
 0x1e8   :  { %v7177_v6 = vpack.c.bf16 %v1454_v13, %v1453_v21  ;;  %7224 = vmatprep.subr.bf16.mxu0 %v13430_v52  ;;  %v1485_v11 = vsel %vm1357_vm10, %v1293_v59, %v1421_v3  ;;  %vm1328_vm13 = vcmp.ge.f32.partialorder %v1264_v27, 0.0  ;;  %v1391_v35 = vmul.f32 0.2, %v1263_v10 }
 0x1e9   :  { %v1392_v39 = vmul.f32 0.2, %v1264_v27  ;;  %v1486_v36 = vsel %vm1358_vm11, %v1294_v15, %v1422_v25  ;;  %v1295_v1 = vadd.f32 %v9707_v31, %v9694_v57  ;;  %v1296_v38 = vadd.f32 %v9707_v31, %v9698_v14  ;;  %v13440_v15 = vld [vmem:[#allocation24_spill] sm:$0xff] }
 0x1ea   :  { %7178 = vmatpush1.bf16.msra.mxu1 %v7177_v6  ;;  %v1265_v32 = vadd.f32 %v9707_v31, %v9582_v41  ;;  %v7225_v20 = vpack.c.bf16 %v1486_v36, %v1485_v11  ;;  %v1455_v46 = vsel %vm1327_vm12, %v1263_v10, %v1391_v35  ;;  %v1266_v40 = vadd.f32 %v9707_v31, %v9586_v43  ;;  %v13441_v35 = vld [vmem:[#allocation23_spill] sm:$0xff] }
 0x1eb   :  { %7179 = vmatprep.subr.bf16.mxu1 %v13430_v52  ;;  %v1456_v23 = vsel %vm1328_vm13, %v1264_v27, %v1392_v39  ;;  %vm1359_vm14 = vcmp.ge.f32.partialorder %v1295_v1, 0.0  ;;  %vm1360_vm15 = vcmp.ge.f32.partialorder %v1296_v38, 0.0  ;;  %v1423_v48 = vmul.f32 0.2, %v1295_v1 }
 0x1ec   :  { %v7180_v17 = vpack.c.bf16 %v1456_v23, %v1455_v46  ;;  %7226 = vmatpush1.bf16.msra.mxu0 %v7225_v20  ;;  %v1424_v57 = vmul.f32 0.2, %v1296_v38  ;;  %vm1329_vm0 = vcmp.ge.f32.partialorder %v1265_v32, 0.0  ;;  %vm1330_vm2 = vcmp.ge.f32.partialorder %v1266_v40, 0.0 }
 0x1ed   :  { %v1393_v14 = vmul.f32 0.2, %v1265_v32  ;;  %7227 = vmatprep.subr.bf16.mxu0 %v13430_v52  ;;  %v1487_v41 = vsel %vm1359_vm14, %v1295_v1, %v1423_v48  ;;  %v1394_v8 = vmul.f32 0.2, %v1266_v40  ;;  %v1297_v55 = vadd.f32 %v9707_v31, %v9702_v47 }
 0x1ee   :  { %7181 = vmatpush1.bf16.msra.mxu1 %v7180_v17  ;;  %v1298_v43 = vadd.f32 %v9707_v31, %v13431_v2  ;;  %v1488_v37 = vsel %vm1360_vm15, %v1296_v38, %v1424_v57  ;;  %v1267_v62 = vadd.f32 %v9707_v31, %v13432_v7  ;;  %v1268_v12 = vadd.f32 %v9707_v31, %v13433_v19  ;;  %v13443_v57 = vld [vmem:[#allocation16_spill] sm:$0xff] }
 0x1ef   :  { %7182 = vmatprep.subr.bf16.mxu1 %v13430_v52  ;;  %v1457_v53 = vsel %vm1329_vm0, %v1265_v32, %v1393_v14  ;;  %v7228_v26 = vpack.c.bf16 %v1488_v37, %v1487_v41  ;;  %v1458_v5 = vsel %vm1330_vm2, %v1266_v40, %v1394_v8  ;;  %vm1361_vm3 = vcmp.ge.f32.partialorder %v1297_v55, 0.0  ;;  %v13442_v32 = vld [vmem:[#allocation11_spill] sm:$0xff] }
 0x1f0   :  { %vm1362_vm4 = vcmp.ge.f32.partialorder %v1298_v43, 0.0  ;;  %v7183_v42 = vpack.c.bf16 %v1458_v5, %v1457_v53  ;;  %v1425_v30 = vmul.f32 0.2, %v1297_v55  ;;  %v1426_v47 = vmul.f32 0.2, %v1298_v43 }
 0x1f1   :  { %vm1331_vm5 = vcmp.ge.f32.partialorder %v1267_v62, 0.0  ;;  %7229 = vmatpush1.bf16.msra.mxu0 %v7228_v26  ;;  %vm1332_vm6 = vcmp.ge.f32.partialorder %v1268_v12, 0.0  ;;  %v1395_v58 = vmul.f32 0.2, %v1267_v62  ;;  %v1396_v54 = vmul.f32 0.2, %v1268_v12 }
 0x1f2   :  { %v1299_v18 = vadd.f32 %v9707_v31, %v13434_v51  ;;  %7230 = vmatprep.subr.bf16.mxu0 %v13430_v52  ;;  %7184 = vmatpush1.bf16.msra.mxu1 %v7183_v42  ;;  %v1489_v49 = vsel %vm1361_vm3, %v1297_v55, %v1425_v30  ;;  %v1490_v29 = vsel %vm1362_vm4, %v1298_v43, %v1426_v47  ;;  %v13444_v55 = vld [vmem:[#allocation28_spill] sm:$0xff]  ;;  %v13445_v43 = vld [vmem:[#allocation27_spill] sm:$0xff] }
 0x1f3   :  { %v1300_v45 = vadd.f32 %v9707_v31, %v13435_v33  ;;  %v7231_v61 = vpack.c.bf16 %v1490_v29, %v1489_v49  ;;  %7185 = vmatprep.subr.bf16.mxu1 %v13430_v52  ;;  %v1459_v60 = vsel %vm1331_vm5, %v1267_v62, %v1395_v58  ;;  %v1460_v16 = vsel %vm1332_vm6, %v1268_v12, %v1396_v54  ;;  %v13446_v62 = vld [vmem:[#allocation6_spill] sm:$0xff]  ;;  %v13447_v30 = vld [vmem:[#allocation15_spill] sm:$0xff] }
 0x1f4   :  { %vm1363_vm7 = vcmp.ge.f32.partialorder %v1299_v18, 0.0  ;;  %v7186_v0 = vpack.c.bf16 %v1460_v16, %v1459_v60  ;;  %v1427_v50 = vmul.f32 0.2, %v1299_v18  ;;  %v1269_v22 = vadd.f32 %v9707_v31, %v13436_v9  ;;  %v1502_v60 = vld [vmem:[%s13185_s4 + $0x18] sm:$0xff]  ;;  %v1501_v16 = vld [vmem:[%s13185_s4 + $0x10] sm:$0xff] }
 0x1f5   :  { %vm1364_vm8 = vcmp.ge.f32.partialorder %v1300_v45, 0.0  ;;  %v1428_v4 = vmul.f32 0.2, %v1300_v45  ;;  %7232 = vmatpush1.bf16.msra.mxu0 %v7231_v61  ;;  %v1270_v44 = vadd.f32 %v9707_v31, %v13437_v24  ;;  %v1301_v34 = vadd.f32 %v9707_v31, %v13438_v63  ;;  %v1505_v9 = vld [vmem:[%s13185_s4 + $0x30] sm:$0xff]  ;;  %v1507_v24 = vld [vmem:[%s13185_s4 + $0x40] sm:$0xff] }
 0x1f6   :  { %v1302_v59 = vadd.f32 %v9707_v31, %v13439_v56  ;;  %7233 = vmatprep.subr.bf16.mxu0 %v13430_v52  ;;  %7187 = vmatpush1.bf16.msra.mxu1 %v7186_v0  ;;  %v1491_v28 = vsel %vm1363_vm7, %v1299_v18, %v1427_v50  ;;  %v1271_v10 = vadd.f32 %v9707_v31, %v13440_v15  ;;  %vm1333_vm9 = vcmp.ge.f32.partialorder %v1269_v22, 0.0  ;;  %v1504_v0 = vld [vmem:[%s13185_s4 + $0x28] sm:$0xff]  ;;  %v1503_v50 = vld [vmem:[%s13185_s4 + $0x20] sm:$0xff]  ;;  %v1509_v63 = vld [vmem:[%s13185_s4 + $0x50] sm:$0xff] }
 0x1f7   :  { %v1492_v21 = vsel %vm1364_vm8, %v1300_v45, %v1428_v4  ;;  %7188 = vmatprep.subr.bf16.mxu1 %v13430_v52  ;;  %vm1334_vm10 = vcmp.ge.f32.partialorder %v1270_v44, 0.0  ;;  %v1397_v3 = vmul.f32 0.2, %v1269_v22  ;;  %v1398_v27 = vmul.f32 0.2, %v1270_v44  ;;  %v1506_v4 = vld [vmem:[%s13185_s4 + $0x38] sm:$0xff] }
 0x1f8   :  { %v7234_v13 = vpack.c.bf16 %v1492_v21, %v1491_v28  ;;  %vm1365_vm11 = vcmp.ge.f32.partialorder %v1301_v34, 0.0  ;;  %vm1366_vm12 = vcmp.ge.f32.partialorder %v1302_v59, 0.0  ;;  %v1429_v6 = vmul.f32 0.2, %v1301_v34  ;;  %v1511_v56 = vld [vmem:[%s13185_s4 + $0x60] sm:$0xff]  ;;  %v1513_v28 = vld [vmem:[%s13185_s4 + $0x70] sm:$0xff] }
 0x1f9   :  { %v1461_v25 = vsel %vm1333_vm9, %v1269_v22, %v1397_v3  ;;  %v1430_v11 = vmul.f32 0.2, %v1302_v59  ;;  %v1272_v39 = vadd.f32 %v9707_v31, %v13441_v35  ;;  %vm1335_vm13 = vcmp.ge.f32.partialorder %v1271_v10, 0.0  ;;  %v1508_v22 = vld [vmem:[%s13185_s4 + $0x48] sm:$0xff]  ;;  %v1515_v15 = vld [vmem:[%s13185_s4 + $0x80] sm:$0xff] }
 0x1fa   :  { %7235 = vmatpush1.bf16.msra.mxu0 %v7234_v13  ;;  %v1462_v36 = vsel %vm1334_vm10, %v1270_v44, %v1398_v27  ;;  %v1493_v1 = vsel %vm1365_vm11, %v1301_v34, %v1429_v6  ;;  %v1399_v38 = vmul.f32 0.2, %v1271_v10  ;;  %v1303_v20 = vadd.f32 %v9707_v31, %v13442_v32  ;;  %v1510_v44 = vld [vmem:[%s13185_s4 + $0x58] sm:$0xff]  ;;  %v1512_v34 = vld [vmem:[%s13185_s4 + $0x68] sm:$0xff]  ;;  %v1517_v13 = vld [vmem:[%s13185_s4 + $0x90] sm:$0xff] }
 0x1fb   :  { %7236 = vmatprep.subr.bf16.mxu0 %v13430_v52  ;;  %v7189_v46 = vpack.c.bf16 %v1462_v36, %v1461_v25  ;;  %v1494_v23 = vsel %vm1366_vm12, %v1302_v59, %v1430_v11  ;;  %vm1336_vm14 = vcmp.ge.f32.partialorder %v1272_v39, 0.0  ;;  %v1400_v40 = vmul.f32 0.2, %v1272_v39  ;;  %v1514_v59 = vld [vmem:[%s13185_s4 + $0x78] sm:$0xff]  ;;  %v1516_v21 = vld [vmem:[%s13185_s4 + $0x88] sm:$0xff]  ;;  %v1519_v27 = vld [vmem:[%s13185_s4 + $0xa0] sm:$0xff] }
 0x1fc   :  { %v7237_v17 = vpack.c.bf16 %v1494_v23, %v1493_v1  ;;  %v1463_v48 = vsel %vm1335_vm13, %v1271_v10, %v1399_v38  ;;  %v1304_v14 = vadd.f32 %v9707_v31, %v13443_v57  ;;  %vm1367_vm15 = vcmp.ge.f32.partialorder %v1303_v20, 0.0  ;;  %v1518_v10 = vld [vmem:[%s13185_s4 + $0x98] sm:$0xff]  ;;  %v1520_v3 = vld [vmem:[%s13185_s4 + $0xa8] sm:$0xff]  ;;  %v1521_v25 = vld [vmem:[%s13185_s4 + $0xb0] sm:$0xff] }
 0x1fd   :  { %7190 = vmatpush1.bf16.msra.mxu1 %v7189_v46  ;;  %v1464_v41 = vsel %vm1336_vm14, %v1272_v39, %v1400_v40  ;;  %v1431_v8 = vmul.f32 0.2, %v1303_v20  ;;  %v1273_v2 = vadd.f32 %v9707_v31, %v13444_v55  ;;  %v1274_v37 = vadd.f32 %v9707_v31, %v13445_v43  ;;  %v1522_v6 = vld [vmem:[%s13185_s4 + $0xb8] sm:$0xff]  ;;  %v1524_v11 = vld [vmem:[%s13185_s4 + $0xc8] sm:$0xff]  ;;  %v1523_v35 = vld [vmem:[%s13185_s4 + $0xc0] sm:$0xff] }
 0x1fe   :  { %7238 = vmatpush1.bf16.msra.mxu0 %v7237_v17  ;;  %7191 = vmatprep.subr.bf16.mxu1 %v13430_v52  ;;  %v7192_v53 = vpack.c.bf16 %v1464_v41, %v1463_v48  ;;  %vm1368_vm0 = vcmp.ge.f32.partialorder %v1304_v14, 0.0  ;;  %v1432_v7 = vmul.f32 0.2, %v1304_v14  ;;  %v1305_v19 = vadd.f32 %v9707_v31, %v13446_v62  ;;  %v1526_v39 = vld [vmem:[%s13185_s4 + $0xd8] sm:$0xff]  ;;  %v1525_v36 = vld [vmem:[%s13185_s4 + $0xd0] sm:$0xff]  ;;  %v1528_v1 = vld [vmem:[%s13185_s4 + $0xe8] sm:$0xff] }
 0x1ff   :  { %7239 = vmatprep.subr.bf16.mxu0 %v13430_v52  ;;  %v1495_v12 = vsel %vm1367_vm15, %v1303_v20, %v1431_v8  ;;  %vm1337_vm2 = vcmp.ge.f32.partialorder %v1273_v2, 0.0  ;;  %vm1338_vm3 = vcmp.ge.f32.partialorder %v1274_v37, 0.0  ;;  %v1401_v26 = vmul.f32 0.2, %v1273_v2  ;;  %v1527_v38 = vld [vmem:[%s13185_s4 + $0xe0] sm:$0xff]  ;;  %v1530_v32 = vld [vmem:[%s13185_s4 + $0xf8] sm:$0xff] }
 0x200   :  { %v1496_v5 = vsel %vm1368_vm0, %v1304_v14, %v1432_v7  ;;  %v1402_v42 = vmul.f32 0.2, %v1274_v37  ;;  %v1306_v47 = vadd.f32 %v9707_v31, %v13447_v30  ;;  %vm1369_vm4 = vcmp.ge.f32.partialorder %v1305_v19, 0.0  ;;  %v1499_v31 = vld [vmem:[%s13185_s4] sm:$0xff]  ;;  %v1529_v20 = vld [vmem:[%s13185_s4 + $0xf0] sm:$0xff]  ;;  %v1532_v46 = vld [vmem:[%s13185_s4 + $0x108] sm:$0xff] }
 0x201   :  { %7193 = vmatpush1.bf16.msra.mxu1 %v7192_v53  ;;  %v7240_v58 = vpack.c.bf16 %v1496_v5, %v1495_v12  ;;  %v1465_v54 = vsel %vm1337_vm2, %v1273_v2, %v1401_v26  ;;  %v1433_v51 = vmul.f32 0.2, %v1305_v19  ;;  %v1531_v23 = vld [vmem:[%s13185_s4 + $0x100] sm:$0xff]  ;;  %v1534_v40 = vld [vmem:[%s13185_s4 + $0x118] sm:$0xff]  ;;  %v1533_v17 = vld [vmem:[%s13185_s4 + $0x110] sm:$0xff]  ;;  %vm2852_vm6 = vcmask 523264  }
 0x202   :  { %7194 = vmatprep.subr.bf16.mxu1 %v13430_v52  ;;  %v1466_v18 = vsel %vm1338_vm3, %v1274_v37, %v1402_v42  ;;  %vm1370_vm5 = vcmp.ge.f32.partialorder %v1306_v47, 0.0  ;;  %v1434_v49 = vmul.f32 0.2, %v1306_v47  ;;  %v1536_v48 = vld [vmem:[%s13185_s4 + $0x128] sm:$0xff]  ;;  %v1535_v57 = vld [vmem:[%s13185_s4 + $0x120] sm:$0xff]  ;;  %v1538_v14 = vld [vmem:[%s13185_s4 + $0x138] sm:$0xff] }
 0x203   :  { %7241 = vmatpush1.bf16.msra.mxu0 %v7240_v58  ;;  %v7195_v29 = vpack.c.bf16 %v1466_v18, %v1465_v54  ;;  %v1497_v33 = vsel %vm1369_vm4, %v1305_v19, %v1433_v51  ;;  %v1537_v41 = vld [vmem:[%s13185_s4 + $0x130] sm:$0xff]  ;;  %v1540_v8 = vld [vmem:[%s13185_s4 + $0x148] sm:$0xff]  ;;  %v1539_v55 = vld [vmem:[%s13185_s4 + $0x140] sm:$0xff]  ;;  %vm2861_vm7 = vcmask 785408  }
 0x204   :  { %7242 = vmatprep.subr.bf16.mxu0 %v13430_v52  ;;  %v1498_v45 = vsel %vm1370_vm5, %v1306_v47, %v1434_v49  ;;  %v1542_v2 = vld [vmem:[%s13185_s4 + $0x158] sm:$0xff]  ;;  %v1541_v43 = vld [vmem:[%s13185_s4 + $0x150] sm:$0xff]  ;;  %v1544_v37 = vld [vmem:[%s13185_s4 + $0x168] sm:$0xff] }
 0x205   :  { %7196 = vmatpush1.bf16.msra.mxu1 %v7195_v29  ;;  %v7243_v61 = vpack.c.bf16 %v1498_v45, %v1497_v33  ;;  %v1543_v53 = vld [vmem:[%s13185_s4 + $0x160] sm:$0xff]  ;;  %v1546_v7 = vld [vmem:[%s13185_s4 + $0x178] sm:$0xff]  ;;  %v1545_v62 = vld [vmem:[%s13185_s4 + $0x170] sm:$0xff] }
 0x206   :  { %v1548_v19 = vld [vmem:[%s13185_s4 + $0x188] sm:$0xff]  ;;  %v1547_v12 = vld [vmem:[%s13185_s4 + $0x180] sm:$0xff]  ;;  %v1550_v26 = vld [vmem:[%s13185_s4 + $0x198] sm:$0xff] }
 0x207   :  { %7244 = vmatpush1.bf16.msra.mxu0 %v7243_v61  ;;  %v1549_v5 = vld [vmem:[%s13185_s4 + $0x190] sm:$0xff]  ;;  %v1552_v42 = vld [vmem:[%s13185_s4 + $0x1a8] sm:$0xff]  ;;  %v1551_v30 = vld [vmem:[%s13185_s4 + $0x1a0] sm:$0xff] }
 0x208   :  { %1820 = vmatmul.mubr.f32.vlgmr.msra.gmra.mrb[32].mxu1 %v1499_v31  ;;  %v1554_v47 = vld [vmem:[%s13185_s4 + $0x1b8] sm:$0xff]  ;;  %v1553_v58 = vld [vmem:[%s13185_s4 + $0x1b0] sm:$0xff]  ;;  %v1556_v54 = vld [vmem:[%s13185_s4 + $0x1c8] sm:$0xff] }
 0x209   :  { %1824 = vmatprep.mubr.f32.mxu1 %v1502_v60  ;;  %v1555_v51 = vld [vmem:[%s13185_s4 + $0x1c0] sm:$0xff]  ;;  %v1558_v18 = vld [vmem:[%s13185_s4 + $0x1d8] sm:$0xff]  ;;  %v1557_v49 = vld [vmem:[%s13185_s4 + $0x1d0] sm:$0xff] }
 0x20a   :  { %3007 = vmatmul.mubr.f32.vlgmr.msra.gmra.mrb[32].mxu0 %v1499_v31  ;;  %v1560_v29 = vld [vmem:[%s13185_s4 + $0x1e8] sm:$0xff]  ;;  %v1559_v33 = vld [vmem:[%s13185_s4 + $0x1e0] sm:$0xff]  ;;  %v1562_v45 = vld [vmem:[%s13185_s4 + $0x1f8] sm:$0xff] }
 0x20b   :  { %3011 = vmatprep.mubr.f32.mxu0 %v1502_v60  ;;  %v1561_v61 = vld [vmem:[%s13185_s4 + $0x1f0] sm:$0xff]  ;;  %v1564_v31 = vld [vmem:[%s13185_s4 + $0x208] sm:$0xff]  ;;  %v1563_v60 = vld [vmem:[%s13185_s4 + $0x200] sm:$0xff] }
 0x20c   :  { %1825 = vmatmul.mubr.f32.gmra.mrb[34].mxu1 %v1501_v16 }
 0x20d   :  { %1829 = vmatprep.mubr.f32.mxu1 %v1504_v0 }
 0x20e   :  { %3012 = vmatmul.mubr.f32.gmra.mrb[34].mxu0 %v1501_v16  ;;  %v1566_v16 = vld [vmem:[%s13185_s4 + $0x218] sm:$0xff] }
 0x20f   :  { %3016 = vmatprep.mubr.f32.mxu0 %v1504_v0  ;;  %v1565_v0 = vld [vmem:[%s13185_s4 + $0x210] sm:$0xff] }
 0x210   :  { %1830 = vmatmul.mubr.f32.gmra.mrb[36].mxu1 %v1503_v50 }
 0x211   :  { %1834 = vmatprep.mubr.f32.mxu1 %v1506_v4 }
 0x212   :  { %3017 = vmatmul.mubr.f32.gmra.mrb[36].mxu0 %v1503_v50  ;;  %v1568_v50 = vld [vmem:[%s13185_s4 + $0x228] sm:$0xff] }
 0x213   :  { %3021 = vmatprep.mubr.f32.mxu0 %v1506_v4  ;;  %v1567_v4 = vld [vmem:[%s13185_s4 + $0x220] sm:$0xff] }
 0x214   :  { %1835 = vmatmul.mubr.f32.gmra.mrb[38].mxu1 %v1505_v9 }
 0x215   :  { %1839 = vmatprep.mubr.f32.mxu1 %v1508_v22 }
 0x216   :  { %3022 = vmatmul.mubr.f32.gmra.mrb[38].mxu0 %v1505_v9  ;;  %v1570_v9 = vld [vmem:[%s13185_s4 + $0x238] sm:$0xff] }
 0x217   :  { %3026 = vmatprep.mubr.f32.mxu0 %v1508_v22  ;;  %v1569_v22 = vld [vmem:[%s13185_s4 + $0x230] sm:$0xff] }
 0x218   :  { %1840 = vmatmul.mubr.f32.gmra.mrb[40].mxu1 %v1507_v24 }
 0x219   :  { %1844 = vmatprep.mubr.f32.mxu1 %v1510_v44 }
 0x21a   :  { %3027 = vmatmul.mubr.f32.gmra.mrb[40].mxu0 %v1507_v24  ;;  %v1572_v24 = vld [vmem:[%s13185_s4 + $0x248] sm:$0xff] }
 0x21b   :  { %3031 = vmatprep.mubr.f32.mxu0 %v1510_v44  ;;  %v1571_v44 = vld [vmem:[%s13185_s4 + $0x240] sm:$0xff] }
 0x21c   :  { %1845 = vmatmul.mubr.f32.gmra.mrb[42].mxu1 %v1509_v63 }
 0x21d   :  { %1849 = vmatprep.mubr.f32.mxu1 %v1512_v34 }
 0x21e   :  { %3032 = vmatmul.mubr.f32.gmra.mrb[42].mxu0 %v1509_v63  ;;  %v1574_v63 = vld [vmem:[%s13185_s4 + $0x258] sm:$0xff] }
 0x21f   :  { %3036 = vmatprep.mubr.f32.mxu0 %v1512_v34  ;;  %v1573_v34 = vld [vmem:[%s13185_s4 + $0x250] sm:$0xff] }
 0x220   :  { %1850 = vmatmul.mubr.f32.gmra.mrb[44].mxu1 %v1511_v56 }
 0x221   :  { %1854 = vmatprep.mubr.f32.mxu1 %v1514_v59 }
 0x222   :  { %3037 = vmatmul.mubr.f32.gmra.mrb[44].mxu0 %v1511_v56  ;;  %v1576_v56 = vld [vmem:[%s13185_s4 + $0x268] sm:$0xff] }
 0x223   :  { %3041 = vmatprep.mubr.f32.mxu0 %v1514_v59  ;;  %v1575_v59 = vld [vmem:[%s13185_s4 + $0x260] sm:$0xff] }
 0x224   :  { %1855 = vmatmul.mubr.f32.gmra.mrb[46].mxu1 %v1513_v28 }
 0x225   :  { %1859 = vmatprep.mubr.f32.mxu1 %v1516_v21 }
 0x226   :  { %3042 = vmatmul.mubr.f32.gmra.mrb[46].mxu0 %v1513_v28  ;;  %v1578_v28 = vld [vmem:[%s13185_s4 + $0x278] sm:$0xff] }
 0x227   :  { %3046 = vmatprep.mubr.f32.mxu0 %v1516_v21  ;;  %v1577_v21 = vld [vmem:[%s13185_s4 + $0x270] sm:$0xff] }
 0x228   :  { %1860 = vmatmul.mubr.f32.gmra.mrb[48].mxu1 %v1515_v15 }
 0x229   :  { %1864 = vmatprep.mubr.f32.mxu1 %v1518_v10 }
 0x22a   :  { %3047 = vmatmul.mubr.f32.gmra.mrb[48].mxu0 %v1515_v15  ;;  %v1580_v15 = vld [vmem:[%s13185_s4 + $0x288] sm:$0xff] }
 0x22b   :  { %3051 = vmatprep.mubr.f32.mxu0 %v1518_v10  ;;  %v1579_v10 = vld [vmem:[%s13185_s4 + $0x280] sm:$0xff] }
 0x22c   :  { %1865 = vmatmul.mubr.f32.gmra.mrb[50].mxu1 %v1517_v13 }
 0x22d   :  { %1869 = vmatprep.mubr.f32.mxu1 %v1520_v3 }
 0x22e   :  { %3052 = vmatmul.mubr.f32.gmra.mrb[50].mxu0 %v1517_v13  ;;  %v1582_v13 = vld [vmem:[%s13185_s4 + $0x298] sm:$0xff] }
 0x22f   :  { %3056 = vmatprep.mubr.f32.mxu0 %v1520_v3  ;;  %v1581_v3 = vld [vmem:[%s13185_s4 + $0x290] sm:$0xff] }
 0x230   :  { %1870 = vmatmul.mubr.f32.gmra.mrb[52].mxu1 %v1519_v27 }
 0x231   :  { %1874 = vmatprep.mubr.f32.mxu1 %v1522_v6 }
 0x232   :  { %3057 = vmatmul.mubr.f32.gmra.mrb[52].mxu0 %v1519_v27  ;;  %v1584_v27 = vld [vmem:[%s13185_s4 + $0x2a8] sm:$0xff] }
 0x233   :  { %3061 = vmatprep.mubr.f32.mxu0 %v1522_v6  ;;  %v1583_v6 = vld [vmem:[%s13185_s4 + $0x2a0] sm:$0xff] }
 0x234   :  { %1875 = vmatmul.mubr.f32.gmra.mrb[54].mxu1 %v1521_v25 }
 0x235   :  { %1879 = vmatprep.mubr.f32.mxu1 %v1524_v11 }
 0x236   :  { %3062 = vmatmul.mubr.f32.gmra.mrb[54].mxu0 %v1521_v25  ;;  %v1586_v25 = vld [vmem:[%s13185_s4 + $0x2b8] sm:$0xff] }
 0x237   :  { %3066 = vmatprep.mubr.f32.mxu0 %v1524_v11  ;;  %v1585_v11 = vld [vmem:[%s13185_s4 + $0x2b0] sm:$0xff] }
 0x238   :  { %1880 = vmatmul.mubr.f32.gmra.mrb[56].mxu1 %v1523_v35 }
 0x239   :  { %1884 = vmatprep.mubr.f32.mxu1 %v1526_v39 }
 0x23a   :  { %3067 = vmatmul.mubr.f32.gmra.mrb[56].mxu0 %v1523_v35  ;;  %v1588_v35 = vld [vmem:[%s13185_s4 + $0x2c8] sm:$0xff] }
 0x23b   :  { %3071 = vmatprep.mubr.f32.mxu0 %v1526_v39  ;;  %v1587_v39 = vld [vmem:[%s13185_s4 + $0x2c0] sm:$0xff] }
 0x23c   :  { %1885 = vmatmul.mubr.f32.gmra.mrb[58].mxu1 %v1525_v36 }
 0x23d   :  { %1889 = vmatprep.mubr.f32.mxu1 %v1528_v1 }
 0x23e   :  { %3072 = vmatmul.mubr.f32.gmra.mrb[58].mxu0 %v1525_v36  ;;  %v1590_v36 = vld [vmem:[%s13185_s4 + $0x2d8] sm:$0xff] }
 0x23f   :  { %3076 = vmatprep.mubr.f32.mxu0 %v1528_v1  ;;  %v1589_v1 = vld [vmem:[%s13185_s4 + $0x2d0] sm:$0xff] }
 0x240   :  { %1890 = vmatmul.mubr.f32.gmra.mrb[60].mxu1 %v1527_v38 }
 0x241   :  { %1894 = vmatprep.mubr.f32.mxu1 %v1530_v32 }
 0x242   :  { %3077 = vmatmul.mubr.f32.gmra.mrb[60].mxu0 %v1527_v38  ;;  %v1592_v38 = vld [vmem:[%s13185_s4 + $0x2e8] sm:$0xff] }
 0x243   :  { %3081 = vmatprep.mubr.f32.mxu0 %v1530_v32  ;;  %v1591_v32 = vld [vmem:[%s13185_s4 + $0x2e0] sm:$0xff] }
 0x244   :  { %1895 = vmatmul.mubr.f32.gmra.mrb[62].mxu1 %v1529_v20 }
 0x245   :  { %1899 = vmatprep.mubr.f32.mxu1 %v1532_v46 }
 0x246   :  { %3082 = vmatmul.mubr.f32.gmra.mrb[62].mxu0 %v1529_v20  ;;  %v1594_v20 = vld [vmem:[%s13185_s4 + $0x2f8] sm:$0xff] }
 0x247   :  { %3086 = vmatprep.mubr.f32.mxu0 %v1532_v46  ;;  %v1593_v46 = vld [vmem:[%s13185_s4 + $0x2f0] sm:$0xff] }
 0x248   :  { %1900 = vmatmul.mubr.f32.gmra.mrb[64].mxu1 %v1531_v23 }
 0x249   :  { %1904 = vmatprep.mubr.f32.mxu1 %v1534_v40 }
 0x24a   :  { %3087 = vmatmul.mubr.f32.gmra.mrb[64].mxu0 %v1531_v23  ;;  %v4143_v23 = vld [vmem:[%s13186_s5 + $0x80] sm:$0xff] }
 0x24b   :  { %3091 = vmatprep.mubr.f32.mxu0 %v1534_v40  ;;  %v4144_v40 = vld [vmem:[%s13186_s5 + $0x88] sm:$0xff] }
 0x24c   :  { %1905 = vmatmul.mubr.f32.gmra.mrb[66].mxu1 %v1533_v17 }
 0x24d   :  { %1909 = vmatprep.mubr.f32.mxu1 %v1536_v48 }
 0x24e   :  { %3092 = vmatmul.mubr.f32.gmra.mrb[66].mxu0 %v1533_v17  ;;  %v1596_v17 = vld [vmem:[%s13185_s4 + $0x308] sm:$0xff] }
 0x24f   :  { %3096 = vmatprep.mubr.f32.mxu0 %v1536_v48  ;;  %v7245_v48 = vpack.c.bf16 %v4144_v40, %v4143_v23  ;;  %v1621_v40 = vld [vmem:[%s13185_s4 + $0x3d0] sm:$0xff] }
 0x250   :  { %1910 = vmatmul.mubr.f32.gmra.mrb[68].mxu1 %v1535_v57 }
 0x251   :  { %1914 = vmatprep.mubr.f32.mxu1 %v1538_v14  ;;  %7543 = vmatprep.subr.bf16.mxu1 %v7245_v48 }
 0x252   :  { %3097 = vmatmul.mubr.f32.gmra.mrb[68].mxu0 %v1535_v57  ;;  %v4127_v57 = vld [vmem:[%s13186_s5] sm:$0xff]  ;;  %7246 = vmatprep.subr.bf16.mxu0 %v7245_v48  ;;  %v1624_v48 = vld [vmem:[%s13185_s4 + $0x3e8] sm:$0xff] }
 0x253   :  { %3101 = vmatprep.mubr.f32.mxu0 %v1538_v14  ;;  %v4128_v14 = vld [vmem:[%s13186_s5 + $0x8] sm:$0xff] }
 0x254   :  { %1915 = vmatmul.mubr.f32.gmra.mrb[70].mxu1 %v1537_v41 }
 0x255   :  { %1919 = vmatprep.mubr.f32.mxu1 %v1540_v8 }
 0x256   :  { %3102 = vmatmul.mubr.f32.gmra.mrb[70].mxu0 %v1537_v41  ;;  %v7247_v41 = vpack.c.bf16 %v4128_v14, %v4127_v57 }
 0x257   :  { %3106 = vmatprep.mubr.f32.mxu0 %v1540_v8  ;;  %v1595_v8 = vld [vmem:[%s13185_s4 + $0x300] sm:$0xff] }
 0x258   :  { %1920 = vmatmul.mubr.f32.gmra.mrb[72].mxu1 %v1539_v55  ;;  %7248 = vmatpush3.bf16.msra.mxu0 %v7247_v41 }
 0x259   :  { %1924 = vmatprep.mubr.f32.mxu1 %v1542_v2  ;;  %7551 = vmatpush3.bf16.msra.mxu1 %v7247_v41 }
 0x25a   :  { %3107 = vmatmul.mubr.f32.gmra.mrb[72].mxu0 %v1539_v55  ;;  %v1598_v55 = vld [vmem:[%s13185_s4 + $0x318] sm:$0xff] }
 0x25b   :  { %3111 = vmatprep.mubr.f32.mxu0 %v1542_v2  ;;  %v1597_v2 = vld [vmem:[%s13185_s4 + $0x310] sm:$0xff] }
 0x25c   :  { %1925 = vmatmul.mubr.f32.gmra.mrb[74].mxu1 %v1541_v43 }
 0x25d   :  { %1929 = vmatprep.mubr.f32.mxu1 %v1544_v37 }
 0x25e   :  { %3112 = vmatmul.mubr.f32.gmra.mrb[74].mxu0 %v1541_v43  ;;  %v1600_v43 = vld [vmem:[%s13185_s4 + $0x328] sm:$0xff] }
 0x25f   :  { %3116 = vmatprep.mubr.f32.mxu0 %v1544_v37  ;;  %v1599_v37 = vld [vmem:[%s13185_s4 + $0x320] sm:$0xff] }
 0x260   :  { %1930 = vmatmul.mubr.f32.gmra.mrb[76].mxu1 %v1543_v53 }
 0x261   :  { %1934 = vmatprep.mubr.f32.mxu1 %v1546_v7 }
 0x262   :  { %3117 = vmatmul.mubr.f32.gmra.mrb[76].mxu0 %v1543_v53  ;;  %v1602_v53 = vld [vmem:[%s13185_s4 + $0x338] sm:$0xff] }
 0x263   :  { %3121 = vmatprep.mubr.f32.mxu0 %v1546_v7  ;;  %v1601_v7 = vld [vmem:[%s13185_s4 + $0x330] sm:$0xff] }
 0x264   :  { %1935 = vmatmul.mubr.f32.gmra.mrb[78].mxu1 %v1545_v62 }
 0x265   :  { %1939 = vmatprep.mubr.f32.mxu1 %v1548_v19 }
 0x266   :  { %3122 = vmatmul.mubr.f32.gmra.mrb[78].mxu0 %v1545_v62  ;;  %v1604_v62 = vld [vmem:[%s13185_s4 + $0x348] sm:$0xff] }
 0x267   :  { %3126 = vmatprep.mubr.f32.mxu0 %v1548_v19  ;;  %v1603_v19 = vld [vmem:[%s13185_s4 + $0x340] sm:$0xff] }
 0x268   :  { %1940 = vmatmul.mubr.f32.gmra.mrb[80].mxu1 %v1547_v12 }
 0x269   :  { %1944 = vmatprep.mubr.f32.mxu1 %v1550_v26 }
 0x26a   :  { %3127 = vmatmul.mubr.f32.gmra.mrb[80].mxu0 %v1547_v12  ;;  %v1606_v12 = vld [vmem:[%s13185_s4 + $0x358] sm:$0xff] }
 0x26b   :  { %3131 = vmatprep.mubr.f32.mxu0 %v1550_v26  ;;  %v1605_v26 = vld [vmem:[%s13185_s4 + $0x350] sm:$0xff] }
 0x26c   :  { %1945 = vmatmul.mubr.f32.gmra.mrb[82].mxu1 %v1549_v5 }
 0x26d   :  { %1949 = vmatprep.mubr.f32.mxu1 %v1552_v42 }
 0x26e   :  { %3132 = vmatmul.mubr.f32.gmra.mrb[82].mxu0 %v1549_v5  ;;  %v1608_v5 = vld [vmem:[%s13185_s4 + $0x368] sm:$0xff] }
 0x26f   :  { %3136 = vmatprep.mubr.f32.mxu0 %v1552_v42 }
 0x270   :  { %1950 = vmatmul.mubr.f32.gmra.mrb[84].mxu1 %v1551_v30 }
 0x271   :  { %1954 = vmatprep.mubr.f32.mxu1 %v1554_v47 }
 0x272   :  { %3137 = vmatmul.mubr.f32.gmra.mrb[84].mxu0 %v1551_v30 }
 0x273   :  { %3141 = vmatprep.mubr.f32.mxu0 %v1554_v47 }
 0x274   :  { %1955 = vmatmul.mubr.f32.gmra.mrb[86].mxu1 %v1553_v58 }
 0x275   :  { %1959 = vmatprep.mubr.f32.mxu1 %v1556_v54 }
 0x276   :  { %3142 = vmatmul.mubr.f32.gmra.mrb[86].mxu0 %v1553_v58  ;;  %v1607_v58 = vld [vmem:[%s13185_s4 + $0x360] sm:$0xff] }
 0x277   :  { %3146 = vmatprep.mubr.f32.mxu0 %v1556_v54 }
 0x278   :  { %1960 = vmatmul.mubr.f32.gmra.mrb[88].mxu1 %v1555_v51 }
 0x279   :  { %1964 = vmatprep.mubr.f32.mxu1 %v1558_v18 }
 0x27a   :  { %3147 = vmatmul.mubr.f32.gmra.mrb[88].mxu0 %v1555_v51  ;;  %v1610_v51 = vld [vmem:[%s13185_s4 + $0x378] sm:$0xff] }
 0x27b   :  { %3151 = vmatprep.mubr.f32.mxu0 %v1558_v18 }
 0x27c   :  { %1965 = vmatmul.mubr.f32.gmra.mrb[90].mxu1 %v1557_v49 }
 0x27d   :  { %1969 = vmatprep.mubr.f32.mxu1 %v1560_v29 }
 0x27e   :  { %3152 = vmatmul.mubr.f32.gmra.mrb[90].mxu0 %v1557_v49 }
 0x27f   :  { %3156 = vmatprep.mubr.f32.mxu0 %v1560_v29 }
 0x280   :  { %1970 = vmatmul.mubr.f32.gmra.mrb[92].mxu1 %v1559_v33 }
 0x281   :  { %1974 = vmatprep.mubr.f32.mxu1 %v1562_v45 }
 0x282   :  { %3157 = vmatmul.mubr.f32.gmra.mrb[92].mxu0 %v1559_v33  ;;  %v1609_v33 = vld [vmem:[%s13185_s4 + $0x370] sm:$0xff] }
 0x283   :  { %3161 = vmatprep.mubr.f32.mxu0 %v1562_v45 }
 0x284   :  { %1975 = vmatmul.mubr.f32.gmra.mrb[94].mxu1 %v1561_v61 }
 0x285   :  { %1979 = vmatprep.mubr.f32.mxu1 %v1564_v31 }
 0x286   :  { %3162 = vmatmul.mubr.f32.gmra.mrb[94].mxu0 %v1561_v61  ;;  %v1612_v61 = vld [vmem:[%s13185_s4 + $0x388] sm:$0xff] }
 0x287   :  { %3166 = vmatprep.mubr.f32.mxu0 %v1564_v31 }
 0x288   :  { %1980 = vmatmul.mubr.f32.gmra.mrb[96].mxu1 %v1563_v60 }
 0x289   :  { %1984 = vmatprep.mubr.f32.mxu1 %v1566_v16 }
 0x28a   :  { %3167 = vmatmul.mubr.f32.gmra.mrb[96].mxu0 %v1563_v60 }
 0x28b   :  { %3171 = vmatprep.mubr.f32.mxu0 %v1566_v16 }
 0x28c   :  { %1985 = vmatmul.mubr.f32.gmra.mrb[98].mxu1 %v1565_v0 }
 0x28d   :  { %1989 = vmatprep.mubr.f32.mxu1 %v1568_v50 }
 0x28e   :  { %3172 = vmatmul.mubr.f32.gmra.mrb[98].mxu0 %v1565_v0  ;;  %v1611_v0 = vld [vmem:[%s13185_s4 + $0x380] sm:$0xff] }
 0x28f   :  { %3176 = vmatprep.mubr.f32.mxu0 %v1568_v50 }
 0x290   :  { %1990 = vmatmul.mubr.f32.gmra.mrb[100].mxu1 %v1567_v4 }
 0x291   :  { %1994 = vmatprep.mubr.f32.mxu1 %v1570_v9 }
 0x292   :  { %3177 = vmatmul.mubr.f32.gmra.mrb[100].mxu0 %v1567_v4  ;;  %v1614_v4 = vld [vmem:[%s13185_s4 + $0x398] sm:$0xff] }
 0x293   :  { %3181 = vmatprep.mubr.f32.mxu0 %v1570_v9 }
 0x294   :  { %1995 = vmatmul.mubr.f32.gmra.mrb[102].mxu1 %v1569_v22 }
 0x295   :  { %1999 = vmatprep.mubr.f32.mxu1 %v1572_v24 }
 0x296   :  { %3182 = vmatmul.mubr.f32.gmra.mrb[102].mxu0 %v1569_v22 }
 0x297   :  { %3186 = vmatprep.mubr.f32.mxu0 %v1572_v24 }
 0x298   :  { %2000 = vmatmul.mubr.f32.gmra.mrb[104].mxu1 %v1571_v44 }
 0x299   :  { %2004 = vmatprep.mubr.f32.mxu1 %v1574_v63 }
 0x29a   :  { %3187 = vmatmul.mubr.f32.gmra.mrb[104].mxu0 %v1571_v44  ;;  %v1613_v44 = vld [vmem:[%s13185_s4 + $0x390] sm:$0xff] }
 0x29b   :  { %3191 = vmatprep.mubr.f32.mxu0 %v1574_v63 }
 0x29c   :  { %2005 = vmatmul.mubr.f32.gmra.mrb[106].mxu1 %v1573_v34 }
 0x29d   :  { %2009 = vmatprep.mubr.f32.mxu1 %v1576_v56 }
 0x29e   :  { %3192 = vmatmul.mubr.f32.gmra.mrb[106].mxu0 %v1573_v34  ;;  %v1616_v34 = vld [vmem:[%s13185_s4 + $0x3a8] sm:$0xff] }
 0x29f   :  { %3196 = vmatprep.mubr.f32.mxu0 %v1576_v56 }
 0x2a0   :  { %2010 = vmatmul.mubr.f32.gmra.mrb[108].mxu1 %v1575_v59 }
 0x2a1   :  { %2014 = vmatprep.mubr.f32.mxu1 %v1578_v28 }
 0x2a2   :  { %3197 = vmatmul.mubr.f32.gmra.mrb[108].mxu0 %v1575_v59 }
 0x2a3   :  { %3201 = vmatprep.mubr.f32.mxu0 %v1578_v28 }
 0x2a4   :  { %2015 = vmatmul.mubr.f32.gmra.mrb[110].mxu1 %v1577_v21 }
 0x2a5   :  { %2019 = vmatprep.mubr.f32.mxu1 %v1580_v15 }
 0x2a6   :  { %3202 = vmatmul.mubr.f32.gmra.mrb[110].mxu0 %v1577_v21  ;;  %v1615_v21 = vld [vmem:[%s13185_s4 + $0x3a0] sm:$0xff] }
 0x2a7   :  { %3206 = vmatprep.mubr.f32.mxu0 %v1580_v15 }
 0x2a8   :  { %2020 = vmatmul.mubr.f32.gmra.mrb[112].mxu1 %v1579_v10 }
 0x2a9   :  { %2024 = vmatprep.mubr.f32.mxu1 %v1582_v13 }
 0x2aa   :  { %3207 = vmatmul.mubr.f32.gmra.mrb[112].mxu0 %v1579_v10  ;;  %v1618_v10 = vld [vmem:[%s13185_s4 + $0x3b8] sm:$0xff] }
 0x2ab   :  { %3211 = vmatprep.mubr.f32.mxu0 %v1582_v13 }
 0x2ac   :  { %2025 = vmatmul.mubr.f32.gmra.mrb[114].mxu1 %v1581_v3 }
 0x2ad   :  { %2029 = vmatprep.mubr.f32.mxu1 %v1584_v27 }
 0x2ae   :  { %3212 = vmatmul.mubr.f32.gmra.mrb[114].mxu0 %v1581_v3 }
 0x2af   :  { %3216 = vmatprep.mubr.f32.mxu0 %v1584_v27 }
 0x2b0   :  { %2030 = vmatmul.mubr.f32.gmra.mrb[116].mxu1 %v1583_v6 }
 0x2b1   :  { %2034 = vmatprep.mubr.f32.mxu1 %v1586_v25 }
 0x2b2   :  { %3217 = vmatmul.mubr.f32.gmra.mrb[116].mxu0 %v1583_v6  ;;  %v1617_v6 = vld [vmem:[%s13185_s4 + $0x3b0] sm:$0xff] }
 0x2b3   :  { %3221 = vmatprep.mubr.f32.mxu0 %v1586_v25 }
 0x2b4   :  { %2035 = vmatmul.mubr.f32.gmra.mrb[118].mxu1 %v1585_v11 }
 0x2b5   :  { %2039 = vmatprep.mubr.f32.mxu1 %v1588_v35 }
 0x2b6   :  { %3222 = vmatmul.mubr.f32.gmra.mrb[118].mxu0 %v1585_v11  ;;  %v1620_v11 = vld [vmem:[%s13185_s4 + $0x3c8] sm:$0xff] }
 0x2b7   :  { %3226 = vmatprep.mubr.f32.mxu0 %v1588_v35 }
 0x2b8   :  { %2040 = vmatmul.mubr.f32.gmra.mrb[120].mxu1 %v1587_v39 }
 0x2b9   :  { %2044 = vmatprep.mubr.f32.mxu1 %v1590_v36 }
 0x2ba   :  { %3227 = vmatmul.mubr.f32.gmra.mrb[120].mxu0 %v1587_v39 }
 0x2bb   :  { %3231 = vmatprep.mubr.f32.mxu0 %v1590_v36 }
 0x2bc   :  { %2045 = vmatmul.mubr.f32.gmra.mrb[122].mxu1 %v1589_v1 }
 0x2bd   :  { %2049 = vmatprep.mubr.f32.mxu1 %v1592_v38 }
 0x2be   :  { %3232 = vmatmul.mubr.f32.gmra.mrb[122].mxu0 %v1589_v1  ;;  %v1619_v1 = vld [vmem:[%s13185_s4 + $0x3c0] sm:$0xff] }
 0x2bf   :  { %3236 = vmatprep.mubr.f32.mxu0 %v1592_v38 }
 0x2c0   :  { %2050 = vmatmul.mubr.f32.gmra.mrb[124].mxu1 %v1591_v32 }
 0x2c1   :  { %2054 = vmatprep.mubr.f32.mxu1 %v1594_v20 }
 0x2c2   :  { %3237 = vmatmul.mubr.f32.gmra.mrb[124].mxu0 %v1591_v32  ;;  %v1622_v32 = vld [vmem:[%s13185_s4 + $0x3d8] sm:$0xff] }
 0x2c3   :  { %3241 = vmatprep.mubr.f32.mxu0 %v1594_v20 }
 0x2c4   :  { %2055 = vmatmul.mubr.f32.gmra.mrb[126].mxu1 %v1593_v46 }
 0x2c5   :  { %2059 = vmatprep.mubr.f32.mxu1 %v1596_v17 }
 0x2c6   :  { %3242 = vmatmul.mubr.f32.gmra.mrb[126].mxu0 %v1593_v46 }
 0x2c7   :  { %3246 = vmatprep.mubr.f32.mxu0 %v1596_v17 }
 0x2c8   :  { %2060 = vmatmul.mubr.f32.gmra.mrb[128].mxu1 %v1595_v8 }
 0x2c9   :  { %2064 = vmatprep.mubr.f32.mxu1 %v1598_v55 }
 0x2ca   :  { %3247 = vmatmul.mubr.f32.gmra.mrb[128].mxu0 %v1595_v8  ;;  %v1623_v8 = vld [vmem:[%s13185_s4 + $0x3e0] sm:$0xff] }
 0x2cb   :  { %3251 = vmatprep.mubr.f32.mxu0 %v1598_v55 }
 0x2cc   :  { %2065 = vmatmul.mubr.f32.gmra.mrb[130].mxu1 %v1597_v2 }
 0x2cd   :  { %2069 = vmatprep.mubr.f32.mxu1 %v1600_v43 }
 0x2ce   :  { %3252 = vmatmul.mubr.f32.gmra.mrb[130].mxu0 %v1597_v2  ;;  %v1626_v2 = vld [vmem:[%s13185_s4 + $0x3f8] sm:$0xff] }
 0x2cf   :  { %3256 = vmatprep.mubr.f32.mxu0 %v1600_v43 }
 0x2d0   :  { %2070 = vmatmul.mubr.f32.gmra.mrb[132].mxu1 %v1599_v37 }
 0x2d1   :  { %2074 = vmatprep.mubr.f32.mxu1 %v1602_v53 }
 0x2d2   :  { %3257 = vmatmul.mubr.f32.gmra.mrb[132].mxu0 %v1599_v37 }
 0x2d3   :  { %3261 = vmatprep.mubr.f32.mxu0 %v1602_v53 }
 0x2d4   :  { %2075 = vmatmul.mubr.f32.gmra.mrb[134].mxu1 %v1601_v7 }
 0x2d5   :  { %2079 = vmatprep.mubr.f32.mxu1 %v1604_v62 }
 0x2d6   :  { %3262 = vmatmul.mubr.f32.gmra.mrb[134].mxu0 %v1601_v7  ;;  %v1625_v7 = vld [vmem:[%s13185_s4 + $0x3f0] sm:$0xff] }
 0x2d7   :  { %3266 = vmatprep.mubr.f32.mxu0 %v1604_v62 }
 0x2d8   :  { %2080 = vmatmul.mubr.f32.gmra.mrb[136].mxu1 %v1603_v19 }
 0x2d9   :  { %2084 = vmatprep.mubr.f32.mxu1 %v1606_v12 }
 0x2da   :  { %3267 = vmatmul.mubr.f32.gmra.mrb[136].mxu0 %v1603_v19  ;;  %v1628_v19 = vld [vmem:[%s13185_s4 + $0x408] sm:$0xff] }
 0x2db   :  { %v10232_v42 = vpop.f32.mrb[32].mxu1  ;;  %3271 = vmatprep.mubr.f32.mxu0 %v1606_v12  ;;  %v4145_v12 = vld [vmem:[%s13186_s5 + $0x90] sm:$0xff] }
 0x2dc   :  { %13448 = vst [vmem:[#allocation20_spill] sm:$0xff] %v10232_v42  ;;  %v1823_v30 = vpop.f32.mrb[33].mxu1  ;;  %2085 = vmatmul.mubr.f32.gmra.mrb[138].mxu1 %v1605_v26 }
 0x2dd   :  { %v10234_v47 = vpop.f32.mrb[32].mxu0  ;;  %2089 = vmatprep.mubr.f32.mxu1 %v1608_v5 }
 0x2de   :  { %v3010_v54 = vpop.f32.mrb[33].mxu0  ;;  %3272 = vmatmul.mubr.f32.gmra.mrb[138].mxu0 %v1605_v26  ;;  %v4146_v26 = vld [vmem:[%s13186_s5 + $0x98] sm:$0xff] }
 0x2df   :  { %v10242_v18 = vpop.f32.mrb[34].mxu1  ;;  %3276 = vmatprep.mubr.f32.mxu0 %v1608_v5  ;;  %v7249_v30 = vpack.c.bf16 %v4146_v26, %v4145_v12  ;;  %v4130_v54 = vld [vmem:[%s13186_s5 + $0x18] sm:$0xff] }
 0x2e0   :  { %13449 = vst [vmem:[#allocation19_spill] sm:$0xff] %v10242_v18  ;;  %v1828_v49 = vpop.f32.mrb[35].mxu1  ;;  %2090 = vmatmul.mubr.f32.gmra.mrb[140].mxu1 %v1607_v58 }
 0x2e1   :  { %v10244_v29 = vpop.f32.mrb[34].mxu0  ;;  %2094 = vmatprep.mubr.f32.mxu1 %v1610_v51  ;;  %7544 = vmatprep.subr.bf16.mxu1 %v7249_v30 }
 0x2e2   :  { %v3015_v45 = vpop.f32.mrb[35].mxu0  ;;  %3277 = vmatmul.mubr.f32.gmra.mrb[140].mxu0 %v1607_v58  ;;  %v4129_v58 = vld [vmem:[%s13186_s5 + $0x10] sm:$0xff]  ;;  %7250 = vmatprep.subr.bf16.mxu0 %v7249_v30  ;;  %v1639_v30 = vld [vmem:[%s13185_s4 + $0x460] sm:$0xff] }
 0x2e3   :  { %v10252_v31 = vpop.f32.mrb[36].mxu1  ;;  %3281 = vmatprep.mubr.f32.mxu0 %v1610_v51  ;;  %v7251_v49 = vpack.c.bf16 %v4130_v54, %v4129_v58  ;;  %v1627_v45 = vld [vmem:[%s13185_s4 + $0x400] sm:$0xff]  ;;  %v1642_v54 = vld [vmem:[%s13185_s4 + $0x478] sm:$0xff] }
 0x2e4   :  { %13450 = vst [vmem:[#allocation31_spill] sm:$0xff] %v10252_v31  ;;  %v1833_v60 = vpop.f32.mrb[37].mxu1  ;;  %2095 = vmatmul.mubr.f32.gmra.mrb[142].mxu1 %v1609_v33 }
 0x2e5   :  { %v10254_v16 = vpop.f32.mrb[36].mxu0  ;;  %2099 = vmatprep.mubr.f32.mxu1 %v1612_v61  ;;  %v1630_v60 = vld [vmem:[%s13185_s4 + $0x418] sm:$0xff]  ;;  %7552 = vmatpush3.bf16.msra.mxu1 %v7251_v49 }
 0x2e6   :  { %v3020_v50 = vpop.f32.mrb[37].mxu0  ;;  %3282 = vmatmul.mubr.f32.gmra.mrb[142].mxu0 %v1609_v33 }
 0x2e7   :  { %v10262_v9 = vpop.f32.mrb[38].mxu1  ;;  %3286 = vmatprep.mubr.f32.mxu0 %v1612_v61  ;;  %7252 = vmatpush3.bf16.msra.mxu0 %v7251_v49 }
 0x2e8   :  { %13451 = vst [vmem:[#allocation34_spill] sm:$0xff] %v10262_v9  ;;  %v1838_v22 = vpop.f32.mrb[39].mxu1  ;;  %2100 = vmatmul.mubr.f32.gmra.mrb[144].mxu1 %v1611_v0 }
 0x2e9   :  { %v10264_v24 = vpop.f32.mrb[38].mxu0  ;;  %2104 = vmatprep.mubr.f32.mxu1 %v1614_v4  ;;  %v1629_v22 = vld [vmem:[%s13185_s4 + $0x410] sm:$0xff] }
 0x2ea   :  { %v3025_v63 = vpop.f32.mrb[39].mxu0  ;;  %3287 = vmatmul.mubr.f32.gmra.mrb[144].mxu0 %v1611_v0 }
 0x2eb   :  { %v10272_v56 = vpop.f32.mrb[40].mxu1  ;;  %3291 = vmatprep.mubr.f32.mxu0 %v1614_v4  ;;  %v1632_v63 = vld [vmem:[%s13185_s4 + $0x428] sm:$0xff] }
 0x2ec   :  { %13452 = vst [vmem:[#allocation5_spill] sm:$0xff] %v10272_v56  ;;  %v1843_v59 = vpop.f32.mrb[41].mxu1  ;;  %2105 = vmatmul.mubr.f32.gmra.mrb[146].mxu1 %v1613_v44 }
 0x2ed   :  { %v10274_v28 = vpop.f32.mrb[40].mxu0  ;;  %2109 = vmatprep.mubr.f32.mxu1 %v1616_v34 }
 0x2ee   :  { %v3030_v15 = vpop.f32.mrb[41].mxu0  ;;  %3292 = vmatmul.mubr.f32.gmra.mrb[146].mxu0 %v1613_v44 }
 0x2ef   :  { %v10282_v13 = vpop.f32.mrb[42].mxu1  ;;  %3296 = vmatprep.mubr.f32.mxu0 %v1616_v34  ;;  %v1631_v15 = vld [vmem:[%s13185_s4 + $0x420] sm:$0xff] }
 0x2f0   :  { %13453 = vst [vmem:[#allocation8_spill] sm:$0xff] %v10282_v13  ;;  %v1848_v3 = vpop.f32.mrb[43].mxu1  ;;  %2110 = vmatmul.mubr.f32.gmra.mrb[148].mxu1 %v1615_v21 }
 0x2f1   :  { %v10284_v27 = vpop.f32.mrb[42].mxu0  ;;  %2114 = vmatprep.mubr.f32.mxu1 %v1618_v10  ;;  %v1634_v3 = vld [vmem:[%s13185_s4 + $0x438] sm:$0xff] }
 0x2f2   :  { %13454 = vst [vmem:[#allocation7_spill] sm:$0xff] %v10284_v27  ;;  %v3035_v25 = vpop.f32.mrb[43].mxu0  ;;  %3297 = vmatmul.mubr.f32.gmra.mrb[148].mxu0 %v1615_v21 }
 0x2f3   :  { %v10292_v35 = vpop.f32.mrb[44].mxu1  ;;  %3301 = vmatprep.mubr.f32.mxu0 %v1618_v10 }
 0x2f4   :  { %13455 = vst [vmem:[#allocation10_spill] sm:$0xff] %v10292_v35  ;;  %v1853_v39 = vpop.f32.mrb[45].mxu1  ;;  %2115 = vmatmul.mubr.f32.gmra.mrb[150].mxu1 %v1617_v6 }
 0x2f5   :  { %v10294_v36 = vpop.f32.mrb[44].mxu0  ;;  %2119 = vmatprep.mubr.f32.mxu1 %v1620_v11  ;;  %v1633_v39 = vld [vmem:[%s13185_s4 + $0x430] sm:$0xff] }
 0x2f6   :  { %13456 = vst [vmem:[#allocation9_spill] sm:$0xff] %v10294_v36  ;;  %v3040_v38 = vpop.f32.mrb[45].mxu0  ;;  %3302 = vmatmul.mubr.f32.gmra.mrb[150].mxu0 %v1617_v6 }
 0x2f7   :  { %v10302_v20 = vpop.f32.mrb[46].mxu1  ;;  %3306 = vmatprep.mubr.f32.mxu0 %v1620_v11  ;;  %v1636_v38 = vld [vmem:[%s13185_s4 + $0x448] sm:$0xff] }
 0x2f8   :  { %13457 = vst [vmem:[#allocation14_spill] sm:$0xff] %v10302_v20  ;;  %v1858_v46 = vpop.f32.mrb[47].mxu1  ;;  %2120 = vmatmul.mubr.f32.gmra.mrb[152].mxu1 %v1619_v1  ;;  %v1659_v20 = vld [vmem:[%s13185_s4 + $0x500] sm:$0xff] }
 0x2f9   :  { %v10304_v23 = vpop.f32.mrb[46].mxu0  ;;  %2124 = vmatprep.mubr.f32.mxu1 %v1622_v32 }
 0x2fa   :  { %13458 = vst [vmem:[#allocation22_spill] sm:$0xff] %v10304_v23  ;;  %v3045_v17 = vpop.f32.mrb[47].mxu0  ;;  %3307 = vmatmul.mubr.f32.gmra.mrb[152].mxu0 %v1619_v1 }
 0x2fb   :  { %v10312_v57 = vpop.f32.mrb[48].mxu1  ;;  %3311 = vmatprep.mubr.f32.mxu0 %v1622_v32  ;;  %v1635_v17 = vld [vmem:[%s13185_s4 + $0x440] sm:$0xff] }
 0x2fc   :  { %v1863_v14 = vpop.f32.mrb[49].mxu1  ;;  %2125 = vmatmul.mubr.f32.gmra.mrb[154].mxu1 %v1621_v40 }
 0x2fd   :  { %v10314_v41 = vpop.f32.mrb[48].mxu0  ;;  %2129 = vmatprep.mubr.f32.mxu1 %v1624_v48  ;;  %v1638_v14 = vld [vmem:[%s13185_s4 + $0x458] sm:$0xff] }
 0x2fe   :  { %v3050_v55 = vpop.f32.mrb[49].mxu0  ;;  %3312 = vmatmul.mubr.f32.gmra.mrb[154].mxu0 %v1621_v40 }
 0x2ff   :  { %v10322_v43 = vpop.f32.mrb[50].mxu1  ;;  %3316 = vmatprep.mubr.f32.mxu0 %v1624_v48 }
 0x300   :  { %v1868_v37 = vpop.f32.mrb[51].mxu1  ;;  %2130 = vmatmul.mubr.f32.gmra.mrb[156].mxu1 %v1623_v8 }
 0x301   :  { %v10324_v53 = vpop.f32.mrb[50].mxu0  ;;  %2134 = vmatprep.mubr.f32.mxu1 %v1626_v2  ;;  %v1637_v37 = vld [vmem:[%s13185_s4 + $0x450] sm:$0xff] }
 0x302   :  { %v3055_v62 = vpop.f32.mrb[51].mxu0  ;;  %3317 = vmatmul.mubr.f32.gmra.mrb[156].mxu0 %v1623_v8 }
 0x303   :  { %v10338_v5 = vpop.f32.mrb[52].mxu1  ;;  %3321 = vmatprep.mubr.f32.mxu0 %v1626_v2  ;;  %v1640_v62 = vld [vmem:[%s13185_s4 + $0x468] sm:$0xff] }
 0x304   :  { %v1873_v51 = vpop.f32.mrb[53].mxu1  ;;  %2135 = vmatmul.mubr.f32.gmra.mrb[158].mxu1 %v1625_v7 }
 0x305   :  { %v10346_v33 = vpop.f32.mrb[52].mxu0  ;;  %2139 = vmatprep.mubr.f32.mxu1 %v1628_v19 }
 0x306   :  { %v3060_v61 = vpop.f32.mrb[53].mxu0  ;;  %3322 = vmatmul.mubr.f32.gmra.mrb[158].mxu0 %v1625_v7 }
 0x307   :  { %v10354_v0 = vpop.f32.mrb[54].mxu1  ;;  %3326 = vmatprep.mubr.f32.mxu0 %v1628_v19  ;;  %v1641_v61 = vld [vmem:[%s13185_s4 + $0x470] sm:$0xff] }
 0x308   :  { %v1878_v50 = vpop.f32.mrb[55].mxu1  ;;  %2140 = vmatmul.mubr.f32.gmra.mrb[160].mxu1 %v1627_v45 }
 0x309   :  { %v10356_v4 = vpop.f32.mrb[54].mxu0  ;;  %2144 = vmatprep.mubr.f32.mxu1 %v1630_v60  ;;  %v1644_v50 = vld [vmem:[%s13185_s4 + $0x488] sm:$0xff] }
 0x30a   :  { %v3065_v44 = vpop.f32.mrb[55].mxu0  ;;  %3327 = vmatmul.mubr.f32.gmra.mrb[160].mxu0 %v1627_v45 }
 0x30b   :  { %v10364_v34 = vpop.f32.mrb[56].mxu1  ;;  %3331 = vmatprep.mubr.f32.mxu0 %v1630_v60 }
 0x30c   :  { %v1883_v59 = vpop.f32.mrb[57].mxu1  ;;  %2145 = vmatmul.mubr.f32.gmra.mrb[162].mxu1 %v1629_v22 }
 0x30d   :  { %v10366_v21 = vpop.f32.mrb[56].mxu0  ;;  %2149 = vmatprep.mubr.f32.mxu1 %v1632_v63  ;;  %v1643_v59 = vld [vmem:[%s13185_s4 + $0x480] sm:$0xff] }
 0x30e   :  { %v3070_v10 = vpop.f32.mrb[57].mxu0  ;;  %3332 = vmatmul.mubr.f32.gmra.mrb[162].mxu0 %v1629_v22 }
 0x30f   :  { %v10374_v6 = vpop.f32.mrb[58].mxu1  ;;  %3336 = vmatprep.mubr.f32.mxu0 %v1632_v63  ;;  %v1646_v10 = vld [vmem:[%s13185_s4 + $0x498] sm:$0xff] }
 0x310   :  { %v1888_v25 = vpop.f32.mrb[59].mxu1  ;;  %2150 = vmatmul.mubr.f32.gmra.mrb[164].mxu1 %v1631_v15 }
 0x311   :  { %v10376_v11 = vpop.f32.mrb[58].mxu0  ;;  %2154 = vmatprep.mubr.f32.mxu1 %v1634_v3 }
 0x312   :  { %v3075_v1 = vpop.f32.mrb[59].mxu0  ;;  %3337 = vmatmul.mubr.f32.gmra.mrb[164].mxu0 %v1631_v15 }
 0x313   :  { %v10384_v32 = vpop.f32.mrb[60].mxu1  ;;  %3341 = vmatprep.mubr.f32.mxu0 %v1634_v3  ;;  %v1645_v1 = vld [vmem:[%s13185_s4 + $0x490] sm:$0xff] }
 0x314   :  { %13459 = vst [vmem:[#allocation21_spill] sm:$0xff] %v10384_v32  ;;  %v1893_v46 = vpop.f32.mrb[61].mxu1  ;;  %2155 = vmatmul.mubr.f32.gmra.mrb[166].mxu1 %v1633_v39 }
 0x315   :  { %v10386_v40 = vpop.f32.mrb[60].mxu0  ;;  %2159 = vmatprep.mubr.f32.mxu1 %v1636_v38  ;;  %v1648_v46 = vld [vmem:[%s13185_s4 + $0x4a8] sm:$0xff] }
 0x316   :  { %v3080_v48 = vpop.f32.mrb[61].mxu0  ;;  %3342 = vmatmul.mubr.f32.gmra.mrb[166].mxu0 %v1633_v39 }
 0x317   :  { %v10394_v8 = vpop.f32.mrb[62].mxu1  ;;  %3346 = vmatprep.mubr.f32.mxu0 %v1636_v38 }
 0x318   :  { %13460 = vst [vmem:[#allocation26_spill] sm:$0xff] %v10394_v8  ;;  %v1898_v55 = vpop.f32.mrb[63].mxu1  ;;  %2160 = vmatmul.mubr.f32.gmra.mrb[168].mxu1 %v1635_v17 }
 0x319   :  { %v10396_v2 = vpop.f32.mrb[62].mxu0  ;;  %2164 = vmatprep.mubr.f32.mxu1 %v1638_v14  ;;  %v1647_v55 = vld [vmem:[%s13185_s4 + $0x4a0] sm:$0xff] }
 0x31a   :  { %v3085_v7 = vpop.f32.mrb[63].mxu0  ;;  %3347 = vmatmul.mubr.f32.gmra.mrb[168].mxu0 %v1635_v17 }
 0x31b   :  { %v10404_v19 = vpop.f32.mrb[64].mxu1  ;;  %3351 = vmatprep.mubr.f32.mxu0 %v1638_v14  ;;  %v1650_v7 = vld [vmem:[%s13185_s4 + $0x4b8] sm:$0xff] }
 0x31c   :  { %v1903_v12 = vpop.f32.mrb[65].mxu1  ;;  %2165 = vmatmul.mubr.f32.gmra.mrb[170].mxu1 %v1637_v37 }
 0x31d   :  { %v10406_v26 = vpop.f32.mrb[64].mxu0  ;;  %2169 = vmatprep.mubr.f32.mxu1 %v1640_v62 }
 0x31e   :  { %v3090_v58 = vpop.f32.mrb[65].mxu0  ;;  %3352 = vmatmul.mubr.f32.gmra.mrb[170].mxu0 %v1637_v37 }
 0x31f   :  { %v10414_v51 = vpop.f32.mrb[66].mxu1  ;;  %3356 = vmatprep.mubr.f32.mxu0 %v1640_v62  ;;  %v1649_v58 = vld [vmem:[%s13185_s4 + $0x4b0] sm:$0xff] }
 0x320   :  { %v1908_v49 = vpop.f32.mrb[67].mxu1  ;;  %2170 = vmatmul.mubr.f32.gmra.mrb[172].mxu1 %v1639_v30 }
 0x321   :  { %v10416_v45 = vpop.f32.mrb[66].mxu0  ;;  %2174 = vmatprep.mubr.f32.mxu1 %v1642_v54  ;;  %v1652_v49 = vld [vmem:[%s13185_s4 + $0x4c8] sm:$0xff] }
 0x322   :  { %v3095_v60 = vpop.f32.mrb[67].mxu0  ;;  %3357 = vmatmul.mubr.f32.gmra.mrb[172].mxu0 %v1639_v30 }
 0x323   :  { %v10424_v22 = vpop.f32.mrb[68].mxu1  ;;  %3361 = vmatprep.mubr.f32.mxu0 %v1642_v54 }
 0x324   :  { %v1913_v44 = vpop.f32.mrb[69].mxu1  ;;  %2175 = vmatmul.mubr.f32.gmra.mrb[174].mxu1 %v1641_v61 }
 0x325   :  { %v10426_v63 = vpop.f32.mrb[68].mxu0  ;;  %2179 = vmatprep.mubr.f32.mxu1 %v1644_v50  ;;  %v1651_v44 = vld [vmem:[%s13185_s4 + $0x4c0] sm:$0xff] }
 0x326   :  { %v3100_v15 = vpop.f32.mrb[69].mxu0  ;;  %3362 = vmatmul.mubr.f32.gmra.mrb[174].mxu0 %v1641_v61 }
 0x327   :  { %v10434_v3 = vpop.f32.mrb[70].mxu1  ;;  %3366 = vmatprep.mubr.f32.mxu0 %v1644_v50  ;;  %v1654_v15 = vld [vmem:[%s13185_s4 + $0x4d8] sm:$0xff] }
 0x328   :  { %v1918_v25 = vpop.f32.mrb[71].mxu1  ;;  %2180 = vmatmul.mubr.f32.gmra.mrb[176].mxu1 %v1643_v59 }
 0x329   :  { %v10436_v39 = vpop.f32.mrb[70].mxu0  ;;  %2184 = vmatprep.mubr.f32.mxu1 %v1646_v10 }
 0x32a   :  { %v3105_v38 = vpop.f32.mrb[71].mxu0  ;;  %3367 = vmatmul.mubr.f32.gmra.mrb[176].mxu0 %v1643_v59 }
 0x32b   :  { %v10444_v17 = vpop.f32.mrb[72].mxu1  ;;  %3371 = vmatprep.mubr.f32.mxu0 %v1646_v10  ;;  %v1653_v38 = vld [vmem:[%s13185_s4 + $0x4d0] sm:$0xff] }
 0x32c   :  { %v1923_v48 = vpop.f32.mrb[73].mxu1  ;;  %2185 = vmatmul.mubr.f32.gmra.mrb[178].mxu1 %v1645_v1 }
 0x32d   :  { %v10446_v14 = vpop.f32.mrb[72].mxu0  ;;  %2189 = vmatprep.mubr.f32.mxu1 %v1648_v46  ;;  %v1656_v48 = vld [vmem:[%s13185_s4 + $0x4e8] sm:$0xff] }
 0x32e   :  { %v3110_v37 = vpop.f32.mrb[73].mxu0  ;;  %3372 = vmatmul.mubr.f32.gmra.mrb[178].mxu0 %v1645_v1 }
 0x32f   :  { %v10454_v62 = vpop.f32.mrb[74].mxu1  ;;  %3376 = vmatprep.mubr.f32.mxu0 %v1648_v46 }
 0x330   :  { %v1928_v12 = vpop.f32.mrb[75].mxu1  ;;  %2190 = vmatmul.mubr.f32.gmra.mrb[180].mxu1 %v1647_v55 }
 0x331   :  { %v10456_v30 = vpop.f32.mrb[74].mxu0  ;;  %2194 = vmatprep.mubr.f32.mxu1 %v1650_v7  ;;  %v1655_v12 = vld [vmem:[%s13185_s4 + $0x4e0] sm:$0xff] }
 0x332   :  { %v3115_v54 = vpop.f32.mrb[75].mxu0  ;;  %3377 = vmatmul.mubr.f32.gmra.mrb[180].mxu0 %v1647_v55 }
 0x333   :  { %v10464_v61 = vpop.f32.mrb[76].mxu1  ;;  %3381 = vmatprep.mubr.f32.mxu0 %v1650_v7  ;;  %v1658_v54 = vld [vmem:[%s13185_s4 + $0x4f8] sm:$0xff] }
 0x334   :  { %13461 = vst [vmem:[#allocation32_spill] sm:$0xff] %v10464_v61  ;;  %v1933_v60 = vpop.f32.mrb[77].mxu1  ;;  %2195 = vmatmul.mubr.f32.gmra.mrb[182].mxu1 %v1649_v58 }
 0x335   :  { %v10466_v50 = vpop.f32.mrb[76].mxu0  ;;  %2199 = vmatprep.mubr.f32.mxu1 %v1652_v49 }
 0x336   :  { %v3120_v59 = vpop.f32.mrb[77].mxu0  ;;  %3382 = vmatmul.mubr.f32.gmra.mrb[182].mxu0 %v1649_v58 }
 0x337   :  { %v10474_v10 = vpop.f32.mrb[78].mxu1  ;;  %3386 = vmatprep.mubr.f32.mxu0 %v1652_v49  ;;  %v1657_v59 = vld [vmem:[%s13185_s4 + $0x4f0] sm:$0xff] }
 0x338   :  { %13462 = vst [vmem:[#allocation25_spill] sm:$0xff] %v10474_v10  ;;  %v1938_v25 = vpop.f32.mrb[79].mxu1  ;;  %2200 = vmatmul.mubr.f32.gmra.mrb[184].mxu1 %v1651_v44 }
 0x339   :  { %v10476_v1 = vpop.f32.mrb[78].mxu0  ;;  %2204 = vmatprep.mubr.f32.mxu1 %v1654_v15  ;;  %v1660_v25 = vld [vmem:[%s13185_s4 + $0x508] sm:$0xff] }
 0x33a   :  { %v3125_v46 = vpop.f32.mrb[79].mxu0  ;;  %3387 = vmatmul.mubr.f32.gmra.mrb[184].mxu0 %v1651_v44 }
 0x33b   :  { %v10484_v55 = vpop.f32.mrb[80].mxu1  ;;  %3391 = vmatprep.mubr.f32.mxu0 %v1654_v15  ;;  %v4148_v46 = vld [vmem:[%s13186_s5 + $0xa8] sm:$0xff] }
 0x33c   :  { %13463 = vst [vmem:[#allocation30_spill] sm:$0xff] %v10484_v55  ;;  %v1943_v37 = vpop.f32.mrb[81].mxu1  ;;  %2205 = vmatmul.mubr.f32.gmra.mrb[186].mxu1 %v1653_v38 }
 0x33d   :  { %v10486_v7 = vpop.f32.mrb[80].mxu0  ;;  %2209 = vmatprep.mubr.f32.mxu1 %v1656_v48 }
 0x33e   :  { %v3130_v58 = vpop.f32.mrb[81].mxu0  ;;  %3392 = vmatmul.mubr.f32.gmra.mrb[186].mxu0 %v1653_v38  ;;  %v4147_v38 = vld [vmem:[%s13186_s5 + $0xa0] sm:$0xff] }
 0x33f   :  { %v10494_v49 = vpop.f32.mrb[82].mxu1  ;;  %3396 = vmatprep.mubr.f32.mxu0 %v1656_v48  ;;  %v7253_v37 = vpack.c.bf16 %v4148_v46, %v4147_v38  ;;  %v4132_v58 = vld [vmem:[%s13186_s5 + $0x28] sm:$0xff]  ;;  %v1662_v38 = vld [vmem:[%s13185_s4 + $0x518] sm:$0xff] }
 0x340   :  { %13464 = vst [vmem:[#allocation13_spill] sm:$0xff] %v10494_v49  ;;  %v1948_v60 = vpop.f32.mrb[83].mxu1  ;;  %2210 = vmatmul.mubr.f32.gmra.mrb[188].mxu1 %v1655_v12 }
 0x341   :  { %v10496_v44 = vpop.f32.mrb[82].mxu0  ;;  %2214 = vmatprep.mubr.f32.mxu1 %v1658_v54  ;;  %7545 = vmatprep.subr.bf16.mxu1 %v7253_v37 }
 0x342   :  { %v3135_v15 = vpop.f32.mrb[83].mxu0  ;;  %3397 = vmatmul.mubr.f32.gmra.mrb[188].mxu0 %v1655_v12  ;;  %v4131_v12 = vld [vmem:[%s13186_s5 + $0x20] sm:$0xff]  ;;  %7254 = vmatprep.subr.bf16.mxu0 %v7253_v37 }
 0x343   :  { %v10510_v48 = vpop.f32.mrb[84].mxu1  ;;  %3401 = vmatprep.mubr.f32.mxu0 %v1658_v54  ;;  %v7255_v15 = vpack.c.bf16 %v4132_v58, %v4131_v12 }
 0x344   :  { %13465 = vst [vmem:[#allocation18_spill] sm:$0xff] %v10510_v48  ;;  %v1953_v60 = vpop.f32.mrb[85].mxu1  ;;  %2215 = vmatmul.mubr.f32.gmra.mrb[190].mxu1 %v1657_v59 }
 0x345   :  { %v10518_v52 = vpop.f32.mrb[84].mxu0  ;;  %2219 = vmatprep.mubr.f32.mxu1 %v1660_v25  ;;  %7553 = vmatpush3.bf16.msra.mxu1 %v7255_v15  ;;  %v1661_v60 = vld [vmem:[%s13185_s4 + $0x510] sm:$0xff] }
 0x346   :  { %v3140_v54 = vpop.f32.mrb[85].mxu0  ;;  %3402 = vmatmul.mubr.f32.gmra.mrb[190].mxu0 %v1657_v59 }
 0x347   :  { %v10526_v46 = vpop.f32.mrb[86].mxu1  ;;  %3406 = vmatprep.mubr.f32.mxu0 %v1660_v25  ;;  %7256 = vmatpush3.bf16.msra.mxu0 %v7255_v15  ;;  %v1664_v54 = vld [vmem:[%s13185_s4 + $0x528] sm:$0xff]  ;;  %v1663_v15 = vld [vmem:[%s13185_s4 + $0x520] sm:$0xff] }
 0x348   :  { %13466 = vst [vmem:[#allocation29_spill] sm:$0xff] %v10526_v46  ;;  %v1958_v12 = vpop.f32.mrb[87].mxu1  ;;  %2220 = vmatmul.mubr.f32.gmra.mrb[192].mxu1 %v1659_v20 }
 0x349   :  { %v10528_v58 = vpop.f32.mrb[86].mxu0  ;;  %2224 = vmatprep.mubr.f32.mxu1 %v1662_v38 }
 0x34a   :  { %v3145_v59 = vpop.f32.mrb[87].mxu0  ;;  %3407 = vmatmul.mubr.f32.gmra.mrb[192].mxu0 %v1659_v20  ;;  %v1666_v20 = vld [vmem:[%s13185_s4 + $0x538] sm:$0xff] }
 0x34b   :  { %v10536_v35 = vpop.f32.mrb[88].mxu1  ;;  %3411 = vmatprep.mubr.f32.mxu0 %v1662_v38 }
 0x34c   :  { %v1963_v25 = vpop.f32.mrb[89].mxu1  ;;  %2225 = vmatmul.mubr.f32.gmra.mrb[194].mxu1 %v1661_v60 }
 0x34d   :  { %v10538_v37 = vpop.f32.mrb[88].mxu0  ;;  %2229 = vmatprep.mubr.f32.mxu1 %v1664_v54  ;;  %v1665_v25 = vld [vmem:[%s13185_s4 + $0x530] sm:$0xff] }
 0x34e   :  { %v3150_v12 = vpop.f32.mrb[89].mxu0  ;;  %3412 = vmatmul.mubr.f32.gmra.mrb[194].mxu0 %v1661_v60  ;;  %v1668_v60 = vld [vmem:[%s13185_s4 + $0x548] sm:$0xff] }
 0x34f   :  { %v10546_v59 = vpop.f32.mrb[90].mxu1  ;;  %3416 = vmatprep.mubr.f32.mxu0 %v1664_v54  ;;  %v1667_v54 = vld [vmem:[%s13185_s4 + $0x540] sm:$0xff] }
 0x350   :  { %v1968_v9 = vpop.f32.mrb[91].mxu1  ;;  %2230 = vmatmul.mubr.f32.gmra.mrb[196].mxu1 %v1663_v15 }
 0x351   :  { %v10548_v38 = vpop.f32.mrb[90].mxu0  ;;  %2234 = vmatprep.mubr.f32.mxu1 %v1666_v20 }
 0x352   :  { %v3155_v31 = vpop.f32.mrb[91].mxu0  ;;  %3417 = vmatmul.mubr.f32.gmra.mrb[196].mxu0 %v1663_v15 }
 0x353   :  { %v10556_v12 = vpop.f32.mrb[92].mxu1  ;;  %3421 = vmatprep.mubr.f32.mxu0 %v1666_v20  ;;  %v1670_v31 = vld [vmem:[%s13185_s4 + $0x558] sm:$0xff]  ;;  %v1669_v20 = vld [vmem:[%s13185_s4 + $0x550] sm:$0xff] }
 0x354   :  { %13467 = vst [vmem:[#allocation33_spill] sm:$0xff] %v10556_v12  ;;  %v1973_v18 = vpop.f32.mrb[93].mxu1  ;;  %2235 = vmatmul.mubr.f32.gmra.mrb[198].mxu1 %v1665_v25 }
 0x355   :  { %v10558_v9 = vpop.f32.mrb[92].mxu0  ;;  %2239 = vmatprep.mubr.f32.mxu1 %v1668_v60 }
 0x356   :  { %v3160_v42 = vpop.f32.mrb[93].mxu0  ;;  %3422 = vmatmul.mubr.f32.gmra.mrb[198].mxu0 %v1665_v25 }
 0x357   :  { %v10566_v15 = vpop.f32.mrb[94].mxu1  ;;  %3426 = vmatprep.mubr.f32.mxu0 %v1668_v60  ;;  %v1672_v42 = vld [vmem:[%s13185_s4 + $0x568] sm:$0xff]  ;;  %v1671_v60 = vld [vmem:[%s13185_s4 + $0x560] sm:$0xff] }
 0x358   :  { %13468 = vst [vmem:[#allocation17_spill] sm:$0xff] %v10566_v15  ;;  %v1978_v13 = vpop.f32.mrb[95].mxu1  ;;  %2240 = vmatmul.mubr.f32.gmra.mrb[200].mxu1 %v1667_v54 }
 0x359   :  { %v10568_v18 = vpop.f32.mrb[94].mxu0  ;;  %2244 = vmatprep.mubr.f32.mxu1 %v1670_v31 }
 0x35a   :  { %v3165_v56 = vpop.f32.mrb[95].mxu0  ;;  %3427 = vmatmul.mubr.f32.gmra.mrb[200].mxu0 %v1667_v54 }
 0x35b   :  { %v10576_v25 = vpop.f32.mrb[96].mxu1  ;;  %3431 = vmatprep.mubr.f32.mxu0 %v1670_v31  ;;  %v1674_v56 = vld [vmem:[%s13185_s4 + $0x578] sm:$0xff]  ;;  %v1673_v31 = vld [vmem:[%s13185_s4 + $0x570] sm:$0xff] }
 0x35c   :  { %13469 = vst [vmem:[#allocation12_spill] sm:$0xff] %v10576_v25  ;;  %v1983_v46 = vpop.f32.mrb[97].mxu1  ;;  %2245 = vmatmul.mubr.f32.gmra.mrb[202].mxu1 %v1669_v20 }
 0x35d   :  { %v10578_v13 = vpop.f32.mrb[96].mxu0  ;;  %2249 = vmatprep.mubr.f32.mxu1 %v1672_v42 }
 0x35e   :  { %v3170_v48 = vpop.f32.mrb[97].mxu0  ;;  %3432 = vmatmul.mubr.f32.gmra.mrb[202].mxu0 %v1669_v20 }
 0x35f   :  { %v10586_v54 = vpop.f32.mrb[98].mxu1  ;;  %3436 = vmatprep.mubr.f32.mxu0 %v1672_v42  ;;  %v1676_v48 = vld [vmem:[%s13185_s4 + $0x588] sm:$0xff] }
 0x360   :  { %13470 = vst [vmem:[#allocation24_spill] sm:$0xff] %v10586_v54  ;;  %v1988_v25 = vpop.f32.mrb[99].mxu1  ;;  %2250 = vmatmul.mubr.f32.gmra.mrb[204].mxu1 %v1671_v60 }
 0x361   :  { %v10588_v46 = vpop.f32.mrb[98].mxu0  ;;  %2254 = vmatprep.mubr.f32.mxu1 %v1674_v56  ;;  %v1675_v25 = vld [vmem:[%s13185_s4 + $0x580] sm:$0xff] }
 0x362   :  { %v3175_v49 = vpop.f32.mrb[99].mxu0  ;;  %3437 = vmatmul.mubr.f32.gmra.mrb[204].mxu0 %v1671_v60 }
 0x363   :  { %v10596_v20 = vpop.f32.mrb[100].mxu1  ;;  %3441 = vmatprep.mubr.f32.mxu0 %v1674_v56  ;;  %v1678_v49 = vld [vmem:[%s13185_s4 + $0x598] sm:$0xff] }
 0x364   :  { %13471 = vst [vmem:[#allocation23_spill] sm:$0xff] %v10596_v20  ;;  %v1993_v54 = vpop.f32.mrb[101].mxu1  ;;  %2255 = vmatmul.mubr.f32.gmra.mrb[206].mxu1 %v1673_v31 }
 0x365   :  { %v10598_v42 = vpop.f32.mrb[100].mxu0  ;;  %2259 = vmatprep.mubr.f32.mxu1 %v1676_v48  ;;  %v1677_v54 = vld [vmem:[%s13185_s4 + $0x590] sm:$0xff] }
 0x366   :  { %v3180_v23 = vpop.f32.mrb[101].mxu0  ;;  %3442 = vmatmul.mubr.f32.gmra.mrb[206].mxu0 %v1673_v31 }
 0x367   :  { %v10606_v60 = vpop.f32.mrb[102].mxu1  ;;  %3446 = vmatprep.mubr.f32.mxu0 %v1676_v48  ;;  %v1680_v23 = vld [vmem:[%s13185_s4 + $0x5a8] sm:$0xff] }
 0x368   :  { %13472 = vst [vmem:[#allocation11_spill] sm:$0xff] %v10606_v60  ;;  %v1998_v20 = vpop.f32.mrb[103].mxu1  ;;  %2260 = vmatmul.mubr.f32.gmra.mrb[208].mxu1 %v1675_v25 }
 0x369   :  { %v10608_v56 = vpop.f32.mrb[102].mxu0  ;;  %2264 = vmatprep.mubr.f32.mxu1 %v1678_v49  ;;  %v1679_v20 = vld [vmem:[%s13185_s4 + $0x5a0] sm:$0xff] }
 0x36a   :  { %v3185_v55 = vpop.f32.mrb[103].mxu0  ;;  %3447 = vmatmul.mubr.f32.gmra.mrb[208].mxu0 %v1675_v25 }
 0x36b   :  { %v10616_v31 = vpop.f32.mrb[104].mxu1  ;;  %3451 = vmatprep.mubr.f32.mxu0 %v1678_v49  ;;  %v1682_v55 = vld [vmem:[%s13185_s4 + $0x5b8] sm:$0xff] }
 0x36c   :  { %13473 = vst [vmem:[#allocation16_spill] sm:$0xff] %v10616_v31  ;;  %v2003_v60 = vpop.f32.mrb[105].mxu1  ;;  %2265 = vmatmul.mubr.f32.gmra.mrb[210].mxu1 %v1677_v54 }
 0x36d   :  { %v10618_v48 = vpop.f32.mrb[104].mxu0  ;;  %2269 = vmatprep.mubr.f32.mxu1 %v1680_v23  ;;  %v1681_v60 = vld [vmem:[%s13185_s4 + $0x5b0] sm:$0xff] }
 0x36e   :  { %v3190_v15 = vpop.f32.mrb[105].mxu0  ;;  %3452 = vmatmul.mubr.f32.gmra.mrb[210].mxu0 %v1677_v54 }
 0x36f   :  { %v10626_v25 = vpop.f32.mrb[106].mxu1  ;;  %3456 = vmatprep.mubr.f32.mxu0 %v1680_v23  ;;  %v1684_v15 = vld [vmem:[%s13185_s4 + $0x5c8] sm:$0xff] }
 0x370   :  { %13474 = vst [vmem:[#allocation28_spill] sm:$0xff] %v10626_v25  ;;  %v2008_v31 = vpop.f32.mrb[107].mxu1  ;;  %2270 = vmatmul.mubr.f32.gmra.mrb[212].mxu1 %v1679_v20 }
 0x371   :  { %v10628_v49 = vpop.f32.mrb[106].mxu0  ;;  %2274 = vmatprep.mubr.f32.mxu1 %v1682_v55  ;;  %v1683_v31 = vld [vmem:[%s13185_s4 + $0x5c0] sm:$0xff] }
 0x372   :  { %13475 = vst [vmem:[#allocation27_spill] sm:$0xff] %v10628_v49  ;;  %v3195_v36 = vpop.f32.mrb[107].mxu0  ;;  %3457 = vmatmul.mubr.f32.gmra.mrb[212].mxu0 %v1679_v20 }
 0x373   :  { %v10636_v54 = vpop.f32.mrb[108].mxu1  ;;  %3461 = vmatprep.mubr.f32.mxu0 %v1682_v55  ;;  %v1686_v36 = vld [vmem:[%s13185_s4 + $0x5d8] sm:$0xff] }
 0x374   :  { %13476 = vst [vmem:[#allocation6_spill] sm:$0xff] %v10636_v54  ;;  %v2013_v25 = vpop.f32.mrb[109].mxu1  ;;  %2275 = vmatmul.mubr.f32.gmra.mrb[214].mxu1 %v1681_v60 }
 0x375   :  { %v10638_v23 = vpop.f32.mrb[108].mxu0  ;;  %2279 = vmatprep.mubr.f32.mxu1 %v1684_v15  ;;  %v1685_v25 = vld [vmem:[%s13185_s4 + $0x5d0] sm:$0xff] }
 0x376   :  { %13477 = vst [vmem:[#allocation15_spill] sm:$0xff] %v10638_v23  ;;  %v3200_v49 = vpop.f32.mrb[109].mxu0  ;;  %3462 = vmatmul.mubr.f32.gmra.mrb[214].mxu0 %v1681_v60 }
 0x377   :  { %v10646_v20 = vpop.f32.mrb[110].mxu1  ;;  %3466 = vmatprep.mubr.f32.mxu0 %v1684_v15  ;;  %v1688_v49 = vld [vmem:[%s13185_s4 + $0x5e8] sm:$0xff] }
 0x378   :  { %13478 = vst [vmem:[#allocation35_spill] sm:$0xff] %v10646_v20  ;;  %v2018_v54 = vpop.f32.mrb[111].mxu1  ;;  %2280 = vmatmul.mubr.f32.gmra.mrb[216].mxu1 %v1683_v31 }
 0x379   :  { %v10648_v55 = vpop.f32.mrb[110].mxu0  ;;  %2284 = vmatprep.mubr.f32.mxu1 %v1686_v36  ;;  %v1687_v54 = vld [vmem:[%s13185_s4 + $0x5e0] sm:$0xff] }
 0x37a   :  { %13479 = vst [vmem:[#allocation36_spill] sm:$0xff] %v10648_v55  ;;  %v3205_v23 = vpop.f32.mrb[111].mxu0  ;;  %3467 = vmatmul.mubr.f32.gmra.mrb[216].mxu0 %v1683_v31 }
 0x37b   :  { %v10656_v60 = vpop.f32.mrb[112].mxu1  ;;  %3471 = vmatprep.mubr.f32.mxu0 %v1686_v36  ;;  %v1690_v23 = vld [vmem:[%s13185_s4 + $0x5f8] sm:$0xff] }
 0x37c   :  { %13480 = vst [vmem:[#allocation37_spill] sm:$0xff] %v10656_v60  ;;  %v2023_v20 = vpop.f32.mrb[113].mxu1  ;;  %2285 = vmatmul.mubr.f32.gmra.mrb[218].mxu1 %v1685_v25 }
 0x37d   :  { %v3208_v15 = vpop.f32.mrb[112].mxu0  ;;  %2289 = vmatprep.mubr.f32.mxu1 %v1688_v49 }
 0x37e   :  { %v7566_v55 = vpack.i.bf16 %v10314_v41, %v3208_v15  ;;  %v3210_v12 = vpop.f32.mrb[113].mxu0  ;;  %3472 = vmatmul.mubr.f32.gmra.mrb[218].mxu0 %v1685_v25  ;;  %v1689_v41 = vld [vmem:[%s13185_s4 + $0x5f0] sm:$0xff]  ;;  %v1692_v15 = vld [vmem:[%s13185_s4 + $0x608] sm:$0xff] }
 0x37f   :  { %v10665_v31 = vpop.f32.mrb[114].mxu1  ;;  %3476 = vmatprep.mubr.f32.mxu0 %v1688_v49  ;;  %v4150_v49 = vld [vmem:[%s13186_s5 + $0xb8] sm:$0xff] }
 0x380   :  { %13481 = vst [vmem:[#allocation38_spill] sm:$0xff] %v10665_v31  ;;  %7567 = vrot.lane.b32.xlu0 %v7566_v55, %s8155_s22  ;;  %v2028_v36 = vpop.f32.mrb[115].mxu1  ;;  %2290 = vmatmul.mubr.f32.gmra.mrb[220].mxu1 %v1687_v54  ;;  %v4149_v55 = vld [vmem:[%s13186_s5 + $0xb0] sm:$0xff] }
 0x381   :  { %v3213_v20 = vpop.f32.mrb[114].mxu0  ;;  %2294 = vmatprep.mubr.f32.mxu1 %v1690_v23  ;;  %v7257_v31 = vpack.c.bf16 %v4150_v49, %v4149_v55  ;;  %v1694_v49 = vld [vmem:[%s13185_s4 + $0x618] sm:$0xff] }
 0x382   :  { %v7571_v12 = vpack.i.bf16 %v10324_v53, %v3213_v20  ;;  %v3215_v25 = vpop.f32.mrb[115].mxu0  ;;  %3477 = vmatmul.mubr.f32.gmra.mrb[220].mxu0 %v1687_v54  ;;  %v1691_v20 = vld [vmem:[%s13185_s4 + $0x600] sm:$0xff] }
 0x383   :  { %v10681_v36 = vpop.f32.mrb[116].mxu1  ;;  %3481 = vmatprep.mubr.f32.mxu0 %v1690_v23  ;;  %7546 = vmatprep.subr.bf16.mxu1 %v7257_v31  ;;  %v4133_v25 = vld [vmem:[%s13186_s5 + $0x30] sm:$0xff]  ;;  %v4134_v23 = vld [vmem:[%s13186_s5 + $0x38] sm:$0xff] }
 0x384   :  { %13482 = vst [vmem:[#allocation39_spill] sm:$0xff] %v10681_v36  ;;  %7572 = vrot.lane.b32.xlu1 %v7571_v12, %s8155_s22  ;;  %v2033_v53 = vpop.f32.mrb[117].mxu1  ;;  %2295 = vmatmul.mubr.f32.gmra.mrb[222].mxu1 %v1689_v41 }
 0x385   :  { %v3218_v54 = vpop.f32.mrb[116].mxu0  ;;  %2299 = vmatprep.mubr.f32.mxu1 %v1692_v15  ;;  %v7259_v53 = vpack.c.bf16 %v4134_v23, %v4133_v25  ;;  %7258 = vmatprep.subr.bf16.mxu0 %v7257_v31  ;;  %v1696_v31 = vld [vmem:[%s13185_s4 + $0x628] sm:$0xff]  ;;  %v1698_v23 = vld [vmem:[%s13185_s4 + $0x638] sm:$0xff] }
 0x386   :  { %v7576_v55 = vpack.i.bf16 %v10346_v33, %v3218_v54  ;;  %v3220_v12 = vpop.f32.mrb[117].mxu0  ;;  %3482 = vmatmul.mubr.f32.gmra.mrb[222].mxu0 %v1689_v41  ;;  %v1693_v33 = vld [vmem:[%s13185_s4 + $0x610] sm:$0xff] }
 0x387   :  { %v10697_v36 = vpop.f32.mrb[118].mxu1  ;;  %3486 = vmatprep.mubr.f32.mxu0 %v1692_v15  ;;  %7554 = vmatpush3.bf16.msra.mxu1 %v7259_v53 }
 0x388   :  { %7577 = vrot.lane.b32.xlu0 %v7576_v55, %s8155_s22  ;;  %v2038_v60 = vpop.f32.mrb[119].mxu1  ;;  %2300 = vmatmul.mubr.f32.gmra.mrb[224].mxu1 %v1691_v20 }
 0x389   :  { %v3223_v27 = vpop.f32.mrb[118].mxu0  ;;  %2304 = vmatprep.mubr.f32.mxu1 %v1694_v49  ;;  %7260 = vmatpush3.bf16.msra.mxu0 %v7259_v53  ;;  %v1697_v53 = vld [vmem:[%s13185_s4 + $0x630] sm:$0xff] }
 0x38a   :  { %v7581_v41 = vpack.i.bf16 %v10356_v4, %v3223_v27  ;;  %v3225_v54 = vpop.f32.mrb[119].mxu0  ;;  %3487 = vmatmul.mubr.f32.gmra.mrb[224].mxu0 %v1691_v20  ;;  %v1695_v27 = vld [vmem:[%s13185_s4 + $0x620] sm:$0xff] }
 0x38b   :  { %v10707_v15 = vpop.f32.mrb[120].mxu1  ;;  %3491 = vmatprep.mubr.f32.mxu0 %v1694_v49 }
 0x38c   :  { %7582 = vrot.lane.b32.xlu1 %v7581_v41, %s8155_s22  ;;  %v2043_v60 = vpop.f32.mrb[121].mxu1  ;;  %2305 = vmatmul.mubr.f32.gmra.mrb[226].mxu1 %v1693_v33  ;;  %v1700_v41 = vld [vmem:[%s13185_s4 + $0x648] sm:$0xff] }
 0x38d   :  { %v3228_v25 = vpop.f32.mrb[120].mxu0  ;;  %2309 = vmatprep.mubr.f32.mxu1 %v1696_v31 }
 0x38e   :  { %v7586_v4 = vpack.i.bf16 %v10366_v21, %v3228_v25  ;;  %v3230_v20 = vpop.f32.mrb[121].mxu0  ;;  %3492 = vmatmul.mubr.f32.gmra.mrb[226].mxu0 %v1693_v33  ;;  %v1699_v25 = vld [vmem:[%s13185_s4 + $0x640] sm:$0xff] }
 0x38f   :  { %v10717_v55 = vpop.f32.mrb[122].mxu1  ;;  %3496 = vmatprep.mubr.f32.mxu0 %v1696_v31 }
 0x390   :  { %7587 = vrot.lane.b32.xlu0 %v7586_v4, %s8155_s22  ;;  %v2048_v12 = vpop.f32.mrb[123].mxu1  ;;  %2310 = vmatmul.mubr.f32.gmra.mrb[228].mxu1 %v1695_v27  ;;  %v1702_v4 = vld [vmem:[%s13185_s4 + $0x658] sm:$0xff] }
 0x391   :  { %v3233_v49 = vpop.f32.mrb[122].mxu0  ;;  %2314 = vmatprep.mubr.f32.mxu1 %v1698_v23 }
 0x392   :  { %v7591_v21 = vpack.i.bf16 %v10376_v11, %v3233_v49  ;;  %v3235_v33 = vpop.f32.mrb[123].mxu0  ;;  %3497 = vmatmul.mubr.f32.gmra.mrb[228].mxu0 %v1695_v27  ;;  %v1701_v49 = vld [vmem:[%s13185_s4 + $0x650] sm:$0xff] }
 0x393   :  { %v10727_v54 = vpop.f32.mrb[124].mxu1  ;;  %3501 = vmatprep.mubr.f32.mxu0 %v1698_v23 }
 0x394   :  { %7592 = vrot.lane.b32.xlu1 %v7591_v21, %s8155_s22  ;;  %v2053_v31 = vpop.f32.mrb[125].mxu1  ;;  %2315 = vmatmul.mubr.f32.gmra.mrb[230].mxu1 %v1697_v53  ;;  %v1704_v21 = vld [vmem:[%s13185_s4 + $0x668] sm:$0xff] }
 0x395   :  { %v3238_v60 = vpop.f32.mrb[124].mxu0  ;;  %2319 = vmatprep.mubr.f32.mxu1 %v1700_v41 }
 0x396   :  { %v7596_v11 = vpack.i.bf16 %v10386_v40, %v3238_v60  ;;  %v3240_v27 = vpop.f32.mrb[125].mxu0  ;;  %3502 = vmatmul.mubr.f32.gmra.mrb[230].mxu0 %v1697_v53  ;;  %v1703_v60 = vld [vmem:[%s13185_s4 + $0x660] sm:$0xff] }
 0x397   :  { %v10737_v20 = vpop.f32.mrb[126].mxu1  ;;  %3506 = vmatprep.mubr.f32.mxu0 %v1700_v41 }
 0x398   :  { %7597 = vrot.lane.b32.xlu0 %v7596_v11, %s8155_s22  ;;  %v2058_v23 = vpop.f32.mrb[127].mxu1  ;;  %2320 = vmatmul.mubr.f32.gmra.mrb[232].mxu1 %v1699_v25  ;;  %v1706_v11 = vld [vmem:[%s13185_s4 + $0x678] sm:$0xff] }
 0x399   :  { %v3243_v12 = vpop.f32.mrb[126].mxu0  ;;  %2324 = vmatprep.mubr.f32.mxu1 %v1702_v4 }
 0x39a   :  { %v7601_v40 = vpack.i.bf16 %v10396_v2, %v3243_v12  ;;  %v3245_v53 = vpop.f32.mrb[127].mxu0  ;;  %3507 = vmatmul.mubr.f32.gmra.mrb[232].mxu0 %v1699_v25 }
 0x39b   :  { %v10747_v33 = vpop.f32.mrb[128].mxu1  ;;  %3511 = vmatprep.mubr.f32.mxu0 %v1702_v4 }
 0x39c   :  { %13483 = vst [vmem:[#allocation40_spill] sm:$0xff] %v10747_v33  ;;  %7602 = vrot.lane.b32.xlu1 %v7601_v40, %s8155_s22  ;;  %v2063_v41 = vpop.f32.mrb[129].mxu1  ;;  %2325 = vmatmul.mubr.f32.gmra.mrb[234].mxu1 %v1701_v49  ;;  %v1708_v40 = vld [vmem:[%s13185_s4 + $0x688] sm:$0xff] }
 0x39d   :  { %v3248_v31 = vpop.f32.mrb[128].mxu0  ;;  %2329 = vmatprep.mubr.f32.mxu1 %v1704_v21 }
 0x39e   :  { %v7606_v2 = vpack.i.bf16 %v10406_v26, %v3248_v31  ;;  %v3250_v25 = vpop.f32.mrb[129].mxu0  ;;  %3512 = vmatmul.mubr.f32.gmra.mrb[234].mxu0 %v1701_v49  ;;  %v1705_v26 = vld [vmem:[%s13185_s4 + $0x670] sm:$0xff]  ;;  %v1707_v31 = vld [vmem:[%s13185_s4 + $0x680] sm:$0xff] }
 0x39f   :  { %v10757_v27 = vpop.f32.mrb[130].mxu1  ;;  %3516 = vmatprep.mubr.f32.mxu0 %v1704_v21 }
 0x3a0   :  { %13484 = vst [vmem:[#allocation41_spill] sm:$0xff] %v10757_v27  ;;  %7607 = vrot.lane.b32.xlu0 %v7606_v2, %s8156_s27  ;;  %v2068_v4 = vpop.f32.mrb[131].mxu1  ;;  %2330 = vmatmul.mubr.f32.gmra.mrb[236].mxu1 %v1703_v60  ;;  %v1710_v2 = vld [vmem:[%s13185_s4 + $0x698] sm:$0xff] }
 0x3a1   :  { %v3253_v23 = vpop.f32.mrb[130].mxu0  ;;  %2334 = vmatprep.mubr.f32.mxu1 %v1706_v11  ;;  %v1709_v4 = vld [vmem:[%s13185_s4 + $0x690] sm:$0xff] }
 0x3a2   :  { %v7611_v12 = vpack.i.bf16 %v10416_v45, %v3253_v23  ;;  %v3255_v49 = vpop.f32.mrb[131].mxu0  ;;  %3517 = vmatmul.mubr.f32.gmra.mrb[236].mxu0 %v1703_v60 }
 0x3a3   :  { %v10767_v53 = vpop.f32.mrb[132].mxu1  ;;  %3521 = vmatprep.mubr.f32.mxu0 %v1706_v11 }
 0x3a4   :  { %13485 = vst [vmem:[#allocation42_spill] sm:$0xff] %v10767_v53  ;;  %7612 = vrot.lane.b32.xlu0 %v7611_v12, %s8156_s27  ;;  %v2073_v21 = vpop.f32.mrb[133].mxu1  ;;  %2335 = vmatmul.mubr.f32.gmra.mrb[238].mxu1 %v1705_v26  ;;  %v4135_v12 = vld [vmem:[%s13186_s5 + $0x40] sm:$0xff]  ;;  %v4140_v53 = vld [vmem:[%s13186_s5 + $0x68] sm:$0xff] }
 0x3a5   :  { %v3258_v41 = vpop.f32.mrb[132].mxu0  ;;  %2339 = vmatprep.mubr.f32.mxu1 %v1708_v40  ;;  %v1712_v21 = vld [vmem:[%s13185_s4 + $0x6a8] sm:$0xff] }
 0x3a6   :  { %v7616_v45 = vpack.i.bf16 %v10426_v63, %v3258_v41  ;;  %v3260_v60 = vpop.f32.mrb[133].mxu0  ;;  %3522 = vmatmul.mubr.f32.gmra.mrb[238].mxu0 %v1705_v26  ;;  %v4151_v63 = vld [vmem:[%s13186_s5 + $0xc0] sm:$0xff]  ;;  %v4152_v26 = vld [vmem:[%s13186_s5 + $0xc8] sm:$0xff] }
 0x3a7   :  { %v10777_v25 = vpop.f32.mrb[134].mxu1  ;;  %3526 = vmatprep.mubr.f32.mxu0 %v1708_v40  ;;  %v7261_v41 = vpack.c.bf16 %v4152_v26, %v4151_v63 }
 0x3a8   :  { %13486 = vst [vmem:[#allocation43_spill] sm:$0xff] %v10777_v25  ;;  %7617 = vrot.lane.b32.xlu1 %v7616_v45, %s8156_s27  ;;  %v2078_v11 = vpop.f32.mrb[135].mxu1  ;;  %2340 = vmatmul.mubr.f32.gmra.mrb[240].mxu1 %v1707_v31  ;;  %v4136_v45 = vld [vmem:[%s13186_s5 + $0x48] sm:$0xff]  ;;  %v4153_v25 = vld [vmem:[%s13186_s5 + $0xd0] sm:$0xff] }
 0x3a9   :  { %v3263_v23 = vpop.f32.mrb[134].mxu0  ;;  %2344 = vmatprep.mubr.f32.mxu1 %v1710_v2  ;;  %v7263_v11 = vpack.c.bf16 %v4136_v45, %v4135_v12  ;;  %v1711_v12 = vld [vmem:[%s13185_s4 + $0x6a0] sm:$0xff]  ;;  %7547 = vmatprep.subr.bf16.mxu1 %v7261_v41 }
 0x3aa   :  { %v7621_v49 = vpack.i.bf16 %v10436_v39, %v3263_v23  ;;  %v3265_v40 = vpop.f32.mrb[135].mxu0  ;;  %3527 = vmatmul.mubr.f32.gmra.mrb[240].mxu0 %v1707_v31  ;;  %v4154_v39 = vld [vmem:[%s13186_s5 + $0xd8] sm:$0xff]  ;;  %v4137_v31 = vld [vmem:[%s13186_s5 + $0x50] sm:$0xff]  ;;  %7262 = vmatprep.subr.bf16.mxu0 %v7261_v41  ;;  %v1715_v41 = vld [vmem:[%s13185_s4 + $0x6c0] sm:$0xff] }
 0x3ab   :  { %v10799_v60 = vpop.f32.mrb[136].mxu1  ;;  %3531 = vmatprep.mubr.f32.mxu0 %v1710_v2  ;;  %v7265_v63 = vpack.c.bf16 %v4154_v39, %v4153_v25  ;;  %v4138_v2 = vld [vmem:[%s13186_s5 + $0x58] sm:$0xff]  ;;  %7555 = vmatpush3.bf16.msra.mxu1 %v7263_v11 }
 0x3ac   :  { %13487 = vst [vmem:[#allocation44_spill] sm:$0xff] %v10799_v60  ;;  %7622 = vrot.lane.b32.xlu0 %v7621_v49, %s8156_s27  ;;  %v2083_v23 = vpop.f32.mrb[137].mxu1  ;;  %2345 = vmatmul.mubr.f32.gmra.mrb[242].mxu1 %v1709_v4  ;;  %v1714_v49 = vld [vmem:[%s13185_s4 + $0x6b8] sm:$0xff]  ;;  %v7267_v25 = vpack.c.bf16 %v4138_v2, %v4137_v31  ;;  %v4156_v31 = vld [vmem:[%s13186_s5 + $0xe8] sm:$0xff] }
 0x3ad   :  { %v3268_v26 = vpop.f32.mrb[136].mxu0  ;;  %2349 = vmatprep.mubr.f32.mxu1 %v1712_v21  ;;  %7548 = vmatprep.subr.bf16.mxu1 %v7265_v63 }
 0x3ae   :  { %v7626_v40 = vpack.i.bf16 %v10446_v14, %v3268_v26  ;;  %v3270_v45 = vpop.f32.mrb[137].mxu0  ;;  %3532 = vmatmul.mubr.f32.gmra.mrb[242].mxu0 %v1709_v4  ;;  %v1713_v14 = vld [vmem:[%s13185_s4 + $0x6b0] sm:$0xff]  ;;  %v4155_v4 = vld [vmem:[%s13186_s5 + $0xe0] sm:$0xff] }
 0x3af   :  { %v10821_v39 = vpop.f32.mrb[138].mxu1  ;;  %3536 = vmatprep.mubr.f32.mxu0 %v1712_v21  ;;  %v4139_v21 = vld [vmem:[%s13186_s5 + $0x60] sm:$0xff]  ;;  %v1716_v45 = vld [vmem:[%s13185_s4 + $0x6c8] sm:$0xff]  ;;  %7556 = vmatpush3.bf16.msra.mxu1 %v7267_v25 }
 0x3b0   :  { %13488 = vst [vmem:[#allocation45_spill] sm:$0xff] %v10821_v39  ;;  %7627 = vrot.lane.b32.xlu1 %v7626_v40, %s8156_s27  ;;  %v2088_v23 = vpop.f32.mrb[139].mxu1  ;;  %2350 = vmatmul.mubr.f32.gmra.mrb[244].mxu1 %v1711_v12  ;;  %v7271_v33 = vpack.c.bf16 %v4140_v53, %v4139_v21  ;;  %v4158_v53 = vld [vmem:[%s13186_s5 + $0xf8] sm:$0xff] }
 0x3b1   :  { %v3273_v26 = vpop.f32.mrb[138].mxu0  ;;  %2354 = vmatprep.mubr.f32.mxu1 %v1714_v49  ;;  %v7269_v23 = vpack.c.bf16 %v4156_v31, %v4155_v4  ;;  %7264 = vmatpush3.bf16.msra.mxu0 %v7263_v11  ;;  %v4141_v11 = vld [vmem:[%s13186_s5 + $0x70] sm:$0xff]  ;;  %v1718_v31 = vld [vmem:[%s13185_s4 + $0x6d8] sm:$0xff] }
 0x3b2   :  { %v7631_v2 = vpack.i.bf16 %v10456_v30, %v3273_v26  ;;  %v3275_v40 = vpop.f32.mrb[139].mxu0  ;;  %3537 = vmatmul.mubr.f32.gmra.mrb[244].mxu0 %v1711_v12  ;;  %v4157_v26 = vld [vmem:[%s13186_s5 + $0xf0] sm:$0xff]  ;;  %7266 = vmatprep.subr.bf16.mxu0 %v7265_v63 }
 0x3b3   :  { %v10843_v27 = vpop.f32.mrb[140].mxu1  ;;  %3541 = vmatprep.mubr.f32.mxu0 %v1714_v49  ;;  %7549 = vmatprep.subr.bf16.mxu1 %v7269_v23  ;;  %v7273_v21 = vpack.c.bf16 %v4158_v53, %v4157_v26 }
 0x3b4   :  { %13489 = vst [vmem:[#allocation46_spill] sm:$0xff] %v10843_v27  ;;  %7632 = vrot.lane.b32.xlu0 %v7631_v2, %s8156_s27  ;;  %v2093_v30 = vpop.f32.mrb[141].mxu1  ;;  %2355 = vmatmul.mubr.f32.gmra.mrb[246].mxu1 %v1713_v14  ;;  %v4142_v2 = vld [vmem:[%s13186_s5 + $0x78] sm:$0xff] }
 0x3b5   :  { %v3278_v12 = vpop.f32.mrb[140].mxu0  ;;  %2359 = vmatprep.mubr.f32.mxu1 %v1716_v45  ;;  %7557 = vmatpush3.bf16.msra.mxu1 %v7271_v33  ;;  %v7275_v30 = vpack.c.bf16 %v4142_v2, %v4141_v11 }
 0x3b6   :  { %v7636_v49 = vpack.i.bf16 %v10466_v50, %v3278_v12  ;;  %v3280_v4 = vpop.f32.mrb[141].mxu0  ;;  %3542 = vmatmul.mubr.f32.gmra.mrb[246].mxu0 %v1713_v14  ;;  %v1717_v12 = vld [vmem:[%s13185_s4 + $0x6d0] sm:$0xff]  ;;  %7550 = vmatprep.subr.bf16.mxu1 %v7273_v21 }
 0x3b7   :  { %v10865_v40 = vpop.f32.mrb[142].mxu1  ;;  %3546 = vmatprep.mubr.f32.mxu0 %v1716_v45  ;;  %v1720_v45 = vld [vmem:[%s13185_s4 + $0x6e8] sm:$0xff]  ;;  %7268 = vmatpush3.bf16.msra.mxu0 %v7267_v25 }
 0x3b8   :  { %13490 = vst [vmem:[#allocation47_spill] sm:$0xff] %v10865_v40  ;;  %7637 = vrot.lane.b32.xlu1 %v7636_v49, %s8156_s27  ;;  %v2098_v50 = vpop.f32.mrb[143].mxu1  ;;  %2360 = vmatmul.mubr.f32.gmra.mrb[248].mxu1 %v1715_v41 }
 0x3b9   :  { %v3283_v14 = vpop.f32.mrb[142].mxu0  ;;  %2364 = vmatprep.mubr.f32.mxu1 %v1718_v31  ;;  %7558 = vmatpush3.bf16.msra.mxu1 %v7275_v30 }
 0x3ba   :  { %v7641_v26 = vpack.i.bf16 %v10476_v1, %v3283_v14  ;;  %v3285_v53 = vpop.f32.mrb[143].mxu0  ;;  %3547 = vmatmul.mubr.f32.gmra.mrb[248].mxu0 %v1715_v41  ;;  %v1719_v1 = vld [vmem:[%s13185_s4 + $0x6e0] sm:$0xff]  ;;  %7270 = vmatprep.subr.bf16.mxu0 %v7269_v23 }
 0x3bb   :  { %v10875_v63 = vpop.f32.mrb[144].mxu1  ;;  %3551 = vmatprep.mubr.f32.mxu0 %v1718_v31  ;;  %v1722_v31 = vld [vmem:[%s13185_s4 + $0x6f8] sm:$0xff]  ;;  %7272 = vmatpush3.bf16.msra.mxu0 %v7271_v33  ;;  %v1724_v33 = vld [vmem:[%s13185_s4 + $0x708] sm:$0xff] }
 0x3bc   :  { %13491 = vst [vmem:[#allocation48_spill] sm:$0xff] %v10875_v63  ;;  %7642 = vrot.lane.b32.xlu0 %v7641_v26, %s8156_s27  ;;  %v2103_v11 = vpop.f32.mrb[145].mxu1  ;;  %2365 = vmatmul.mubr.f32.gmra.mrb[250].mxu1 %v1717_v12 }
 0x3bd   :  { %v3288_v49 = vpop.f32.mrb[144].mxu0  ;;  %2369 = vmatprep.mubr.f32.mxu1 %v1720_v45  ;;  %7274 = vmatprep.subr.bf16.mxu0 %v7273_v21  ;;  %v1726_v11 = vld [vmem:[%s13185_s4 + $0x718] sm:$0xff] }
 0x3be   :  { %v7646_v41 = vpack.i.bf16 %v10486_v7, %v3288_v49  ;;  %v3290_v4 = vpop.f32.mrb[145].mxu0  ;;  %3552 = vmatmul.mubr.f32.gmra.mrb[250].mxu0 %v1717_v12  ;;  %v1721_v7 = vld [vmem:[%s13185_s4 + $0x6f0] sm:$0xff] }
 0x3bf   :  { %v10885_v25 = vpop.f32.mrb[146].mxu1  ;;  %3556 = vmatprep.mubr.f32.mxu0 %v1720_v45  ;;  %7276 = vmatpush3.bf16.msra.mxu0 %v7275_v30 }
 0x3c0   :  { %13492 = vst [vmem:[#allocation49_spill] sm:$0xff] %v10885_v25  ;;  %7647 = vrot.lane.b32.xlu1 %v7646_v41, %s8157_s23  ;;  %v2108_v2 = vpop.f32.mrb[147].mxu1  ;;  %2370 = vmatmul.mubr.f32.gmra.mrb[252].mxu1 %v1719_v1  ;;  %v1725_v41 = vld [vmem:[%s13185_s4 + $0x710] sm:$0xff] }
 0x3c1   :  { %v3293_v50 = vpop.f32.mrb[146].mxu0  ;;  %2374 = vmatprep.mubr.f32.mxu1 %v1722_v31 }
 0x3c2   :  { %v7651_v23 = vpack.i.bf16 %v10496_v44, %v3293_v50  ;;  %v3295_v14 = vpop.f32.mrb[147].mxu0  ;;  %3557 = vmatmul.mubr.f32.gmra.mrb[252].mxu0 %v1719_v1  ;;  %v1723_v44 = vld [vmem:[%s13185_s4 + $0x700] sm:$0xff] }
 0x3c3   :  { %v10895_v12 = vpop.f32.mrb[148].mxu1  ;;  %3561 = vmatprep.mubr.f32.mxu0 %v1722_v31  ;;  %v1728_v31 = vld [vmem:[%s13185_s4 + $0x728] sm:$0xff] }
 0x3c4   :  { %13493 = vst [vmem:[#allocation50_spill] sm:$0xff] %v10895_v12  ;;  %7652 = vrot.lane.b32.xlu1 %v7651_v23, %s8157_s23  ;;  %v2113_v26 = vpop.f32.mrb[149].mxu1  ;;  %2375 = vmatmul.mubr.f32.gmra.mrb[254].mxu1 %v1721_v7  ;;  %v1727_v23 = vld [vmem:[%s13185_s4 + $0x720] sm:$0xff] }
 0x3c5   :  { %v3298_v53 = vpop.f32.mrb[148].mxu0  ;;  %2379 = vmatprep.mubr.f32.mxu1 %v1724_v33 }
 0x3c6   :  { %v7656_v21 = vpack.i.bf16 %v10518_v52, %v3298_v53  ;;  %v3300_v45 = vpop.f32.mrb[149].mxu0  ;;  %3562 = vmatmul.mubr.f32.gmra.mrb[254].mxu0 %v1721_v7 }
 0x3c7   :  { %v10905_v49 = vpop.f32.mrb[150].mxu1  ;;  %3566 = vmatprep.mubr.f32.mxu0 %v1724_v33  ;;  %v1730_v33 = vld [vmem:[%s13185_s4 + $0x738] sm:$0xff] }
 0x3c8   :  { %13494 = vst [vmem:[#allocation51_spill] sm:$0xff] %v10905_v49  ;;  %7657 = vrot.lane.b32.xlu0 %v7656_v21, %s8157_s23  ;;  %v2118_v30 = vpop.f32.mrb[151].mxu1  ;;  %2380 = vmatmul.mubr.f32.gmra.mrb[0].mxu1 %v1723_v44  ;;  %v1729_v21 = vld [vmem:[%s13185_s4 + $0x730] sm:$0xff] }
 0x3c9   :  { %v3303_v1 = vpop.f32.mrb[150].mxu0  ;;  %2384 = vmatprep.mubr.f32.mxu1 %v1726_v11 }
 0x3ca   :  { %v7661_v52 = vpack.i.bf16 %v10528_v58, %v3303_v1  ;;  %v3305_v4 = vpop.f32.mrb[151].mxu0  ;;  %3567 = vmatmul.mubr.f32.gmra.mrb[0].mxu0 %v1723_v44 }
 0x3cb   :  { %v10915_v2 = vpop.f32.mrb[152].mxu1  ;;  %3571 = vmatprep.mubr.f32.mxu0 %v1726_v11  ;;  %v1732_v11 = vld [vmem:[%s13185_s4 + $0x748] sm:$0xff] }
 0x3cc   :  { %13495 = vst [vmem:[#allocation52_spill] sm:$0xff] %v10915_v2  ;;  %7662 = vrot.lane.b32.xlu1 %v7661_v52, %s8157_s23  ;;  %v2123_v50 = vpop.f32.mrb[153].mxu1  ;;  %2385 = vmatmul.mubr.f32.gmra.mrb[2].mxu1 %v1725_v41  ;;  %v1731_v52 = vld [vmem:[%s13185_s4 + $0x740] sm:$0xff] }
 0x3cd   :  { %v3308_v7 = vpop.f32.mrb[152].mxu0  ;;  %2389 = vmatprep.mubr.f32.mxu1 %v1728_v31 }
 0x3ce   :  { %v7666_v58 = vpack.i.bf16 %v10538_v37, %v3308_v7  ;;  %v3310_v14 = vpop.f32.mrb[153].mxu0  ;;  %3572 = vmatmul.mubr.f32.gmra.mrb[2].mxu0 %v1725_v41 }
 0x3cf   :  { %v10925_v26 = vpop.f32.mrb[154].mxu1  ;;  %3576 = vmatprep.mubr.f32.mxu0 %v1728_v31  ;;  %v1734_v31 = vld [vmem:[%s13185_s4 + $0x758] sm:$0xff] }
 0x3d0   :  { %13496 = vst [vmem:[#allocation53_spill] sm:$0xff] %v10925_v26  ;;  %7667 = vrot.lane.b32.xlu0 %v7666_v58, %s8157_s23  ;;  %v2128_v53 = vpop.f32.mrb[155].mxu1  ;;  %2390 = vmatmul.mubr.f32.gmra.mrb[4].mxu1 %v1727_v23  ;;  %v1733_v58 = vld [vmem:[%s13185_s4 + $0x750] sm:$0xff] }
 0x3d1   :  { %v3313_v44 = vpop.f32.mrb[154].mxu0  ;;  %2394 = vmatprep.mubr.f32.mxu1 %v1730_v33 }
 0x3d2   :  { %v7671_v37 = vpack.i.bf16 %v10548_v38, %v3313_v44  ;;  %v3315_v45 = vpop.f32.mrb[155].mxu0  ;;  %3577 = vmatmul.mubr.f32.gmra.mrb[4].mxu0 %v1727_v23 }
 0x3d3   :  { %v10935_v30 = vpop.f32.mrb[156].mxu1  ;;  %3581 = vmatprep.mubr.f32.mxu0 %v1730_v33  ;;  %v1736_v33 = vld [vmem:[%s13185_s4 + $0x768] sm:$0xff]  ;;  %v1738_v45 = vld [vmem:[%s13185_s4 + $0x778] sm:$0xff] }
 0x3d4   :  { %13497 = vst [vmem:[#allocation54_spill] sm:$0xff] %v10935_v30  ;;  %7672 = vrot.lane.b32.xlu1 %v7671_v37, %s8157_s23  ;;  %v2133_v1 = vpop.f32.mrb[157].mxu1  ;;  %2395 = vmatmul.mubr.f32.gmra.mrb[6].mxu1 %v1729_v21 }
 0x3d5   :  { %v3318_v41 = vpop.f32.mrb[156].mxu0  ;;  %2399 = vmatprep.mubr.f32.mxu1 %v1732_v11 }
 0x3d6   :  { %v7676_v38 = vpack.i.bf16 %v10558_v9, %v3318_v41  ;;  %v3320_v4 = vpop.f32.mrb[157].mxu0  ;;  %3582 = vmatmul.mubr.f32.gmra.mrb[6].mxu0 %v1729_v21 }
 0x3d7   :  { %v10945_v50 = vpop.f32.mrb[158].mxu1  ;;  %3586 = vmatprep.mubr.f32.mxu0 %v1732_v11  ;;  %v1740_v4 = vld [vmem:[%s13185_s4 + $0x788] sm:$0xff] }
 0x3d8   :  { %13498 = vst [vmem:[#allocation55_spill] sm:$0xff] %v10945_v50  ;;  %7677 = vrot.lane.b32.xlu0 %v7676_v38, %s8157_s23  ;;  %v2138_v7 = vpop.f32.mrb[159].mxu1  ;;  %2400 = vmatmul.mubr.f32.gmra.mrb[8].mxu1 %v1731_v52 }
 0x3d9   :  { %v3323_v23 = vpop.f32.mrb[158].mxu0  ;;  %2404 = vmatprep.mubr.f32.mxu1 %v1734_v31 }
 0x3da   :  { %v7681_v9 = vpack.i.bf16 %v10568_v18, %v3323_v23  ;;  %v3325_v14 = vpop.f32.mrb[159].mxu0  ;;  %3587 = vmatmul.mubr.f32.gmra.mrb[8].mxu0 %v1731_v52  ;;  %v1735_v18 = vld [vmem:[%s13185_s4 + $0x760] sm:$0xff]  ;;  %v1737_v52 = vld [vmem:[%s13185_s4 + $0x770] sm:$0xff] }
 0x3db   :  { %v10955_v53 = vpop.f32.mrb[160].mxu1  ;;  %3591 = vmatprep.mubr.f32.mxu0 %v1734_v31  ;;  %v1742_v14 = vld [vmem:[%s13185_s4 + $0x798] sm:$0xff] }
 0x3dc   :  { %13499 = vst [vmem:[#allocation56_spill] sm:$0xff] %v10955_v53  ;;  %7682 = vrot.lane.b32.xlu1 %v7681_v9, %s8157_s23  ;;  %v2143_v44 = vpop.f32.mrb[161].mxu1  ;;  %2405 = vmatmul.mubr.f32.gmra.mrb[10].mxu1 %v1733_v58  ;;  %v1753_v53 = vld [vmem:[%s13185_s4 + $0x7f0] sm:$0xff] }
 0x3dd   :  { %v10958_v21 = vpop.f32.mrb[160].mxu0  ;;  %2409 = vmatprep.mubr.f32.mxu1 %v1736_v33 }
 0x3de   :  { %v3330_v37 = vpop.f32.mrb[161].mxu0  ;;  %3592 = vmatmul.mubr.f32.gmra.mrb[10].mxu0 %v1733_v58  ;;  %v1739_v58 = vld [vmem:[%s13185_s4 + $0x780] sm:$0xff] }
 0x3df   :  { %v10966_v11 = vpop.f32.mrb[162].mxu1  ;;  %3596 = vmatprep.mubr.f32.mxu0 %v1736_v33  ;;  %v1741_v37 = vld [vmem:[%s13185_s4 + $0x790] sm:$0xff] }
 0x3e0   :  { %13500 = vst [vmem:[#allocation57_spill] sm:$0xff] %v10966_v11  ;;  %v2148_v1 = vpop.f32.mrb[163].mxu1  ;;  %2410 = vmatmul.mubr.f32.gmra.mrb[12].mxu1 %v1735_v18 }
 0x3e1   :  { %v10968_v41 = vpop.f32.mrb[162].mxu0  ;;  %2414 = vmatprep.mubr.f32.mxu1 %v1738_v45  ;;  %v1744_v1 = vld [vmem:[%s13185_s4 + $0x7a8] sm:$0xff] }
 0x3e2   :  { %v3335_v38 = vpop.f32.mrb[163].mxu0  ;;  %3597 = vmatmul.mubr.f32.gmra.mrb[12].mxu0 %v1735_v18 }
 0x3e3   :  { %v10976_v31 = vpop.f32.mrb[164].mxu1  ;;  %3601 = vmatprep.mubr.f32.mxu0 %v1738_v45 }
 0x3e4   :  { %13501 = vst [vmem:[#allocation58_spill] sm:$0xff] %v10976_v31  ;;  %v2153_v7 = vpop.f32.mrb[165].mxu1  ;;  %2415 = vmatmul.mubr.f32.gmra.mrb[14].mxu1 %v1737_v52 }
 0x3e5   :  { %v10978_v23 = vpop.f32.mrb[164].mxu0  ;;  %2419 = vmatprep.mubr.f32.mxu1 %v1740_v4  ;;  %v1743_v7 = vld [vmem:[%s13185_s4 + $0x7a0] sm:$0xff] }
 0x3e6   :  { %13502 = vst [vmem:[#allocation59_spill] sm:$0xff] %v10978_v23  ;;  %v3340_v9 = vpop.f32.mrb[165].mxu0  ;;  %3602 = vmatmul.mubr.f32.gmra.mrb[14].mxu0 %v1737_v52 }
 0x3e7   :  { %v10986_v33 = vpop.f32.mrb[166].mxu1  ;;  %3606 = vmatprep.mubr.f32.mxu0 %v1740_v4 }
 0x3e8   :  { %13503 = vst [vmem:[#allocation60_spill] sm:$0xff] %v10986_v33  ;;  %v2158_v44 = vpop.f32.mrb[167].mxu1  ;;  %2420 = vmatmul.mubr.f32.gmra.mrb[16].mxu1 %v1739_v58 }
 0x3e9   :  { %v10988_v18 = vpop.f32.mrb[166].mxu0  ;;  %2424 = vmatprep.mubr.f32.mxu1 %v1742_v14 }
 0x3ea   :  { %13504 = vst [vmem:[#allocation61_spill] sm:$0xff] %v10988_v18  ;;  %v3345_v45 = vpop.f32.mrb[167].mxu0  ;;  %3607 = vmatmul.mubr.f32.gmra.mrb[16].mxu0 %v1739_v58  ;;  %v1746_v58 = vld [vmem:[%s13185_s4 + $0x7b8] sm:$0xff] }
 0x3eb   :  { %v10996_v52 = vpop.f32.mrb[168].mxu1  ;;  %3611 = vmatprep.mubr.f32.mxu0 %v1742_v14 }
 0x3ec   :  { %v2163_v38 = vpop.f32.mrb[169].mxu1  ;;  %2425 = vmatmul.mubr.f32.gmra.mrb[18].mxu1 %v1741_v37 }
 0x3ed   :  { %v10998_v4 = vpop.f32.mrb[168].mxu0  ;;  %2429 = vmatprep.mubr.f32.mxu1 %v1744_v1  ;;  %v1745_v38 = vld [vmem:[%s13185_s4 + $0x7b0] sm:$0xff] }
 0x3ee   :  { %13505 = vst [vmem:[#allocation62_spill] sm:$0xff] %v10998_v4  ;;  %v3350_v9 = vpop.f32.mrb[169].mxu0  ;;  %3612 = vmatmul.mubr.f32.gmra.mrb[18].mxu0 %v1741_v37  ;;  %v1748_v37 = vld [vmem:[%s13185_s4 + $0x7c8] sm:$0xff] }
 0x3ef   :  { %v11006_v44 = vpop.f32.mrb[170].mxu1  ;;  %3616 = vmatprep.mubr.f32.mxu0 %v1744_v1 }
 0x3f0   :  { %v2168_v45 = vpop.f32.mrb[171].mxu1  ;;  %2430 = vmatmul.mubr.f32.gmra.mrb[20].mxu1 %v1743_v7 }
 0x3f1   :  { %v11008_v14 = vpop.f32.mrb[170].mxu0  ;;  %2434 = vmatprep.mubr.f32.mxu1 %v1746_v58  ;;  %v1747_v45 = vld [vmem:[%s13185_s4 + $0x7c0] sm:$0xff] }
 0x3f2   :  { %13506 = vst [vmem:[#allocation63_spill] sm:$0xff] %v11008_v14  ;;  %3617 = vmatmul.mubr.f32.gmra.mrb[20].mxu0 %v1743_v7  ;;  %v3355_v4 = vpop.f32.mrb[171].mxu0 }
 0x3f3   :  { %v11016_v9 = vpop.f32.mrb[172].mxu1  ;;  %3621 = vmatprep.mubr.f32.mxu0 %v1746_v58  ;;  %v1750_v4 = vld [vmem:[%s13185_s4 + $0x7d8] sm:$0xff]  ;;  %v1749_v58 = vld [vmem:[%s13185_s4 + $0x7d0] sm:$0xff] }
 0x3f4   :  { %v2173_v18 = vpop.f32.mrb[173].mxu1  ;;  %2435 = vmatmul.mubr.f32.gmra.mrb[22].mxu1 %v1745_v38 }
 0x3f5   :  { %v11018_v1 = vpop.f32.mrb[172].mxu0  ;;  %2439 = vmatprep.mubr.f32.mxu1 %v1748_v37 }
 0x3f6   :  { %13507 = vst [vmem:[#allocation64_spill] sm:$0xff] %v11018_v1  ;;  %3622 = vmatmul.mubr.f32.gmra.mrb[22].mxu0 %v1745_v38  ;;  %v3360_v14 = vpop.f32.mrb[173].mxu0 }
 0x3f7   :  { %v11026_v7 = vpop.f32.mrb[174].mxu1  ;;  %3626 = vmatprep.mubr.f32.mxu0 %v1748_v37  ;;  %v1752_v14 = vld [vmem:[%s13185_s4 + $0x7e8] sm:$0xff]  ;;  %v1751_v37 = vld [vmem:[%s13185_s4 + $0x7e0] sm:$0xff] }
 0x3f8   :  { %v2178_v23 = vpop.f32.mrb[175].mxu1  ;;  %2440 = vmatmul.mubr.f32.gmra.mrb[24].mxu1 %v1747_v45 }
 0x3f9   :  { %v11028_v18 = vpop.f32.mrb[174].mxu0  ;;  %2444 = vmatprep.mubr.f32.mxu1 %v1750_v4 }
 0x3fa   :  { %13508 = vst [vmem:[#allocation65_spill] sm:$0xff] %v11028_v18  ;;  %3627 = vmatmul.mubr.f32.gmra.mrb[24].mxu0 %v1747_v45  ;;  %v3365_v1 = vpop.f32.mrb[175].mxu0 }
 0x3fb   :  { %v11036_v38 = vpop.f32.mrb[176].mxu1  ;;  %3631 = vmatprep.mubr.f32.mxu0 %v1750_v4  ;;  %v1754_v1 = vld [vmem:[%s13185_s4 + $0x7f8] sm:$0xff] }
 0x3fc   :  { %v2183_v33 = vpop.f32.mrb[177].mxu1  ;;  %2445 = vmatmul.mubr.f32.gmra.mrb[26].mxu1 %v1749_v58 }
 0x3fd   :  { %v3368_v23 = vpop.f32.mrb[176].mxu0  ;;  %2449 = vmatprep.mubr.f32.mxu1 %v1752_v14 }
 0x3fe   :  { %v7686_v18 = vpack.i.bf16 %v3368_v23, %v10364_v34  ;;  %3632 = vmatmul.mubr.f32.gmra.mrb[26].mxu0 %v1749_v58  ;;  %v3370_v45 = vpop.f32.mrb[177].mxu0 }
 0x3ff   :  { %v11045_v11 = vpop.f32.mrb[178].mxu1  ;;  %3636 = vmatprep.mubr.f32.mxu0 %v1752_v14 }
 0x400   :  { %7687 = vrot.lane.b32.xlu1 %v7686_v18, %s8155_s22  ;;  %v2188_v33 = vpop.f32.mrb[179].mxu1  ;;  %2450 = vmatmul.mubr.f32.gmra.mrb[28].mxu1 %v1751_v37 }
 0x401   :  { %v3373_v4 = vpop.f32.mrb[178].mxu0  ;;  %2454 = vmatprep.mubr.f32.mxu1 %v1754_v1 }
 0x402   :  { %v7691_v34 = vpack.i.bf16 %v3373_v4, %v10374_v6  ;;  %3637 = vmatmul.mubr.f32.gmra.mrb[28].mxu0 %v1751_v37  ;;  %v3375_v58 = vpop.f32.mrb[179].mxu0  ;;  %v11073_v37 = vpop.permute.xlu0 %7567 }
 0x403   :  { %v11052_v23 = vpop.f32.mrb[180].mxu1  ;;  %3641 = vmatprep.mubr.f32.mxu0 %v1754_v1 }
 0x404   :  { %7692 = vrot.lane.b32.xlu1 %v7691_v34, %s8155_s22  ;;  %v2193_v14 = vpop.f32.mrb[181].mxu1  ;;  %2455 = vmatmul.mubr.f32.gmra.mrb[30].mxu1 %v1753_v53 }
 0x405   :  { %v11055_v18 = vpop.f32.mrb[180].mxu0 }
 0x406   :  { %13509 = vst [vmem:[#allocation66_spill] sm:$0xff] %v11055_v18  ;;  %3642 = vmatmul.mubr.f32.gmra.mrb[30].mxu0 %v1753_v53  ;;  %v3380_v33 = vpop.f32.mrb[181].mxu0 }
 0x407   :  { %v11059_v31 = vpop.f32.mrb[182].mxu1 }
 0x408   :  { %v2198_v49 = vpop.f32.mrb[183].mxu1 }
 0x409   :  { %v11061_v6 = vpop.f32.mrb[182].mxu0 }
 0x40a   :  { %13510 = vst [vmem:[#allocation67_spill] sm:$0xff] %v11061_v6  ;;  %v3385_v1 = vpop.f32.mrb[183].mxu0 }
 0x40b   :  { %v2201_v4 = vpop.f32.mrb[184].mxu1 }
 0x40c   :  { %v7696_v34 = vpack.i.bf16 %v2201_v4, %v10312_v57  ;;  %v2203_v58 = vpop.f32.mrb[185].mxu1 }
 0x40d   :  { %v11066_v14 = vpop.f32.mrb[184].mxu0 }
 0x40e   :  { %v3390_v12 = vpop.f32.mrb[185].mxu0  ;;  %7697 = vrot.lane.b32.xlu1 %v7696_v34, %s8155_s22 }
 0x40f   :  { %v2206_v53 = vpop.f32.mrb[186].mxu1  ;;  %v11078_v12 = vpop.permute.xlu1 %7572 }
 0x410   :  { %v7701_v33 = vpack.i.bf16 %v2206_v53, %v10322_v43  ;;  %v2208_v45 = vpop.f32.mrb[187].mxu1  ;;  %v11081_v43 = vpop.permute.xlu0 %7577 }
 0x411   :  { %v11070_v49 = vpop.f32.mrb[186].mxu0 }
 0x412   :  { %v3395_v25 = vpop.f32.mrb[187].mxu0  ;;  %7702 = vrot.lane.b32.xlu1 %v7701_v33, %s8155_s22 }
 0x413   :  { %v2211_v1 = vpop.f32.mrb[188].mxu1  ;;  %v11086_v8 = vpop.permute.xlu1 %7582 }
 0x414   :  { %v7706_v57 = vpack.i.bf16 %v2211_v1, %v10338_v5  ;;  %v2213_v4 = vpop.f32.mrb[189].mxu1  ;;  %v11089_v5 = vpop.permute.xlu0 %7587 }
 0x415   :  { %v11076_v58 = vpop.f32.mrb[188].mxu0 }
 0x416   :  { %v3400_v34 = vpop.f32.mrb[189].mxu0  ;;  %7707 = vrot.lane.b32.xlu1 %v7706_v57, %s8155_s22 }
 0x417   :  { %v2216_v45 = vpop.f32.mrb[190].mxu1  ;;  %v11093_v57 = vpop.permute.xlu1 %7592 }
 0x418   :  { %v7711_v25 = vpack.i.bf16 %v2216_v45, %v10354_v0  ;;  %v2218_v53 = vpop.f32.mrb[191].mxu1  ;;  %v11096_v0 = vpop.permute.xlu0 %7597 }
 0x419   :  { %v11084_v33 = vpop.f32.mrb[190].mxu0 }
 0x41a   :  { %v3405_v6 = vpop.f32.mrb[191].mxu0  ;;  %7712 = vrot.lane.b32.xlu1 %v7711_v25, %s8155_s22 }
 0x41b   :  { %v11091_v1 = vpop.f32.mrb[192].mxu1  ;;  %v11101_v25 = vpop.permute.xlu1 %7602 }
 0x41c   :  { %13511 = vst [vmem:[#allocation68_spill] sm:$0xff] %v11091_v1  ;;  %v2223_v4 = vpop.f32.mrb[193].mxu1 }
 0x41d   :  { %v3408_v34 = vpop.f32.mrb[192].mxu0  ;;  %v7608_v4 = vpop.permute.xlu0 %7607 }
 0x41e   :  { %v7716_v32 = vpack.i.bf16 %v3408_v34, %v10444_v17  ;;  %v3410_v18 = vpop.f32.mrb[193].mxu0 }
 0x41f   :  { %v11098_v45 = vpop.f32.mrb[194].mxu1  ;;  %v11109_v34 = vpop.permute.xlu1 %7617 }
 0x420   :  { %13512 = vst [vmem:[#allocation69_spill] sm:$0xff] %v11098_v45  ;;  %7717 = vrot.lane.b32.xlu1 %v7716_v32, %s8156_s27  ;;  %v2228_v6 = vpop.f32.mrb[195].mxu1 }
 0x421   :  { %v3413_v53 = vpop.f32.mrb[194].mxu0  ;;  %v11115_v40 = vpop.permute.xlu0 %7612 }
 0x422   :  { %v7721_v63 = vpack.i.bf16 %v3413_v53, %v10454_v62  ;;  %v3415_v50 = vpop.f32.mrb[195].mxu0 }
 0x423   :  { %v11104_v30 = vpop.f32.mrb[196].mxu1  ;;  %v11119_v50 = vpop.permute.xlu1 %7627 }
 0x424   :  { %13513 = vst [vmem:[#allocation70_spill] sm:$0xff] %v11104_v30  ;;  %7722 = vrot.lane.b32.xlu1 %v7721_v63, %s8156_s27  ;;  %v2233_v17 = vpop.f32.mrb[197].mxu1  ;;  %v7610_v63 = vunpack.i.h.bf16 %v7608_v4 }
 0x425   :  { %v11107_v18 = vpop.f32.mrb[196].mxu0  ;;  %v11124_v39 = vpop.permute.xlu0 %7622 }
 0x426   :  { %13514 = vst [vmem:[#allocation71_spill] sm:$0xff] %v11107_v18  ;;  %v3420_v6 = vpop.f32.mrb[197].mxu0  ;;  %v7569_v18 = vunpack.i.l.bf16 %v11073_v37 }
 0x427   :  { %v11113_v26 = vpop.f32.mrb[198].mxu1 }
 0x428   :  { %13515 = vst [vmem:[#allocation72_spill] sm:$0xff] %v11113_v26  ;;  %v2238_v2 = vpop.f32.mrb[199].mxu1 }
 0x429   :  { %v11117_v62 = vpop.f32.mrb[198].mxu0  ;;  %v7570_v2 = vunpack.i.h.bf16 %v11073_v37 }
 0x42a   :  { %13516 = vst [vmem:[#allocation73_spill] sm:$0xff] %v11117_v62  ;;  %v3425_v53 = vpop.f32.mrb[199].mxu0  ;;  %v11129_v32 = vpop.permute.xlu1 %7637 }
 0x42b   :  { %v2241_v17 = vpop.f32.mrb[200].mxu1  ;;  %v7609_v53 = vunpack.i.l.bf16 %v7608_v4  ;;  %v4031_v62 = vsel %vm701_vm1, %v10234_v47, %v7570_v2  ;;  %v7615_v47 = vunpack.i.h.bf16 %v11115_v40 }
 0x42c   :  { %v7726_v27 = vpack.i.bf16 %v2241_v17, %v10404_v19  ;;  %v2243_v30 = vpop.f32.mrb[201].mxu1  ;;  %v4039_v45 = vsel %vm2852_vm6, %v4031_v62, %v7610_v63  ;;  %v7579_v63 = vunpack.i.l.bf16 %v11081_v43 }
 0x42d   :  { %v11126_v6 = vpop.f32.mrb[200].mxu0  ;;  %v11134_v30 = vpop.permute.xlu0 %7632 }
 0x42e   :  { %13517 = vst [vmem:[#allocation74_spill] sm:$0xff] %v11126_v6  ;;  %v3430_v61 = vpop.f32.mrb[201].mxu0  ;;  %7727 = vrot.lane.b32.xlu1 %v7726_v27, %s8156_s27  ;;  %v7574_v27 = vunpack.i.l.bf16 %v11078_v12 }
 0x42f   :  { %v2246_v26 = vpop.f32.mrb[202].mxu1  ;;  %v7575_v61 = vunpack.i.h.bf16 %v11078_v12 }
 0x430   :  { %v7731_v10 = vpack.i.bf16 %v2246_v26, %v10414_v51  ;;  %v2248_v19 = vpop.f32.mrb[203].mxu1  ;;  %v7614_v51 = vunpack.i.l.bf16 %v11115_v40 }
 0x431   :  { %v11136_v17 = vpop.f32.mrb[202].mxu0 }
 0x432   :  { %13518 = vst [vmem:[#allocation75_spill] sm:$0xff] %v11136_v17  ;;  %v7648_v37 = vpop.permute.xlu1 %7647  ;;  %v3435_v6 = vpop.f32.mrb[203].mxu0  ;;  %7732 = vrot.lane.b32.xlu1 %v7731_v10, %s8156_s27  ;;  %v4055_v17 = vsel %vm701_vm1, %v10578_v13, %v7569_v18  ;;  %v4032_v13 = vsel %vm701_vm1, %v10244_v29, %v7575_v61  ;;  %v7580_v18 = vunpack.i.h.bf16 %v11081_v43  ;;  %v7620_v29 = vunpack.i.h.bf16 %v11109_v34 }
 0x433   :  { %v7650_v26 = vunpack.i.h.bf16 %v7648_v37  ;;  %v7649_v4 = vunpack.i.l.bf16 %v7648_v37  ;;  %v2251_v19 = vpop.f32.mrb[204].mxu1  ;;  %v4063_v60 = vsel %vm2852_vm6, %v4055_v17, %v7609_v53  ;;  %v11150_v6 = vpop.permute.xlu0 %7642  ;;  %v7619_v61 = vunpack.i.l.bf16 %v11109_v34 }
 0x434   :  { %v7736_v2 = vpack.i.bf16 %v2251_v19, %v10424_v22  ;;  %v2253_v12 = vpop.f32.mrb[205].mxu1  ;;  %v4056_v22 = vsel %vm701_vm1, %v10588_v46, %v7574_v27  ;;  %v4040_v19 = vsel %vm2852_vm6, %v4032_v13, %v7615_v47  ;;  %v4033_v27 = vsel %vm701_vm1, %v10254_v16, %v7580_v18 }
 0x435   :  { %v4047_v10 = vsel %vm2861_vm7, %v4039_v45, %v7650_v26  ;;  %v11153_v1 = vpop.f32.mrb[204].mxu0  ;;  %v4071_v37 = vsel %vm2861_vm7, %v4063_v60, %v7649_v4  ;;  %v4064_v60 = vsel %vm2852_vm6, %v4056_v22, %v7614_v51  ;;  %v7585_v51 = vunpack.i.h.bf16 %v11086_v8 }
 0x436   :  { %v7653_v62 = vpop.permute.xlu1 %7652  ;;  %v3440_v40 = vpop.f32.mrb[205].mxu0  ;;  %4295 = vmatprep.mubr.f32.mxu1 %v4071_v37  ;;  %7737 = vrot.lane.b32.xlu1 %v7736_v2, %s8156_s27  ;;  %v4057_v13 = vsel %vm701_vm1, %v10598_v42, %v7579_v63  ;;  %v7624_v16 = vunpack.i.l.bf16 %v11124_v39  ;;  %v4041_v22 = vsel %vm2852_vm6, %v4033_v27, %v7620_v29 }
 0x437   :  { %v7655_v45 = vunpack.i.h.bf16 %v7653_v62  ;;  %v7654_v53 = vunpack.i.l.bf16 %v7653_v62  ;;  %4296 = vmatmul.mubr.f32.vlgmr.msra.gmra.mrb[32].mxu1 %v4047_v10  ;;  %v2256_v17 = vpop.f32.mrb[206].mxu1  ;;  %v7625_v62 = vunpack.i.h.bf16 %v11124_v39  ;;  %v4065_v40 = vsel %vm2852_vm6, %v4057_v13, %v7619_v61 }
 0x438   :  { %v7741_v26 = vpack.i.bf16 %v2256_v17, %v10434_v3  ;;  %v2258_v4 = vpop.f32.mrb[207].mxu1  ;;  %v7584_v3 = vunpack.i.l.bf16 %v11086_v8  ;;  %v4034_v17 = vsel %vm701_vm1, %v10264_v24, %v7585_v51  ;;  %v7589_v39 = vunpack.i.l.bf16 %v11089_v5 }
 0x439   :  { %v11168_v2 = vpop.f32.mrb[206].mxu0  ;;  %v4072_v46 = vsel %vm2861_vm7, %v4064_v60, %v7654_v53  ;;  %v4048_v43 = vsel %vm2861_vm7, %v4040_v19, %v7655_v45  ;;  %v7590_v60 = vunpack.i.h.bf16 %v11089_v5  ;;  %v7629_v24 = vunpack.i.l.bf16 %v11119_v50 }
 0x43a   :  { %v7658_v12 = vpop.permute.xlu0 %7657  ;;  %v3445_v10 = vpop.f32.mrb[207].mxu0  ;;  %4300 = vmatprep.mubr.f32.mxu1 %v4072_v46  ;;  %7742 = vrot.lane.b32.xlu1 %v7741_v26, %s8156_s27  ;;  %v4058_v19 = vsel %vm701_vm1, %v10608_v56, %v7584_v3  ;;  %v7630_v46 = vunpack.i.h.bf16 %v11119_v50  ;;  %v4042_v27 = vsel %vm2852_vm6, %v4034_v17, %v7625_v62 }
 0x43b   :  { %v7660_v34 = vunpack.i.h.bf16 %v7658_v12  ;;  %v7659_v47 = vunpack.i.l.bf16 %v7658_v12  ;;  %4301 = vmatmul.mubr.f32.gmra.mrb[34].mxu1 %v4048_v43  ;;  %v11177_v37 = vpop.f32.mrb[208].mxu1  ;;  %v4066_v43 = vsel %vm2852_vm6, %v4058_v19, %v7624_v16  ;;  %v4035_v56 = vsel %vm701_vm1, %v10274_v28, %v7590_v60  ;;  %v13519_v60 = vld [vmem:[#allocation7_spill] sm:$0xff] }
 0x43c   :  { %v2263_v18 = vpop.f32.mrb[209].mxu1  ;;  %v7595_v10 = vunpack.i.h.bf16 %v11093_v57  ;;  %v7635_v28 = vunpack.i.h.bf16 %v11134_v30 }
 0x43d   :  { %v3448_v45 = vpop.f32.mrb[208].mxu0  ;;  %v4073_v8 = vsel %vm2861_vm7, %v4065_v40, %v7659_v47  ;;  %v4049_v53 = vsel %vm2861_vm7, %v4041_v22, %v7660_v34  ;;  %v7594_v47 = vunpack.i.l.bf16 %v11093_v57  ;;  %v4059_v18 = vsel %vm701_vm1, %v10618_v48, %v7589_v39 }
 0x43e   :  { %v7746_v42 = vpack.i.bf16 %v3448_v45, %v10536_v35  ;;  %v7663_v63 = vpop.permute.xlu1 %7662  ;;  %v3450_v26 = vpop.f32.mrb[209].mxu0  ;;  %4305 = vmatprep.mubr.f32.mxu1 %v4073_v8  ;;  %v7634_v40 = vunpack.i.l.bf16 %v11134_v30  ;;  %v4067_v45 = vsel %vm2852_vm6, %v4059_v18, %v7629_v24  ;;  %v4043_v8 = vsel %vm2852_vm6, %v4035_v56, %v7630_v46  ;;  %v13523_v18 = vld [vmem:[#allocation17_spill] sm:$0xff] }
 0x43f   :  { %v7665_v61 = vunpack.i.h.bf16 %v7663_v63  ;;  %v7664_v4 = vunpack.i.l.bf16 %v7663_v63  ;;  %4306 = vmatmul.mubr.f32.gmra.mrb[36].mxu1 %v4049_v53  ;;  %v11192_v29 = vpop.f32.mrb[210].mxu1  ;;  %v7600_v48 = vunpack.i.h.bf16 %v11096_v0  ;;  %v7599_v63 = vunpack.i.l.bf16 %v11096_v0  ;;  %v13520_v26 = vld [vmem:[#allocation33_spill] sm:$0xff] }
 0x440   :  { %7747 = vrot.lane.b32.xlu1 %v7746_v42, %s8157_s23  ;;  %v2268_v35 = vpop.f32.mrb[211].mxu1  ;;  %v4036_v42 = vsel %vm701_vm1, %v13519_v60, %v7595_v10  ;;  %v7640_v0 = vunpack.i.h.bf16 %v11129_v32 }
 0x441   :  { %v11201_v5 = vpop.f32.mrb[210].mxu0  ;;  %v4074_v51 = vsel %vm2861_vm7, %v4066_v43, %v7664_v4  ;;  %v4050_v12 = vsel %vm2861_vm7, %v4042_v27, %v7665_v61  ;;  %v7639_v4 = vunpack.i.l.bf16 %v11129_v32  ;;  %v13521_v35 = vld [vmem:[#allocation27_spill] sm:$0xff]  ;;  %v4044_v27 = vsel %vm2852_vm6, %v4036_v42, %v7635_v28 }
 0x442   :  { %v7668_v3 = vpop.permute.xlu0 %7667  ;;  %v3455_v34 = vpop.f32.mrb[211].mxu0  ;;  %4310 = vmatprep.mubr.f32.mxu1 %v4074_v51  ;;  %v4060_v43 = vsel %vm701_vm1, %v13521_v35, %v7594_v47  ;;  %v13524_v32 = vld [vmem:[#allocation15_spill] sm:$0xff]  ;;  %v7645_v42 = vunpack.i.h.bf16 %v11150_v6  ;;  %v13538_v47 = vld [vmem:[#allocation8_spill] sm:$0xff] }
 0x443   :  { %v7670_v13 = vunpack.i.h.bf16 %v7668_v3  ;;  %v7669_v62 = vunpack.i.l.bf16 %v7668_v3  ;;  %4311 = vmatmul.mubr.f32.gmra.mrb[38].mxu1 %v4050_v12  ;;  %v11211_v16 = vpop.f32.mrb[212].mxu1  ;;  %v4068_v12 = vsel %vm2852_vm6, %v4060_v43, %v7634_v40  ;;  %v13522_v34 = vld [vmem:[#allocation9_spill] sm:$0xff]  ;;  %v4061_v40 = vsel %vm701_vm1, %v13524_v32, %v7599_v63 }
 0x444   :  { %v2273_v22 = vpop.f32.mrb[213].mxu1  ;;  %v4069_v60 = vsel %vm2852_vm6, %v4061_v40, %v7639_v4  ;;  %v13526_v4 = vld [vmem:[#allocation22_spill] sm:$0xff] }
 0x445   :  { %v11219_v53 = vpop.f32.mrb[212].mxu0  ;;  %v4075_v57 = vsel %vm2861_vm7, %v4067_v45, %v7669_v62  ;;  %v4051_v17 = vsel %vm2861_vm7, %v4043_v8, %v7670_v13  ;;  %v4037_v13 = vsel %vm701_vm1, %v13522_v34, %v7600_v48  ;;  %v7605_v62 = vunpack.i.h.bf16 %v11101_v25 }
 0x446   :  { %v7673_v39 = vpop.permute.xlu1 %7672  ;;  %v3460_v61 = vpop.f32.mrb[213].mxu0  ;;  %4315 = vmatprep.mubr.f32.mxu1 %v4075_v57  ;;  %v7604_v45 = vunpack.i.l.bf16 %v11101_v25  ;;  %v7644_v48 = vunpack.i.l.bf16 %v11150_v6 }
 0x447   :  { %v7675_v19 = vunpack.i.h.bf16 %v7673_v39  ;;  %v7674_v46 = vunpack.i.l.bf16 %v7673_v39  ;;  %4316 = vmatmul.mubr.f32.gmra.mrb[40].mxu1 %v4051_v17  ;;  %v11230_v24 = vpop.f32.mrb[214].mxu1  ;;  %v13525_v39 = vld [vmem:[#allocation30_spill] sm:$0xff] }
 0x448   :  { %v2278_v51 = vpop.f32.mrb[215].mxu1 }
 0x449   :  { %v11237_v56 = vpop.f32.mrb[214].mxu0  ;;  %v4076_v10 = vsel %vm2861_vm7, %v4068_v12, %v7674_v46  ;;  %v4052_v3 = vsel %vm2861_vm7, %v4044_v27, %v7675_v19  ;;  %v4045_v46 = vsel %vm2852_vm6, %v4037_v13, %v7640_v0  ;;  %v4038_v51 = vsel %vm701_vm1, %v13526_v4, %v7605_v62  ;;  %v13528_v13 = vld [vmem:[#allocation13_spill] sm:$0xff] }
 0x44a   :  { %v7678_v28 = vpop.permute.xlu0 %7677  ;;  %v3465_v22 = vpop.f32.mrb[215].mxu0  ;;  %4320 = vmatprep.mubr.f32.mxu1 %v4076_v10  ;;  %v4046_v34 = vsel %vm2852_vm6, %v4038_v51, %v7645_v42 }
 0x44b   :  { %v7680_v8 = vunpack.i.h.bf16 %v7678_v28  ;;  %v7679_v57 = vunpack.i.l.bf16 %v7678_v28  ;;  %4321 = vmatmul.mubr.f32.gmra.mrb[42].mxu1 %v4052_v3  ;;  %v2281_v17 = vpop.f32.mrb[216].mxu1  ;;  %v13527_v3 = vld [vmem:[#allocation36_spill] sm:$0xff] }
 0x44c   :  { %v7751_v61 = vpack.i.bf16 %v2281_v17, %v13525_v39  ;;  %v2283_v19 = vpop.f32.mrb[217].mxu1  ;;  %v4062_v0 = vsel %vm701_vm1, %v13527_v3, %v7604_v45  ;;  %v13529_v45 = vld [vmem:[#allocation18_spill] sm:$0xff] }
 0x44d   :  { %v11254_v35 = vpop.f32.mrb[216].mxu0  ;;  %v4077_v63 = vsel %vm2861_vm7, %v4069_v60, %v7679_v57  ;;  %v4053_v25 = vsel %vm2861_vm7, %v4045_v46, %v7680_v8  ;;  %v4070_v32 = vsel %vm2852_vm6, %v4062_v0, %v7644_v48  ;;  %v13530_v19 = vld [vmem:[#allocation29_spill] sm:$0xff] }
 0x44e   :  { %v7683_v43 = vpop.permute.xlu1 %7682  ;;  %v3470_v27 = vpop.f32.mrb[217].mxu0  ;;  %4325 = vmatprep.mubr.f32.mxu1 %v4077_v63  ;;  %7752 = vrot.lane.b32.xlu1 %v7751_v61, %s8157_s23 }
 0x44f   :  { %v7685_v6 = vunpack.i.h.bf16 %v7683_v43  ;;  %v7684_v12 = vunpack.i.l.bf16 %v7683_v43  ;;  %4326 = vmatmul.mubr.f32.gmra.mrb[44].mxu1 %v4053_v25  ;;  %v2286_v10 = vpop.f32.mrb[218].mxu1 }
 0x450   :  { %v7756_v28 = vpack.i.bf16 %v2286_v10, %v13528_v13  ;;  %v2288_v22 = vpop.f32.mrb[219].mxu1 }
 0x451   :  { %v11266_v40 = vpop.f32.mrb[218].mxu0  ;;  %v4078_v8 = vsel %vm2861_vm7, %v4070_v32, %v7684_v12  ;;  %v4054_v62 = vsel %vm2861_vm7, %v4046_v34, %v7685_v6 }
 0x452   :  { %v3475_v57 = vpop.f32.mrb[219].mxu0  ;;  %4330 = vmatprep.mubr.f32.mxu1 %v4078_v8  ;;  %7757 = vrot.lane.b32.xlu1 %v7756_v28, %s8157_s23 }
 0x453   :  { %4331 = vmatmul.mubr.f32.gmra.mrb[46].mxu1 %v4054_v62  ;;  %v2291_v17 = vpop.f32.mrb[220].mxu1 }
 0x454   :  { %v7761_v60 = vpack.i.bf16 %v2291_v17, %v13529_v45  ;;  %v2293_v42 = vpop.f32.mrb[221].mxu1 }
 0x455   :  { %v11272_v39 = vpop.f32.mrb[220].mxu0 }
 0x456   :  { %v3480_v61 = vpop.f32.mrb[221].mxu0  ;;  %7762 = vrot.lane.b32.xlu1 %v7761_v60, %s8157_s23 }
 0x457   :  { %v2296_v48 = vpop.f32.mrb[222].mxu1 }
 0x458   :  { %v7766_v46 = vpack.i.bf16 %v2296_v48, %v13530_v19  ;;  %v2298_v63 = vpop.f32.mrb[223].mxu1 }
 0x459   :  { %v11276_v25 = vpop.f32.mrb[222].mxu0 }
 0x45a   :  { %v3485_v43 = vpop.f32.mrb[223].mxu0  ;;  %7767 = vrot.lane.b32.xlu1 %v7766_v46, %s8157_s23 }
 0x45b   :  { %v11279_v27 = vpop.f32.mrb[224].mxu1 }
 0x45c   :  { %v2303_v4 = vpop.f32.mrb[225].mxu1 }
 0x45d   :  { %v11281_v51 = vpop.f32.mrb[224].mxu0 }
 0x45e   :  { %v3490_v6 = vpop.f32.mrb[225].mxu0 }
 0x45f   :  { %v11283_v12 = vpop.f32.mrb[226].mxu1 }
 0x460   :  { %v2308_v10 = vpop.f32.mrb[227].mxu1 }
 0x461   :  { %v11285_v3 = vpop.f32.mrb[226].mxu0 }
 0x462   :  { %v3495_v0 = vpop.f32.mrb[227].mxu0 }
 0x463   :  { %v11287_v34 = vpop.f32.mrb[228].mxu1 }
 0x464   :  { %v2313_v13 = vpop.f32.mrb[229].mxu1 }
 0x465   :  { %v11289_v28 = vpop.f32.mrb[228].mxu0  ;;  %v13536_v13 = vld [vmem:[#allocation5_spill] sm:$0xff] }
 0x466   :  { %13531 = vst [vmem:[#allocation7_spill] sm:$0xff] %v11289_v28  ;;  %v3500_v22 = vpop.f32.mrb[229].mxu0  ;;  %v4177_v28 = vld [vmem:[%s13186_s5 + $0x190] sm:$0xff] }
 0x467   :  { %v11291_v32 = vpop.f32.mrb[230].mxu1 }
 0x468   :  { %13532 = vst [vmem:[#allocation33_spill] sm:$0xff] %v11291_v32  ;;  %v2318_v8 = vpop.f32.mrb[231].mxu1 }
 0x469   :  { %v11293_v62 = vpop.f32.mrb[230].mxu0 }
 0x46a   :  { %13533 = vst [vmem:[#allocation27_spill] sm:$0xff] %v11293_v62  ;;  %v3505_v57 = vpop.f32.mrb[231].mxu0 }
 0x46b   :  { %v11295_v17 = vpop.f32.mrb[232].mxu1 }
 0x46c   :  { %v2323_v45 = vpop.f32.mrb[233].mxu1 }
 0x46d   :  { %v11297_v60 = vpop.f32.mrb[232].mxu0 }
 0x46e   :  { %13534 = vst [vmem:[#allocation9_spill] sm:$0xff] %v11297_v60  ;;  %v3510_v42 = vpop.f32.mrb[233].mxu0 }
 0x46f   :  { %v11299_v61 = vpop.f32.mrb[234].mxu1 }
 0x470   :  { %v2328_v48 = vpop.f32.mrb[235].mxu1 }
 0x471   :  { %v11301_v19 = vpop.f32.mrb[234].mxu0 }
 0x472   :  { %13535 = vst [vmem:[#allocation17_spill] sm:$0xff] %v11301_v19  ;;  %v3515_v46 = vpop.f32.mrb[235].mxu0  ;;  %v7688_v63 = vpop.permute.xlu1 %7687 }
 0x473   :  { %v7690_v43 = vunpack.i.h.bf16 %v7688_v63  ;;  %v7689_v4 = vunpack.i.l.bf16 %v7688_v63  ;;  %v11303_v6 = vpop.f32.mrb[236].mxu1 }
 0x474   :  { %v2333_v10 = vpop.f32.mrb[237].mxu1 }
 0x475   :  { %v11307_v0 = vsel %vm701_vm1, %v10958_v21, %v7690_v43  ;;  %v11311_v22 = vsel %vm701_vm1, %v13536_v13, %v7689_v4  ;;  %v11313_v8 = vpop.f32.mrb[236].mxu0 }
 0x476   :  { %13537 = vst [vmem:[#allocation15_spill] sm:$0xff] %v11313_v8  ;;  %v3520_v57 = vpop.f32.mrb[237].mxu0  ;;  %v7693_v45 = vpop.permute.xlu1 %7692 }
 0x477   :  { %v7695_v42 = vunpack.i.h.bf16 %v7693_v45  ;;  %v7694_v48 = vunpack.i.l.bf16 %v7693_v45  ;;  %v11315_v46 = vpop.f32.mrb[238].mxu1 }
 0x478   :  { %v2338_v63 = vpop.f32.mrb[239].mxu1 }
 0x479   :  { %v11319_v10 = vsel %vm701_vm1, %v10968_v41, %v7695_v42  ;;  %v11323_v21 = vsel %vm701_vm1, %v13538_v47, %v7694_v48  ;;  %v11325_v43 = vpop.f32.mrb[238].mxu0 }
 0x47a   :  { %13539 = vst [vmem:[#allocation30_spill] sm:$0xff] %v11325_v43  ;;  %v3525_v4 = vpop.f32.mrb[239].mxu0 }
 0x47b   :  { %v2341_v13 = vpop.f32.mrb[240].mxu1 }
 0x47c   :  { %v7771_v57 = vpack.i.bf16 %v11036_v38, %v2341_v13  ;;  %v2343_v30 = vpop.f32.mrb[241].mxu1  ;;  %v13540_v38 = vld [vmem:[#allocation20_spill] sm:$0xff] }
 0x47d   :  { %v3528_v50 = vpop.f32.mrb[240].mxu0 }
 0x47e   :  { %v7776_v45 = vpack.i.bf16 %v3528_v50, %v10707_v15  ;;  %v3530_v8 = vpop.f32.mrb[241].mxu0  ;;  %7772 = vrot.lane.b32.xlu0 %v7771_v57, %s8155_s22  ;;  %v13546_v57 = vld [vmem:[#allocation39_spill] sm:$0xff] }
 0x47f   :  { %v2346_v63 = vpop.f32.mrb[242].mxu1 }
 0x480   :  { %v7781_v41 = vpack.i.bf16 %v11045_v11, %v2346_v63  ;;  %v7698_v42 = vpop.permute.xlu1 %7697  ;;  %v2348_v19 = vpop.f32.mrb[243].mxu1 }
 0x481   :  { %v3533_v47 = vpop.f32.mrb[242].mxu0  ;;  %v7700_v48 = vunpack.i.h.bf16 %v7698_v42  ;;  %v7699_v60 = vunpack.i.l.bf16 %v7698_v42 }
 0x482   :  { %v7786_v4 = vpack.i.bf16 %v3533_v47, %v10717_v55  ;;  %v3535_v43 = vpop.f32.mrb[243].mxu0  ;;  %7777 = vrot.lane.b32.xlu0 %v7776_v45, %s8155_s22  ;;  %7782 = vrot.lane.b32.xlu1 %v7781_v41, %s8155_s22 }
 0x483   :  { %v11336_v15 = vsel %vm701_vm1, %v10996_v52, %v7700_v48  ;;  %v11340_v50 = vsel %vm701_vm1, %v13540_v38, %v7699_v60  ;;  %v2351_v11 = vpop.f32.mrb[244].mxu1  ;;  %v13541_v60 = vld [vmem:[#allocation19_spill] sm:$0xff] }
 0x484   :  { %v7791_v30 = vpack.i.bf16 %v11052_v23, %v2351_v11  ;;  %v7703_v19 = vpop.permute.xlu1 %7702  ;;  %v2353_v8 = vpop.f32.mrb[245].mxu1 }
 0x485   :  { %v11343_v13 = vpop.f32.mrb[244].mxu0  ;;  %v7705_v55 = vunpack.i.h.bf16 %v7703_v19  ;;  %v7704_v43 = vunpack.i.l.bf16 %v7703_v19  ;;  %v13542_v8 = vld [vmem:[#allocation31_spill] sm:$0xff] }
 0x486   :  { %v3540_v45 = vpop.f32.mrb[245].mxu0  ;;  %7787 = vrot.lane.b32.xlu0 %v7786_v4, %s8155_s22 }
 0x487   :  { %v11350_v52 = vsel %vm701_vm1, %v11006_v44, %v7705_v55  ;;  %v11354_v63 = vsel %vm701_vm1, %v13541_v60, %v7704_v43  ;;  %v2356_v23 = vpop.f32.mrb[246].mxu1  ;;  %v13543_v43 = vld [vmem:[#allocation37_spill] sm:$0xff] }
 0x488   :  { %v7796_v41 = vpack.i.bf16 %v11059_v31, %v2356_v23  ;;  %v7708_v42 = vpop.permute.xlu1 %7707  ;;  %v2358_v47 = vpop.f32.mrb[247].mxu1 }
 0x489   :  { %v11357_v48 = vpop.f32.mrb[246].mxu0  ;;  %v7710_v38 = vunpack.i.h.bf16 %v7708_v42  ;;  %v7709_v11 = vunpack.i.l.bf16 %v7708_v42 }
 0x48a   :  { %v3545_v19 = vpop.f32.mrb[247].mxu0  ;;  %7792 = vrot.lane.b32.xlu0 %v7791_v30, %s8155_s22  ;;  %7797 = vrot.lane.b32.xlu1 %v7796_v41, %s8155_s22 }
 0x48b   :  { %v11365_v44 = vsel %vm701_vm1, %v11016_v9, %v7710_v38  ;;  %v11369_v31 = vsel %vm701_vm1, %v13542_v8, %v7709_v11  ;;  %v2361_v55 = vpop.f32.mrb[248].mxu1  ;;  %v13544_v38 = vld [vmem:[#allocation34_spill] sm:$0xff] }
 0x48c   :  { %v7801_v45 = vpack.i.bf16 %v2361_v55, %v13543_v43  ;;  %v7713_v60 = vpop.permute.xlu1 %7712  ;;  %v2363_v23 = vpop.f32.mrb[249].mxu1  ;;  %v13545_v55 = vld [vmem:[#allocation38_spill] sm:$0xff] }
 0x48d   :  { %v11372_v42 = vpop.f32.mrb[248].mxu0  ;;  %v7715_v47 = vunpack.i.h.bf16 %v7713_v60  ;;  %v7714_v19 = vunpack.i.l.bf16 %v7713_v60 }
 0x48e   :  { %v3550_v41 = vpop.f32.mrb[249].mxu0  ;;  %7802 = vrot.lane.b32.xlu0 %v7801_v45, %s8155_s22 }
 0x48f   :  { %v11379_v9 = vsel %vm701_vm1, %v11026_v7, %v7715_v47  ;;  %v11383_v11 = vsel %vm701_vm1, %v13544_v38, %v7714_v19  ;;  %v2366_v8 = vpop.f32.mrb[250].mxu1 }
 0x490   :  { %v7806_v43 = vpack.i.bf16 %v2366_v8, %v13545_v55  ;;  %v2368_v23 = vpop.f32.mrb[251].mxu1 }
 0x491   :  { %v11386_v4 = vpop.f32.mrb[250].mxu0 }
 0x492   :  { %v3555_v41 = vpop.f32.mrb[251].mxu0  ;;  %v7718_v30 = vpop.permute.xlu1 %7717  ;;  %7807 = vrot.lane.b32.xlu0 %v7806_v43, %s8155_s22 }
 0x493   :  { %v7720_v45 = vunpack.i.h.bf16 %v7718_v30  ;;  %v7719_v7 = vunpack.i.l.bf16 %v7718_v30  ;;  %v2371_v47 = vpop.f32.mrb[252].mxu1 }
 0x494   :  { %v7811_v62 = vpack.i.bf16 %v2371_v47, %v13546_v57  ;;  %v2373_v19 = vpop.f32.mrb[253].mxu1 }
 0x495   :  { %v11394_v38 = vsel %vm2852_vm6, %v11307_v0, %v7720_v45  ;;  %v11398_v8 = vsel %vm2852_vm6, %v11311_v22, %v7719_v7  ;;  %v11400_v55 = vpop.f32.mrb[252].mxu0 }
 0x496   :  { %v3560_v43 = vpop.f32.mrb[253].mxu0  ;;  %v7723_v41 = vpop.permute.xlu1 %7722  ;;  %7812 = vrot.lane.b32.xlu0 %v7811_v62, %s8155_s22  ;;  %v4175_v62 = vld [vmem:[%s13186_s5 + $0x180] sm:$0xff] }
 0x497   :  { %v7725_v30 = vunpack.i.h.bf16 %v7723_v41  ;;  %v7724_v57 = vunpack.i.l.bf16 %v7723_v41  ;;  %v2376_v47 = vpop.f32.mrb[254].mxu1  ;;  %v4176_v43 = vld [vmem:[%s13186_s5 + $0x188] sm:$0xff] }
 0x498   :  { %v7816_v19 = vpack.i.bf16 %v2376_v47, %v10697_v36  ;;  %v2378_v0 = vpop.f32.mrb[255].mxu1  ;;  %v4159_v36 = vld [vmem:[%s13186_s5 + $0x100] sm:$0xff] }
 0x499   :  { %v11408_v45 = vsel %vm2852_vm6, %v11319_v10, %v7725_v30  ;;  %v11412_v22 = vsel %vm2852_vm6, %v11323_v21, %v7724_v57  ;;  %v11414_v7 = vpop.f32.mrb[254].mxu0  ;;  %v7277_v21 = vpack.c.bf16 %v4176_v43, %v4175_v62  ;;  %v4160_v30 = vld [vmem:[%s13186_s5 + $0x108] sm:$0xff]  ;;  %v13549_v0 = vld [vmem:[#allocation68_spill] sm:$0xff] }
 0x49a   :  { %13547 = vst [vmem:[#allocation22_spill] sm:$0xff] %v11408_v45  ;;  %13548 = vst [vmem:[#allocation36_spill] sm:$0xff] %v11412_v22  ;;  %v3565_v41 = vpop.f32.mrb[255].mxu0  ;;  %7817 = vrot.lane.b32.xlu0 %v7816_v19, %s8155_s22  ;;  %v7279_v47 = vpack.c.bf16 %v4160_v30, %v4159_v36  ;;  %v4161_v19 = vld [vmem:[%s13186_s5 + $0x110] sm:$0xff]  ;;  %v13550_v36 = vld [vmem:[#allocation44_spill] sm:$0xff] }
 0x49b   :  { %v2381_v57 = vpop.f32.mrb[0].mxu1  ;;  %7278 = vmatprep.subr.bf16.mxu1 %v7277_v21  ;;  %v4178_v41 = vld [vmem:[%s13186_s5 + $0x198] sm:$0xff]  ;;  %v13551_v10 = vld [vmem:[#allocation69_spill] sm:$0xff] }
 0x49c   :  { %v7821_v23 = vpack.i.bf16 %v13549_v0, %v2381_v57  ;;  %v2383_v60 = vpop.f32.mrb[1].mxu1  ;;  %7280 = vmatpush3.bf16.msra.mxu1 %v7279_v47  ;;  %v7281_v43 = vpack.c.bf16 %v4178_v41, %v4177_v28 }
 0x49d   :  { %v3568_v62 = vpop.f32.mrb[0].mxu0  ;;  %v4162_v60 = vld [vmem:[%s13186_s5 + $0x118] sm:$0xff] }
 0x49e   :  { %v7826_v21 = vpack.i.bf16 %v3568_v62, %v13550_v36  ;;  %v3570_v30 = vpop.f32.mrb[1].mxu0  ;;  %7822 = vrot.lane.b32.xlu1 %v7821_v23, %s8156_s27  ;;  %v7283_v57 = vpack.c.bf16 %v4162_v60, %v4161_v19  ;;  %7282 = vmatprep.subr.bf16.mxu1 %v7281_v43  ;;  %v4179_v62 = vld [vmem:[%s13186_s5 + $0x1a0] sm:$0xff]  ;;  %v4180_v23 = vld [vmem:[%s13186_s5 + $0x1a8] sm:$0xff] }
 0x49f   :  { %v2386_v0 = vpop.f32.mrb[2].mxu1  ;;  %v4163_v19 = vld [vmem:[%s13186_s5 + $0x120] sm:$0xff] }
 0x4a0   :  { %7827 = vrot.lane.b32.xlu0 %v7826_v21, %s8156_s27  ;;  %v7831_v45 = vpack.i.bf16 %v13551_v10, %v2386_v0  ;;  %v7728_v22 = vpop.permute.xlu1 %7727  ;;  %v2388_v32 = vpop.f32.mrb[3].mxu1  ;;  %7284 = vmatpush3.bf16.msra.mxu1 %v7283_v57  ;;  %v13552_v43 = vld [vmem:[#allocation45_spill] sm:$0xff]  ;;  %v13555_v0 = vld [vmem:[#allocation70_spill] sm:$0xff] }
 0x4a1   :  { %v3573_v47 = vpop.f32.mrb[2].mxu0  ;;  %v7730_v28 = vunpack.i.h.bf16 %v7728_v22  ;;  %v7729_v41 = vunpack.i.l.bf16 %v7728_v22  ;;  %v7285_v32 = vpack.c.bf16 %v4180_v23, %v4179_v62  ;;  %v4164_v22 = vld [vmem:[%s13186_s5 + $0x128] sm:$0xff]  ;;  %v4181_v23 = vld [vmem:[%s13186_s5 + $0x1b0] sm:$0xff] }
 0x4a2   :  { %v7836_v10 = vpack.i.bf16 %v3573_v47, %v13552_v43  ;;  %v3575_v60 = vpop.f32.mrb[3].mxu0  ;;  %v7287_v57 = vpack.c.bf16 %v4164_v22, %v4163_v19 }
 0x4a3   :  { %v11463_v36 = vsel %vm2852_vm6, %v11336_v15, %v7730_v28  ;;  %v11467_v21 = vsel %vm2852_vm6, %v11340_v50, %v7729_v41  ;;  %v2391_v30 = vpop.f32.mrb[4].mxu1  ;;  %7286 = vmatprep.subr.bf16.mxu1 %v7285_v32  ;;  %v4182_v15 = vld [vmem:[%s13186_s5 + $0x1b8] sm:$0xff]  ;;  %v4165_v50 = vld [vmem:[%s13186_s5 + $0x130] sm:$0xff] }
 0x4a4   :  { %13553 = vst [vmem:[#allocation13_spill] sm:$0xff] %v11463_v36  ;;  %13554 = vst [vmem:[#allocation18_spill] sm:$0xff] %v11467_v21  ;;  %7832 = vrot.lane.b32.xlu0 %v7831_v45, %s8156_s27  ;;  %v7841_v47 = vpack.i.bf16 %v13555_v0, %v2391_v30  ;;  %v7733_v43 = vpop.permute.xlu1 %7732  ;;  %v2393_v62 = vpop.f32.mrb[5].mxu1  ;;  %7288 = vmatpush3.bf16.msra.mxu1 %v7287_v57  ;;  %v7289_v19 = vpack.c.bf16 %v4182_v15, %v4181_v23  ;;  %v4166_v60 = vld [vmem:[%s13186_s5 + $0x138] sm:$0xff]  ;;  %v13556_v32 = vld [vmem:[#allocation46_spill] sm:$0xff] }
 0x4a5   :  { %v11480_v28 = vpop.f32.mrb[4].mxu0  ;;  %v7735_v45 = vunpack.i.h.bf16 %v7733_v43  ;;  %v7734_v41 = vunpack.i.l.bf16 %v7733_v43  ;;  %v7291_v0 = vpack.c.bf16 %v4166_v60, %v4165_v50  ;;  %v13559_v23 = vld [vmem:[#allocation72_spill] sm:$0xff]  ;;  %v13560_v60 = vld [vmem:[#allocation47_spill] sm:$0xff] }
 0x4a6   :  { %v3580_v30 = vpop.f32.mrb[5].mxu0  ;;  %7842 = vrot.lane.b32.xlu1 %v7841_v47, %s8156_s27  ;;  %7290 = vmatprep.subr.bf16.mxu1 %v7289_v19  ;;  %v4183_v47 = vld [vmem:[%s13186_s5 + $0x1c0] sm:$0xff]  ;;  %v4168_v19 = vld [vmem:[%s13186_s5 + $0x148] sm:$0xff] }
 0x4a7   :  { %v11490_v62 = vsel %vm2852_vm6, %v11350_v52, %v7735_v45  ;;  %v11494_v43 = vsel %vm2852_vm6, %v11354_v63, %v7734_v41  ;;  %v2396_v57 = vpop.f32.mrb[6].mxu1  ;;  %v4184_v52 = vld [vmem:[%s13186_s5 + $0x1c8] sm:$0xff]  ;;  %v4167_v63 = vld [vmem:[%s13186_s5 + $0x140] sm:$0xff] }
 0x4a8   :  { %13557 = vst [vmem:[#allocation29_spill] sm:$0xff] %v11490_v62  ;;  %13558 = vst [vmem:[#allocation5_spill] sm:$0xff] %v11494_v43  ;;  %7837 = vrot.lane.b32.xlu0 %v7836_v10, %s8156_s27  ;;  %v7846_v15 = vpack.i.bf16 %v13559_v23, %v2396_v57  ;;  %v7738_v36 = vpop.permute.xlu1 %7737  ;;  %v2398_v22 = vpop.f32.mrb[7].mxu1  ;;  %7292 = vmatpush3.bf16.msra.mxu1 %v7291_v0  ;;  %v7293_v41 = vpack.c.bf16 %v4184_v52, %v4183_v47  ;;  %v4185_v0 = vld [vmem:[%s13186_s5 + $0x1d0] sm:$0xff]  ;;  %v4186_v47 = vld [vmem:[%s13186_s5 + $0x1d8] sm:$0xff] }
 0x4a9   :  { %v11507_v50 = vpop.f32.mrb[6].mxu0  ;;  %v7740_v45 = vunpack.i.h.bf16 %v7738_v36  ;;  %v7739_v10 = vunpack.i.l.bf16 %v7738_v36  ;;  %v7295_v57 = vpack.c.bf16 %v4168_v19, %v4167_v63  ;;  %v4169_v52 = vld [vmem:[%s13186_s5 + $0x150] sm:$0xff] }
 0x4aa   :  { %v3585_v30 = vpop.f32.mrb[7].mxu0  ;;  %7294 = vmatprep.subr.bf16.mxu1 %v7293_v41  ;;  %v4170_v41 = vld [vmem:[%s13186_s5 + $0x158] sm:$0xff] }
 0x4ab   :  { %v11516_v23 = vsel %vm2852_vm6, %v11365_v44, %v7740_v45  ;;  %v11520_v62 = vsel %vm2852_vm6, %v11369_v31, %v7739_v10  ;;  %v2401_v36 = vpop.f32.mrb[8].mxu1  ;;  %v13563_v44 = vld [vmem:[#allocation40_spill] sm:$0xff]  ;;  %v7297_v10 = vpack.c.bf16 %v4186_v47, %v4185_v0 }
 0x4ac   :  { %13561 = vst [vmem:[#allocation8_spill] sm:$0xff] %v11516_v23  ;;  %13562 = vst [vmem:[#allocation20_spill] sm:$0xff] %v11520_v62  ;;  %7847 = vrot.lane.b32.xlu0 %v7846_v15, %s8156_s27  ;;  %v7851_v63 = vpack.i.bf16 %v2401_v36, %v13563_v44  ;;  %v7743_v31 = vpop.permute.xlu1 %7742  ;;  %v2403_v45 = vpop.f32.mrb[9].mxu1  ;;  %7296 = vmatpush3.bf16.msra.mxu1 %v7295_v57  ;;  %v7299_v23 = vpack.c.bf16 %v4170_v41, %v4169_v52  ;;  %v13564_v62 = vld [vmem:[#allocation74_spill] sm:$0xff]  ;;  %v4187_v47 = vld [vmem:[%s13186_s5 + $0x1e0] sm:$0xff] }
 0x4ad   :  { %v11536_v19 = vpop.f32.mrb[8].mxu0  ;;  %v7745_v30 = vunpack.i.h.bf16 %v7743_v31  ;;  %v7744_v22 = vunpack.i.l.bf16 %v7743_v31  ;;  %7298 = vmatprep.subr.bf16.mxu1 %v7297_v10  ;;  %v4188_v57 = vld [vmem:[%s13186_s5 + $0x1e8] sm:$0xff]  ;;  %v13568_v10 = vld [vmem:[#allocation75_spill] sm:$0xff] }
 0x4ae   :  { %v3590_v21 = vpop.f32.mrb[9].mxu0 }
 0x4af   :  { %v11542_v15 = vsel %vm2852_vm6, %v11379_v9, %v7745_v30  ;;  %v11546_v36 = vsel %vm2852_vm6, %v11383_v11, %v7744_v22  ;;  %v2406_v0 = vpop.f32.mrb[10].mxu1  ;;  %v4171_v21 = vld [vmem:[%s13186_s5 + $0x160] sm:$0xff]  ;;  %v7301_v11 = vpack.c.bf16 %v4188_v57, %v4187_v47  ;;  %v4172_v22 = vld [vmem:[%s13186_s5 + $0x168] sm:$0xff] }
 0x4b0   :  { %13565 = vst [vmem:[#allocation19_spill] sm:$0xff] %v11542_v15  ;;  %13566 = vst [vmem:[#allocation31_spill] sm:$0xff] %v11546_v36  ;;  %7852 = vrot.lane.b32.xlu0 %v7851_v63, %s8156_s27  ;;  %v13567_v9 = vld [vmem:[#allocation41_spill] sm:$0xff]  ;;  %v2408_v44 = vpop.f32.mrb[11].mxu1  ;;  %7300 = vmatpush3.bf16.msra.mxu1 %v7299_v23  ;;  %v7303_v45 = vpack.c.bf16 %v4172_v22, %v4171_v21  ;;  %v4189_v23 = vld [vmem:[%s13186_s5 + $0x1f0] sm:$0xff] }
 0x4b1   :  { %v7856_v52 = vpack.i.bf16 %v2406_v0, %v13567_v9  ;;  %v11562_v31 = vpop.f32.mrb[10].mxu0  ;;  %7302 = vmatprep.subr.bf16.mxu1 %v7301_v11  ;;  %v13569_v0 = vld [vmem:[#allocation42_spill] sm:$0xff] }
 0x4b2   :  { %v7748_v30 = vpop.permute.xlu1 %7747  ;;  %v3595_v43 = vpop.f32.mrb[11].mxu0  ;;  %v4173_v21 = vld [vmem:[%s13186_s5 + $0x170] sm:$0xff] }
 0x4b3   :  { %v7750_v15 = vunpack.i.h.bf16 %v7748_v30  ;;  %v7749_v63 = vunpack.i.l.bf16 %v7748_v30  ;;  %v2411_v36 = vpop.f32.mrb[12].mxu1  ;;  %v4190_v43 = vld [vmem:[%s13186_s5 + $0x1f8] sm:$0xff] }
 0x4b4   :  { %7857 = vrot.lane.b32.xlu0 %v7856_v52, %s8156_s27  ;;  %v7861_v47 = vpack.i.bf16 %v2411_v36, %v13569_v0  ;;  %v2413_v57 = vpop.f32.mrb[13].mxu1  ;;  %7304 = vmatpush3.bf16.msra.mxu1 %v7303_v45  ;;  %v7305_v22 = vpack.c.bf16 %v4190_v43, %v4189_v23  ;;  %v4174_v45 = vld [vmem:[%s13186_s5 + $0x178] sm:$0xff] }
 0x4b5   :  { %v11568_v9 = vpop.f32.mrb[12].mxu0  ;;  %v11581_v52 = vsel %vm2861_vm7, %v11398_v8, %v7749_v63  ;;  %v11585_v36 = vsel %vm2861_vm7, %v11394_v38, %v7750_v15  ;;  %v7307_v0 = vpack.c.bf16 %v4174_v45, %v4173_v21  ;;  %v13570_v57 = vld [vmem:[#allocation43_spill] sm:$0xff]  ;;  %v13571_v45 = vld [vmem:[#allocation52_spill] sm:$0xff] }
 0x4b6   :  { %v3600_v11 = vpop.f32.mrb[13].mxu0  ;;  %7306 = vmatprep.subr.bf16.mxu1 %v7305_v22 }
 0x4b7   :  { %v2416_v30 = vpop.f32.mrb[14].mxu1 }
 0x4b8   :  { %7862 = vrot.lane.b32.xlu0 %v7861_v47, %s8156_s27  ;;  %v7866_v8 = vpack.i.bf16 %v2416_v30, %v13570_v57  ;;  %v2418_v63 = vpop.f32.mrb[15].mxu1  ;;  %7308 = vmatpush3.bf16.msra.mxu1 %v7307_v0 }
 0x4b9   :  { %v11594_v41 = vpop.f32.mrb[14].mxu0  ;;  %v13572_v63 = vld [vmem:[#allocation53_spill] sm:$0xff] }
 0x4ba   :  { %v3605_v15 = vpop.f32.mrb[15].mxu0 }
 0x4bb   :  { %v2421_v23 = vpop.f32.mrb[16].mxu1 }
 0x4bc   :  { %7867 = vrot.lane.b32.xlu0 %v7866_v8, %s8156_s27  ;;  %v7871_v43 = vpack.i.bf16 %v11177_v37, %v2421_v23  ;;  %v2423_v11 = vpop.f32.mrb[17].mxu1 }
 0x4bd   :  { %v3608_v21 = vpop.f32.mrb[16].mxu0 }
 0x4be   :  { %v7876_v47 = vpack.i.bf16 %v3608_v21, %v13571_v45  ;;  %v3610_v44 = vpop.f32.mrb[17].mxu0 }
 0x4bf   :  { %v2426_v30 = vpop.f32.mrb[18].mxu1  ;;  %v13573_v44 = vld [vmem:[#allocation54_spill] sm:$0xff] }
 0x4c0   :  { %7872 = vrot.lane.b32.xlu0 %v7871_v43, %s8157_s23  ;;  %v7881_v22 = vpack.i.bf16 %v11192_v29, %v2426_v30  ;;  %v2428_v0 = vpop.f32.mrb[19].mxu1  ;;  %v13574_v29 = vpack.i.bf16 %v11201_v5, %v10546_v59  ;;  %v13575_v30 = vpack.i.bf16 %v11343_v13, %v10727_v54  ;;  %v13577_v59 = vld [vmem:[#allocation48_spill] sm:$0xff]  ;;  %v13578_v13 = vld [vmem:[#allocation66_spill] sm:$0xff] }
 0x4c1   :  { %v3613_v57 = vpop.f32.mrb[18].mxu0  ;;  %v13576_v0 = vld [vmem:[#allocation55_spill] sm:$0xff] }
 0x4c2   :  { %v7896_v38 = vpack.i.bf16 %v3613_v57, %v13572_v63  ;;  %v3615_v15 = vpop.f32.mrb[19].mxu0  ;;  %7882 = vrot.lane.b32.xlu1 %v7881_v22, %s8157_s23 }
 0x4c3   :  { %v2431_v8 = vpop.f32.mrb[20].mxu1 }
 0x4c4   :  { %7877 = vrot.lane.b32.xlu0 %v7876_v47, %s8157_s23  ;;  %v7901_v37 = vpack.i.bf16 %v11211_v16, %v2431_v8  ;;  %v2433_v23 = vpop.f32.mrb[21].mxu1 }
 0x4c5   :  { %v3618_v11 = vpop.f32.mrb[20].mxu0 }
 0x4c6   :  { %v7926_v21 = vpack.i.bf16 %v3618_v11, %v13573_v44  ;;  %v3620_v45 = vpop.f32.mrb[21].mxu0  ;;  %7887 = vrot.lane.b32.xlu1 %v13574_v29, %s8157_s23  ;;  %v13581_v29 = vld [vmem:[#allocation49_spill] sm:$0xff] }
 0x4c7   :  { %v2436_v43 = vpop.f32.mrb[22].mxu1 }
 0x4c8   :  { %7892 = vrot.lane.b32.xlu0 %v13575_v30, %s8155_s22  ;;  %v7906_v47 = vpack.i.bf16 %v11230_v24, %v2436_v43  ;;  %v2438_v22 = vpop.f32.mrb[23].mxu1  ;;  %v13579_v24 = vld [vmem:[#allocation21_spill] sm:$0xff] }
 0x4c9   :  { %v3623_v16 = vpop.f32.mrb[22].mxu0  ;;  %v13580_v44 = vpack.i.bf16 %v13578_v13, %v13579_v24 }
 0x4ca   :  { %v7976_v57 = vpack.i.bf16 %v3623_v16, %v13576_v0  ;;  %v3625_v63 = vpop.f32.mrb[23].mxu0  ;;  %7907 = vrot.lane.b32.xlu1 %v7906_v47, %s8157_s23  ;;  %v13582_v16 = vld [vmem:[#allocation71_spill] sm:$0xff]  ;;  %v13583_v0 = vld [vmem:[#allocation32_spill] sm:$0xff] }
 0x4cb   :  { %v2441_v15 = vpop.f32.mrb[24].mxu1 }
 0x4cc   :  { %7897 = vrot.lane.b32.xlu0 %v7896_v38, %s8157_s23  ;;  %v7946_v5 = vpack.i.bf16 %v2441_v15, %v13577_v59  ;;  %v2443_v8 = vpop.f32.mrb[25].mxu1  ;;  %v13585_v15 = vpack.i.bf16 %v11480_v28, %v13556_v32  ;;  %v13586_v59 = vld [vmem:[#allocation50_spill] sm:$0xff] }
 0x4cd   :  { %v3628_v23 = vpop.f32.mrb[24].mxu0 }
 0x4ce   :  { %v7996_v11 = vpack.i.bf16 %v11254_v35, %v3628_v23  ;;  %v3630_v54 = vpop.f32.mrb[25].mxu0  ;;  %7912 = vrot.lane.b32.xlu1 %v13580_v44, %s8155_s22  ;;  %v13584_v35 = vpack.i.bf16 %v13582_v16, %v13583_v0  ;;  %v13588_v44 = vld [vmem:[#allocation51_spill] sm:$0xff]  ;;  %v13597_v0 = vpack.i.bf16 %v13564_v62, %v11536_v19  ;;  %v13601_v19 = vpack.i.bf16 %v11084_v33, %v11414_v7 }
 0x4cf   :  { %v2446_v45 = vpop.f32.mrb[26].mxu1 }
 0x4d0   :  { %7902 = vrot.lane.b32.xlu0 %v7901_v37, %s8157_s23  ;;  %v7951_v43 = vpack.i.bf16 %v2446_v45, %v13581_v29  ;;  %v2448_v30 = vpop.f32.mrb[27].mxu1 }
 0x4d1   :  { %v3633_v47 = vpop.f32.mrb[26].mxu0  ;;  %v13589_v30 = vld [vmem:[#allocation67_spill] sm:$0xff] }
 0x4d2   :  { %v8011_v38 = vpack.i.bf16 %v11266_v40, %v3633_v47  ;;  %v3635_v22 = vpop.f32.mrb[27].mxu0  ;;  %7922 = vrot.lane.b32.xlu1 %v13584_v35, %s8156_s27  ;;  %v13587_v40 = vpack.i.bf16 %v11219_v53, %v13520_v26  ;;  %v13590_v47 = vld [vmem:[#allocation26_spill] sm:$0xff]  ;;  %v13592_v53 = vpack.i.bf16 %v11357_v48, %v10737_v20  ;;  %v13593_v26 = vld [vmem:[#allocation73_spill] sm:$0xff]  ;;  %v13598_v20 = vpack.i.bf16 %v11070_v49, %v11386_v4 }
 0x4d3   :  { %v2451_v63 = vpop.f32.mrb[28].mxu1  ;;  %v13591_v22 = vpack.i.bf16 %v13589_v30, %v13590_v47  ;;  %v13600_v48 = vpack.i.bf16 %v11153_v1, %v11568_v9  ;;  %v13603_v1 = vpack.i.bf16 %v11066_v14, %v11372_v42 }
 0x4d4   :  { %7917 = vrot.lane.b32.xlu0 %v13585_v15, %s8156_s27  ;;  %v7956_v37 = vpack.i.bf16 %v2451_v63, %v13586_v59  ;;  %v2453_v8 = vpop.f32.mrb[29].mxu1  ;;  %v13605_v15 = vld [vmem:[#allocation58_spill] sm:$0xff]  ;;  %v13606_v59 = vpack.i.bf16 %v13568_v10, %v11562_v31  ;;  %v13609_v10 = vld [vmem:[#allocation24_spill] sm:$0xff] }
 0x4d5   :  { %v3638_v23 = vpop.f32.mrb[28].mxu0 }
 0x4d6   :  { %v8026_v54 = vpack.i.bf16 %v11272_v39, %v3638_v23  ;;  %v3640_v13 = vpop.f32.mrb[29].mxu0  ;;  %7932 = vrot.lane.b32.xlu1 %v13587_v40, %s8157_s23 }
 0x4d7   :  { %v2456_v24 = vpop.f32.mrb[30].mxu1 }
 0x4d8   :  { %7927 = vrot.lane.b32.xlu0 %v7926_v21, %s8157_s23  ;;  %v7961_v45 = vpack.i.bf16 %v2456_v24, %v13588_v44  ;;  %v2458_v29 = vpop.f32.mrb[31].mxu1  ;;  %v13594_v21 = vld [vmem:[#allocation25_spill] sm:$0xff] }
 0x4d9   :  { %v3643_v28 = vpop.f32.mrb[30].mxu0  ;;  %v13595_v16 = vpack.i.bf16 %v13593_v26, %v13594_v21 }
 0x4da   :  { %v8041_v32 = vpack.i.bf16 %v11276_v25, %v3643_v28  ;;  %7942 = vrot.lane.b32.xlu1 %v13591_v22, %s8155_s22  ;;  %v3645_v39 = vpop.f32.mrb[31].mxu0  ;;  %v13596_v25 = vpack.i.bf16 %v11237_v56, %v13523_v18  ;;  %v13599_v56 = vpack.i.bf16 %v11507_v50, %v13560_v60 }
 0x4db   :  { %v11751_v39 = vpop.permute.xlu1 %7752 }
 0x4dc   :  { %7937 = vrot.lane.b32.xlu0 %v13592_v53, %s8155_s22 }
 0x4de   :  { %7972 = vrot.lane.b32.xlu1 %v13595_v16, %s8156_s27 }
 0x4e0   :  { %7947 = vrot.lane.b32.xlu0 %v7946_v5, %s8157_s23  ;;  %v13602_v5 = vld [vmem:[#allocation16_spill] sm:$0xff] }
 0x4e2   :  { %7982 = vrot.lane.b32.xlu1 %v13596_v25, %s8157_s23  ;;  %v13612_v25 = vld [vmem:[#allocation11_spill] sm:$0xff] }
 0x4e4   :  { %7952 = vrot.lane.b32.xlu0 %v7951_v43, %s8157_s23 }
 0x4e6   :  { %7992 = vrot.lane.b32.xlu1 %v13597_v0, %s8156_s27 }
 0x4e8   :  { %7957 = vrot.lane.b32.xlu0 %v7956_v37, %s8157_s23 }
 0x4ea   :  { %8002 = vrot.lane.b32.xlu1 %v13598_v20, %s8155_s22 }
 0x4ec   :  { %7962 = vrot.lane.b32.xlu0 %v7961_v45, %s8157_s23 }
 0x4ee   :  { %8012 = vrot.lane.b32.xlu1 %v8011_v38, %s8157_s23  ;;  %v13604_v38 = vld [vmem:[#allocation28_spill] sm:$0xff] }
 0x4f0   :  { %7967 = vrot.lane.b32.xlu0 %v13599_v56, %s8156_s27  ;;  %v11679_v18 = vpop.permute.xlu0 %7772 }
 0x4f2   :  { %8022 = vrot.lane.b32.xlu1 %v13600_v48, %s8156_s27 }
 0x4f4   :  { %7977 = vrot.lane.b32.xlu0 %v7976_v57, %s8157_s23  ;;  %v7778_v49 = vpop.permute.xlu0 %7777 }
 0x4f5   :  { %v7780_v4 = vunpack.i.h.bf16 %v7778_v49  ;;  %v7779_v62 = vunpack.i.l.bf16 %v7778_v49 }
 0x4f6   :  { %8032 = vrot.lane.b32.xlu1 %v13601_v19, %s8155_s22 }
 0x4f7   :  { %v2874_v50 = vsel %vm701_vm1, %v13602_v5, %v7779_v62  ;;  %v4103_v60 = vsel %vm701_vm1, %v11281_v51, %v7780_v4 }
 0x4f8   :  { %7987 = vrot.lane.b32.xlu0 %v13603_v1, %s8155_s22  ;;  %v7788_v9 = vpop.permute.xlu0 %7787 }
 0x4f9   :  { %v7790_v57 = vunpack.i.h.bf16 %v7788_v9  ;;  %v7789_v43 = vunpack.i.l.bf16 %v7788_v9 }
 0x4fa   :  { %8042 = vrot.lane.b32.xlu1 %v8041_v32, %s8157_s23 }
 0x4fb   :  { %v2875_v33 = vsel %vm701_vm1, %v13604_v38, %v7789_v43  ;;  %v4104_v7 = vsel %vm701_vm1, %v11285_v3, %v7790_v57 }
 0x4fc   :  { %7997 = vrot.lane.b32.xlu0 %v7996_v11, %s8157_s23  ;;  %v7793_v35 = vpop.permute.xlu0 %7792  ;;  %v13607_v11 = vld [vmem:[#allocation12_spill] sm:$0xff] }
 0x4fd   :  { %v7795_v51 = vunpack.i.h.bf16 %v7793_v35  ;;  %v7794_v63 = vunpack.i.l.bf16 %v7793_v35 }
 0x4ff   :  { %v11706_v14 = vsel %vm701_vm1, %v13605_v15, %v7795_v51  ;;  %v11710_v42 = vsel %vm701_vm1, %v11287_v34, %v7794_v63  ;;  %v13608_v34 = vpack.i.bf16 %v11076_v58, %v11400_v55  ;;  %v13610_v58 = vld [vmem:[#allocation23_spill] sm:$0xff] }
 0x500   :  { %8007 = vrot.lane.b32.xlu0 %v13606_v59, %s8156_s27  ;;  %v7803_v37 = vpop.permute.xlu0 %7802 }
 0x501   :  { %v7805_v3 = vunpack.i.h.bf16 %v7803_v37  ;;  %v7804_v8 = vunpack.i.l.bf16 %v7803_v37 }
 0x503   :  { %v11718_v23 = vsel %vm701_vm1, %v13607_v11, %v7804_v8  ;;  %v11722_v13 = vsel %vm701_vm1, %v11295_v17, %v7805_v3 }
 0x504   :  { %8017 = vrot.lane.b32.xlu0 %v13608_v34, %s8155_s22  ;;  %v7808_v40 = vpop.permute.xlu0 %7807 }
 0x505   :  { %v7810_v24 = vunpack.i.h.bf16 %v7808_v40  ;;  %v7809_v31 = vunpack.i.l.bf16 %v7808_v40 }
 0x507   :  { %v11730_v44 = vsel %vm701_vm1, %v13609_v10, %v7809_v31  ;;  %v11734_v45 = vsel %vm701_vm1, %v11299_v61, %v7810_v24  ;;  %v13611_v61 = vpack.i.bf16 %v11168_v2, %v11594_v41  ;;  %v11763_v41 = vpop.permute.xlu1 %7757 }
 0x508   :  { %8027 = vrot.lane.b32.xlu0 %v8026_v54, %s8157_s23  ;;  %v7813_v17 = vpop.permute.xlu0 %7812 }
 0x509   :  { %v7815_v29 = vunpack.i.h.bf16 %v7813_v17  ;;  %v7814_v28 = vunpack.i.l.bf16 %v7813_v17 }
 0x50a   :  { %v6525_v32 = vpop.f32.mrb[32].mxu1 }
 0x50b   :  { %v6526_v30 = vpop.f32.mrb[33].mxu1  ;;  %v11739_v55 = vsel %vm701_vm1, %v13610_v58, %v7814_v28  ;;  %v11743_v47 = vsel %vm701_vm1, %v11303_v6, %v7815_v29  ;;  %v11775_v43 = vpop.permute.xlu1 %7762 }
 0x50c   :  { %v11745_v22 = vadd.f32 %v6526_v30, %v6525_v32  ;;  %8037 = vrot.lane.b32.xlu0 %v13611_v61, %s8156_s27  ;;  %v7818_v54 = vpop.permute.xlu0 %7817  ;;  %v7775_v61 = vunpack.i.h.bf16 %v11679_v18 }
 0x50d   :  { %v7820_v53 = vunpack.i.h.bf16 %v7818_v54  ;;  %v7819_v26 = vunpack.i.l.bf16 %v7818_v54 }
 0x50e   :  { %v6528_v21 = vpop.f32.mrb[34].mxu1 }
 0x50f   :  { %v6529_v16 = vpop.f32.mrb[35].mxu1  ;;  %v11755_v0 = vsel %vm701_vm1, %v13612_v25, %v7819_v26  ;;  %v11759_v6 = vsel %vm701_vm1, %v11315_v46, %v7820_v53  ;;  %v11787_v11 = vpop.permute.xlu1 %7767  ;;  %v7774_v53 = vunpack.i.l.bf16 %v11679_v18 }
 0x510   :  { %v11761_v20 = vadd.f32 %v6529_v16, %v6528_v21 }
 0x512   :  { %v7828_v56 = vpop.permute.xlu0 %7827  ;;  %v6531_v2 = vpop.f32.mrb[36].mxu1 }
 0x513   :  { %v7830_v48 = vunpack.i.h.bf16 %v7828_v56  ;;  %v7829_v49 = vunpack.i.l.bf16 %v7828_v56  ;;  %v6532_v4 = vpop.f32.mrb[37].mxu1  ;;  %v7783_v10 = vpop.permute.xlu1 %7782  ;;  %v13613_v56 = vld [vmem:[#allocation56_spill] sm:$0xff] }
 0x514   :  { %v11765_v62 = vadd.f32 %v6532_v4, %v6531_v2  ;;  %v7784_v26 = vunpack.i.l.bf16 %v7783_v10  ;;  %v2894_v2 = vsel %vm701_vm1, %v13613_v56, %v7775_v61 }
 0x515   :  { %v11768_v19 = vsel %vm2852_vm6, %v2874_v50, %v7829_v49  ;;  %v11771_v5 = vsel %vm2852_vm6, %v4103_v60, %v7830_v48  ;;  %v7785_v48 = vunpack.i.h.bf16 %v7783_v10 }
 0x516   :  { %v7833_v1 = vpop.permute.xlu0 %7832  ;;  %v6534_v46 = vpop.f32.mrb[38].mxu1 }
 0x517   :  { %v6535_v9 = vpop.f32.mrb[39].mxu1  ;;  %v11797_v28 = vpop.permute.xlu1 %7797  ;;  %v7834_v49 = vunpack.i.l.bf16 %v7833_v1 }
 0x518   :  { %v11773_v57 = vadd.f32 %v6535_v9, %v6534_v46  ;;  %v7835_v46 = vunpack.i.h.bf16 %v7833_v1  ;;  %v13614_v1 = vld [vmem:[#allocation57_spill] sm:$0xff] }
 0x519   :  { %v2895_v10 = vsel %vm701_vm1, %v13614_v1, %v7785_v48  ;;  %v7799_v48 = vunpack.i.l.bf16 %v11797_v28 }
 0x51a   :  { %v7838_v38 = vpop.permute.xlu0 %7837  ;;  %v6537_v35 = vpop.f32.mrb[40].mxu1 }
 0x51b   :  { %v7840_v51 = vunpack.i.h.bf16 %v7838_v38  ;;  %v7839_v63 = vunpack.i.l.bf16 %v7838_v38  ;;  %v6538_v15 = vpop.f32.mrb[41].mxu1  ;;  %v7823_v58 = vpop.permute.xlu1 %7822 }
 0x51c   :  { %v11777_v59 = vadd.f32 %v6538_v15, %v6537_v35  ;;  %v7825_v21 = vunpack.i.h.bf16 %v7823_v58  ;;  %v7824_v16 = vunpack.i.l.bf16 %v7823_v58  ;;  %v2918_v35 = vsel %vm701_vm1, %v11279_v27, %v7774_v53 }
 0x51d   :  { %v11780_v50 = vsel %vm2852_vm6, %v2875_v33, %v7839_v63  ;;  %v11783_v60 = vsel %vm2852_vm6, %v4104_v7, %v7840_v51  ;;  %v2919_v15 = vsel %vm701_vm1, %v11283_v12, %v7784_v26 }
 0x51e   :  { %v11785_v37 = vpop.permute.xlu0 %7847  ;;  %v6540_v3 = vpop.f32.mrb[42].mxu1  ;;  %v2902_v51 = vsel %vm2852_vm6, %v2894_v2, %v7825_v21  ;;  %v2926_v18 = vsel %vm2852_vm6, %v2918_v35, %v7824_v16  ;;  %v2927_v27 = vsel %vm2852_vm6, %v2919_v15, %v7834_v49  ;;  %v7800_v35 = vunpack.i.h.bf16 %v11797_v28  ;;  %v13616_v28 = vld [vmem:[#allocation60_spill] sm:$0xff] }
 0x51f   :  { %v6541_v8 = vpop.f32.mrb[43].mxu1  ;;  %v7843_v25 = vpop.permute.xlu1 %7842  ;;  %v7849_v49 = vunpack.i.l.bf16 %v11785_v37 }
 0x520   :  { %v11789_v34 = vadd.f32 %v6541_v8, %v6540_v3  ;;  %v7845_v16 = vunpack.i.h.bf16 %v7843_v25  ;;  %v7844_v56 = vunpack.i.l.bf16 %v7843_v25  ;;  %v7850_v25 = vunpack.i.h.bf16 %v11785_v37 }
 0x522   :  { %v11791_v40 = vpop.permute.xlu0 %7852  ;;  %v6543_v24 = vpop.f32.mrb[44].mxu1 }
 0x523   :  { %v6544_v31 = vpop.f32.mrb[45].mxu1 }
 0x524   :  { %v11793_v17 = vadd.f32 %v6544_v31, %v6543_v24 }
 0x526   :  { %v11795_v33 = vpop.permute.xlu0 %7857  ;;  %v6546_v29 = vpop.f32.mrb[46].mxu1 }
 0x527   :  { %v6547_v7 = vpop.f32.mrb[47].mxu1 }
 0x528   :  { %v11799_v32 = vadd.f32 %v6547_v7, %v6546_v29  ;;  %v2903_v7 = vsel %vm2852_vm6, %v2895_v10, %v7835_v46  ;;  %v2897_v10 = vsel %vm701_vm1, %v13616_v28, %v7800_v35  ;;  %v7860_v35 = vunpack.i.h.bf16 %v11795_v33 }
 0x52a   :  { %v11801_v30 = vpop.permute.xlu0 %7862 }
 0x52b   :  { %v7864_v28 = vunpack.i.l.bf16 %v11801_v30 }
 0x52e   :  { %v11804_v54 = vpop.permute.xlu0 %7867 }
 0x532   :  { %v7873_v4 = vpop.permute.xlu0 %7872 }
 0x533   :  { %v7875_v9 = vunpack.i.h.bf16 %v7873_v4  ;;  %v7874_v38 = vunpack.i.l.bf16 %v7873_v4 }
 0x534   :  { %v7883_v63 = vpop.permute.xlu1 %7882 }
 0x535   :  { %v2910_v3 = vsel %vm2861_vm7, %v2902_v51, %v7875_v9  ;;  %v2934_v8 = vsel %vm2861_vm7, %v2926_v18, %v7874_v38  ;;  %v7885_v24 = vunpack.i.h.bf16 %v7883_v63  ;;  %v7884_v31 = vunpack.i.l.bf16 %v7883_v63 }
 0x536   :  { %v11819_v29 = vpop.permute.xlu0 %7877  ;;  %4400 = vmatprep.mubr.f32.mxu1 %v2934_v8  ;;  %v2904_v51 = vsel %vm2852_vm6, %v11706_v14, %v7845_v16  ;;  %v2928_v18 = vsel %vm2852_vm6, %v11710_v42, %v7844_v56  ;;  %v13615_v8 = vld [vmem:[#allocation33_spill] sm:$0xff]  ;;  %v7855_v16 = vunpack.i.h.bf16 %v11791_v40  ;;  %v7854_v56 = vunpack.i.l.bf16 %v11791_v40 }
 0x537   :  { %4401 = vmatmul.mubr.f32.vlgmr.msra.gmra.mrb[48].mxu1 %v2910_v3  ;;  %v2935_v58 = vsel %vm2861_vm7, %v2927_v27, %v7884_v31  ;;  %v2911_v61 = vsel %vm2861_vm7, %v2903_v7, %v7885_v24  ;;  %v2921_v24 = vsel %vm701_vm1, %v13615_v8, %v7799_v48  ;;  %v2905_v27 = vsel %vm2852_vm6, %v2897_v10, %v7850_v25 }
 0x538   :  { %v11824_v12 = vpop.permute.xlu1 %7887  ;;  %4405 = vmatprep.mubr.f32.mxu1 %v2935_v58  ;;  %v2929_v14 = vsel %vm2852_vm6, %v2921_v24, %v7849_v49  ;;  %v7755_v48 = vunpack.i.h.bf16 %v11751_v39  ;;  %v7754_v49 = vunpack.i.l.bf16 %v11751_v39  ;;  %v2930_v25 = vsel %vm2852_vm6, %v11722_v13, %v7855_v16  ;;  %v13617_v39 = vld [vmem:[#allocation18_spill] sm:$0xff] }
 0x539   :  { %v7760_v8 = vunpack.i.h.bf16 %v11763_v41  ;;  %v7759_v24 = vunpack.i.l.bf16 %v11763_v41  ;;  %v7865_v13 = vunpack.i.h.bf16 %v11801_v30  ;;  %v2931_v41 = vsel %vm2852_vm6, %v11734_v45, %v7860_v35  ;;  %v13619_v30 = vld [vmem:[#allocation5_spill] sm:$0xff] }
 0x53a   :  { %v11827_v53 = vpop.permute.xlu0 %7892  ;;  %v7770_v45 = vunpack.i.h.bf16 %v11787_v11 }
 0x53b   :  { %4406 = vmatmul.mubr.f32.gmra.mrb[50].mxu1 %v2911_v61 }
 0x53c   :  { %v7908_v26 = vpop.permute.xlu1 %7907 }
 0x53d   :  { %v7909_v46 = vunpack.i.l.bf16 %v7908_v26  ;;  %v7910_v31 = vunpack.i.h.bf16 %v7908_v26 }
 0x53e   :  { %v11829_v21 = vpop.permute.xlu0 %7897 }
 0x53f   :  { %v2937_v42 = vsel %vm2861_vm7, %v2929_v14, %v7909_v46  ;;  %v2913_v58 = vsel %vm2861_vm7, %v2905_v27, %v7910_v31  ;;  %v13618_v31 = vld [vmem:[#allocation13_spill] sm:$0xff] }
 0x540   :  { %v11831_v2 = vpop.permute.xlu1 %7912 }
 0x542   :  { %v7903_v4 = vpop.permute.xlu0 %7902 }
 0x543   :  { %v7905_v9 = vunpack.i.h.bf16 %v7903_v4  ;;  %v7904_v38 = vunpack.i.l.bf16 %v7903_v4 }
 0x544   :  { %v11840_v63 = vpop.permute.xlu1 %7922 }
 0x545   :  { %v2936_v15 = vsel %vm2861_vm7, %v2928_v18, %v7904_v38  ;;  %v2912_v3 = vsel %vm2861_vm7, %v2904_v51, %v7905_v9  ;;  %v7859_v51 = vunpack.i.l.bf16 %v11795_v33  ;;  %v2878_v18 = vsel %vm2852_vm6, %v11718_v23, %v7854_v56 }
 0x546   :  { %v11847_v1 = vpop.permute.xlu0 %7917  ;;  %4410 = vmatprep.mubr.f32.mxu1 %v2936_v15  ;;  %v2914_v23 = vsel %vm2861_vm7, %v13618_v31, %v7755_v48  ;;  %v7765_v56 = vunpack.i.h.bf16 %v11775_v43  ;;  %v7764_v48 = vunpack.i.l.bf16 %v11775_v43  ;;  %v7869_v43 = vunpack.i.l.bf16 %v11804_v54 }
 0x547   :  { %4411 = vmatmul.mubr.f32.gmra.mrb[52].mxu1 %v2912_v3  ;;  %v2862_v3 = vsel %vm2861_vm7, %v13617_v39, %v7754_v49  ;;  %v2879_v10 = vsel %vm2852_vm6, %v11730_v44, %v7859_v51  ;;  %v13620_v44 = vld [vmem:[#allocation29_spill] sm:$0xff] }
 0x548   :  { %4415 = vmatprep.mubr.f32.mxu1 %v2937_v42  ;;  %v11853_v37 = vpop.permute.xlu1 %7932 }
 0x54a   :  { %v11856_v7 = vpop.permute.xlu0 %7927 }
 0x54b   :  { %4416 = vmatmul.mubr.f32.gmra.mrb[54].mxu1 %v2913_v58 }
 0x54c   :  { %v11859_v61 = vpop.permute.xlu1 %7942 }
 0x54e   :  { %v11861_v26 = vpop.permute.xlu0 %7937 }
 0x550   :  { %v11867_v46 = vpop.permute.xlu1 %7972 }
 0x552   :  { %v7948_v4 = vpop.permute.xlu0 %7947 }
 0x553   :  { %v7950_v9 = vunpack.i.h.bf16 %v7948_v4  ;;  %v7949_v38 = vunpack.i.l.bf16 %v7948_v4  ;;  %v2863_v4 = vsel %vm2861_vm7, %v13619_v30, %v7759_v24  ;;  %v7899_v30 = vunpack.i.l.bf16 %v11829_v21 }
 0x554   :  { %v11889_v27 = vpop.permute.xlu1 %7982 }
 0x555   :  { %v2886_v40 = vsel %vm2861_vm7, %v2878_v18, %v7949_v38  ;;  %v2938_v15 = vsel %vm2861_vm7, %v2930_v25, %v7950_v9  ;;  %v2915_v9 = vsel %vm2861_vm7, %v13620_v44, %v7760_v8  ;;  %v7769_v38 = vunpack.i.l.bf16 %v11787_v11  ;;  %v13621_v8 = vld [vmem:[#allocation20_spill] sm:$0xff] }
 0x556   :  { %4255 = vmatprep.mubr.f32.mxu0 %v2886_v40  ;;  %4420 = vmatprep.mubr.f32.mxu1 %v2938_v15  ;;  %v7953_v33 = vpop.permute.xlu0 %7952  ;;  %v7870_v18 = vunpack.i.h.bf16 %v11804_v54  ;;  %v2880_v25 = vsel %vm2852_vm6, %v11739_v55, %v7864_v28  ;;  %v2932_v40 = vsel %vm2852_vm6, %v11743_v47, %v7865_v13  ;;  %v7879_v11 = vunpack.i.l.bf16 %v11819_v29 }
 0x557   :  { %v7955_v14 = vunpack.i.h.bf16 %v7953_v33  ;;  %v7954_v42 = vunpack.i.l.bf16 %v7953_v33  ;;  %4256 = vmatmul.mubr.f32.vlgmr.msra.gmra.mrb[32].mxu0 %v2862_v3  ;;  %4421 = vmatmul.mubr.f32.gmra.mrb[56].mxu1 %v2914_v23  ;;  %v2864_v24 = vsel %vm2861_vm7, %v13621_v8, %v7764_v48  ;;  %v13622_v33 = vld [vmem:[#allocation8_spill] sm:$0xff]  ;;  %v7880_v55 = vunpack.i.h.bf16 %v11819_v29  ;;  %v13630_v8 = vld [vmem:[#allocation59_spill] sm:$0xff] }
 0x558   :  { %v2916_v54 = vsel %vm2861_vm7, %v13622_v33, %v7765_v56  ;;  %v11915_v31 = vpop.permute.xlu1 %7992  ;;  %v7889_v13 = vunpack.i.l.bf16 %v11824_v12  ;;  %v2881_v28 = vsel %vm2852_vm6, %v11755_v0, %v7869_v43  ;;  %v7914_v0 = vunpack.i.l.bf16 %v11831_v2 }
 0x559   :  { %v2887_v58 = vsel %vm2861_vm7, %v2879_v10, %v7954_v42  ;;  %v2939_v16 = vsel %vm2861_vm7, %v2931_v41, %v7955_v14  ;;  %v13623_v14 = vld [vmem:[#allocation31_spill] sm:$0xff]  ;;  %v2933_v10 = vsel %vm2852_vm6, %v11759_v6, %v7870_v18  ;;  %v2890_v6 = vsel %vm2861_vm7, %v11768_v19, %v7879_v11  ;;  %v13626_v18 = vld [vmem:[#allocation22_spill] sm:$0xff] }
 0x55a   :  { %4260 = vmatprep.mubr.f32.mxu0 %v2887_v58  ;;  %4425 = vmatprep.mubr.f32.mxu1 %v2939_v16  ;;  %v7958_v49 = vpop.permute.xlu0 %7957  ;;  %v2865_v42 = vsel %vm2861_vm7, %v13623_v14, %v7769_v38  ;;  %v13624_v41 = vld [vmem:[#allocation19_spill] sm:$0xff]  ;;  %v7894_v58 = vunpack.i.l.bf16 %v11827_v53  ;;  %v7890_v16 = vunpack.i.h.bf16 %v11824_v12  ;;  %v7900_v44 = vunpack.i.h.bf16 %v11829_v21 }
 0x55b   :  { %v7960_v35 = vunpack.i.h.bf16 %v7958_v49  ;;  %v7959_v51 = vunpack.i.l.bf16 %v7958_v49  ;;  %4261 = vmatmul.mubr.f32.gmra.mrb[34].mxu0 %v2863_v4  ;;  %4426 = vmatmul.mubr.f32.gmra.mrb[58].mxu1 %v2915_v9  ;;  %v2917_v29 = vsel %vm2861_vm7, %v13624_v41, %v7770_v45  ;;  %v7895_v49 = vunpack.i.h.bf16 %v11827_v53 }
 0x55c   :  { %v7915_v12 = vunpack.i.h.bf16 %v11831_v2  ;;  %v7924_v9 = vunpack.i.l.bf16 %v11840_v63  ;;  %v4119_v53 = vsel %vm2861_vm7, %v11771_v5, %v7880_v55  ;;  %v7919_v45 = vunpack.i.l.bf16 %v11847_v1 }
 0x55d   :  { %v2888_v15 = vsel %vm2861_vm7, %v2880_v25, %v7959_v51  ;;  %v2940_v39 = vsel %vm2861_vm7, %v2932_v40, %v7960_v35  ;;  %v7925_v38 = vunpack.i.h.bf16 %v11840_v63  ;;  %v13625_v35 = vld [vmem:[#allocation36_spill] sm:$0xff]  ;;  %v7920_v21 = vunpack.i.h.bf16 %v11847_v1  ;;  %v11948_v51 = vpop.permute.xlu1 %8002  ;;  %v13627_v25 = vld [vmem:[#allocation6_spill] sm:$0xff]  ;;  %v13629_v1 = vld [vmem:[#allocation7_spill] sm:$0xff] }
 0x55e   :  { %4265 = vmatprep.mubr.f32.mxu0 %v2888_v15  ;;  %4430 = vmatprep.mubr.f32.mxu1 %v2940_v39  ;;  %v7963_v3 = vpop.permute.xlu0 %7962  ;;  %v2867_v19 = vsel %vm2861_vm7, %v13625_v35, %v7889_v13  ;;  %v7934_v2 = vunpack.i.l.bf16 %v11853_v37  ;;  %v4096_v43 = vsel %vm2861_vm7, %v13626_v18, %v7890_v16  ;;  %v2876_v5 = vsel %vm701_vm1, %v13627_v25, %v7894_v58  ;;  %v13628_v40 = vld [vmem:[#allocation10_spill] sm:$0xff]  ;;  %v13635_v18 = vld [vmem:[#allocation9_spill] sm:$0xff] }
 0x55f   :  { %v7965_v47 = vunpack.i.h.bf16 %v7963_v3  ;;  %v7964_v23 = vunpack.i.l.bf16 %v7963_v3  ;;  %4266 = vmatmul.mubr.f32.gmra.mrb[36].mxu0 %v2864_v24  ;;  %4431 = vmatmul.mubr.f32.gmra.mrb[60].mxu1 %v2916_v54  ;;  %v2850_v63 = vsel %vm701_vm1, %v13628_v40, %v7914_v0  ;;  %v7929_v15 = vunpack.i.l.bf16 %v11856_v7 }
 0x560   :  { %v2891_v11 = vsel %vm2861_vm7, %v11780_v50, %v7899_v30  ;;  %v4105_v3 = vsel %vm701_vm1, %v13629_v1, %v7895_v49  ;;  %v4081_v24 = vsel %vm701_vm1, %v13630_v8, %v7915_v12  ;;  %v2859_v33 = vsel %vm2852_vm6, %v2850_v63, %v7924_v9  ;;  %v13633_v12 = vld [vmem:[#allocation27_spill] sm:$0xff] }
 0x561   :  { %v2889_v56 = vsel %vm2861_vm7, %v2881_v28, %v7964_v23  ;;  %v2941_v48 = vsel %vm2861_vm7, %v2933_v10, %v7965_v47  ;;  %v7930_v54 = vunpack.i.h.bf16 %v11856_v7  ;;  %v4120_v55 = vsel %vm2861_vm7, %v11783_v60, %v7900_v44  ;;  %v11981_v41 = vpop.permute.xlu1 %8012 }
 0x562   :  { %v11933_v4 = vpop.permute.xlu0 %7967  ;;  %4270 = vmatprep.mubr.f32.mxu0 %v2889_v56  ;;  %4435 = vmatprep.mubr.f32.mxu1 %v2941_v48  ;;  %v4089_v47 = vsel %vm2852_vm6, %v4081_v24, %v7925_v38  ;;  %v7935_v50 = vunpack.i.h.bf16 %v11853_v37  ;;  %v7945_v23 = vunpack.i.h.bf16 %v11859_v61  ;;  %v2884_v14 = vsel %vm2852_vm6, %v2876_v5, %v7919_v45  ;;  %v13631_v56 = vld [vmem:[#allocation61_spill] sm:$0xff] }
 0x563   :  { %4271 = vmatmul.mubr.f32.gmra.mrb[38].mxu0 %v2865_v42  ;;  %4436 = vmatmul.mubr.f32.gmra.mrb[62].mxu1 %v2917_v29  ;;  %v7940_v42 = vunpack.i.h.bf16 %v11861_v26  ;;  %v7939_v7 = vunpack.i.l.bf16 %v11861_v26  ;;  %v7944_v60 = vunpack.i.l.bf16 %v11859_v61  ;;  %v7970_v13 = vunpack.i.h.bf16 %v11933_v4 }
 0x564   :  { %4275 = vmatprep.mubr.f32.mxu0 %v2890_v6  ;;  %4440 = vmatprep.mubr.f32.mxu1 %v4119_v53  ;;  %v7969_v37 = vunpack.i.l.bf16 %v11933_v4  ;;  %v2892_v10 = vsel %vm2861_vm7, %v2884_v14, %v7929_v15  ;;  %v4082_v48 = vsel %vm701_vm1, %v13631_v56, %v7945_v23  ;;  %v7975_v61 = vunpack.i.h.bf16 %v11867_v46  ;;  %v13632_v6 = vld [vmem:[#allocation35_spill] sm:$0xff]  ;;  %v13634_v53 = vld [vmem:[#allocation14_spill] sm:$0xff] }
 0x565   :  { %v7974_v49 = vunpack.i.l.bf16 %v11867_v46  ;;  %v4097_v30 = vsel %vm2861_vm7, %v4089_v47, %v7935_v50  ;;  %v7985_v0 = vunpack.i.h.bf16 %v11889_v27  ;;  %v7984_v4 = vunpack.i.l.bf16 %v11889_v27  ;;  %v8023_v15 = vpop.permute.xlu1 %8022 }
 0x566   :  { %v7978_v39 = vpop.permute.xlu0 %7977  ;;  %v2877_v44 = vsel %vm701_vm1, %v13632_v6, %v7939_v7  ;;  %v4106_v9 = vsel %vm701_vm1, %v13633_v12, %v7940_v42  ;;  %v2851_v45 = vsel %vm701_vm1, %v13634_v53, %v7944_v60  ;;  %v4090_v5 = vsel %vm2852_vm6, %v4082_v48, %v7975_v61  ;;  %v13637_v42 = vld [vmem:[#allocation17_spill] sm:$0xff]  ;;  %v13640_v48 = vld [vmem:[#allocation15_spill] sm:$0xff] }
 0x567   :  { %4276 = vmatmul.mubr.f32.gmra.mrb[40].mxu0 %v11581_v52  ;;  %4441 = vmatmul.mubr.f32.gmra.mrb[64].mxu1 %v11585_v36  ;;  %v4113_v52 = vsel %vm2852_vm6, %v4105_v3, %v7920_v21  ;;  %v2868_v36 = vsel %vm2861_vm7, %v2859_v33, %v7934_v2  ;;  %v7980_v29 = vunpack.i.h.bf16 %v7978_v39  ;;  %v7979_v58 = vunpack.i.l.bf16 %v7978_v39  ;;  %v13636_v3 = vld [vmem:[#allocation62_spill] sm:$0xff] }
 0x568   :  { %4280 = vmatprep.mubr.f32.mxu0 %v2891_v11  ;;  %4445 = vmatprep.mubr.f32.mxu1 %v4120_v55  ;;  %v4121_v26 = vsel %vm2861_vm7, %v4113_v52, %v7930_v54  ;;  %v2885_v46 = vsel %vm2852_vm6, %v2877_v44, %v7969_v37  ;;  %v2860_v25 = vsel %vm2852_vm6, %v2851_v45, %v7974_v49  ;;  %v7994_v40 = vunpack.i.l.bf16 %v11915_v31 }
 0x569   :  { %v2893_v27 = vsel %vm2861_vm7, %v2885_v46, %v7979_v58  ;;  %v8004_v63 = vunpack.i.l.bf16 %v11948_v51  ;;  %v2869_v39 = vsel %vm2861_vm7, %v2860_v25, %v7984_v4  ;;  %v4098_v11 = vsel %vm2861_vm7, %v4090_v5, %v7985_v0  ;;  %v13642_v25 = vld [vmem:[#allocation30_spill] sm:$0xff] }
 0x56a   :  { %v7988_v28 = vpop.permute.xlu0 %7987  ;;  %v8005_v1 = vunpack.i.h.bf16 %v11948_v51  ;;  %v7995_v55 = vunpack.i.h.bf16 %v11915_v31  ;;  %v8014_v14 = vunpack.i.l.bf16 %v11981_v41  ;;  %v8025_v49 = vunpack.i.h.bf16 %v8023_v15 }
 0x56b   :  { %v7989_v16 = vunpack.i.l.bf16 %v7988_v28  ;;  %4281 = vmatmul.mubr.f32.gmra.mrb[42].mxu0 %v2867_v19  ;;  %4446 = vmatmul.mubr.f32.gmra.mrb[66].mxu1 %v4096_v43  ;;  %v7990_v38 = vunpack.i.h.bf16 %v7988_v28  ;;  %v4114_v19 = vsel %vm2852_vm6, %v4106_v9, %v7970_v13  ;;  %v4108_v51 = vsel %vm701_vm1, %v13637_v42, %v8004_v63  ;;  %v8033_v28 = vpop.permute.xlu1 %8032  ;;  %v4704_v42 = vld [vmem:[%s13189_s8] sm:$0xff] }
 0x56c   :  { %4285 = vmatprep.mubr.f32.mxu0 %v2892_v10  ;;  %4450 = vmatprep.mubr.f32.mxu1 %v4121_v26  ;;  %v4122_v2 = vsel %vm2861_vm7, %v4114_v19, %v7980_v29  ;;  %v13639_v26 = vld [vmem:[#allocation64_spill] sm:$0xff]  ;;  %v8035_v12 = vunpack.i.h.bf16 %v8033_v28  ;;  %v8034_v9 = vunpack.i.l.bf16 %v8033_v28 }
 0x56d   :  { %v4107_v43 = vsel %vm701_vm1, %v13635_v18, %v7989_v16  ;;  %v4083_v8 = vsel %vm701_vm1, %v13636_v3, %v7990_v38  ;;  %v8015_v16 = vunpack.i.h.bf16 %v11981_v41 }
 0x56e   :  { %v7998_v35 = vpop.permute.xlu0 %7997  ;;  %v4115_v54 = vsel %vm2852_vm6, %v4107_v43, %v7994_v40  ;;  %v4091_v7 = vsel %vm2852_vm6, %v4083_v8, %v7995_v55  ;;  %v4110_v5 = vsel %vm701_vm1, %v13642_v25, %v8034_v9 }
 0x56f   :  { %v7999_v21 = vunpack.i.l.bf16 %v7998_v35  ;;  %4286 = vmatmul.mubr.f32.gmra.mrb[44].mxu0 %v2868_v36  ;;  %4451 = vmatmul.mubr.f32.gmra.mrb[68].mxu1 %v4097_v30  ;;  %v8000_v24 = vunpack.i.h.bf16 %v7998_v35  ;;  %v13638_v36 = vld [vmem:[#allocation63_spill] sm:$0xff]  ;;  %v8024_v30 = vunpack.i.l.bf16 %v8023_v15  ;;  %v8043_v45 = vpop.permute.xlu1 %8042 }
 0x570   :  { %4290 = vmatprep.mubr.f32.mxu0 %v2893_v27  ;;  %4455 = vmatprep.mubr.f32.mxu1 %v4122_v2  ;;  %v4084_v60 = vsel %vm701_vm1, %v13638_v36, %v8005_v1  ;;  %v13641_v27 = vld [vmem:[#allocation65_spill] sm:$0xff]  ;;  %v8045_v18 = vunpack.i.h.bf16 %v8043_v45  ;;  %v8044_v43 = vunpack.i.l.bf16 %v8043_v45 }
 0x571   :  { %v4123_v23 = vsel %vm2861_vm7, %v4115_v54, %v7999_v21  ;;  %v4099_v13 = vsel %vm2861_vm7, %v4091_v7, %v8000_v24  ;;  %v4086_v2 = vsel %vm701_vm1, %v13641_v27, %v8035_v12 }
 0x572   :  { %v8008_v33 = vpop.permute.xlu0 %8007 }
 0x573   :  { %v8010_v47 = vunpack.i.h.bf16 %v8008_v33  ;;  %v8009_v50 = vunpack.i.l.bf16 %v8008_v33  ;;  %4291 = vmatmul.mubr.f32.gmra.mrb[46].mxu0 %v2869_v39  ;;  %4456 = vmatmul.mubr.f32.gmra.mrb[70].mxu1 %v4098_v11 }
 0x574   :  { %4460 = vmatprep.mubr.f32.mxu1 %v4123_v23  ;;  %7014 = vmatprep.mubr.msk.f32.mxu0 %vm2852_vm6, %v4704_v42 }
 0x575   :  { %v4116_v52 = vsel %vm2852_vm6, %v4108_v51, %v8009_v50  ;;  %v4092_v10 = vsel %vm2852_vm6, %v4084_v60, %v8010_v47 }
 0x576   :  { %v8018_v31 = vpop.permute.xlu0 %8017  ;;  %v4124_v37 = vsel %vm2861_vm7, %v4116_v52, %v8014_v14  ;;  %v4100_v4 = vsel %vm2861_vm7, %v4092_v10, %v8015_v16 }
 0x577   :  { %v8020_v29 = vunpack.i.h.bf16 %v8018_v31  ;;  %v8019_v58 = vunpack.i.l.bf16 %v8018_v31  ;;  %4461 = vmatmul.mubr.f32.gmra.mrb[72].mxu1 %v4099_v13 }
 0x578   :  { %4465 = vmatprep.mubr.f32.mxu1 %v4124_v37 }
 0x579   :  { %v4085_v56 = vsel %vm701_vm1, %v13639_v26, %v8020_v29  ;;  %v4109_v61 = vsel %vm701_vm1, %v13640_v48, %v8019_v58 }
 0x57a   :  { %v8028_v0 = vpop.permute.xlu0 %8027  ;;  %v4117_v53 = vsel %vm2852_vm6, %v4109_v61, %v8024_v30  ;;  %v4093_v41 = vsel %vm2852_vm6, %v4085_v56, %v8025_v49 }
 0x57b   :  { %v8030_v6 = vunpack.i.h.bf16 %v8028_v0  ;;  %v8029_v44 = vunpack.i.l.bf16 %v8028_v0  ;;  %4466 = vmatmul.mubr.f32.gmra.mrb[74].mxu1 %v4100_v4 }
 0x57d   :  { %v4125_v38 = vsel %vm2861_vm7, %v4117_v53, %v8029_v44  ;;  %v4101_v35 = vsel %vm2861_vm7, %v4093_v41, %v8030_v6 }
 0x57e   :  { %v8038_v46 = vpop.permute.xlu0 %8037  ;;  %4470 = vmatprep.mubr.f32.mxu1 %v4125_v38 }
 0x57f   :  { %v8040_v19 = vunpack.i.h.bf16 %v8038_v46  ;;  %v8039_v21 = vunpack.i.l.bf16 %v8038_v46  ;;  %4471 = vmatmul.mubr.f32.gmra.mrb[76].mxu1 %v4101_v35 }
 0x581   :  { %v4094_v40 = vsel %vm2852_vm6, %v4086_v2, %v8040_v19  ;;  %v4118_v63 = vsel %vm2852_vm6, %v4110_v5, %v8039_v21 }
 0x582   :  { %v4126_v15 = vsel %vm2861_vm7, %v4118_v63, %v8044_v43  ;;  %v4102_v39 = vsel %vm2861_vm7, %v4094_v40, %v8045_v18 }
 0x583   :  { %4475 = vmatprep.mubr.f32.mxu1 %v4126_v15 }
 0x584   :  { %4476 = vmatmul.mubr.f32.gmra.mrb[78].mxu1 %v4102_v39 }
 0x585   :  { %7078 = vmatprep.mubr.msk.f32.mxu1 %vm2852_vm6, %v4704_v42 }
 0x60a   :  { %v6581_v11 = vpop.f32.mrb[48].mxu1 }
 0x60b   :  { %v6582_v1 = vpop.f32.mrb[49].mxu1 }
 0x60c   :  { %v6583_v3 = vadd.f32 %v6582_v1, %v6581_v11 }
 0x60e   :  { %v6584_v8 = vpop.f32.mrb[50].mxu1 }
 0x60f   :  { %v6585_v24 = vpop.f32.mrb[51].mxu1 }
 0x610   :  { %v6586_v33 = vadd.f32 %v6585_v24, %v6584_v8 }
 0x61a   :  { %v6587_v54 = vpop.f32.mrb[52].mxu1 }
 0x61b   :  { %v6588_v55 = vpop.f32.mrb[53].mxu1 }
 0x61c   :  { %v6589_v47 = vadd.f32 %v6588_v55, %v6587_v54 }
 0x61e   :  { %v6590_v50 = vpop.f32.mrb[54].mxu1 }
 0x61f   :  { %v6591_v23 = vpop.f32.mrb[55].mxu1 }
 0x620   :  { %v6592_v14 = vadd.f32 %v6591_v23, %v6590_v50 }
 0x62a   :  { %v6501_v51 = vpop.f32.mrb[32].mxu0  ;;  %v6593_v7 = vpop.f32.mrb[56].mxu1 }
 0x62b   :  { %v6502_v52 = vpop.f32.mrb[33].mxu0  ;;  %v6594_v36 = vpop.f32.mrb[57].mxu1 }
 0x62c   :  { %v6503_v60 = vadd.f32 %v6502_v52, %v6501_v51  ;;  %v6595_v31 = vadd.f32 %v6594_v36, %v6593_v7 }
 0x62e   :  { %v12048_v13 = vadd.f32 %v6583_v3, %v6503_v60  ;;  %v6504_v37 = vpop.f32.mrb[34].mxu0  ;;  %v6596_v28 = vpop.f32.mrb[58].mxu1 }
 0x62f   :  { %v6505_v10 = vpop.f32.mrb[35].mxu0  ;;  %v6597_v29 = vpop.f32.mrb[59].mxu1 }
 0x630   :  { %v6506_v58 = vadd.f32 %v6505_v10, %v6504_v37  ;;  %v6598_v16 = vadd.f32 %v6597_v29, %v6596_v28  ;;  %v4520_v26 = vmul.f32 %v12048_v13, %v12048_v13  ;;  %v4483_v49 = vsel %vm2852_vm6, %v12048_v13, 0.0 }
 0x632   :  { %v12052_v56 = vadd.f32 %v6586_v33, %v6506_v58  ;;  %v6507_v48 = vpop.f32.mrb[36].mxu0  ;;  %v6599_v61 = vpop.f32.mrb[60].mxu1  ;;  %v4536_v53 = vsel %vm2852_vm6, %v4520_v26, 0.0 }
 0x633   :  { %v6508_v30 = vpop.f32.mrb[37].mxu0  ;;  %v6600_v0 = vpop.f32.mrb[61].mxu1 }
 0x634   :  { %v4484_v4 = vsel %vm2852_vm6, %v12052_v56, 0.0  ;;  %v4521_v6 = vmul.f32 %v12052_v56, %v12052_v56  ;;  %v6509_v44 = vadd.f32 %v6508_v30, %v6507_v48  ;;  %v6601_v12 = vadd.f32 %v6600_v0, %v6599_v61 }
 0x635   :  { %v4485_v9 = vadd.f32 %v4484_v4, %v4483_v49 }
 0x636   :  { %v4537_v41 = vsel %vm2852_vm6, %v4521_v6, 0.0  ;;  %v12062_v45 = vadd.f32 %v6589_v47, %v6509_v44  ;;  %v6510_v38 = vpop.f32.mrb[38].mxu0  ;;  %v6602_v35 = vpop.f32.mrb[62].mxu1 }
 0x637   :  { %v4538_v46 = vadd.f32 %v4537_v41, %v4536_v53  ;;  %v6511_v19 = vpop.f32.mrb[39].mxu0  ;;  %v6603_v21 = vpop.f32.mrb[63].mxu1 }
 0x638   :  { %v4486_v27 = vsel %vm2852_vm6, %v12062_v45, 0.0  ;;  %v4522_v2 = vmul.f32 %v12062_v45, %v12062_v45  ;;  %v6512_v18 = vadd.f32 %v6511_v19, %v6510_v38  ;;  %v6604_v43 = vadd.f32 %v6603_v21, %v6602_v35 }
 0x639   :  { %v4487_v25 = vadd.f32 %v4486_v27, %v4485_v9 }
 0x63a   :  { %v4539_v5 = vsel %vm2852_vm6, %v4522_v2, 0.0  ;;  %v12069_v40 = vadd.f32 %v6592_v14, %v6512_v18  ;;  %v6513_v63 = vpop.f32.mrb[40].mxu0  ;;  %v6605_v15 = vpop.f32.mrb[64].mxu1 }
 0x63b   :  { %v4540_v39 = vadd.f32 %v4539_v5, %v4538_v46  ;;  %v6514_v11 = vpop.f32.mrb[41].mxu0  ;;  %v6606_v1 = vpop.f32.mrb[65].mxu1 }
 0x63c   :  { %v4488_v3 = vsel %vm2852_vm6, %v12069_v40, 0.0  ;;  %v4523_v8 = vmul.f32 %v12069_v40, %v12069_v40  ;;  %v6515_v24 = vadd.f32 %v6514_v11, %v6513_v63  ;;  %v6607_v33 = vadd.f32 %v6606_v1, %v6605_v15 }
 0x63d   :  { %v4489_v54 = vadd.f32 %v4488_v3, %v4487_v25 }
 0x63e   :  { %v4541_v55 = vsel %vm2852_vm6, %v4523_v8, 0.0  ;;  %v12076_v47 = vadd.f32 %v6595_v31, %v6515_v24  ;;  %v12079_v50 = vadd.f32 %v6607_v33, %v11745_v22  ;;  %v6516_v23 = vpop.f32.mrb[42].mxu0  ;;  %v6608_v14 = vpop.f32.mrb[66].mxu1 }
 0x63f   :  { %v4542_v42 = vadd.f32 %v4541_v55, %v4540_v39  ;;  %v6517_v51 = vpop.f32.mrb[43].mxu0  ;;  %v6609_v7 = vpop.f32.mrb[67].mxu1 }
 0x640   :  { %v4490_v52 = vsel %vm2852_vm6, %v12076_v47, 0.0  ;;  %v4524_v36 = vmul.f32 %v12076_v47, %v12076_v47  ;;  %v6518_v37 = vadd.f32 %v6517_v51, %v6516_v23  ;;  %v6610_v28 = vadd.f32 %v6609_v7, %v6608_v14 }
 0x641   :  { %v4491_v60 = vadd.f32 %v4490_v52, %v4489_v54  ;;  %v4528_v39 = vmul.f32 %v12079_v50, %v12079_v50 }
 0x642   :  { %v4543_v31 = vsel %vm2852_vm6, %v4524_v36, 0.0  ;;  %v6519_v10 = vpop.f32.mrb[44].mxu0  ;;  %v6611_v29 = vpop.f32.mrb[68].mxu1  ;;  %v12086_v58 = vadd.f32 %v6598_v16, %v6518_v37  ;;  %v12089_v26 = vadd.f32 %v6610_v28, %v11761_v20 }
 0x643   :  { %v4544_v22 = vadd.f32 %v4543_v31, %v4542_v42  ;;  %v6520_v48 = vpop.f32.mrb[45].mxu0  ;;  %v6612_v61 = vpop.f32.mrb[69].mxu1  ;;  %v4551_v14 = vsel %vm2852_vm6, %v4528_v39, 0.0 }
 0x644   :  { %v6521_v49 = vadd.f32 %v6520_v48, %v6519_v10  ;;  %v6613_v30 = vadd.f32 %v6612_v61, %v6611_v29  ;;  %v4492_v0 = vsel %vm2852_vm6, %v12086_v58, 0.0  ;;  %v4525_v4 = vmul.f32 %v12086_v58, %v12086_v58 }
 0x645   :  { %v4493_v6 = vadd.f32 %v4492_v0, %v4491_v60  ;;  %v4529_v24 = vmul.f32 %v12089_v26, %v12089_v26  ;;  %v4500_v42 = vsel %vm2852_vm6, %v12089_v26, 0.0 }
 0x646   :  { %v12095_v44 = vadd.f32 %v6601_v12, %v6521_v49  ;;  %v12098_v9 = vadd.f32 %v6613_v30, %v11765_v62  ;;  %v6522_v16 = vpop.f32.mrb[46].mxu0  ;;  %v6614_v53 = vpop.f32.mrb[70].mxu1  ;;  %v4545_v20 = vsel %vm2852_vm6, %v4525_v4, 0.0 }
 0x647   :  { %v6523_v41 = vpop.f32.mrb[47].mxu0  ;;  %v6615_v38 = vpop.f32.mrb[71].mxu1  ;;  %v4546_v35 = vadd.f32 %v4545_v20, %v4544_v22  ;;  %v4553_v60 = vsel %vm2852_vm6, %v4529_v24, 0.0 }
 0x648   :  { %v4494_v46 = vsel %vm2852_vm6, %v12095_v44, 0.0  ;;  %v4526_v19 = vmul.f32 %v12095_v44, %v12095_v44  ;;  %v6524_v27 = vadd.f32 %v6523_v41, %v6522_v16  ;;  %v6616_v12 = vadd.f32 %v6615_v38, %v6614_v53 }
 0x649   :  { %v4495_v21 = vadd.f32 %v4494_v46, %v4493_v6  ;;  %v4502_v37 = vsel %vm2852_vm6, %v12098_v9, 0.0 }
 0x64a   :  { %v4547_v2 = vsel %vm2852_vm6, %v4526_v19, 0.0  ;;  %v6617_v62 = vpop.f32.mrb[72].mxu1  ;;  %v12106_v25 = vadd.f32 %v6604_v43, %v6524_v27  ;;  %v12109_v5 = vadd.f32 %v6616_v12, %v11773_v57  ;;  %v4498_v57 = vsel %vm2852_vm6, %v12079_v50, 0.0 }
 0x64b   :  { %v4548_v18 = vadd.f32 %v4547_v2, %v4546_v35  ;;  %v6618_v63 = vpop.f32.mrb[73].mxu1 }
 0x64c   :  { %v6619_v15 = vadd.f32 %v6618_v63, %v6617_v62  ;;  %v4496_v11 = vsel %vm2852_vm6, %v12106_v25, 0.0  ;;  %v4527_v1 = vmul.f32 %v12106_v25, %v12106_v25  ;;  %v4531_v28 = vmul.f32 %v12109_v5, %v12109_v5 }
 0x64d   :  { %v4497_v3 = vadd.f32 %v4496_v11, %v4495_v21  ;;  %v4504_v49 = vsel %vm2852_vm6, %v12109_v5, 0.0 }
 0x64e   :  { %v12118_v8 = vadd.f32 %v6619_v15, %v11777_v59  ;;  %v6620_v43 = vpop.f32.mrb[74].mxu1  ;;  %v4549_v33 = vsel %vm2852_vm6, %v4527_v1, 0.0  ;;  %v4530_v59 = vmul.f32 %v12098_v9, %v12098_v9 }
 0x64f   :  { %v6621_v54 = vpop.f32.mrb[75].mxu1  ;;  %v4499_v55 = vadd.f32 %v4498_v57, %v4497_v3  ;;  %v4550_v23 = vadd.f32 %v4549_v33, %v4548_v18 }
 0x650   :  { %v6622_v51 = vadd.f32 %v6621_v54, %v6620_v43  ;;  %v4555_v61 = vsel %vm2852_vm6, %v4530_v59, 0.0  ;;  %v4532_v30 = vmul.f32 %v12118_v8, %v12118_v8  ;;  %v4506_v16 = vsel %vm2852_vm6, %v12118_v8, 0.0 }
 0x651   :  { %v4552_v7 = vadd.f32 %v4551_v14, %v4550_v23  ;;  %v4501_v52 = vadd.f32 %v4500_v42, %v4499_v55 }
 0x652   :  { %v6623_v36 = vpop.f32.mrb[76].mxu1  ;;  %v12136_v31 = vadd.f32 %v6622_v51, %v11789_v34  ;;  %v4557_v34 = vsel %vm2852_vm6, %v4531_v28, 0.0  ;;  %v4559_v46 = vsel %vm2852_vm6, %v4532_v30, 0.0 }
 0x653   :  { %v6624_v10 = vpop.f32.mrb[77].mxu1  ;;  %v4503_v29 = vadd.f32 %v4502_v37, %v4501_v52  ;;  %v4554_v22 = vadd.f32 %v4553_v60, %v4552_v7 }
 0x654   :  { %v6625_v48 = vadd.f32 %v6624_v10, %v6623_v36  ;;  %v4533_v53 = vmul.f32 %v12136_v31, %v12136_v31  ;;  %v4508_v19 = vsel %vm2852_vm6, %v12136_v31, 0.0 }
 0x655   :  { %v4505_v0 = vadd.f32 %v4504_v49, %v4503_v29  ;;  %v4556_v4 = vadd.f32 %v4555_v61, %v4554_v22 }
 0x656   :  { %v12144_v6 = vadd.f32 %v6625_v48, %v11793_v17  ;;  %v4561_v2 = vsel %vm2852_vm6, %v4533_v53, 0.0 }
 0x657   :  { %v6626_v20 = vpop.f32.mrb[78].mxu1  ;;  %v4558_v41 = vadd.f32 %v4557_v34, %v4556_v4  ;;  %v4507_v38 = vadd.f32 %v4506_v16, %v4505_v0 }
 0x658   :  { %v6627_v35 = vpop.f32.mrb[79].mxu1  ;;  %v4534_v17 = vmul.f32 %v12144_v6, %v12144_v6  ;;  %v4510_v62 = vsel %vm2852_vm6, %v12144_v6, 0.0 }
 0x659   :  { %v6628_v21 = vadd.f32 %v6627_v35, %v6626_v20  ;;  %v4560_v27 = vadd.f32 %v4559_v46, %v4558_v41  ;;  %v4509_v12 = vadd.f32 %v4508_v19, %v4507_v38  ;;  %v12212_v38 = vld [vmem:[%s13188_s7] ss:$0 sm:$0xff] }
 0x65a   :  { %v4563_v39 = vsel %vm2852_vm6, %v4534_v17, 0.0 }
 0x65b   :  { %v4478_v18 = vadd.f32 %v6628_v21, %v11799_v32  ;;  %v4562_v63 = vadd.f32 %v4561_v2, %v4560_v27  ;;  %v4511_v15 = vadd.f32 %v4510_v62, %v4509_v12 }
 0x65d   :  { %v4512_v11 = vsel %vm2852_vm6, %v4478_v18, 0.0  ;;  %v4535_v1 = vmul.f32 %v4478_v18, %v4478_v18  ;;  %v4564_v3 = vadd.f32 %v4563_v39, %v4562_v63 }
 0x65e   :  { %v4513_v43 = vadd.f32 %v4512_v11, %v4511_v15 }
 0x65f   :  { %v4565_v57 = vsel %vm2852_vm6, %v4535_v1, 0.0 }
 0x660   :  { %v4514_v24 = vrot.slane %v4513_v43, 4  ;;  %v4566_v33 = vadd.f32 %v4565_v57, %v4564_v3 }
 0x662   :  { %v4515_v54 = vadd.f32 %v4514_v24, %v4513_v43  ;;  %v4567_v55 = vrot.slane %v4566_v33, 4 }
 0x664   :  { %v4516_v23 = vrot.slane %v4515_v54, 2  ;;  %v4568_v14 = vadd.f32 %v4567_v55, %v4566_v33 }
 0x666   :  { %v4517_v42 = vadd.f32 %v4516_v23, %v4515_v54  ;;  %v4569_v59 = vrot.slane %v4568_v14, 2 }
 0x668   :  { %v4518_v32 = vrot.slane %v4517_v42, 1  ;;  %v4570_v51 = vadd.f32 %v4569_v59, %v4568_v14 }
 0x66a   :  { %v4519_v7 = vadd.f32 %v4518_v32, %v4517_v42  ;;  %v4571_v52 = vrot.slane %v4570_v51, 1 }
 0x66c   :  { %v4572_v36 = vadd.f32 %v4571_v52, %v4570_v51  ;;  %v12163_v60 = vmul.f32 0.0078125, %v4519_v7 }
 0x66e   :  { %v4574_v37 = vmul.f32 0.0078125, %v4572_v36  ;;  %v4575_v28 = vmul.f32 %v12163_v60, %v12163_v60  ;;  %v4593_v10 = vsub.f32 %v4478_v18, %v12163_v60  ;;  %v4578_v29 = vsub.f32 %v12048_v13, %v12163_v60 }
 0x66f   :  { %v4579_v22 = vsub.f32 %v12052_v56, %v12163_v60  ;;  %v4586_v48 = vsub.f32 %v12079_v50, %v12163_v60  ;;  %v4587_v61 = vsub.f32 %v12089_v26, %v12163_v60  ;;  %v4580_v49 = vsub.f32 %v12062_v45, %v12163_v60 }
 0x670   :  { %v4576_v30 = vsub.f32 %v4574_v37, %v4575_v28  ;;  %v4581_v0 = vsub.f32 %v12069_v40, %v12163_v60  ;;  %v4588_v4 = vsub.f32 %v12098_v9, %v12163_v60  ;;  %v4589_v13 = vsub.f32 %v12109_v5, %v12163_v60 }
 0x671   :  { %v4582_v56 = vsub.f32 %v12076_v47, %v12163_v60  ;;  %v4583_v50 = vsub.f32 %v12086_v58, %v12163_v60  ;;  %v4590_v26 = vsub.f32 %v12118_v8, %v12163_v60  ;;  %v4591_v45 = vsub.f32 %v12136_v31, %v12163_v60  ;;  %v12203_v58 = vld [vmem:[%s13187_s6] ss:$0 sm:$0xff] }
 0x672   :  { %v4577_v34 = vmax.f32 %v4576_v30, 0.0  ;;  %v4584_v40 = vsub.f32 %v12095_v44, %v12163_v60  ;;  %v4585_v9 = vsub.f32 %v12106_v25, %v12163_v60  ;;  %v4592_v5 = vsub.f32 %v12144_v6, %v12163_v60 }
 0x674   :  { %v4594_v47 = vadd.f32 1e-05, %v4577_v34 }
 0x676   :  { %8128 = vrsqrt.f32 %v4594_v47 }
 0x680   :  { %v12198_v16 = vpop.eup %8128 }
 0x681   :  { %v4611_v8 = vmul.f32 %v12198_v16, %v4593_v10  ;;  %v4596_v53 = vmul.f32 %v12198_v16, %v4578_v29  ;;  %v4597_v20 = vmul.f32 %v12198_v16, %v4579_v22  ;;  %v4604_v41 = vmul.f32 %v12198_v16, %v4586_v48 }
 0x682   :  { %v4605_v35 = vmul.f32 %v12198_v16, %v4587_v61  ;;  %v4598_v46 = vmul.f32 %v12198_v16, %v4580_v49  ;;  %v4599_v19 = vmul.f32 %v12198_v16, %v4581_v0  ;;  %v4606_v17 = vmul.f32 %v12198_v16, %v4588_v4 }
 0x683   :  { %v12219_v21 = vmul.f32 %v12203_v58, %v4611_v8  ;;  %v4618_v27 = vmul.f32 %v12203_v58, %v4596_v53  ;;  %v4619_v12 = vmul.f32 %v12203_v58, %v4597_v20  ;;  %v4626_v2 = vmul.f32 %v12203_v58, %v4604_v41 }
 0x684   :  { %v4627_v62 = vmul.f32 %v12203_v58, %v4605_v35  ;;  %v4620_v18 = vmul.f32 %v12203_v58, %v4598_v46  ;;  %v4621_v63 = vmul.f32 %v12203_v58, %v4599_v19  ;;  %v4607_v15 = vmul.f32 %v12198_v16, %v4589_v13 }
 0x685   :  { %v4640_v39 = vadd.f32 %v12212_v38, %v4618_v27  ;;  %v4641_v11 = vadd.f32 %v12212_v38, %v4619_v12  ;;  %v4648_v1 = vadd.f32 %v12212_v38, %v4626_v2  ;;  %v4628_v3 = vmul.f32 %v12203_v58, %v4606_v17 }
 0x686   :  { %v4649_v43 = vadd.f32 %v12212_v38, %v4627_v62  ;;  %v4642_v57 = vadd.f32 %v12212_v38, %v4620_v18  ;;  %v4643_v24 = vadd.f32 %v12212_v38, %v4621_v63  ;;  %v4629_v33 = vmul.f32 %v12203_v58, %v4607_v15 }
 0x687   :  { %vm4656_vm8 = vcmp.ge.f32.partialorder %v4640_v39, 0.0  ;;  %vm4657_vm9 = vcmp.ge.f32.partialorder %v4641_v11, 0.0  ;;  %v4672_v54 = vmul.f32 0.2, %v4640_v39  ;;  %v4673_v55 = vmul.f32 0.2, %v4641_v11 }
 0x688   :  { %vm4664_vm10 = vcmp.ge.f32.partialorder %v4648_v1, 0.0  ;;  %vm4665_vm11 = vcmp.ge.f32.partialorder %v4649_v43, 0.0  ;;  %v4680_v23 = vmul.f32 0.2, %v4648_v1  ;;  %v4681_v14 = vmul.f32 0.2, %v4649_v43 }
 0x689   :  { %v4688_v42 = vsel %vm4656_vm8, %v4640_v39, %v4672_v54  ;;  %v4689_v59 = vsel %vm4657_vm9, %v4641_v11, %v4673_v55  ;;  %vm4658_vm12 = vcmp.ge.f32.partialorder %v4642_v57, 0.0  ;;  %vm4659_vm13 = vcmp.ge.f32.partialorder %v4643_v24, 0.0 }
 0x68a   :  { %v7309_v32 = vpack.c.bf16 %v4689_v59, %v4688_v42  ;;  %v4696_v51 = vsel %vm4664_vm10, %v4648_v1, %v4680_v23  ;;  %v4697_v7 = vsel %vm4665_vm11, %v4649_v43, %v4681_v14  ;;  %v4674_v52 = vmul.f32 0.2, %v4642_v57  ;;  %v4707_v23 = vld [vmem:[%s13189_s8 + $0x18] sm:$0xff]  ;;  %v4708_v14 = vld [vmem:[%s13189_s8 + $0x20] sm:$0xff]  ;;  %v4709_v42 = vld [vmem:[%s13189_s8 + $0x28] sm:$0xff] }
 0x68b   :  { %v7325_v36 = vpack.c.bf16 %v4697_v7, %v4696_v51  ;;  %v4675_v37 = vmul.f32 0.2, %v4643_v24  ;;  %v4650_v28 = vadd.f32 %v12212_v38, %v4628_v3  ;;  %v4651_v10 = vadd.f32 %v12212_v38, %v4629_v33  ;;  %v4710_v59 = vld [vmem:[%s13189_s8 + $0x30] sm:$0xff]  ;;  %v4712_v51 = vld [vmem:[%s13189_s8 + $0x40] sm:$0xff]  ;;  %v4713_v7 = vld [vmem:[%s13189_s8 + $0x48] sm:$0xff] }
 0x68c   :  { %7310 = vmatprep.subr.bf16.mxu0 %v7309_v32  ;;  %v4690_v29 = vsel %vm4658_vm12, %v4642_v57, %v4674_v52  ;;  %v4600_v22 = vmul.f32 %v12198_v16, %v4582_v56  ;;  %v4601_v48 = vmul.f32 %v12198_v16, %v4583_v50  ;;  %v4608_v61 = vmul.f32 %v12198_v16, %v4590_v26  ;;  %v4714_v52 = vld [vmem:[%s13189_s8 + $0x50] sm:$0xff] }
 0x68d   :  { %7326 = vmatprep.subr.bf16.mxu1 %v7325_v36  ;;  %7312 = vmatpush3.bf16.msra.mxu0 %v7309_v32  ;;  %v4691_v49 = vsel %vm4659_vm13, %v4643_v24, %v4675_v37  ;;  %vm4666_vm14 = vcmp.ge.f32.partialorder %v4650_v28, 0.0  ;;  %vm4667_vm15 = vcmp.ge.f32.partialorder %v4651_v10, 0.0  ;;  %v4682_v30 = vmul.f32 0.2, %v4650_v28  ;;  %v4711_v32 = vld [vmem:[%s13189_s8 + $0x38] sm:$0xff]  ;;  %v4716_v37 = vld [vmem:[%s13189_s8 + $0x60] sm:$0xff] }
 0x68e   :  { %7328 = vmatpush3.bf16.msra.mxu1 %v7325_v36  ;;  %v7313_v0 = vpack.c.bf16 %v4691_v49, %v4690_v29  ;;  %v4683_v4 = vmul.f32 0.2, %v4651_v10  ;;  %v4622_v13 = vmul.f32 %v12203_v58, %v4600_v22  ;;  %v4623_v34 = vmul.f32 %v12203_v58, %v4601_v48  ;;  %v4715_v36 = vld [vmem:[%s13189_s8 + $0x58] sm:$0xff]  ;;  %v4720_v22 = vld [vmem:[%s13189_s8 + $0x80] sm:$0xff]  ;;  %v4721_v48 = vld [vmem:[%s13189_s8 + $0x88] sm:$0xff] }
 0x68f   :  { %v4698_v47 = vsel %vm4666_vm14, %v4650_v28, %v4682_v30  ;;  %v4609_v56 = vmul.f32 %v12198_v16, %v4591_v45  ;;  %v4630_v50 = vmul.f32 %v12203_v58, %v4608_v61  ;;  %v4602_v26 = vmul.f32 %v12198_v16, %v4584_v40  ;;  %v4717_v28 = vld [vmem:[%s13189_s8 + $0x68] sm:$0xff]  ;;  %v4719_v29 = vld [vmem:[%s13189_s8 + $0x78] sm:$0xff]  ;;  %v4722_v61 = vld [vmem:[%s13189_s8 + $0x90] sm:$0xff] }
 0x690   :  { %7314 = vmatprep.subr.bf16.mxu0 %v7313_v0  ;;  %v4699_v8 = vsel %vm4667_vm15, %v4651_v10, %v4683_v4  ;;  %v4644_v53 = vadd.f32 %v12212_v38, %v4622_v13  ;;  %v4645_v20 = vadd.f32 %v12212_v38, %v4623_v34  ;;  %v4603_v31 = vmul.f32 %v12198_v16, %v4585_v9  ;;  %v4718_v10 = vld [vmem:[%s13189_s8 + $0x70] sm:$0xff]  ;;  %v4723_v49 = vld [vmem:[%s13189_s8 + $0x98] sm:$0xff]  ;;  %v4724_v30 = vld [vmem:[%s13189_s8 + $0xa0] sm:$0xff] }
 0x691   :  { %v7329_v41 = vpack.c.bf16 %v4699_v8, %v4698_v47  ;;  %7316 = vmatpush3.bf16.msra.mxu0 %v7313_v0  ;;  %v4631_v45 = vmul.f32 %v12203_v58, %v4609_v56  ;;  %v4652_v35 = vadd.f32 %v12212_v38, %v4630_v50  ;;  %v4624_v44 = vmul.f32 %v12203_v58, %v4602_v26  ;;  %v4725_v0 = vld [vmem:[%s13189_s8 + $0xa8] sm:$0xff]  ;;  %v4726_v4 = vld [vmem:[%s13189_s8 + $0xb0] sm:$0xff]  ;;  %v4727_v13 = vld [vmem:[%s13189_s8 + $0xb8] sm:$0xff] }
 0x692   :  { %vm4660_vm0 = vcmp.ge.f32.partialorder %v4644_v53, 0.0  ;;  %vm4661_vm2 = vcmp.ge.f32.partialorder %v4645_v20, 0.0  ;;  %v4676_v40 = vmul.f32 0.2, %v4644_v53  ;;  %v4677_v46 = vmul.f32 0.2, %v4645_v20 }
 0x693   :  { %7330 = vmatprep.subr.bf16.mxu1 %v7329_v41  ;;  %v4653_v19 = vadd.f32 %v12212_v38, %v4631_v45  ;;  %vm4668_vm3 = vcmp.ge.f32.partialorder %v4652_v35, 0.0  ;;  %v4684_v17 = vmul.f32 0.2, %v4652_v35  ;;  %v4625_v25 = vmul.f32 %v12203_v58, %v4603_v31  ;;  %v4728_v34 = vld [vmem:[%s13189_s8 + $0xc0] sm:$0xff]  ;;  %v4729_v47 = vld [vmem:[%s13189_s8 + $0xc8] sm:$0xff]  ;;  %v4730_v56 = vld [vmem:[%s13189_s8 + $0xd0] sm:$0xff] }
 0x694   :  { %7332 = vmatpush3.bf16.msra.mxu1 %v7329_v41  ;;  %v4692_v9 = vsel %vm4660_vm0, %v4644_v53, %v4676_v40  ;;  %v4693_v27 = vsel %vm4661_vm2, %v4645_v20, %v4677_v46  ;;  %v4646_v12 = vadd.f32 %v12212_v38, %v4624_v44  ;;  %v4610_v2 = vmul.f32 %v12198_v16, %v4592_v5  ;;  %v4731_v50 = vld [vmem:[%s13189_s8 + $0xd8] sm:$0xff]  ;;  %v4732_v26 = vld [vmem:[%s13189_s8 + $0xe0] sm:$0xff]  ;;  %v4733_v8 = vld [vmem:[%s13189_s8 + $0xe8] sm:$0xff] }
 0x695   :  { %v7317_v62 = vpack.c.bf16 %v4693_v27, %v4692_v9  ;;  %vm4669_vm4 = vcmp.ge.f32.partialorder %v4653_v19, 0.0  ;;  %v4685_v18 = vmul.f32 0.2, %v4653_v19  ;;  %v4700_v63 = vsel %vm4668_vm3, %v4652_v35, %v4684_v17  ;;  %v4734_v53 = vld [vmem:[%s13189_s8 + $0xf0] sm:$0xff]  ;;  %v4735_v20 = vld [vmem:[%s13189_s8 + $0xf8] sm:$0xff]  ;;  %v5458_v31 = vld [vmem:[%s13190_s9 + $0x80] sm:$0xff] }
 0x696   :  { %v4647_v15 = vadd.f32 %v12212_v38, %v4625_v25  ;;  %vm4662_vm5 = vcmp.ge.f32.partialorder %v4646_v12, 0.0  ;;  %v4678_v39 = vmul.f32 0.2, %v4646_v12  ;;  %v4632_v11 = vmul.f32 %v12203_v58, %v4610_v2  ;;  %v5459_v41 = vld [vmem:[%s13190_s9 + $0x88] sm:$0xff]  ;;  %v5442_v45 = vld [vmem:[%s13190_s9] sm:$0xff]  ;;  %v5460_v40 = vld [vmem:[%s13190_s9 + $0x90] sm:$0xff] }
 0x697   :  { %7318 = vmatprep.subr.bf16.mxu0 %v7317_v62  ;;  %v4701_v1 = vsel %vm4669_vm4, %v4653_v19, %v4685_v18  ;;  %v4655_v3 = vadd.f32 %v12212_v38, %v12219_v21  ;;  %v4705_v21 = vld [vmem:[%s13189_s8 + $0x8] sm:$0xff]  ;;  %v7341_v35 = vpack.c.bf16 %v5459_v41, %v5458_v31  ;;  %v5461_v46 = vld [vmem:[%s13190_s9 + $0x98] sm:$0xff]  ;;  %v5444_v25 = vld [vmem:[%s13190_s9 + $0x10] sm:$0xff]  ;;  %vm6245_vm10 = vcmask 74752  }
 0x698   :  { %v7333_v43 = vpack.c.bf16 %v4701_v1, %v4700_v63  ;;  %7320 = vmatpush3.bf16.msra.mxu0 %v7317_v62  ;;  %vm4663_vm7 = vcmp.ge.f32.partialorder %v4647_v15, 0.0  ;;  %v4679_v6 = vmul.f32 0.2, %v4647_v15  ;;  %v4694_v60 = vsel %vm4662_vm5, %v4646_v12, %v4678_v39  ;;  %v5443_v44 = vld [vmem:[%s13190_s9 + $0x8] sm:$0xff]  ;;  %v5445_v9 = vld [vmem:[%s13190_s9 + $0x18] sm:$0xff]  ;;  %v5462_v27 = vld [vmem:[%s13190_s9 + $0xa0] sm:$0xff] }
 0x699   :  { %v4654_v5 = vadd.f32 %v12212_v38, %v4632_v11  ;;  %vm4671_vm8 = vcmp.ge.f32.partialorder %v4655_v3, 0.0  ;;  %v4687_v16 = vmul.f32 0.2, %v4655_v3  ;;  %v4706_v38 = vld [vmem:[%s13189_s8 + $0x10] sm:$0xff]  ;;  %v7343_v19 = vpack.c.bf16 %v5443_v44, %v5442_v45  ;;  %v5463_v12 = vld [vmem:[%s13190_s9 + $0xa8] sm:$0xff]  ;;  %v5446_v18 = vld [vmem:[%s13190_s9 + $0x20] sm:$0xff] }
 0x69a   :  { %7334 = vmatprep.subr.bf16.mxu1 %v7333_v43  ;;  %v4695_v57 = vsel %vm4663_vm7, %v4647_v15, %v4679_v6  ;;  %v7345_v17 = vpack.c.bf16 %v5461_v46, %v5460_v40  ;;  %v7347_v2 = vpack.c.bf16 %v5445_v9, %v5444_v25  ;;  %v7349_v62 = vpack.c.bf16 %v5463_v12, %v5462_v27  ;;  %v5447_v63 = vld [vmem:[%s13190_s9 + $0x28] sm:$0xff]  ;;  %v5464_v15 = vld [vmem:[%s13190_s9 + $0xb0] sm:$0xff]  ;;  %v5465_v39 = vld [vmem:[%s13190_s9 + $0xb8] sm:$0xff] }
 0x69b   :  { %7336 = vmatpush3.bf16.msra.mxu1 %v7333_v43  ;;  %v7321_v24 = vpack.c.bf16 %v4695_v57, %v4694_v60  ;;  %vm4670_vm9 = vcmp.ge.f32.partialorder %v4654_v5, 0.0  ;;  %v4686_v58 = vmul.f32 0.2, %v4654_v5  ;;  %v4703_v33 = vsel %vm4671_vm8, %v4655_v3, %v4687_v16  ;;  %v5448_v3 = vld [vmem:[%s13190_s9 + $0x30] sm:$0xff]  ;;  %v5449_v43 = vld [vmem:[%s13190_s9 + $0x38] sm:$0xff]  ;;  %v5466_v6 = vld [vmem:[%s13190_s9 + $0xc0] sm:$0xff] }
 0x69c   :  { %v7351_v11 = vpack.c.bf16 %v5447_v63, %v5446_v18  ;;  %v7353_v1 = vpack.c.bf16 %v5465_v39, %v5464_v15  ;;  %v5467_v60 = vld [vmem:[%s13190_s9 + $0xc8] sm:$0xff]  ;;  %v5450_v57 = vld [vmem:[%s13190_s9 + $0x40] sm:$0xff]  ;;  %v5524_v46 = vld [vmem:[%s13190_s9 + $0x290] sm:$0xff] }
 0x69d   :  { %7322 = vmatprep.subr.bf16.mxu0 %v7321_v24  ;;  %v4702_v54 = vsel %vm4670_vm9, %v4654_v5, %v4686_v58  ;;  %v7355_v5 = vpack.c.bf16 %v5449_v43, %v5448_v3  ;;  %v7357_v16 = vpack.c.bf16 %v5467_v60, %v5466_v6  ;;  %v5468_v58 = vld [vmem:[%s13190_s9 + $0xd0] sm:$0xff]  ;;  %v5507_v41 = vld [vmem:[%s13190_s9 + $0x208] sm:$0xff]  ;;  %v5509_v12 = vld [vmem:[%s13190_s9 + $0x218] sm:$0xff] }
 0x69e   :  { %v7337_v55 = vpack.c.bf16 %v4703_v33, %v4702_v54  ;;  %7324 = vmatpush3.bf16.msra.mxu0 %v7321_v24  ;;  %v5451_v24 = vld [vmem:[%s13190_s9 + $0x48] sm:$0xff]  ;;  %v5469_v33 = vld [vmem:[%s13190_s9 + $0xd8] sm:$0xff]  ;;  %v5510_v3 = vld [vmem:[%s13190_s9 + $0x220] sm:$0xff] }
 0x69f   :  { %7342 = vmatprep.subr.bf16.mxu0 %v7341_v35  ;;  %v7359_v54 = vpack.c.bf16 %v5451_v24, %v5450_v57 }
 0x6a0   :  { %7338 = vmatprep.subr.bf16.mxu1 %v7337_v55 }
 0x6a1   :  { %7340 = vmatpush3.bf16.msra.mxu1 %v7337_v55  ;;  %7015 = vmatmul.mubr.msk.f32.vlgmr.msra.gmra.mrb[48].mxu0 %vm2852_vm6, %v4705_v21  ;;  %v7361_v55 = vpack.c.bf16 %v5469_v33, %v5468_v58 }
 0x6a2   :  { %7017 = vmatprep.mubr.msk.f32.mxu0 %vm2852_vm6, %v4706_v38  ;;  %7344 = vmatpush3.bf16.msra.mxu0 %v7343_v19  ;;  %v5525_v19 = vld [vmem:[%s13190_s9 + $0x298] sm:$0xff] }
 0x6a3   :  { %7346 = vmatprep.subr.bf16.mxu0 %v7345_v17  ;;  %v5508_v17 = vld [vmem:[%s13190_s9 + $0x210] sm:$0xff]  ;;  %v7409_v27 = vpack.c.bf16 %v5525_v19, %v5524_v46  ;;  %v5534_v19 = vld [vmem:[%s13190_s9 + $0x2e0] sm:$0xff] }
 0x6a4   :  { %7079 = vmatmul.mubr.msk.f32.vlgmr.msra.gmra.mrb[80].mxu1 %vm2852_vm6, %v4705_v21  ;;  %v5452_v21 = vld [vmem:[%s13190_s9 + $0x50] sm:$0xff] }
 0x6a5   :  { %7018 = vmatmul.mubr.msk.f32.gmra.mrb[50].mxu0 %vm2852_vm6, %v4707_v23  ;;  %7081 = vmatprep.mubr.msk.f32.mxu1 %vm2852_vm6, %v4706_v38  ;;  %v5453_v38 = vld [vmem:[%s13190_s9 + $0x58] sm:$0xff] }
 0x6a6   :  { %7020 = vmatprep.mubr.msk.f32.mxu0 %vm2852_vm6, %v4708_v14  ;;  %7348 = vmatpush3.bf16.msra.mxu0 %v7347_v2 }
 0x6a7   :  { %7350 = vmatprep.subr.bf16.mxu0 %v7349_v62  ;;  %v7411_v62 = vpack.c.bf16 %v5509_v12, %v5508_v17  ;;  %v5535_v17 = vld [vmem:[%s13190_s9 + $0x2e8] sm:$0xff] }
 0x6a8   :  { %7082 = vmatmul.mubr.msk.f32.gmra.mrb[82].mxu1 %vm2852_vm6, %v4707_v23  ;;  %v5470_v23 = vld [vmem:[%s13190_s9 + $0xe0] sm:$0xff]  ;;  %v7429_v12 = vpack.c.bf16 %v5535_v17, %v5534_v19 }
 0x6a9   :  { %7021 = vmatmul.mubr.msk.f32.gmra.mrb[52].mxu0 %vm2852_vm6, %v4709_v42  ;;  %7084 = vmatprep.mubr.msk.f32.mxu1 %vm2852_vm6, %v4708_v14  ;;  %v5471_v14 = vld [vmem:[%s13190_s9 + $0xe8] sm:$0xff] }
 0x6aa   :  { %7023 = vmatprep.mubr.msk.f32.mxu0 %vm2852_vm6, %v4710_v59  ;;  %7352 = vmatpush3.bf16.msra.mxu0 %v7351_v11  ;;  %v5526_v11 = vld [vmem:[%s13190_s9 + $0x2a0] sm:$0xff] }
 0x6ab   :  { %7354 = vmatprep.subr.bf16.mxu0 %v7353_v1  ;;  %v5527_v1 = vld [vmem:[%s13190_s9 + $0x2a8] sm:$0xff] }
 0x6ac   :  { %7085 = vmatmul.mubr.msk.f32.gmra.mrb[84].mxu1 %vm2852_vm6, %v4709_v42  ;;  %v7363_v42 = vpack.c.bf16 %v5453_v38, %v5452_v21  ;;  %v7413_v60 = vpack.c.bf16 %v5527_v1, %v5526_v11  ;;  %v5512_v21 = vld [vmem:[%s13190_s9 + $0x230] sm:$0xff]  ;;  %v5513_v38 = vld [vmem:[%s13190_s9 + $0x238] sm:$0xff] }
 0x6ad   :  { %7024 = vmatmul.mubr.msk.f32.gmra.mrb[54].mxu0 %vm2852_vm6, %v4711_v32  ;;  %7087 = vmatprep.mubr.msk.f32.mxu1 %vm2852_vm6, %v4710_v59  ;;  %v7365_v59 = vpack.c.bf16 %v5471_v14, %v5470_v23  ;;  %v5536_v1 = vld [vmem:[%s13190_s9 + $0x2f0] sm:$0xff] }
 0x6ae   :  { %7026 = vmatprep.mubr.msk.f32.mxu0 %vm2852_vm6, %v4712_v51  ;;  %7356 = vmatpush3.bf16.msra.mxu0 %v7355_v5  ;;  %v5511_v5 = vld [vmem:[%s13190_s9 + $0x228] sm:$0xff] }
 0x6af   :  { %7358 = vmatprep.subr.bf16.mxu0 %v7357_v16  ;;  %v7415_v16 = vpack.c.bf16 %v5511_v5, %v5510_v3  ;;  %v5537_v3 = vld [vmem:[%s13190_s9 + $0x2f8] sm:$0xff] }
 0x6b0   :  { %7088 = vmatmul.mubr.msk.f32.gmra.mrb[86].mxu1 %vm2852_vm6, %v4711_v32  ;;  %v5454_v32 = vld [vmem:[%s13190_s9 + $0x60] sm:$0xff] }
 0x6b1   :  { %7027 = vmatmul.mubr.msk.f32.gmra.mrb[56].mxu0 %vm2852_vm6, %v4713_v7  ;;  %7090 = vmatprep.mubr.msk.f32.mxu1 %vm2852_vm6, %v4712_v51  ;;  %v5455_v51 = vld [vmem:[%s13190_s9 + $0x68] sm:$0xff] }
 0x6b2   :  { %7029 = vmatprep.mubr.msk.f32.mxu0 %vm2852_vm6, %v4714_v52  ;;  %7360 = vmatpush3.bf16.msra.mxu0 %v7359_v54  ;;  %v5528_v54 = vld [vmem:[%s13190_s9 + $0x2b0] sm:$0xff] }
 0x6b3   :  { %7362 = vmatprep.subr.bf16.mxu0 %v7361_v55  ;;  %v5529_v55 = vld [vmem:[%s13190_s9 + $0x2b8] sm:$0xff] }
 0x6b4   :  { %7091 = vmatmul.mubr.msk.f32.gmra.mrb[88].mxu1 %vm2852_vm6, %v4713_v7  ;;  %v7367_v7 = vpack.c.bf16 %v5455_v51, %v5454_v32  ;;  %v7417_v14 = vpack.c.bf16 %v5529_v55, %v5528_v54  ;;  %v5530_v51 = vld [vmem:[%s13190_s9 + $0x2c0] sm:$0xff] }
 0x6b5   :  { %7030 = vmatmul.mubr.msk.f32.gmra.mrb[58].mxu0 %vm2852_vm6, %v4715_v36  ;;  %7093 = vmatprep.mubr.msk.f32.mxu1 %vm2852_vm6, %v4714_v52 }
 0x6b6   :  { %7032 = vmatprep.mubr.msk.f32.mxu0 %vm2852_vm6, %v4716_v37  ;;  %7364 = vmatpush3.bf16.msra.mxu0 %v7363_v42  ;;  %v7419_v42 = vpack.c.bf16 %v5513_v38, %v5512_v21 }
 0x6b7   :  { %7366 = vmatprep.subr.bf16.mxu0 %v7365_v59 }
 0x6b8   :  { %7094 = vmatmul.mubr.msk.f32.gmra.mrb[90].mxu1 %vm2852_vm6, %v4715_v36 }
 0x6b9   :  { %7033 = vmatmul.mubr.msk.f32.gmra.mrb[60].mxu0 %vm2852_vm6, %v4717_v28  ;;  %7096 = vmatprep.mubr.msk.f32.mxu1 %vm2852_vm6, %v4716_v37  ;;  %v5472_v37 = vld [vmem:[%s13190_s9 + $0xf0] sm:$0xff] }
 0x6ba   :  { %7035 = vmatprep.mubr.msk.f32.mxu0 %vm2852_vm6, %v4718_v10  ;;  %7368 = vmatpush3.bf16.msra.mxu0 %v7367_v7  ;;  %v5531_v7 = vld [vmem:[%s13190_s9 + $0x2c8] sm:$0xff] }
 0x6bc   :  { %7097 = vmatmul.mubr.msk.f32.gmra.mrb[92].mxu1 %vm2852_vm6, %v4717_v28  ;;  %v5473_v28 = vld [vmem:[%s13190_s9 + $0xf8] sm:$0xff] }
 0x6bd   :  { %7036 = vmatmul.mubr.msk.f32.gmra.mrb[62].mxu0 %vm2852_vm6, %v4719_v29  ;;  %7099 = vmatprep.mubr.msk.f32.mxu1 %vm2852_vm6, %v4718_v10 }
 0x6be   :  { %7038 = vmatprep.mubr.msk.f32.mxu0 %vm2852_vm6, %v4720_v22 }
 0x6c0   :  { %7100 = vmatmul.mubr.msk.f32.gmra.mrb[94].mxu1 %vm2852_vm6, %v4719_v29  ;;  %v7369_v29 = vpack.c.bf16 %v5473_v28, %v5472_v37  ;;  %v7421_v28 = vpack.c.bf16 %v5531_v7, %v5530_v51 }
 0x6c1   :  { %7039 = vmatmul.mubr.msk.f32.gmra.mrb[64].mxu0 %vm2852_vm6, %v4721_v48  ;;  %7102 = vmatprep.mubr.msk.f32.mxu1 %vm2852_vm6, %v4720_v22 }
 0x6c2   :  { %7041 = vmatprep.mubr.msk.f32.mxu0 %vm2852_vm6, %v4722_v61  ;;  %7370 = vmatprep.subr.bf16.mxu0 %v7369_v29  ;;  %v5514_v29 = vld [vmem:[%s13190_s9 + $0x240] sm:$0xff] }
 0x6c4   :  { %7103 = vmatmul.mubr.msk.f32.gmra.mrb[96].mxu1 %vm2852_vm6, %v4721_v48 }
 0x6c5   :  { %7042 = vmatmul.mubr.msk.f32.gmra.mrb[66].mxu0 %vm2852_vm6, %v4723_v49  ;;  %7105 = vmatprep.mubr.msk.f32.mxu1 %vm2852_vm6, %v4722_v61 }
 0x6c6   :  { %7044 = vmatprep.mubr.msk.f32.mxu0 %vm2852_vm6, %v4724_v30 }
 0x6c8   :  { %7106 = vmatmul.mubr.msk.f32.gmra.mrb[98].mxu1 %vm2852_vm6, %v4723_v49  ;;  %v5456_v49 = vld [vmem:[%s13190_s9 + $0x70] sm:$0xff] }
 0x6c9   :  { %7045 = vmatmul.mubr.msk.f32.gmra.mrb[68].mxu0 %vm2852_vm6, %v4725_v0  ;;  %7108 = vmatprep.mubr.msk.f32.mxu1 %vm2852_vm6, %v4724_v30  ;;  %v5457_v30 = vld [vmem:[%s13190_s9 + $0x78] sm:$0xff] }
 0x6ca   :  { %7047 = vmatprep.mubr.msk.f32.mxu0 %vm2852_vm6, %v4726_v4 }
 0x6cc   :  { %7109 = vmatmul.mubr.msk.f32.gmra.mrb[100].mxu1 %vm2852_vm6, %v4725_v0  ;;  %v7371_v0 = vpack.c.bf16 %v5457_v30, %v5456_v49 }
 0x6cd   :  { %7048 = vmatmul.mubr.msk.f32.gmra.mrb[70].mxu0 %vm2852_vm6, %v4727_v13  ;;  %7111 = vmatprep.mubr.msk.f32.mxu1 %vm2852_vm6, %v4726_v4  ;;  %v5490_v4 = vld [vmem:[%s13190_s9 + $0x180] sm:$0xff] }
 0x6ce   :  { %7050 = vmatprep.mubr.msk.f32.mxu0 %vm2852_vm6, %v4728_v34  ;;  %7372 = vmatpush3.bf16.msra.mxu0 %v7371_v0 }
 0x6d0   :  { %7112 = vmatmul.mubr.msk.f32.gmra.mrb[102].mxu1 %vm2852_vm6, %v4727_v13  ;;  %v5491_v13 = vld [vmem:[%s13190_s9 + $0x188] sm:$0xff] }
 0x6d1   :  { %7051 = vmatmul.mubr.msk.f32.gmra.mrb[72].mxu0 %vm2852_vm6, %v4729_v47  ;;  %7114 = vmatprep.mubr.msk.f32.mxu1 %vm2852_vm6, %v4728_v34 }
 0x6d2   :  { %7053 = vmatprep.mubr.msk.f32.mxu0 %vm2852_vm6, %v4730_v56 }
 0x6d4   :  { %7115 = vmatmul.mubr.msk.f32.gmra.mrb[104].mxu1 %vm2852_vm6, %v4729_v47  ;;  %v7373_v47 = vpack.c.bf16 %v5491_v13, %v5490_v4  ;;  %v5532_v4 = vld [vmem:[%s13190_s9 + $0x2d0] sm:$0xff]  ;;  %v5533_v13 = vld [vmem:[%s13190_s9 + $0x2d8] sm:$0xff] }
 0x6d5   :  { %7054 = vmatmul.mubr.msk.f32.gmra.mrb[74].mxu0 %vm2852_vm6, %v4731_v50  ;;  %7117 = vmatprep.mubr.msk.f32.mxu1 %vm2852_vm6, %v4730_v56 }
 0x6d6   :  { %7056 = vmatprep.mubr.msk.f32.mxu0 %vm2852_vm6, %v4732_v26  ;;  %7374 = vmatprep.subr.bf16.mxu0 %v7373_v47 }
 0x6d8   :  { %7118 = vmatmul.mubr.msk.f32.gmra.mrb[106].mxu1 %vm2852_vm6, %v4731_v50 }
 0x6d9   :  { %7057 = vmatmul.mubr.msk.f32.gmra.mrb[76].mxu0 %vm2852_vm6, %v4733_v8  ;;  %7120 = vmatprep.mubr.msk.f32.mxu1 %vm2852_vm6, %v4732_v26  ;;  %v5522_v26 = vld [vmem:[%s13190_s9 + $0x280] sm:$0xff] }
 0x6da   :  { %7059 = vmatprep.mubr.msk.f32.mxu0 %vm2852_vm6, %v4734_v53 }
 0x6dc   :  { %7121 = vmatmul.mubr.msk.f32.gmra.mrb[108].mxu1 %vm2852_vm6, %v4733_v8  ;;  %v5523_v8 = vld [vmem:[%s13190_s9 + $0x288] sm:$0xff] }
 0x6dd   :  { %7060 = vmatmul.mubr.msk.f32.gmra.mrb[78].mxu0 %vm2852_vm6, %v4735_v20  ;;  %7123 = vmatprep.mubr.msk.f32.mxu1 %vm2852_vm6, %v4734_v53  ;;  %v5506_v53 = vld [vmem:[%s13190_s9 + $0x200] sm:$0xff]  ;;  %v7405_v31 = vpack.c.bf16 %v5523_v8, %v5522_v26  ;;  %v7425_v26 = vpack.c.bf16 %v5533_v13, %v5532_v4  ;;  %v5517_v8 = vld [vmem:[%s13190_s9 + $0x258] sm:$0xff] }
 0x6de   :  { %v7407_v45 = vpack.c.bf16 %v5507_v41, %v5506_v53 }
 0x6df   :  { %7406 = vmatprep.subr.bf16.mxu1 %v7405_v31 }
 0x6e0   :  { %7124 = vmatmul.mubr.msk.f32.gmra.mrb[110].mxu1 %vm2852_vm6, %v4735_v20 }
 0x6e1   :  { %7408 = vmatpush3.bf16.msra.mxu1 %v7407_v45 }
 0x6e2   :  { %7410 = vmatprep.subr.bf16.mxu1 %v7409_v27 }
 0x6e5   :  { %7412 = vmatpush3.bf16.msra.mxu1 %v7411_v62 }
 0x6e6   :  { %7414 = vmatprep.subr.bf16.mxu1 %v7413_v60  ;;  %v5521_v60 = vld [vmem:[%s13190_s9 + $0x278] sm:$0xff] }
 0x6e9   :  { %7416 = vmatpush3.bf16.msra.mxu1 %v7415_v16  ;;  %v7433_v16 = vpack.c.bf16 %v5537_v3, %v5536_v1  ;;  %v5492_v1 = vld [vmem:[%s13190_s9 + $0x190] sm:$0xff]  ;;  %v5493_v3 = vld [vmem:[%s13190_s9 + $0x198] sm:$0xff] }
 0x6ea   :  { %7418 = vmatprep.subr.bf16.mxu1 %v7417_v14 }
 0x6ed   :  { %7420 = vmatpush3.bf16.msra.mxu1 %v7419_v42 }
 0x6ee   :  { %7422 = vmatprep.subr.bf16.mxu1 %v7421_v28 }
 0x774   :  { %v12513_v52 = vpop.f32.mrb[48].mxu0 }
 0x775   :  { %v12515_v36 = vpop.f32.mrb[49].mxu0 }
 0x777   :  { %v12523_v10 = vpop.f32.mrb[80].mxu1 }
 0x778   :  { %v7019_v22 = vpop.f32.mrb[50].mxu0  ;;  %v12525_v48 = vpop.f32.mrb[81].mxu1 }
 0x779   :  { %v4908_v61 = vpop.f32.mrb[51].mxu0 }
 0x77b   :  { %v7083_v34 = vpop.f32.mrb[82].mxu1 }
 0x77c   :  { %v12539_v56 = vpop.f32.mrb[52].mxu0  ;;  %v5213_v50 = vpop.f32.mrb[83].mxu1 }
 0x77d   :  { %v12550_v20 = vpop.f32.mrb[53].mxu0 }
 0x77f   :  { %v12555_v35 = vpop.f32.mrb[84].mxu1 }
 0x780   :  { %v7025_v44 = vpop.f32.mrb[54].mxu0  ;;  %v12557_v40 = vpop.f32.mrb[85].mxu1 }
 0x781   :  { %v8051_v25 = vpack.i.bf16 %v7019_v22, %v7025_v44  ;;  %v4928_v9 = vpop.f32.mrb[55].mxu0  ;;  %v5515_v22 = vld [vmem:[%s13190_s9 + $0x248] sm:$0xff] }
 0x782   :  { %v8046_v2 = vpack.i.bf16 %v4908_v61, %v4928_v9  ;;  %v7423_v61 = vpack.c.bf16 %v5515_v22, %v5514_v29 }
 0x783   :  { %8052 = vrot.lane.b32.xlu1 %v8051_v25, %s8156_s27  ;;  %v7089_v18 = vpop.f32.mrb[86].mxu1  ;;  %v5518_v25 = vld [vmem:[%s13190_s9 + $0x260] sm:$0xff] }
 0x784   :  { %v8061_v63 = vpack.i.bf16 %v7083_v34, %v7089_v18  ;;  %8047 = vrot.lane.b32.xlu0 %v8046_v2, %s8156_s27  ;;  %v5233_v15 = vpop.f32.mrb[87].mxu1  ;;  %v12573_v39 = vpop.f32.mrb[56].mxu0  ;;  %v5516_v34 = vld [vmem:[%s13190_s9 + $0x250] sm:$0xff]  ;;  %7424 = vmatpush3.bf16.msra.mxu1 %v7423_v61  ;;  %v5519_v2 = vld [vmem:[%s13190_s9 + $0x268] sm:$0xff] }
 0x785   :  { %v8056_v43 = vpack.i.bf16 %v5213_v50, %v5233_v15  ;;  %v12584_v6 = vpop.f32.mrb[57].mxu0  ;;  %v7427_v31 = vpack.c.bf16 %v5517_v8, %v5516_v34  ;;  %7426 = vmatprep.subr.bf16.mxu1 %v7425_v26  ;;  %v7431_v62 = vpack.c.bf16 %v5519_v2, %v5518_v25 }
 0x787   :  { %8062 = vrot.lane.b32.xlu1 %v8061_v63, %s8156_s27  ;;  %v12590_v57 = vpop.f32.mrb[88].mxu1 }
 0x788   :  { %8057 = vrot.lane.b32.xlu0 %v8056_v43, %s8156_s27  ;;  %v7031_v24 = vpop.f32.mrb[58].mxu0  ;;  %v12593_v58 = vpop.f32.mrb[89].mxu1  ;;  %7428 = vmatpush3.bf16.msra.mxu1 %v7427_v31  ;;  %v5520_v43 = vld [vmem:[%s13190_s9 + $0x270] sm:$0xff] }
 0x789   :  { %v4948_v33 = vpop.f32.mrb[59].mxu0  ;;  %7430 = vmatprep.subr.bf16.mxu1 %v7429_v12 }
 0x78b   :  { %v7095_v23 = vpop.f32.mrb[90].mxu1 }
 0x78c   :  { %v12607_v59 = vpop.f32.mrb[60].mxu0  ;;  %v5253_v32 = vpop.f32.mrb[91].mxu1  ;;  %7432 = vmatpush3.bf16.msra.mxu1 %v7431_v62  ;;  %v5474_v62 = vld [vmem:[%s13190_s9 + $0x100] sm:$0xff] }
 0x78d   :  { %v12615_v37 = vpop.f32.mrb[61].mxu0  ;;  %7434 = vmatprep.subr.bf16.mxu1 %v7433_v16 }
 0x78f   :  { %v12623_v49 = vpop.f32.mrb[92].mxu1 }
 0x790   :  { %v7037_v30 = vpop.f32.mrb[62].mxu0  ;;  %v12625_v0 = vpop.f32.mrb[93].mxu1 }
 0x791   :  { %v8071_v47 = vpack.i.bf16 %v7031_v24, %v7037_v30  ;;  %v4968_v50 = vpop.f32.mrb[63].mxu0  ;;  %v7435_v24 = vpack.c.bf16 %v5521_v60, %v5520_v43 }
 0x792   :  { %v8066_v53 = vpack.i.bf16 %v4948_v33, %v4968_v50 }
 0x793   :  { %8072 = vrot.lane.b32.xlu1 %v8071_v47, %s8156_s27  ;;  %v7101_v41 = vpop.f32.mrb[94].mxu1  ;;  %7436 = vmatpush3.bf16.msra.mxu1 %v7435_v24 }
 0x794   :  { %v8081_v45 = vpack.i.bf16 %v7095_v23, %v7101_v41  ;;  %8067 = vrot.lane.b32.xlu0 %v8066_v53, %s8156_s27  ;;  %v5273_v44 = vpop.f32.mrb[95].mxu1  ;;  %v12641_v46 = vpop.f32.mrb[64].mxu0 }
 0x795   :  { %v8076_v9 = vpack.i.bf16 %v5253_v32, %v5273_v44  ;;  %v12652_v27 = vpop.f32.mrb[65].mxu0 }
 0x797   :  { %8082 = vrot.lane.b32.xlu1 %v8081_v45, %s8156_s27  ;;  %v12658_v18 = vpop.f32.mrb[96].mxu1 }
 0x798   :  { %8077 = vrot.lane.b32.xlu0 %v8076_v9, %s8156_s27  ;;  %v7043_v63 = vpop.f32.mrb[66].mxu0  ;;  %v12661_v15 = vpop.f32.mrb[97].mxu1 }
 0x799   :  { %v4988_v11 = vpop.f32.mrb[67].mxu0 }
 0x79b   :  { %v7107_v5 = vpop.f32.mrb[98].mxu1 }
 0x79c   :  { %v12675_v33 = vpop.f32.mrb[68].mxu0  ;;  %v5293_v54 = vpop.f32.mrb[99].mxu1 }
 0x79d   :  { %v12677_v55 = vpop.f32.mrb[69].mxu0 }
 0x79f   :  { %v12679_v21 = vpop.f32.mrb[100].mxu1 }
 0x7a0   :  { %v7049_v38 = vpop.f32.mrb[70].mxu0  ;;  %v12681_v23 = vpop.f32.mrb[101].mxu1 }
 0x7a1   :  { %v8091_v14 = vpack.i.bf16 %v7043_v63, %v7049_v38  ;;  %v5008_v42 = vpop.f32.mrb[71].mxu0  ;;  %v5475_v63 = vld [vmem:[%s13190_s9 + $0x108] sm:$0xff]  ;;  %v7377_v38 = vpack.c.bf16 %v5493_v3, %v5492_v1 }
 0x7a2   :  { %v8086_v32 = vpack.i.bf16 %v4988_v11, %v5008_v42  ;;  %v7375_v16 = vpack.c.bf16 %v5475_v63, %v5474_v62  ;;  %v5477_v42 = vld [vmem:[%s13190_s9 + $0x118] sm:$0xff]  ;;  %v5499_v63 = vld [vmem:[%s13190_s9 + $0x1c8] sm:$0xff] }
 0x7a3   :  { %v7113_v51 = vpop.f32.mrb[102].mxu1 }
 0x7a4   :  { %8087 = vrot.lane.b32.xlu0 %v8086_v32, %s8156_s27  ;;  %v8116_v7 = vpack.i.bf16 %v7107_v5, %v7113_v51  ;;  %v5313_v28 = vpop.f32.mrb[103].mxu1  ;;  %v12684_v29 = vpop.f32.mrb[72].mxu0 }
 0x7a5   :  { %v8106_v22 = vpack.i.bf16 %v5293_v54, %v5313_v28  ;;  %v12686_v61 = vpop.f32.mrb[73].mxu0 }
 0x7a7   :  { %v12688_v30 = vpop.f32.mrb[104].mxu1 }
 0x7a8   :  { %8092 = vrot.lane.b32.xlu0 %v8091_v14, %s8156_s27  ;;  %v7055_v4 = vpop.f32.mrb[74].mxu0  ;;  %v12691_v13 = vpop.f32.mrb[105].mxu1  ;;  %v5476_v14 = vld [vmem:[%s13190_s9 + $0x110] sm:$0xff] }
 0x7a9   :  { %v5028_v34 = vpop.f32.mrb[75].mxu0 }
 0x7ab   :  { %v7119_v47 = vpop.f32.mrb[106].mxu1 }
 0x7ac   :  { %8107 = vrot.lane.b32.xlu0 %v8106_v22, %s8156_s27  ;;  %v12694_v50 = vpop.f32.mrb[76].mxu0  ;;  %v5333_v26 = vpop.f32.mrb[107].mxu1 }
 0x7ad   :  { %v12696_v8 = vpop.f32.mrb[77].mxu0 }
 0x7af   :  { %v12698_v53 = vpop.f32.mrb[108].mxu1 }
 0x7b0   :  { %8117 = vrot.lane.b32.xlu0 %v8116_v7, %s8156_s27  ;;  %v7061_v31 = vpop.f32.mrb[78].mxu0  ;;  %v12701_v41 = vpop.f32.mrb[109].mxu1  ;;  %v5494_v7 = vld [vmem:[%s13190_s9 + $0x1a0] sm:$0xff] }
 0x7b1   :  { %v8101_v45 = vpack.i.bf16 %v7055_v4, %v7061_v31  ;;  %v5048_v44 = vpop.f32.mrb[79].mxu0  ;;  %v7379_v4 = vpack.c.bf16 %v5477_v42, %v5476_v14  ;;  %v5485_v42 = vld [vmem:[%s13190_s9 + $0x158] sm:$0xff] }
 0x7b2   :  { %v8096_v19 = vpack.i.bf16 %v5028_v34, %v5048_v44  ;;  %v5497_v44 = vld [vmem:[%s13190_s9 + $0x1b8] sm:$0xff] }
 0x7b3   :  { %v7125_v17 = vpop.f32.mrb[110].mxu1 }
 0x7b4   :  { %8097 = vrot.lane.b32.xlu1 %v8096_v19, %s8156_s27  ;;  %v8121_v25 = vpack.i.bf16 %v7119_v47, %v7125_v17  ;;  %v5353_v9 = vpop.f32.mrb[111].mxu1  ;;  %v5478_v47 = vld [vmem:[%s13190_s9 + $0x120] sm:$0xff] }
 0x7b5   :  { %v8111_v12 = vpack.i.bf16 %v5333_v26, %v5353_v9  ;;  %v5479_v26 = vld [vmem:[%s13190_s9 + $0x128] sm:$0xff] }
 0x7b8   :  { %8102 = vrot.lane.b32.xlu1 %v8101_v45, %s8156_s27 }
 0x7bc   :  { %8112 = vrot.lane.b32.xlu1 %v8111_v12, %s8156_s27  ;;  %v5481_v12 = vld [vmem:[%s13190_s9 + $0x138] sm:$0xff] }
 0x7c0   :  { %8122 = vrot.lane.b32.xlu1 %v8121_v25, %s8156_s27  ;;  %v7383_v25 = vpack.c.bf16 %v5479_v26, %v5478_v47  ;;  %v5488_v47 = vld [vmem:[%s13190_s9 + $0x170] sm:$0xff]  ;;  %v5489_v26 = vld [vmem:[%s13190_s9 + $0x178] sm:$0xff] }
 0x7f5   :  { %v8053_v2 = vpop.permute.xlu1 %8052 }
 0x7f6   :  { %v8048_v11 = vpop.permute.xlu0 %8047  ;;  %v8054_v43 = vunpack.i.l.bf16 %v8053_v2  ;;  %v8055_v32 = vunpack.i.h.bf16 %v8053_v2 }
 0x7f7   :  { %v8050_v60 = vunpack.i.h.bf16 %v8048_v11  ;;  %v8049_v5 = vunpack.i.l.bf16 %v8048_v11 }
 0x7f8   :  { %v5124_v28 = vsel %vm2852_vm6, %v12539_v56, %v8054_v43  ;;  %v5122_v45 = vsel %vm2852_vm6, %v12513_v52, %v8055_v32  ;;  %v5496_v56 = vld [vmem:[%s13190_s9 + $0x1b0] sm:$0xff]  ;;  %v5483_v43 = vld [vmem:[%s13190_s9 + $0x148] sm:$0xff]  ;;  %v5502_v32 = vld [vmem:[%s13190_s9 + $0x1e0] sm:$0xff] }
 0x7f9   :  { %v5121_v24 = vsel %vm2852_vm6, %v12515_v36, %v8050_v60  ;;  %v5123_v54 = vsel %vm2852_vm6, %v12550_v20, %v8049_v5  ;;  %v5495_v36 = vld [vmem:[%s13190_s9 + $0x1a8] sm:$0xff]  ;;  %v8063_v22 = vpop.permute.xlu1 %8062  ;;  %v7385_v9 = vpack.c.bf16 %v5497_v44, %v5496_v56  ;;  %v5480_v52 = vld [vmem:[%s13190_s9 + $0x130] sm:$0xff] }
 0x7fa   :  { %v8058_v51 = vpop.permute.xlu0 %8057  ;;  %5634 = vmatprep.mubr.f32.mxu0 %v5123_v54  ;;  %v7381_v34 = vpack.c.bf16 %v5495_v36, %v5494_v7  ;;  %v8064_v19 = vunpack.i.l.bf16 %v8063_v22  ;;  %v8065_v2 = vunpack.i.h.bf16 %v8063_v22  ;;  %v7387_v1 = vpack.c.bf16 %v5481_v12, %v5480_v52  ;;  %v5486_v36 = vld [vmem:[%s13190_s9 + $0x160] sm:$0xff]  ;;  %v5505_v22 = vld [vmem:[%s13190_s9 + $0x1f8] sm:$0xff]  ;;  %v5555_v56 = vld [vmem:[%s13190_s9 + $0x388] sm:$0xff] }
 0x7fb   :  { %v8059_v20 = vunpack.i.l.bf16 %v8058_v51  ;;  %5635 = vmatmul.mubr.f32.vlgmr.msra.gmra.mrb[80].mxu0 %v5121_v24  ;;  %v8060_v31 = vunpack.i.h.bf16 %v8058_v51  ;;  %v5503_v51 = vld [vmem:[%s13190_s9 + $0x1e8] sm:$0xff] }
 0x7fc   :  { %7376 = vmatpush3.bf16.msra.mxu0 %v7375_v16  ;;  %5639 = vmatprep.mubr.f32.mxu0 %v5124_v28  ;;  %v5429_v11 = vsel %vm2852_vm6, %v12555_v35, %v8064_v19  ;;  %v5427_v5 = vsel %vm2852_vm6, %v12523_v10, %v8065_v2  ;;  %v5500_v35 = vld [vmem:[%s13190_s9 + $0x1d0] sm:$0xff]  ;;  %v5501_v16 = vld [vmem:[%s13190_s9 + $0x1d8] sm:$0xff]  ;;  %v7397_v7 = vpack.c.bf16 %v5503_v51, %v5502_v32 }
 0x7fd   :  { %7378 = vmatprep.subr.bf16.mxu0 %v7377_v38  ;;  %v5428_v17 = vsel %vm2852_vm6, %v12557_v40, %v8059_v20  ;;  %v5426_v62 = vsel %vm2852_vm6, %v12525_v48, %v8060_v31  ;;  %v5498_v40 = vld [vmem:[%s13190_s9 + $0x1c0] sm:$0xff]  ;;  %v7393_v14 = vpack.c.bf16 %v5501_v16, %v5500_v35  ;;  %v5484_v10 = vld [vmem:[%s13190_s9 + $0x150] sm:$0xff]  ;;  %v5487_v20 = vld [vmem:[%s13190_s9 + $0x168] sm:$0xff]  ;;  %v7403_v19 = vpack.c.bf16 %v5489_v26, %v5488_v47 }
 0x7fe   :  { %v7389_v3 = vpack.c.bf16 %v5499_v63, %v5498_v40  ;;  %v5482_v48 = vld [vmem:[%s13190_s9 + $0x140] sm:$0xff]  ;;  %v5504_v28 = vld [vmem:[%s13190_s9 + $0x1f0] sm:$0xff] }
 0x7ff   :  { %5640 = vmatmul.mubr.f32.gmra.mrb[82].mxu0 %v5122_v45  ;;  %v7391_v54 = vpack.c.bf16 %v5483_v43, %v5482_v48  ;;  %v5554_v45 = vld [vmem:[%s13190_s9 + $0x380] sm:$0xff]  ;;  %v5556_v2 = vld [vmem:[%s13190_s9 + $0x390] sm:$0xff] }
 0x800   :  { %7380 = vmatpush3.bf16.msra.mxu0 %v7379_v4  ;;  %5644 = vmatprep.mubr.f32.mxu0 %v5428_v17  ;;  %v7399_v4 = vpack.c.bf16 %v5487_v20, %v5486_v36  ;;  %v7437_v17 = vpack.c.bf16 %v5555_v56, %v5554_v45  ;;  %v5544_v56 = vld [vmem:[%s13190_s9 + $0x330] sm:$0xff] }
 0x801   :  { %7382 = vmatprep.subr.bf16.mxu0 %v7381_v34  ;;  %v7401_v34 = vpack.c.bf16 %v5505_v22, %v5504_v28 }
 0x803   :  { %5645 = vmatmul.mubr.f32.gmra.mrb[84].mxu0 %v5426_v62  ;;  %v5557_v62 = vld [vmem:[%s13190_s9 + $0x398] sm:$0xff] }
 0x804   :  { %7384 = vmatpush3.bf16.msra.mxu0 %v7383_v25  ;;  %5649 = vmatprep.mubr.f32.mxu0 %v5429_v11  ;;  %v5538_v25 = vld [vmem:[%s13190_s9 + $0x300] sm:$0xff]  ;;  %v7441_v43 = vpack.c.bf16 %v5557_v62, %v5556_v2 }
 0x805   :  { %7386 = vmatprep.subr.bf16.mxu0 %v7385_v9  ;;  %v8073_v44 = vpop.permute.xlu1 %8072  ;;  %v5539_v9 = vld [vmem:[%s13190_s9 + $0x308] sm:$0xff] }
 0x806   :  { %v8068_v60 = vpop.permute.xlu0 %8067  ;;  %v8074_v40 = vunpack.i.l.bf16 %v8073_v44  ;;  %v8075_v35 = vunpack.i.h.bf16 %v8073_v44 }
 0x807   :  { %v8069_v24 = vunpack.i.l.bf16 %v8068_v60  ;;  %5650 = vmatmul.mubr.f32.gmra.mrb[86].mxu0 %v5427_v5  ;;  %v8070_v52 = vunpack.i.h.bf16 %v8068_v60  ;;  %v5540_v60 = vld [vmem:[%s13190_s9 + $0x310] sm:$0xff]  ;;  %v5541_v5 = vld [vmem:[%s13190_s9 + $0x318] sm:$0xff] }
 0x808   :  { %7388 = vmatpush3.bf16.msra.mxu0 %v7387_v1  ;;  %v7439_v1 = vpack.c.bf16 %v5539_v9, %v5538_v25  ;;  %v5126_v20 = vsel %vm2852_vm6, %v12573_v39, %v8075_v35  ;;  %v5567_v35 = vld [vmem:[%s13190_s9 + $0x3e8] sm:$0xff] }
 0x809   :  { %7390 = vmatprep.subr.bf16.mxu0 %v7389_v3  ;;  %v5127_v38 = vsel %vm2852_vm6, %v12615_v37, %v8069_v24  ;;  %v7395_v37 = vpack.c.bf16 %v5485_v42, %v5484_v10  ;;  %v5125_v16 = vsel %vm2852_vm6, %v12584_v6, %v8070_v52  ;;  %v5128_v10 = vsel %vm2852_vm6, %v12607_v59, %v8074_v40  ;;  %v8083_v6 = vpop.permute.xlu1 %8082  ;;  %v5543_v59 = vld [vmem:[%s13190_s9 + $0x328] sm:$0xff]  ;;  %v5546_v40 = vld [vmem:[%s13190_s9 + $0x340] sm:$0xff] }
 0x80a   :  { %5719 = vmatprep.mubr.f32.mxu0 %v5127_v38  ;;  %v12815_v31 = vpop.permute.xlu0 %8077  ;;  %v7443_v42 = vpack.c.bf16 %v5541_v5, %v5540_v60  ;;  %v8084_v22 = vunpack.i.l.bf16 %v8083_v6  ;;  %v8085_v44 = vunpack.i.h.bf16 %v8083_v6  ;;  %v5549_v60 = vld [vmem:[%s13190_s9 + $0x358] sm:$0xff]  ;;  %v5566_v5 = vld [vmem:[%s13190_s9 + $0x3e0] sm:$0xff]  ;;  %v5552_v6 = vld [vmem:[%s13190_s9 + $0x370] sm:$0xff] }
 0x80b   :  { %v8080_v36 = vunpack.i.h.bf16 %v12815_v31 }
 0x80c   :  { %7392 = vmatpush3.bf16.msra.mxu0 %v7391_v54  ;;  %v8079_v54 = vunpack.i.l.bf16 %v12815_v31  ;;  %v5433_v52 = vsel %vm2852_vm6, %v12623_v49, %v8084_v22  ;;  %v5547_v49 = vld [vmem:[%s13190_s9 + $0x348] sm:$0xff] }
 0x80d   :  { %7394 = vmatprep.subr.bf16.mxu0 %v7393_v14 }
 0x80e   :  { %v5432_v47 = vsel %vm2852_vm6, %v12625_v0, %v8079_v54  ;;  %v5545_v0 = vld [vmem:[%s13190_s9 + $0x338] sm:$0xff] }
 0x80f   :  { %v5569_v54 = vld [vmem:[%s13190_s9 + $0x3f8] sm:$0xff] }
 0x810   :  { %7396 = vmatpush3.bf16.msra.mxu0 %v7395_v37 }
 0x811   :  { %7398 = vmatprep.subr.bf16.mxu0 %v7397_v7  ;;  %v5542_v7 = vld [vmem:[%s13190_s9 + $0x320] sm:$0xff] }
 0x812   :  { %v7447_v39 = vpack.c.bf16 %v5543_v59, %v5542_v7  ;;  %v13643_v59 = vmov 0.0|0.0  }
 0x814   :  { %7400 = vmatpush3.bf16.msra.mxu0 %v7399_v4 }
 0x815   :  { %7402 = vmatprep.subr.bf16.mxu0 %v7401_v34 }
 0x816   :  { %v8088_v12 = vpop.permute.xlu0 %8087 }
 0x817   :  { %v8090_v63 = vunpack.i.h.bf16 %v8088_v12  ;;  %v8089_v11 = vunpack.i.l.bf16 %v8088_v12 }
 0x818   :  { %7404 = vmatpush3.bf16.msra.mxu0 %v7403_v19  ;;  %v5430_v19 = vsel %vm2852_vm6, %v12593_v58, %v8080_v36  ;;  %v7451_v58 = vpack.c.bf16 %v5545_v0, %v5544_v56  ;;  %v5917_v56 = vld [vmem:[%s13191_s10 + $0x38] sm:$0xff]  ;;  %v5914_v0 = vld [vmem:[%s13191_s10 + $0x20] sm:$0xff] }
 0x819   :  { %v5129_v3 = vsel %vm2852_vm6, %v12652_v27, %v8090_v63  ;;  %7438 = vmatprep.subr.bf16.mxu0 %v7437_v17  ;;  %v5131_v48 = vsel %vm2852_vm6, %v12677_v55, %v8089_v11  ;;  %v5558_v27 = vld [vmem:[%s13190_s9 + $0x3a0] sm:$0xff]  ;;  %v5559_v55 = vld [vmem:[%s13190_s9 + $0x3a8] sm:$0xff]  ;;  %v5431_v63 = vsel %vm2852_vm6, %v12590_v57, %v8085_v44 }
 0x81a   :  { %v8093_v24 = vpop.permute.xlu0 %8092  ;;  %5804 = vmatprep.mubr.f32.mxu1 %v5131_v48  ;;  %v7445_v37 = vpack.c.bf16 %v5559_v55, %v5558_v27  ;;  %v5551_v27 = vld [vmem:[%s13190_s9 + $0x368] sm:$0xff]  ;;  %v5568_v55 = vld [vmem:[%s13190_s9 + $0x3f0] sm:$0xff] }
 0x81b   :  { %5720 = vmatmul.mubr.f32.vlgmr.msra.gmra.mrb[88].mxu0 %v5125_v16  ;;  %v8095_v38 = vunpack.i.h.bf16 %v8093_v24  ;;  %v8094_v14 = vunpack.i.l.bf16 %v8093_v24  ;;  %5805 = vmatmul.mubr.f32.vlgmr.msra.gmra.mrb[112].mxu1 %v5129_v3  ;;  %v7455_v3 = vpack.c.bf16 %v5547_v49, %v5546_v40  ;;  %v7461_v16 = vpack.c.bf16 %v5567_v35, %v5566_v5  ;;  %v5550_v24 = vld [vmem:[%s13190_s9 + $0x360] sm:$0xff]  ;;  %v5924_v49 = vld [vmem:[%s13191_s10 + $0x70] sm:$0xff] }
 0x81c   :  { %5724 = vmatprep.mubr.f32.mxu0 %v5128_v10  ;;  %7440 = vmatpush3.bf16.msra.mxu0 %v7439_v1  ;;  %v7465_v10 = vpack.c.bf16 %v5569_v54, %v5568_v55  ;;  %v5922_v40 = vld [vmem:[%s13191_s10 + $0x60] sm:$0xff]  ;;  %v5932_v35 = vld [vmem:[%s13191_s10 + $0xb0] sm:$0xff] }
 0x81d   :  { %7442 = vmatprep.subr.bf16.mxu0 %v7441_v43  ;;  %v5132_v32 = vsel %vm2852_vm6, %v12675_v33, %v8094_v14  ;;  %v5130_v51 = vsel %vm2852_vm6, %v12641_v46, %v8095_v38  ;;  %v5560_v46 = vld [vmem:[%s13190_s9 + $0x3b0] sm:$0xff]  ;;  %v5561_v33 = vld [vmem:[%s13190_s9 + $0x3b8] sm:$0xff]  ;;  %v7463_v14 = vpack.c.bf16 %v5551_v27, %v5550_v24  ;;  %v5930_v5 = vld [vmem:[%s13191_s10 + $0xa0] sm:$0xff] }
 0x81e   :  { %v8108_v28 = vpop.permute.xlu0 %8107  ;;  %5809 = vmatprep.mubr.f32.mxu1 %v5132_v32  ;;  %v7449_v45 = vpack.c.bf16 %v5561_v33, %v5560_v46  ;;  %v5548_v43 = vld [vmem:[%s13190_s9 + $0x350] sm:$0xff]  ;;  %v7491_v24 = vpack.c.bf16 %v5932_v35, %v5930_v5  ;;  %v5934_v55 = vld [vmem:[%s13191_s10 + $0xc0] sm:$0xff] }
 0x81f   :  { %5725 = vmatmul.mubr.f32.gmra.mrb[90].mxu0 %v5126_v20  ;;  %v8110_v4 = vunpack.i.h.bf16 %v8108_v28  ;;  %v8109_v34 = vunpack.i.l.bf16 %v8108_v28  ;;  %5810 = vmatmul.mubr.f32.gmra.mrb[114].mxu1 %v5130_v51  ;;  %v5936_v54 = vld [vmem:[%s13191_s10 + $0xd0] sm:$0xff] }
 0x820   :  { %5729 = vmatprep.mubr.f32.mxu0 %v5432_v47  ;;  %7444 = vmatpush3.bf16.msra.mxu0 %v7443_v42  ;;  %v5553_v42 = vld [vmem:[%s13190_s9 + $0x378] sm:$0xff] }
 0x821   :  { %7446 = vmatprep.subr.bf16.mxu0 %v7445_v37  ;;  %v5436_v26 = vsel %vm2852_vm6, %v12681_v23, %v8109_v34  ;;  %v5434_v31 = vsel %vm2852_vm6, %v12661_v15, %v8110_v4  ;;  %v5562_v23 = vld [vmem:[%s13190_s9 + $0x3c0] sm:$0xff]  ;;  %v5563_v15 = vld [vmem:[%s13190_s9 + $0x3c8] sm:$0xff]  ;;  %v7467_v32 = vpack.c.bf16 %v5553_v42, %v5552_v6 }
 0x822   :  { %v8118_v17 = vpop.permute.xlu0 %8117  ;;  %5814 = vmatprep.mubr.f32.mxu1 %v5436_v26  ;;  %v7453_v62 = vpack.c.bf16 %v5563_v15, %v5562_v23  ;;  %v5919_v23 = vld [vmem:[%s13191_s10 + $0x48] sm:$0xff]  ;;  %v5921_v15 = vld [vmem:[%s13191_s10 + $0x58] sm:$0xff]  ;;  %v5938_v6 = vld [vmem:[%s13191_s10 + $0xe0] sm:$0xff] }
 0x823   :  { %5730 = vmatmul.mubr.f32.gmra.mrb[92].mxu0 %v5430_v19  ;;  %v8120_v25 = vunpack.i.h.bf16 %v8118_v17  ;;  %v8119_v9 = vunpack.i.l.bf16 %v8118_v17  ;;  %5815 = vmatmul.mubr.f32.gmra.mrb[116].mxu1 %v5434_v31  ;;  %v5916_v19 = vld [vmem:[%s13191_s10 + $0x30] sm:$0xff] }
 0x824   :  { %5734 = vmatprep.mubr.f32.mxu0 %v5433_v52  ;;  %7448 = vmatpush3.bf16.msra.mxu0 %v7447_v39  ;;  %v7475_v17 = vpack.c.bf16 %v5916_v19, %v5914_v0  ;;  %v5920_v52 = vld [vmem:[%s13191_s10 + $0x50] sm:$0xff]  ;;  %v6062_v0 = vld [vmem:[%s13193_s12 + $0x78] sm:$0xff]  ;;  %v6063_v19 = vld [vmem:[%s13193_s12 + $0x80] sm:$0xff] }
 0x825   :  { %v5435_v12 = vsel %vm2852_vm6, %v12658_v18, %v8120_v25  ;;  %v5437_v2 = vsel %vm2852_vm6, %v12679_v21, %v8119_v9  ;;  %7450 = vmatprep.subr.bf16.mxu0 %v7449_v45  ;;  %v5564_v18 = vld [vmem:[%s13190_s9 + $0x3d0] sm:$0xff]  ;;  %v5565_v21 = vld [vmem:[%s13190_s9 + $0x3d8] sm:$0xff]  ;;  %v5918_v25 = vld [vmem:[%s13191_s10 + $0x40] sm:$0xff]  ;;  %v7477_v9 = vpack.c.bf16 %v5921_v15, %v5919_v23 }
 0x826   :  { %5819 = vmatprep.mubr.f32.mxu1 %v5437_v2  ;;  %v8098_v11 = vpop.permute.xlu1 %8097  ;;  %v7457_v57 = vpack.c.bf16 %v5565_v21, %v5564_v18  ;;  %v7479_v2 = vpack.c.bf16 %v5920_v52, %v5918_v25  ;;  %v7483_v18 = vpack.c.bf16 %v5924_v49, %v5922_v40 }
 0x827   :  { %5735 = vmatmul.mubr.f32.gmra.mrb[94].mxu0 %v5431_v63  ;;  %v8099_v1 = vunpack.i.l.bf16 %v8098_v11  ;;  %5820 = vmatmul.mubr.f32.gmra.mrb[118].mxu1 %v5435_v12  ;;  %v8100_v51 = vunpack.i.h.bf16 %v8098_v11  ;;  %v5925_v12 = vld [vmem:[%s13191_s10 + $0x78] sm:$0xff]  ;;  %v5927_v63 = vld [vmem:[%s13191_s10 + $0x88] sm:$0xff] }
 0x828   :  { %7452 = vmatpush3.bf16.msra.mxu0 %v7451_v58  ;;  %v5923_v58 = vld [vmem:[%s13191_s10 + $0x68] sm:$0xff]  ;;  %v5929_v11 = vld [vmem:[%s13191_s10 + $0x98] sm:$0xff] }
 0x829   :  { %7454 = vmatprep.subr.bf16.mxu0 %v7453_v62  ;;  %v5135_v48 = vsel %vm2852_vm6, %v12696_v8, %v8099_v1  ;;  %v7459_v8 = vpack.c.bf16 %v5549_v60, %v5548_v43  ;;  %v5133_v36 = vsel %vm2852_vm6, %v12686_v61, %v8100_v51  ;;  %v7481_v62 = vpack.c.bf16 %v5925_v12, %v5923_v58  ;;  %v5926_v1 = vld [vmem:[%s13191_s10 + $0x80] sm:$0xff] }
 0x82a   :  { %5889 = vmatprep.mubr.f32.mxu0 %v5135_v48  ;;  %v8103_v38 = vpop.permute.xlu1 %8102  ;;  %v7485_v21 = vpack.c.bf16 %v5929_v11, %v5927_v63  ;;  %v5931_v48 = vld [vmem:[%s13191_s10 + $0xa8] sm:$0xff] }
 0x82b   :  { %v8104_v7 = vunpack.i.l.bf16 %v8103_v38  ;;  %v8105_v20 = vunpack.i.h.bf16 %v8103_v38  ;;  %v7495_v38 = vpack.c.bf16 %v5936_v54, %v5934_v55 }
 0x82c   :  { %7456 = vmatpush3.bf16.msra.mxu0 %v7455_v3  ;;  %v5928_v3 = vld [vmem:[%s13191_s10 + $0x90] sm:$0xff] }
 0x82d   :  { %7458 = vmatprep.subr.bf16.mxu0 %v7457_v57  ;;  %v5136_v46 = vsel %vm2852_vm6, %v12694_v50, %v8104_v7  ;;  %v5134_v4 = vsel %vm2852_vm6, %v12684_v29, %v8105_v20  ;;  %v5911_v29 = vld [vmem:[%s13191_s10 + $0x8] sm:$0xff]  ;;  %v5933_v57 = vld [vmem:[%s13191_s10 + $0xb8] sm:$0xff]  ;;  %v7487_v43 = vpack.c.bf16 %v5928_v3, %v5926_v1  ;;  %v6047_v7 = vld [vmem:[%s13193_s12] sm:$0xff] }
 0x82e   :  { %v8113_v37 = vpop.permute.xlu1 %8112  ;;  %v7489_v60 = vpack.c.bf16 %v5933_v57, %v5931_v48  ;;  %v6049_v20 = vld [vmem:[%s13193_s12 + $0x10] sm:$0xff] }
 0x82f   :  { %v8114_v28 = vunpack.i.l.bf16 %v8113_v37  ;;  %v8115_v22 = vunpack.i.h.bf16 %v8113_v37  ;;  %v8158_v37 = vmov 0.0  }
 0x830   :  { %7460 = vmatpush3.bf16.msra.mxu0 %v7459_v8  ;;  %v5935_v8 = vld [vmem:[%s13191_s10 + $0xc8] sm:$0xff]  ;;  %6006 = vmatprep.mubr.f32.mxu1 %v8158_v37 }
 0x831   :  { %7462 = vmatprep.subr.bf16.mxu0 %v7461_v16  ;;  %v5440_v47 = vsel %vm2852_vm6, %v12701_v41, %v8114_v28  ;;  %v5438_v61 = vsel %vm2852_vm6, %v12691_v13, %v8115_v22  ;;  %v5913_v41 = vld [vmem:[%s13191_s10 + $0x18] sm:$0xff]  ;;  %v5910_v13 = vld [vmem:[%s13191_s10] sm:$0xff] }
 0x832   :  { %v8123_v33 = vpop.permute.xlu1 %8122  ;;  %v7469_v31 = vpack.c.bf16 %v5913_v41, %v5911_v29  ;;  %v5937_v16 = vld [vmem:[%s13191_s10 + $0xd8] sm:$0xff]  ;;  %v6051_v22 = vld [vmem:[%s13193_s12 + $0x20] sm:$0xff]  ;;  %v6057_v41 = vld [vmem:[%s13193_s12 + $0x50] sm:$0xff] }
 0x833   :  { %v8124_v34 = vunpack.i.l.bf16 %v8123_v33  ;;  %v8125_v39 = vunpack.i.h.bf16 %v8123_v33  ;;  %v7493_v27 = vpack.c.bf16 %v5937_v16, %v5935_v8 }
 0x834   :  { %7464 = vmatpush3.bf16.msra.mxu0 %v7463_v14  ;;  %7470 = vmatprep.subr.bf16.mxu1 %v7469_v31  ;;  %v5939_v14 = vld [vmem:[%s13191_s10 + $0xe8] sm:$0xff] }
 0x835   :  { %7466 = vmatprep.subr.bf16.mxu0 %v7465_v10  ;;  %v5441_v50 = vsel %vm2852_vm6, %v12698_v53, %v8124_v34  ;;  %v5439_v26 = vsel %vm2852_vm6, %v12688_v30, %v8125_v39  ;;  %v5912_v53 = vld [vmem:[%s13191_s10 + $0x10] sm:$0xff]  ;;  %v5915_v30 = vld [vmem:[%s13191_s10 + $0x28] sm:$0xff]  ;;  %v5941_v10 = vld [vmem:[%s13191_s10 + $0xf8] sm:$0xff]  ;;  %vm8159_vm6 = vmmov 0  }
 0x836   :  { %v7471_v45 = vpack.c.bf16 %v5912_v53, %v5910_v13  ;;  %v7473_v44 = vpack.c.bf16 %v5917_v56, %v5915_v30  ;;  %v7497_v42 = vpack.c.bf16 %v5941_v10, %v5939_v14  ;;  %v6054_v39 = vld [vmem:[%s13193_s12 + $0x38] sm:$0xff]  ;;  %v6059_v53 = vld [vmem:[%s13193_s12 + $0x60] sm:$0xff]  ;;  %v6061_v56 = vld [vmem:[%s13193_s12 + $0x70] sm:$0xff] }
 0x837   :  { %v6058_v13 = vld [vmem:[%s13193_s12 + $0x58] sm:$0xff] }
 0x838   :  { %7468 = vmatpush3.bf16.msra.mxu0 %v7467_v32  ;;  %7472 = vmatpush1.bf16.msra.mxu1 %v7471_v45  ;;  %v5940_v32 = vld [vmem:[%s13191_s10 + $0xf0] sm:$0xff]  ;;  %v7517_v31 = vpack.c.bf16 %v6058_v13, %v6057_v41  ;;  %v6060_v45 = vld [vmem:[%s13193_s12 + $0x68] sm:$0xff]  ;;  %s8160_s10 = smov [#allocation2]  }
 0x839   :  { %7501 = vmatprep.subr.bf16.mxu0 %v13643_v59  ;;  %7474 = vmatprep.subr.bf16.mxu1 %v7473_v44  ;;  %v7499_v51 = vpack.c.bf16 %v5940_v32, %v5938_v6  ;;  %v7520_v30 = vpack.c.bf16 %v6060_v45, %v6059_v53  ;;  %v7523_v44 = vpack.c.bf16 %v6062_v0, %v6061_v56  ;;  %s6253_s2 = sshll.u32 %s8160_s10, 4  ;;  %s6254_s2 = int_to_ptr.vmem [resolvable:$true] %s6253_s2 }
 0x83a   :  { %s8130_s1 = scalar_lea.vmem %s6254_s2, 32  ;;  %p8135_p1 = scmp.lt.s32.totalorder %s6254_s2, %s6254_s2 }
 0x83b   :  { %5890 = vmatmul.mubr.f32.vlgmr.msra.gmra.mrb[96].mxu0 %v5133_v36  ;;  %v6048_v36 = vld [vmem:[%s13193_s12 + $0x8] sm:$0xff]  ;;  %p8131_p0 = scmp.ne.s32.totalorder %s6254_s2, %s8130_s1  ;;  %p8136_p2 = scmp.lt.s32.totalorder %s8130_s1, %s8130_s1 }
 0x83c   :  { %5894 = vmatprep.mubr.f32.mxu0 %v5136_v46  ;;  %7476 = vmatpush1.bf16.msra.mxu1 %v7475_v17  ;;  %v7502_v28 = vpack.c.bf16 %v6048_v36, %v6047_v7  ;;  %v6050_v46 = vld [vmem:[%s13193_s12 + $0x18] sm:$0xff]  ;;  %v6064_v17 = vld [vmem:[%s13193_s12 + $0x88] sm:$0xff] }
 0x83d   :  { %7478 = vmatprep.subr.bf16.mxu1 %v7477_v9  ;;  %v7505_v33 = vpack.c.bf16 %v6050_v46, %v6049_v20  ;;  %v7526_v23 = vpack.c.bf16 %v6064_v17, %v6063_v19  ;;  %v6065_v17 = vld [vmem:[%s13193_s12 + $0x90] sm:$0xff]  ;;  %p8137_p3 = por %p8136_p2, %p8135_p1 }
 0x83e   :  { %7503 = vmatpush1.bf16.msra.mxu0 %v7502_v28 }
 0x83f   :  { %5895 = vmatmul.mubr.f32.gmra.mrb[98].mxu0 %v5134_v4  ;;  %7504 = vmatprep.subr.bf16.mxu0 %v13643_v59  ;;  %v6052_v4 = vld [vmem:[%s13193_s12 + $0x28] sm:$0xff]  ;;  %p8138_p4 = pnand %p8137_p3, %p8131_p0 }
 0x840   :  { %5899 = vmatprep.mubr.f32.mxu0 %v5440_v47  ;;  %7480 = vmatpush1.bf16.msra.mxu1 %v7479_v2  ;;  %v7508_v34 = vpack.c.bf16 %v6052_v4, %v6051_v22  ;;  %v6053_v47 = vld [vmem:[%s13193_s12 + $0x30] sm:$0xff] }
 0x841   :  { %7482 = vmatprep.subr.bf16.mxu1 %v7481_v62 }
 0x842   :  { %7506 = vmatpush1.bf16.msra.mxu0 %v7505_v33 }
 0x843   :  { %5900 = vmatmul.mubr.f32.gmra.mrb[100].mxu0 %v5438_v61  ;;  %7507 = vmatprep.subr.bf16.mxu0 %v13643_v59  ;;  %v7511_v61 = vpack.c.bf16 %v6054_v39, %v6053_v47 }
 0x844   :  { %5904 = vmatprep.mubr.f32.mxu0 %v5441_v50  ;;  %7484 = vmatpush1.bf16.msra.mxu1 %v7483_v18  ;;  %v6055_v50 = vld [vmem:[%s13193_s12 + $0x40] sm:$0xff] }
 0x845   :  { %7486 = vmatprep.subr.bf16.mxu1 %v7485_v21 }
 0x846   :  { %7509 = vmatpush1.bf16.msra.mxu0 %v7508_v34 }
 0x847   :  { %5905 = vmatmul.mubr.f32.gmra.mrb[102].mxu0 %v5439_v26  ;;  %7510 = vmatprep.subr.bf16.mxu0 %v13643_v59  ;;  %v6056_v26 = vld [vmem:[%s13193_s12 + $0x48] sm:$0xff] }
 0x848   :  { %7488 = vmatpush1.bf16.msra.mxu1 %v7487_v43  ;;  %v7514_v29 = vpack.c.bf16 %v6056_v26, %v6055_v50 }
 0x849   :  { %7490 = vmatprep.subr.bf16.mxu1 %v7489_v60 }
 0x84a   :  { %7512 = vmatpush1.bf16.msra.mxu0 %v7511_v61 }
 0x84b   :  { %7513 = vmatprep.subr.bf16.mxu0 %v13643_v59 }
 0x84c   :  { %7492 = vmatpush1.bf16.msra.mxu1 %v7491_v24 }
 0x84d   :  { %7494 = vmatprep.subr.bf16.mxu1 %v7493_v27 }
 0x84e   :  { %7515 = vmatpush1.bf16.msra.mxu0 %v7514_v29 }
 0x84f   :  { %7516 = vmatprep.subr.bf16.mxu0 %v13643_v59 }
 0x850   :  { %7496 = vmatpush1.bf16.msra.mxu1 %v7495_v38 }
 0x851   :  { %7498 = vmatprep.subr.bf16.mxu1 %v7497_v42 }
 0x852   :  { %7518 = vmatpush1.bf16.msra.mxu0 %v7517_v31 }
 0x853   :  { %7519 = vmatprep.subr.bf16.mxu0 %v13643_v59 }
 0x854   :  { %7500 = vmatpush1.bf16.msra.mxu1 %v7499_v51 }
 0x855   :  { %7531 = vmatprep.subr.bf16.mxu1 %v13643_v59 }
 0x856   :  { %7521 = vmatpush1.bf16.msra.mxu0 %v7520_v30 }
 0x857   :  { %7522 = vmatprep.subr.bf16.mxu0 %v13643_v59 }
 0x85a   :  { %7524 = vmatpush1.bf16.msra.mxu0 %v7523_v44 }
 0x85b   :  { %7525 = vmatprep.subr.bf16.mxu0 %v13643_v59 }
 0x85e   :  { %7527 = vmatpush1.bf16.msra.mxu0 %v7526_v23  ;;  %v6066_v23 = vld [vmem:[%s13193_s12 + $0x98] sm:$0xff] }
 0x85f   :  { %7528 = vmatprep.subr.bf16.mxu0 %v13643_v59 }
 0x8ce   :  { %v6741_v15 = vpop.f32.mrb[80].mxu0 }
 0x8cf   :  { %v6742_v25 = vpop.f32.mrb[81].mxu0 }
 0x8d0   :  { %v6743_v9 = vadd.f32 %v6742_v25, %v6741_v15  ;;  %v7529_v15 = vpack.c.bf16 %v6066_v23, %v6065_v17  ;;  %v6032_v25 = vld [vmem:[%s13192_s11 + $0x8] sm:$0xff] }
 0x8d2   :  { %v6744_v52 = vpop.f32.mrb[82].mxu0  ;;  %7530 = vmatpush1.bf16.msra.mxu0 %v7529_v15 }
 0x8d3   :  { %v6745_v58 = vpop.f32.mrb[83].mxu0 }
 0x8d4   :  { %v6746_v12 = vadd.f32 %v6745_v58, %v6744_v52  ;;  %v6031_v52 = vld [vmem:[%s13192_s11] sm:$0xff] }
 0x8d6   :  { %v6747_v2 = vpop.f32.mrb[84].mxu0 }
 0x8d7   :  { %v6748_v62 = vpop.f32.mrb[85].mxu0 }
 0x8d8   :  { %v6749_v40 = vadd.f32 %v6748_v62, %v6747_v2  ;;  %v6034_v62 = vld [vmem:[%s13192_s11 + $0x18] sm:$0xff] }
 0x8da   :  { %v6750_v49 = vpop.f32.mrb[86].mxu0 }
 0x8db   :  { %v6751_v63 = vpop.f32.mrb[87].mxu0 }
 0x8dc   :  { %v6752_v11 = vadd.f32 %v6751_v63, %v6750_v49  ;;  %v6033_v49 = vld [vmem:[%s13192_s11 + $0x10] sm:$0xff] }
 0x8ee   :  { %v6785_v18 = vpop.f32.mrb[88].mxu0  ;;  %v6829_v21 = vpop.f32.mrb[112].mxu1 }
 0x8ef   :  { %v6786_v1 = vpop.f32.mrb[89].mxu0  ;;  %v6830_v3 = vpop.f32.mrb[113].mxu1 }
 0x8f0   :  { %v6787_v48 = vadd.f32 %v6786_v1, %v6785_v18  ;;  %v6831_v57 = vadd.f32 %v6830_v3, %v6829_v21  ;;  %v6036_v21 = vld [vmem:[%s13192_s11 + $0x28] sm:$0xff]  ;;  %v6035_v3 = vld [vmem:[%s13192_s11 + $0x20] sm:$0xff] }
 0x8f2   :  { %v5722_v43 = vadd.f32 %v6787_v48, %v6743_v9  ;;  %v6788_v60 = vpop.f32.mrb[90].mxu0  ;;  %v6832_v5 = vpop.f32.mrb[114].mxu1 }
 0x8f3   :  { %v6789_v35 = vpop.f32.mrb[91].mxu0  ;;  %v6833_v8 = vpop.f32.mrb[115].mxu1 }
 0x8f4   :  { %v5807_v16 = vadd.f32 %v6831_v57, %v5722_v43  ;;  %v6790_v24 = vadd.f32 %v6789_v35, %v6788_v60  ;;  %v6834_v27 = vadd.f32 %v6833_v8, %v6832_v5  ;;  %v6038_v60 = vld [vmem:[%s13192_s11 + $0x38] sm:$0xff]  ;;  %v6037_v35 = vld [vmem:[%s13192_s11 + $0x30] sm:$0xff] }
 0x8f6   :  { %v5727_v55 = vadd.f32 %v6790_v24, %v6746_v12  ;;  %v6791_v54 = vpop.f32.mrb[92].mxu0  ;;  %v6835_v38 = vpop.f32.mrb[116].mxu1 }
 0x8f7   :  { %v6792_v14 = vpop.f32.mrb[93].mxu0  ;;  %v6836_v10 = vpop.f32.mrb[117].mxu1 }
 0x8f8   :  { %v5812_v6 = vadd.f32 %v6834_v27, %v5727_v55  ;;  %v6793_v42 = vadd.f32 %v6792_v14, %v6791_v54  ;;  %v6837_v32 = vadd.f32 %v6836_v10, %v6835_v38 }
 0x8fa   :  { %v5732_v51 = vadd.f32 %v6793_v42, %v6749_v40  ;;  %v6794_v7 = vpop.f32.mrb[94].mxu0  ;;  %v6838_v36 = vpop.f32.mrb[118].mxu1 }
 0x8fb   :  { %v6795_v20 = vpop.f32.mrb[95].mxu0  ;;  %v6839_v28 = vpop.f32.mrb[119].mxu1 }
 0x8fc   :  { %v5817_v46 = vadd.f32 %v6837_v32, %v5732_v51  ;;  %v6796_v33 = vadd.f32 %v6795_v20, %v6794_v7  ;;  %v6840_v22 = vadd.f32 %v6839_v28, %v6838_v36  ;;  %v6164_v7 = vld [vmem:[%s13194_s13] sm:$0x3] }
 0x8fe   :  { %v5737_v4 = vadd.f32 %v6796_v33, %v6752_v11 }
 0x900   :  { %v5822_v34 = vadd.f32 %v6840_v22, %v5737_v4 }
 0x90e   :  { %v6873_v47 = vpop.f32.mrb[96].mxu0 }
 0x90f   :  { %v6874_v39 = vpop.f32.mrb[97].mxu0 }
 0x910   :  { %v6875_v61 = vadd.f32 %v6874_v39, %v6873_v47 }
 0x912   :  { %v5892_v50 = vadd.f32 %v6875_v61, %v5807_v16  ;;  %v6876_v26 = vpop.f32.mrb[98].mxu0 }
 0x913   :  { %v6877_v29 = vpop.f32.mrb[99].mxu0 }
 0x914   :  { %v6878_v41 = vadd.f32 %v6877_v29, %v6876_v26  ;;  %6007 = vmatmul.mubr.f32.vlgmr.msra.gmra.mrb[120].mxu1 %v5892_v50 }
 0x915   :  { %6012 = vmatprep.mubr.f32.mxu1 %v8158_v37 }
 0x916   :  { %v5897_v13 = vadd.f32 %v6878_v41, %v5812_v6  ;;  %v6879_v31 = vpop.f32.mrb[100].mxu0 }
 0x917   :  { %v6880_v53 = vpop.f32.mrb[101].mxu0 }
 0x918   :  { %v6881_v45 = vadd.f32 %v6880_v53, %v6879_v31  ;;  %6013 = vmatmul.mubr.f32.gmra.mrb[122].mxu1 %v5897_v13 }
 0x919   :  { %6018 = vmatprep.mubr.f32.mxu1 %v8158_v37 }
 0x91a   :  { %v5902_v30 = vadd.f32 %v6881_v45, %v5817_v46  ;;  %v6882_v56 = vpop.f32.mrb[102].mxu0 }
 0x91b   :  { %v6883_v0 = vpop.f32.mrb[103].mxu0 }
 0x91c   :  { %v6884_v44 = vadd.f32 %v6883_v0, %v6882_v56  ;;  %6019 = vmatmul.mubr.f32.gmra.mrb[124].mxu1 %v5902_v30 }
 0x91d   :  { %6024 = vmatprep.mubr.f32.mxu1 %v8158_v37 }
 0x91e   :  { %v5907_v19 = vadd.f32 %v6884_v44, %v5822_v34 }
 0x920   :  { %6025 = vmatmul.mubr.f32.gmra.mrb[126].mxu1 %v5907_v19 }
 0x921   :  { %7134 = vmatprep.mubr.msk.f32.mxu1 %vm8159_vm6, %v8158_v37  ;;  %v6397_v37 = vld [vmem:[%s13195_s14] ss:$0 sm:$0xff] }
 0x9e7   :  { %v6008_v9 = vpop.f32.mrb[120].mxu1 }
 0x9e8   :  { %v6010_v58 = vpop.f32.mrb[121].mxu1  ;;  %v6039_v2 = vmul.f32 %v6031_v52, %v6008_v9 }
 0x9e9   :  { %v6040_v12 = vmul.f32 %v6032_v25, %v6010_v58 }
 0x9eb   :  { %v6014_v40 = vpop.f32.mrb[122].mxu1  ;;  %6393 = vmatprep.mubr.msk.f32.mxu0 %vm701_vm1, %v6040_v12 }
 0x9ec   :  { %v6016_v63 = vpop.f32.mrb[123].mxu1  ;;  %6144 = vmatmul.mubr.f32.vlgmr.msra.gmra.mrb[104].mxu0 %v6039_v2  ;;  %v6041_v18 = vmul.f32 %v6033_v49, %v6014_v40 }
 0x9ed   :  { %v6042_v11 = vmul.f32 %v6034_v62, %v6016_v63 }
 0x9ef   :  { %v6020_v1 = vpop.f32.mrb[124].mxu1  ;;  %6394 = vmatprep.mubr.msk.f32.mxu0 %vm701_vm1, %v6042_v11 }
 0x9f0   :  { %v6022_v48 = vpop.f32.mrb[125].mxu1  ;;  %6149 = vmatmul.mubr.f32.gmra.mrb[106].mxu0 %v6041_v18  ;;  %v6043_v43 = vmul.f32 %v6035_v3, %v6020_v1 }
 0x9f1   :  { %v6044_v57 = vmul.f32 %v6036_v21, %v6022_v48 }
 0x9f3   :  { %v6026_v5 = vpop.f32.mrb[126].mxu1  ;;  %6395 = vmatprep.mubr.msk.f32.mxu0 %vm701_vm1, %v6044_v57 }
 0x9f4   :  { %v6028_v8 = vpop.f32.mrb[127].mxu1  ;;  %6154 = vmatmul.mubr.f32.gmra.mrb[108].mxu0 %v6043_v43  ;;  %v6045_v24 = vmul.f32 %v6037_v35, %v6026_v5 }
 0x9f5   :  { %v6046_v16 = vmul.f32 %v6038_v60, %v6028_v8 }
 0x9f7   :  { %6396 = vmatprep.mubr.msk.f32.mxu0 %vm701_vm1, %v6046_v16 }
 0x9f8   :  { %6159 = vmatmul.mubr.f32.gmra.mrb[110].mxu0 %v6045_v24 }
 0xabf   :  { %v6145_v27 = vpop.f32.mrb[104].mxu0 }
 0xac0   :  { %v6147_v55 = vpop.f32.mrb[105].mxu0 }
 0xac3   :  { %v6150_v54 = vpop.f32.mrb[106].mxu0 }
 0xac4   :  { %v7532_v38 = vpack.c.bf16 %v6150_v54, %v6145_v27  ;;  %v6152_v14 = vpop.f32.mrb[107].mxu0 }
 0xac6   :  { %7533 = vmatpush3.bf16.msra.mxu1 %v7532_v38 }
 0xac7   :  { %v6155_v10 = vpop.f32.mrb[108].mxu0  ;;  %7534 = vmatprep.subr.bf16.mxu1 %v13643_v59 }
 0xac8   :  { %v6157_v6 = vpop.f32.mrb[109].mxu0 }
 0xacb   :  { %v6160_v42 = vpop.f32.mrb[110].mxu0 }
 0xacc   :  { %v7535_v32 = vpack.c.bf16 %v6160_v42, %v6155_v10  ;;  %v6162_v51 = vpop.f32.mrb[111].mxu0 }
 0xace   :  { %7536 = vmatpush3.bf16.msra.mxu1 %v7535_v32 }
 0xad1   :  { %7135 = vmatmul.mubr.msk.f32.vlgmr.msra.gmra.mrb[128].mxu1 %vm701_vm1, %v6164_v7 }
 0xba4   :  { %v6241_v36 = vpop.f32.mrb[128].mxu1 }
 0xba5   :  { %v6242_v59 = vadd.f32 %v6397_v37, %v6241_v36  ;;  %v7136_v20 = vpop.f32.mrb[129].mxu1 }
 0xba7   :  { %6246 = vst.msk [vmem:[#allocation2] sm:$0x3] %vm6245_vm10, %v6242_v59 }
 0xba8   :  { %8141 = shalt.err (!%p8138_p4)
}
 0xba9   :  { %s8142_s18 = scalar_lea.hbm %s13196_s15, 32 }
 0xbaa   :  { %p8143_p5 = scmp.ne.s32.totalorder %s13196_s15, %s8142_s18  ;;  %p8146_p6 = scmp.lt.u32.totalorder %s8142_s18, %s13196_s15 }
 0xbac   :  { %p8148_p7 = pnand %p8146_p6, %p8143_p5 }
 0xbae   :  { %8151 = shalt.err (!%p8148_p7)
}
 0xbaf   :  { %6256 = dma.vmem_to_hbm [thread:$0]  %s6254_s2, 32, %s13196_s15, [#allocation3]  }
 0xbb0   :  { %8152 = dma.done.wait [#allocation3], 32  }
 0xbb1   :  { %8153 = vsyncadd [#allocation3], 4294967264 }
 0xbb2   :  { %6260 = vsyncpa [#allocation3], 1 }

</bundles_post_ra>
